<compile_context>
chip_gen: v5e
topology: v5e:2x2
jax: 0.10.0
libtpu: 0.0.40
codegen_flags: <defaults>
</compile_context>

<pallas_src>
import math
from dataclasses import dataclass
from functools import partial

import numpy as np
import jax
import jax.numpy as jnp
from jax import lax
from jax.experimental import pallas as pl
from jax.experimental.pallas import tpu as pltpu  # noqa: F401  (imported for TPU backend availability)

# Storage dtype for all matmul weights (f32 accumulation on the MXU).
WDTYPE = jnp.bfloat16


# --------------------------- in-kernel helpers (pure fns on values) ---------------------------

def _wdot(x, w):
    """x @ w on the MXU; the activation is cast to the weight dtype, accumulate in f32."""
    return jnp.dot(x.astype(w.dtype), w, preferred_element_type=jnp.float32)


def _layer_norm(x, g, b, eps=1e-5):
    mean = jnp.mean(x, axis=-1, keepdims=True)
    var = jnp.mean(jnp.square(x - mean), axis=-1, keepdims=True)
    return (x - mean) * lax.rsqrt(var + eps) * g + b


def _mha(q_all, k_all, v_all, mask, out_w, out_b, n_head):
    """Multi-head attention on flattened (batch*time, E) rows.

    q_all: (Mq, E) f32, k_all/v_all: (Mk, E) f32, mask: (Mq, Mk) additive f32.
    out_w: (E, E) bf16 pre-transposed output projection.
    Heads are processed with a static unroll; the head outputs are lane-concatenated
    and projected with ONE matmul (instead of n_head under-filled pushes).
    """
    mq, e = q_all.shape
    dh = e // n_head
    scale = 1.0 / math.sqrt(dh)
    heads = []
    for h in range(n_head):                      # static unroll, H=4
        q = q_all[:, h * dh:(h + 1) * dh]
        k = k_all[:, h * dh:(h + 1) * dh]
        v = v_all[:, h * dh:(h + 1) * dh]
        s = lax.dot_general(q, k, (((1,), (1,)), ((), ())),
                            preferred_element_type=jnp.float32) * scale + mask
        s = s - jnp.max(s, axis=-1, keepdims=True)
        p = jnp.exp(s)
        p = p * pl.reciprocal(jnp.sum(p, axis=-1, keepdims=True), approx=True)
        heads.append(jnp.dot(p, v, preferred_element_type=jnp.float32))   # (Mq, Dh)
    o = jnp.concatenate(heads, axis=-1)          # (Mq, E) lane-concat == torch head concat
    return _wdot(o, out_w) + out_b               # single output-projection push


def _ffn(x, w1, b1, w2, b2):
    # (M, 2048) intermediate never leaves VMEM; early-cast ReLU output to bf16.
    h = jnp.maximum(_wdot(x, w1) + b1, 0.0).astype(w2.dtype)
    return jnp.dot(h, w2, preferred_element_type=jnp.float32) + b2


# ------------------------------------- single fused kernel ------------------------------------

def _transformer_kernel(
        uy_ctx_ref, uy_new_ref,
        # encoder params
        e_wte_ref, e_wteb_ref, e_pos_ref, e_mask_ref,
        e_qkvw_ref, e_qkvb_ref, e_ow_ref, e_ob_ref, e_ln1g_ref, e_ln1b_ref,
        e_f1w_ref, e_f1b_ref, e_f2w_ref, e_f2b_ref, e_ln2g_ref, e_ln2b_ref,
        e_lnfg_ref, e_lnfb_ref,
        # decoder params
        d_wte_ref, d_wteb_ref, d_pos_ref, d_smask_ref, d_cmask_ref,
        d_sqkvw_ref, d_sqkvb_ref, d_sow_ref, d_sob_ref, d_ln1g_ref, d_ln1b_ref,
        d_cqw_ref, d_cqb_ref, d_ckvw_ref, d_ckvb_ref, d_cow_ref, d_cob_ref,
        d_ln2g_ref, d_ln2b_ref,
        d_f1w_ref, d_f1b_ref, d_f2w_ref, d_f2b_ref, d_ln3g_ref, d_ln3b_ref,
        d_lnfg_ref, d_lnfb_ref, hw_ref, hb_ref,
        o_ref, *, n_layer, n_head):
    e = e_wte_ref.shape[1]

    # ------------------------------ encoder stack ------------------------------
    # fused token embedding (single matmul) + positional embedding
    x = _wdot(uy_ctx_ref[...], e_wte_ref[...]) + e_wteb_ref[...] + e_pos_ref[...]
    mask = e_mask_ref[...]
    for l in range(n_layer):                     # static unroll over layers
        qkv = _wdot(x, e_qkvw_ref[l]) + e_qkvb_ref[l]            # fused Q/K/V (M, 3E)
        sa = _mha(qkv[:, :e], qkv[:, e:2 * e], qkv[:, 2 * e:], mask,
                  e_ow_ref[l], e_ob_ref[l], n_head)
        x = _layer_norm(x + sa, e_ln1g_ref[l], e_ln1b_ref[l])    # residual + post-norm
        ff = _ffn(x, e_f1w_ref[l], e_f1b_ref[l], e_f2w_ref[l], e_f2b_ref[l])
        x = _layer_norm(x + ff, e_ln2g_ref[l], e_ln2b_ref[l])
    mem = _layer_norm(x, e_lnfg_ref[...], e_lnfb_ref[...])        # encoder memory: stays in VMEM

    # ------------------------------ decoder stack ------------------------------
    x = _wdot(uy_new_ref[...], d_wte_ref[...]) + d_wteb_ref[...] + d_pos_ref[...]
    smask = d_smask_ref[...]
    cmask = d_cmask_ref[...]
    for l in range(n_layer):
        # self-attention (no causal mask: the reference PyTorch forward passes no masks)
        qkv = _wdot(x, d_sqkvw_ref[l]) + d_sqkvb_ref[l]
        sa = _mha(qkv[:, :e], qkv[:, e:2 * e], qkv[:, 2 * e:], smask,
                  d_sow_ref[l], d_sob_ref[l], n_head)
        x = _layer_norm(x + sa, d_ln1g_ref[l], d_ln1b_ref[l])
        # cross-attention over encoder memory (fused K/V projection)
        q = _wdot(x, d_cqw_ref[l]) + d_cqb_ref[l]
        kv = _wdot(mem, d_ckvw_ref[l]) + d_ckvb_ref[l]
        ca = _mha(q, kv[:, :e], kv[:, e:], cmask, d_cow_ref[l], d_cob_ref[l], n_head)
        x = _layer_norm(x + ca, d_ln2g_ref[l], d_ln2b_ref[l])
        # FFN
        ff = _ffn(x, d_f1w_ref[l], d_f1b_ref[l], d_f2w_ref[l], d_f2b_ref[l])
        x = _layer_norm(x + ff, d_ln3g_ref[l], d_ln3b_ref[l])
    x = _layer_norm(x, d_lnfg_ref[...], d_lnfb_ref[...])
    # lm_head fused into the same kernel
    o_ref[...] = (_wdot(x, hw_ref[...]) + hb_ref[...]).astype(o_ref.dtype)


# ------------------------------------------ config --------------------------------------------

@dataclass
class Config:
    n_u: int = 3
    n_y: int = 2
    n_embd: int = 32
    n_head: int = 4
    n_layer: int = 2
    seq_len_ctx: int = 8
    seq_len_new: int = 4
    dim_ff: int = 2048  # nn.Transformer default dim_feedforward


# --------------------------------------- param init -------------------------------------------

def _dense_init(key, out_f, in_f):
    kw, kb = jax.random.split(key)
    lim = 1.0 / math.sqrt(in_f)
    w = jax.random.uniform(kw, (out_f, in_f), jnp.float32, -lim, lim)
    b = jax.random.uniform(kb, (out_f,), jnp.float32, -lim, lim)
    return w, b


def _mha_init(key, e):
    k1, k2 = jax.random.split(key)
    lim = math.sqrt(6.0 / (3 * e + e))  # xavier_uniform as in PyTorch MHA
    in_w = jax.random.uniform(k1, (3 * e, e), jnp.float32, -lim, lim)
    in_b = jnp.zeros((3 * e,), jnp.float32)
    out_w, _ = _dense_init(k2, e, e)
    out_b = jnp.zeros((e,), jnp.float32)
    return {"in_w": in_w, "in_b": in_b, "out_w": out_w, "out_b": out_b}


def init_params(key, cfg: Config):
    e, ff = cfg.n_embd, cfg.dim_ff
    keys = iter(jax.random.split(key, 64))
    p = {}
    p["enc_wte_w"], p["enc_wte_b"] = _dense_init(next(keys), e, cfg.n_u + cfg.n_y)
    p["dec_wte_w"], p["dec_wte_b"] = _dense_init(next(keys), e, cfg.n_u + cfg.n_y)
    p["enc_wpe"] = 0.02 * jax.random.normal(next(keys), (cfg.seq_len_ctx, e), jnp.float32)
    p["dec_wpe"] = 0.02 * jax.random.normal(next(keys), (cfg.seq_len_new, e), jnp.float32)

    enc_layers = []
    for _ in range(cfg.n_layer):
        lw1, lb1 = _dense_init(next(keys), ff, e)
        lw2, lb2 = _dense_init(next(keys), e, ff)
        enc_layers.append({
            "self_attn": _mha_init(next(keys), e),
            "lin1_w": lw1, "lin1_b": lb1, "lin2_w": lw2, "lin2_b": lb2,
            "norm1_g": jnp.ones((e,)), "norm1_b": jnp.zeros((e,)),
            "norm2_g": jnp.ones((e,)), "norm2_b": jnp.zeros((e,)),
        })
    p["enc_layers"] = enc_layers
    p["enc_norm_g"], p["enc_norm_b"] = jnp.ones((e,)), jnp.zeros((e,))

    dec_layers = []
    for _ in range(cfg.n_layer):
        lw1, lb1 = _dense_init(next(keys), ff, e)
        lw2, lb2 = _dense_init(next(keys), e, ff)
        dec_layers.append({
            "self_attn": _mha_init(next(keys), e),
            "cross_attn": _mha_init(next(keys), e),
            "lin1_w": lw1, "lin1_b": lb1, "lin2_w": lw2, "lin2_b": lb2,
            "norm1_g": jnp.ones((e,)), "norm1_b": jnp.zeros((e,)),
            "norm2_g": jnp.ones((e,)), "norm2_b": jnp.zeros((e,)),
            "norm3_g": jnp.ones((e,)), "norm3_b": jnp.zeros((e,)),
        })
    p["dec_layers"] = dec_layers
    p["dec_norm_g"], p["dec_norm_b"] = jnp.ones((e,)), jnp.zeros((e,))

    p["lm_head_w"], p["lm_head_b"] = _dense_init(next(keys), cfg.n_y, e)
    return p


# -------------------- one-time kernel-layout preparation (no per-call work) --------------------

def _block_mask(mq, tq, mk, tk):
    """Additive mask (0 / -1e9) so flattened rows only attend within their own batch element."""
    rb = np.arange(mq) // tq
    cb = np.arange(mk) // tk
    return jnp.asarray(np.where(rb[:, None] == cb[None, :], 0.0, -1e9), jnp.float32)


def prepare_params(p, cfg: Config, batch: int):
    e = cfg.n_embd
    f32 = jnp.float32
    t, t_new = cfg.seq_len_ctx, cfg.seq_len_new
    m, m_new = batch * t, batch * t_new

    def tw(w):                     # PyTorch (out, in) -> (in, out) bf16, so kernels do x @ w
        return jnp.asarray(w.T, WDTYPE)

    def row(b):
        return jnp.asarray(b, f32).reshape(1, -1)

    def enc_layer(lp):
        a = lp["self_attn"]
        return {
            "qkv_w": tw(a["in_w"]), "qkv_b": row(a["in_b"]),
            "out_w": tw(a["out_w"]), "out_b": row(a["out_b"]),
            "ln1_g": row(lp["norm1_g"]), "ln1_b": row(lp["norm1_b"]),
            "f1_w": tw(lp["lin1_w"]), "f1_b": row(lp["lin1_b"]),
            "f2_w": tw(lp["lin2_w"]), "f2_b": row(lp["lin2_b"]),
            "ln2_g": row(lp["norm2_g"]), "ln2_b": row(lp["norm2_b"]),
        }

    def dec_layer(lp):
        sa, ca = lp["self_attn"], lp["cross_attn"]
        return {
            "sa_qkv_w": tw(sa["in_w"]), "sa_qkv_b": row(sa["in_b"]),
            "sa_out_w": tw(sa["out_w"]), "sa_out_b": row(sa["out_b"]),
            "ln1_g": row(lp["norm1_g"]), "ln1_b": row(lp["norm1_b"]),
            "ca_q_w": tw(ca["in_w"][:e]), "ca_q_b": row(ca["in_b"][:e]),
            "ca_kv_w": tw(ca["in_w"][e:]), "ca_kv_b": row(ca["in_b"][e:]),
            "ca_out_w": tw(ca["out_w"]), "ca_out_b": row(ca["out_b"]),
            "ln2_g": row(lp["norm2_g"]), "ln2_b": row(lp["norm2_b"]),
            "f1_w": tw(lp["lin1_w"]), "f1_b": row(lp["lin1_b"]),
            "f2_w": tw(lp["lin2_w"]), "f2_b": row(lp["lin2_b"]),
            "ln3_g": row(lp["norm3_g"]), "ln3_b": row(lp["norm3_b"]),
        }

    def stack(dicts):  # stack per-layer leaves along a leading layer axis
        return {k: jnp.stack([d[k] for d in dicts]) for k in dicts[0]}

    return {
        "enc": {
            "wte_w": tw(p["enc_wte_w"]),            # (n_u + n_y, E) fused embedding weight
            "wte_b": row(p["enc_wte_b"]),
            "pos": jnp.tile(jnp.asarray(p["enc_wpe"][:t], f32), (batch, 1)),     # (M, E)
            "mask": _block_mask(m, t, m, t),
            "layers": stack([enc_layer(lp) for lp in p["enc_layers"]]),
            "lnf_g": row(p["enc_norm_g"]), "lnf_b": row(p["enc_norm_b"]),
        },
        "dec": {
            "wte_w": tw(p["dec_wte_w"]),
            "wte_b": row(p["dec_wte_b"]),
            "pos": jnp.tile(jnp.asarray(p["dec_wpe"][:t_new], f32), (batch, 1)),  # (M_new, E)
            "smask": _block_mask(m_new, t_new, m_new, t_new),
            "cmask": _block_mask(m_new, t_new, m, t),
            "layers": stack([dec_layer(lp) for lp in p["dec_layers"]]),
            "lnf_g": row(p["dec_norm_g"]), "lnf_b": row(p["dec_norm_b"]),
        },
        "head_w": tw(p["lm_head_w"]),
        "head_b": row(p["lm_head_b"]),
    }


# --------------------------------------- forward ----------------------------------------------

def transformer_forward(pp, y, u, y_new, u_new, cfg: Config):
    b, t, n_u = u.shape
    t_new = u_new.shape[1]
    n_y = y.shape[-1]
    n_layer, n_head = cfg.n_layer, cfg.n_head
    m, m_new = b * t, b * t_new

    # fused embedding operand: cat(u, y) flattened to (M, n_u + n_y)
    uy_ctx = jnp.concatenate([u, y], axis=-1).reshape(m, n_u + n_y)
    uy_new = jnp.concatenate([u_new, y_new], axis=-1).reshape(m_new, n_u + n_y)

    enc, dec = pp["enc"], pp["dec"]
    el, dl = enc["layers"], dec["layers"]

    operands = [
        uy_ctx, uy_new,
        # encoder
        enc["wte_w"], enc["wte_b"], enc["pos"], enc["mask"],
        el["qkv_w"], el["qkv_b"], el["out_w"], el["out_b"],
        el["ln1_g"], el["ln1_b"],
        el["f1_w"], el["f1_b"], el["f2_w"], el["f2_b"],
        el["ln2_g"], el["ln2_b"],
        enc["lnf_g"], enc["lnf_b"],
        # decoder
        dec["wte_w"], dec["wte_b"], dec["pos"], dec["smask"], dec["cmask"],
        dl["sa_qkv_w"], dl["sa_qkv_b"], dl["sa_out_w"], dl["sa_out_b"],
        dl["ln1_g"], dl["ln1_b"],
        dl["ca_q_w"], dl["ca_q_b"], dl["ca_kv_w"], dl["ca_kv_b"],
        dl["ca_out_w"], dl["ca_out_b"],
        dl["ln2_g"], dl["ln2_b"],
        dl["f1_w"], dl["f1_b"], dl["f2_w"], dl["f2_b"],
        dl["ln3_g"], dl["ln3_b"],
        dec["lnf_g"], dec["lnf_b"],
        pp["head_w"], pp["head_b"],
    ]
    out = pl.pallas_call(
        partial(_transformer_kernel, n_layer=n_layer, n_head=n_head),
        out_shape=jax.ShapeDtypeStruct((m_new, n_y), jnp.float32),
    )(*operands)
    return out.reshape(b, t_new, n_y)


# ----------------------------------------- main ------------------------------------------------

if __name__ == "__main__":
    cfg = Config()
    B = 2

    root = jax.random.PRNGKey(0)
    k_params, k_data = jax.random.split(root)
    params = prepare_params(init_params(k_params, cfg), cfg, batch=B)

    k0, k1, k2, k3 = jax.random.split(k_data, 4)
    y = jax.random.normal(k0, (B, cfg.seq_len_ctx, cfg.n_y), jnp.float32)
    u = jax.random.normal(k1, (B, cfg.seq_len_ctx, cfg.n_u), jnp.float32)
    y_new = jax.random.normal(k2, (B, cfg.seq_len_new, cfg.n_y), jnp.float32)
    u_new = jax.random.normal(k3, (B, cfg.seq_len_new, cfg.n_u), jnp.float32)

    fwd = jax.jit(partial(transformer_forward, cfg=cfg))
    out = jax.block_until_ready(fwd(params, y, u, y_new, u_new))

    assert out.shape == (B, cfg.seq_len_new, cfg.n_y), out.shape
    assert bool(jnp.all(jnp.isfinite(out)))
    print("KERNEL_OK")
</pallas_src>

<mosaic_0001>
module attributes {stable_mosaic.version = 11 : i64} {
  func.func @_transformer_kernel(%arg0: memref<16x5xf32, #tpu.memory_space<vmem>>, %arg1: memref<8x5xf32, #tpu.memory_space<vmem>>, %arg2: memref<5x32xbf16, #tpu.memory_space<vmem>>, %arg3: memref<1x32xf32, #tpu.memory_space<vmem>>, %arg4: memref<16x32xf32, #tpu.memory_space<vmem>>, %arg5: memref<16x16xf32, #tpu.memory_space<vmem>>, %arg6: memref<2x32x96xbf16, #tpu.memory_space<vmem>>, %arg7: memref<2x1x96xf32, #tpu.memory_space<vmem>>, %arg8: memref<2x32x32xbf16, #tpu.memory_space<vmem>>, %arg9: memref<2x1x32xf32, #tpu.memory_space<vmem>>, %arg10: memref<2x1x32xf32, #tpu.memory_space<vmem>>, %arg11: memref<2x1x32xf32, #tpu.memory_space<vmem>>, %arg12: memref<2x32x2048xbf16, #tpu.memory_space<vmem>>, %arg13: memref<2x1x2048xf32, #tpu.memory_space<vmem>>, %arg14: memref<2x2048x32xbf16, #tpu.memory_space<vmem>>, %arg15: memref<2x1x32xf32, #tpu.memory_space<vmem>>, %arg16: memref<2x1x32xf32, #tpu.memory_space<vmem>>, %arg17: memref<2x1x32xf32, #tpu.memory_space<vmem>>, %arg18: memref<1x32xf32, #tpu.memory_space<vmem>>, %arg19: memref<1x32xf32, #tpu.memory_space<vmem>>, %arg20: memref<5x32xbf16, #tpu.memory_space<vmem>>, %arg21: memref<1x32xf32, #tpu.memory_space<vmem>>, %arg22: memref<8x32xf32, #tpu.memory_space<vmem>>, %arg23: memref<8x8xf32, #tpu.memory_space<vmem>>, %arg24: memref<8x16xf32, #tpu.memory_space<vmem>>, %arg25: memref<2x32x96xbf16, #tpu.memory_space<vmem>>, %arg26: memref<2x1x96xf32, #tpu.memory_space<vmem>>, %arg27: memref<2x32x32xbf16, #tpu.memory_space<vmem>>, %arg28: memref<2x1x32xf32, #tpu.memory_space<vmem>>, %arg29: memref<2x1x32xf32, #tpu.memory_space<vmem>>, %arg30: memref<2x1x32xf32, #tpu.memory_space<vmem>>, %arg31: memref<2x32x32xbf16, #tpu.memory_space<vmem>>, %arg32: memref<2x1x32xf32, #tpu.memory_space<vmem>>, %arg33: memref<2x32x64xbf16, #tpu.memory_space<vmem>>, %arg34: memref<2x1x64xf32, #tpu.memory_space<vmem>>, %arg35: memref<2x32x32xbf16, #tpu.memory_space<vmem>>, %arg36: memref<2x1x32xf32, #tpu.memory_space<vmem>>, %arg37: memref<2x1x32xf32, #tpu.memory_space<vmem>>, %arg38: memref<2x1x32xf32, #tpu.memory_space<vmem>>, %arg39: memref<2x32x2048xbf16, #tpu.memory_space<vmem>>, %arg40: memref<2x1x2048xf32, #tpu.memory_space<vmem>>, %arg41: memref<2x2048x32xbf16, #tpu.memory_space<vmem>>, %arg42: memref<2x1x32xf32, #tpu.memory_space<vmem>>, %arg43: memref<2x1x32xf32, #tpu.memory_space<vmem>>, %arg44: memref<2x1x32xf32, #tpu.memory_space<vmem>>, %arg45: memref<1x32xf32, #tpu.memory_space<vmem>>, %arg46: memref<1x32xf32, #tpu.memory_space<vmem>>, %arg47: memref<32x2xbf16, #tpu.memory_space<vmem>>, %arg48: memref<1x2xf32, #tpu.memory_space<vmem>>, %arg49: memref<8x2xf32, #tpu.memory_space<vmem>>) attributes {dimension_semantics = [], scalar_prefetch = 0 : i64, scratch_operands = 0 : i64, tpu.core_type = #tpu.core_type<tc>} {
    %c0 = arith.constant 0 : index
    %c0_0 = arith.constant 0 : index
    %0 = vector.load %arg0[%c0, %c0_0] : memref<16x5xf32, #tpu.memory_space<vmem>>, vector<16x5xf32>
    %c0_1 = arith.constant 0 : index
    %c0_2 = arith.constant 0 : index
    %1 = vector.load %arg2[%c0_1, %c0_2] : memref<5x32xbf16, #tpu.memory_space<vmem>>, vector<5x32xbf16>
    %2 = arith.truncf %0 : vector<16x5xf32> to vector<16x5xbf16>
    %cst = arith.constant dense<0.000000e+00> : vector<16x32xf32>
    %3 = tpu.matmul %2, %1, %cst {dimension_numbers = #tpu.dot_dimension_numbers<[1], [0], [0], [1], [0, 0, 1, 1], [], []>} : vector<16x5xbf16>, vector<5x32xbf16>, vector<16x32xf32> -> vector<16x32xf32>
    %c0_3 = arith.constant 0 : index
    %c0_4 = arith.constant 0 : index
    %4 = vector.load %arg3[%c0_3, %c0_4] : memref<1x32xf32, #tpu.memory_space<vmem>>, vector<1x32xf32>
    %5 = vector.broadcast %4 : vector<1x32xf32> to vector<16x32xf32>
    %6 = arith.addf %3, %5 : vector<16x32xf32>
    %c0_5 = arith.constant 0 : index
    %c0_6 = arith.constant 0 : index
    %7 = vector.load %arg4[%c0_5, %c0_6] : memref<16x32xf32, #tpu.memory_space<vmem>>, vector<16x32xf32>
    %8 = arith.addf %6, %7 : vector<16x32xf32>
    %c0_7 = arith.constant 0 : index
    %c0_8 = arith.constant 0 : index
    %9 = vector.load %arg5[%c0_7, %c0_8] : memref<16x16xf32, #tpu.memory_space<vmem>>, vector<16x16xf32>
    %c0_9 = arith.constant 0 : index
    %c0_10 = arith.constant 0 : index
    %c0_11 = arith.constant 0 : index
    %10 = vector.load %arg6[%c0_9, %c0_10, %c0_11] : memref<2x32x96xbf16, #tpu.memory_space<vmem>>, vector<1x32x96xbf16>
    %11 = vector.shape_cast %10 : vector<1x32x96xbf16> to vector<32x96xbf16>
    %12 = arith.truncf %8 : vector<16x32xf32> to vector<16x32xbf16>
    %cst_12 = arith.constant dense<0.000000e+00> : vector<16x96xf32>
    %13 = tpu.matmul %12, %11, %cst_12 {dimension_numbers = #tpu.dot_dimension_numbers<[1], [0], [0], [1], [0, 0, 1, 1], [], []>} : vector<16x32xbf16>, vector<32x96xbf16>, vector<16x96xf32> -> vector<16x96xf32>
    %c0_13 = arith.constant 0 : index
    %c0_14 = arith.constant 0 : index
    %c0_15 = arith.constant 0 : index
    %14 = vector.load %arg7[%c0_13, %c0_14, %c0_15] : memref<2x1x96xf32, #tpu.memory_space<vmem>>, vector<1x1x96xf32>
    %15 = vector.shape_cast %14 : vector<1x1x96xf32> to vector<1x96xf32>
    %16 = vector.broadcast %15 : vector<1x96xf32> to vector<16x96xf32>
    %17 = arith.addf %13, %16 : vector<16x96xf32>
    %18 = vector.extract_strided_slice %17 {offsets = [0, 0], sizes = [16, 32], strides = [1, 1]} : vector<16x96xf32> to vector<16x32xf32>
    %19 = vector.extract_strided_slice %17 {offsets = [0, 32], sizes = [16, 32], strides = [1, 1]} : vector<16x96xf32> to vector<16x32xf32>
    %20 = vector.extract_strided_slice %17 {offsets = [0, 64], sizes = [16, 32], strides = [1, 1]} : vector<16x96xf32> to vector<16x32xf32>
    %c0_16 = arith.constant 0 : index
    %c0_17 = arith.constant 0 : index
    %c0_18 = arith.constant 0 : index
    %21 = vector.load %arg8[%c0_16, %c0_17, %c0_18] : memref<2x32x32xbf16, #tpu.memory_space<vmem>>, vector<1x32x32xbf16>
    %22 = vector.shape_cast %21 : vector<1x32x32xbf16> to vector<32x32xbf16>
    %c0_19 = arith.constant 0 : index
    %c0_20 = arith.constant 0 : index
    %c0_21 = arith.constant 0 : index
    %23 = vector.load %arg9[%c0_19, %c0_20, %c0_21] : memref<2x1x32xf32, #tpu.memory_space<vmem>>, vector<1x1x32xf32>
    %24 = vector.shape_cast %23 : vector<1x1x32xf32> to vector<1x32xf32>
    %25 = vector.extract_strided_slice %18 {offsets = [0, 0], sizes = [16, 8], strides = [1, 1]} : vector<16x32xf32> to vector<16x8xf32>
    %26 = vector.extract_strided_slice %19 {offsets = [0, 0], sizes = [16, 8], strides = [1, 1]} : vector<16x32xf32> to vector<16x8xf32>
    %27 = vector.extract_strided_slice %20 {offsets = [0, 0], sizes = [16, 8], strides = [1, 1]} : vector<16x32xf32> to vector<16x8xf32>
    %cst_22 = arith.constant dense<0.000000e+00> : vector<16x16xf32>
    %28 = tpu.matmul %25, %26, %cst_22 {dimension_numbers = #tpu.dot_dimension_numbers<[1], [1], [0], [0], [0, 0, 1, 0], [], []>} : vector<16x8xf32>, vector<16x8xf32>, vector<16x16xf32> -> vector<16x16xf32>
    %cst_23 = arith.constant 0.353553385 : f32
    %29 = vector.broadcast %cst_23 : f32 to vector<16x16xf32>
    %30 = arith.mulf %28, %29 : vector<16x16xf32>
    %31 = arith.addf %30, %9 : vector<16x16xf32>
    %cst_24 = arith.constant dense<0xFF800000> : vector<16xf32>
    %32 = vector.multi_reduction <maximumf>, %31, %cst_24 [1] : vector<16x16xf32> to vector<16xf32>
    %33 = vector.shape_cast %32 : vector<16xf32> to vector<16x1xf32>
    %34 = vector.broadcast %33 : vector<16x1xf32> to vector<16x16xf32>
    %35 = arith.subf %31, %34 : vector<16x16xf32>
    %36 = math.exp %35 : vector<16x16xf32>
    %cst_25 = arith.constant dense<0.000000e+00> : vector<16xf32>
    %37 = vector.multi_reduction <add>, %36, %cst_25 [1] : vector<16x16xf32> to vector<16xf32>
    %38 = vector.shape_cast %37 : vector<16xf32> to vector<16x1xf32>
    %39 = tpu.reciprocal %38 {approx = true} : vector<16x1xf32> -> vector<16x1xf32>
    %40 = vector.broadcast %39 : vector<16x1xf32> to vector<16x16xf32>
    %41 = arith.mulf %36, %40 : vector<16x16xf32>
    %cst_26 = arith.constant dense<0.000000e+00> : vector<16x8xf32>
    %42 = tpu.matmul %41, %27, %cst_26 {dimension_numbers = #tpu.dot_dimension_numbers<[1], [0], [0], [1], [0, 0, 1, 1], [], []>} : vector<16x16xf32>, vector<16x8xf32>, vector<16x8xf32> -> vector<16x8xf32>
    %43 = vector.extract_strided_slice %18 {offsets = [0, 8], sizes = [16, 8], strides = [1, 1]} : vector<16x32xf32> to vector<16x8xf32>
    %44 = vector.extract_strided_slice %19 {offsets = [0, 8], sizes = [16, 8], strides = [1, 1]} : vector<16x32xf32> to vector<16x8xf32>
    %45 = vector.extract_strided_slice %20 {offsets = [0, 8], sizes = [16, 8], strides = [1, 1]} : vector<16x32xf32> to vector<16x8xf32>
    %cst_27 = arith.constant dense<0.000000e+00> : vector<16x16xf32>
    %46 = tpu.matmul %43, %44, %cst_27 {dimension_numbers = #tpu.dot_dimension_numbers<[1], [1], [0], [0], [0, 0, 1, 0], [], []>} : vector<16x8xf32>, vector<16x8xf32>, vector<16x16xf32> -> vector<16x16xf32>
    %cst_28 = arith.constant 0.353553385 : f32
    %47 = vector.broadcast %cst_28 : f32 to vector<16x16xf32>
    %48 = arith.mulf %46, %47 : vector<16x16xf32>
    %49 = arith.addf %48, %9 : vector<16x16xf32>
    %cst_29 = arith.constant dense<0xFF800000> : vector<16xf32>
    %50 = vector.multi_reduction <maximumf>, %49, %cst_29 [1] : vector<16x16xf32> to vector<16xf32>
    %51 = vector.shape_cast %50 : vector<16xf32> to vector<16x1xf32>
    %52 = vector.broadcast %51 : vector<16x1xf32> to vector<16x16xf32>
    %53 = arith.subf %49, %52 : vector<16x16xf32>
    %54 = math.exp %53 : vector<16x16xf32>
    %cst_30 = arith.constant dense<0.000000e+00> : vector<16xf32>
    %55 = vector.multi_reduction <add>, %54, %cst_30 [1] : vector<16x16xf32> to vector<16xf32>
    %56 = vector.shape_cast %55 : vector<16xf32> to vector<16x1xf32>
    %57 = tpu.reciprocal %56 {approx = true} : vector<16x1xf32> -> vector<16x1xf32>
    %58 = vector.broadcast %57 : vector<16x1xf32> to vector<16x16xf32>
    %59 = arith.mulf %54, %58 : vector<16x16xf32>
    %cst_31 = arith.constant dense<0.000000e+00> : vector<16x8xf32>
    %60 = tpu.matmul %59, %45, %cst_31 {dimension_numbers = #tpu.dot_dimension_numbers<[1], [0], [0], [1], [0, 0, 1, 1], [], []>} : vector<16x16xf32>, vector<16x8xf32>, vector<16x8xf32> -> vector<16x8xf32>
    %61 = vector.extract_strided_slice %18 {offsets = [0, 16], sizes = [16, 8], strides = [1, 1]} : vector<16x32xf32> to vector<16x8xf32>
    %62 = vector.extract_strided_slice %19 {offsets = [0, 16], sizes = [16, 8], strides = [1, 1]} : vector<16x32xf32> to vector<16x8xf32>
    %63 = vector.extract_strided_slice %20 {offsets = [0, 16], sizes = [16, 8], strides = [1, 1]} : vector<16x32xf32> to vector<16x8xf32>
    %cst_32 = arith.constant dense<0.000000e+00> : vector<16x16xf32>
    %64 = tpu.matmul %61, %62, %cst_32 {dimension_numbers = #tpu.dot_dimension_numbers<[1], [1], [0], [0], [0, 0, 1, 0], [], []>} : vector<16x8xf32>, vector<16x8xf32>, vector<16x16xf32> -> vector<16x16xf32>
    %cst_33 = arith.constant 0.353553385 : f32
    %65 = vector.broadcast %cst_33 : f32 to vector<16x16xf32>
    %66 = arith.mulf %64, %65 : vector<16x16xf32>
    %67 = arith.addf %66, %9 : vector<16x16xf32>
    %cst_34 = arith.constant dense<0xFF800000> : vector<16xf32>
    %68 = vector.multi_reduction <maximumf>, %67, %cst_34 [1] : vector<16x16xf32> to vector<16xf32>
    %69 = vector.shape_cast %68 : vector<16xf32> to vector<16x1xf32>
    %70 = vector.broadcast %69 : vector<16x1xf32> to vector<16x16xf32>
    %71 = arith.subf %67, %70 : vector<16x16xf32>
    %72 = math.exp %71 : vector<16x16xf32>
    %cst_35 = arith.constant dense<0.000000e+00> : vector<16xf32>
    %73 = vector.multi_reduction <add>, %72, %cst_35 [1] : vector<16x16xf32> to vector<16xf32>
    %74 = vector.shape_cast %73 : vector<16xf32> to vector<16x1xf32>
    %75 = tpu.reciprocal %74 {approx = true} : vector<16x1xf32> -> vector<16x1xf32>
    %76 = vector.broadcast %75 : vector<16x1xf32> to vector<16x16xf32>
    %77 = arith.mulf %72, %76 : vector<16x16xf32>
    %cst_36 = arith.constant dense<0.000000e+00> : vector<16x8xf32>
    %78 = tpu.matmul %77, %63, %cst_36 {dimension_numbers = #tpu.dot_dimension_numbers<[1], [0], [0], [1], [0, 0, 1, 1], [], []>} : vector<16x16xf32>, vector<16x8xf32>, vector<16x8xf32> -> vector<16x8xf32>
    %79 = vector.extract_strided_slice %18 {offsets = [0, 24], sizes = [16, 8], strides = [1, 1]} : vector<16x32xf32> to vector<16x8xf32>
    %80 = vector.extract_strided_slice %19 {offsets = [0, 24], sizes = [16, 8], strides = [1, 1]} : vector<16x32xf32> to vector<16x8xf32>
    %81 = vector.extract_strided_slice %20 {offsets = [0, 24], sizes = [16, 8], strides = [1, 1]} : vector<16x32xf32> to vector<16x8xf32>
    %cst_37 = arith.constant dense<0.000000e+00> : vector<16x16xf32>
    %82 = tpu.matmul %79, %80, %cst_37 {dimension_numbers = #tpu.dot_dimension_numbers<[1], [1], [0], [0], [0, 0, 1, 0], [], []>} : vector<16x8xf32>, vector<16x8xf32>, vector<16x16xf32> -> vector<16x16xf32>
    %cst_38 = arith.constant 0.353553385 : f32
    %83 = vector.broadcast %cst_38 : f32 to vector<16x16xf32>
    %84 = arith.mulf %82, %83 : vector<16x16xf32>
    %85 = arith.addf %84, %9 : vector<16x16xf32>
    %cst_39 = arith.constant dense<0xFF800000> : vector<16xf32>
    %86 = vector.multi_reduction <maximumf>, %85, %cst_39 [1] : vector<16x16xf32> to vector<16xf32>
    %87 = vector.shape_cast %86 : vector<16xf32> to vector<16x1xf32>
    %88 = vector.broadcast %87 : vector<16x1xf32> to vector<16x16xf32>
    %89 = arith.subf %85, %88 : vector<16x16xf32>
    %90 = math.exp %89 : vector<16x16xf32>
    %cst_40 = arith.constant dense<0.000000e+00> : vector<16xf32>
    %91 = vector.multi_reduction <add>, %90, %cst_40 [1] : vector<16x16xf32> to vector<16xf32>
    %92 = vector.shape_cast %91 : vector<16xf32> to vector<16x1xf32>
    %93 = tpu.reciprocal %92 {approx = true} : vector<16x1xf32> -> vector<16x1xf32>
    %94 = vector.broadcast %93 : vector<16x1xf32> to vector<16x16xf32>
    %95 = arith.mulf %90, %94 : vector<16x16xf32>
    %cst_41 = arith.constant dense<0.000000e+00> : vector<16x8xf32>
    %96 = tpu.matmul %95, %81, %cst_41 {dimension_numbers = #tpu.dot_dimension_numbers<[1], [0], [0], [1], [0, 0, 1, 1], [], []>} : vector<16x16xf32>, vector<16x8xf32>, vector<16x8xf32> -> vector<16x8xf32>
    %97 = tpu.concatenate %42, %60, %78, %96 in 1 : vector<16x8xf32>, vector<16x8xf32>, vector<16x8xf32>, vector<16x8xf32> -> vector<16x32xf32>
    %98 = arith.truncf %97 : vector<16x32xf32> to vector<16x32xbf16>
    %cst_42 = arith.constant dense<0.000000e+00> : vector<16x32xf32>
    %99 = tpu.matmul %98, %22, %cst_42 {dimension_numbers = #tpu.dot_dimension_numbers<[1], [0], [0], [1], [0, 0, 1, 1], [], []>} : vector<16x32xbf16>, vector<32x32xbf16>, vector<16x32xf32> -> vector<16x32xf32>
    %100 = vector.broadcast %24 : vector<1x32xf32> to vector<16x32xf32>
    %101 = arith.addf %99, %100 : vector<16x32xf32>
    %102 = arith.addf %8, %101 : vector<16x32xf32>
    %c0_43 = arith.constant 0 : index
    %c0_44 = arith.constant 0 : index
    %c0_45 = arith.constant 0 : index
    %103 = vector.load %arg10[%c0_43, %c0_44, %c0_45] : memref<2x1x32xf32, #tpu.memory_space<vmem>>, vector<1x1x32xf32>
    %104 = vector.shape_cast %103 : vector<1x1x32xf32> to vector<1x32xf32>
    %c0_46 = arith.constant 0 : index
    %c0_47 = arith.constant 0 : index
    %c0_48 = arith.constant 0 : index
    %105 = vector.load %arg11[%c0_46, %c0_47, %c0_48] : memref<2x1x32xf32, #tpu.memory_space<vmem>>, vector<1x1x32xf32>
    %106 = vector.shape_cast %105 : vector<1x1x32xf32> to vector<1x32xf32>
    %cst_49 = arith.constant dense<0.000000e+00> : vector<16xf32>
    %107 = vector.multi_reduction <add>, %102, %cst_49 [1] : vector<16x32xf32> to vector<16xf32>
    %108 = vector.shape_cast %107 : vector<16xf32> to vector<16x1xf32>
    %cst_50 = arith.constant 3.200000e+01 : f32
    %109 = vector.broadcast %cst_50 : f32 to vector<16x1xf32>
    %110 = arith.divf %108, %109 : vector<16x1xf32>
    %111 = vector.broadcast %110 : vector<16x1xf32> to vector<16x32xf32>
    %112 = arith.subf %102, %111 : vector<16x32xf32>
    %113 = arith.mulf %112, %112 : vector<16x32xf32>
    %cst_51 = arith.constant dense<0.000000e+00> : vector<16xf32>
    %114 = vector.multi_reduction <add>, %113, %cst_51 [1] : vector<16x32xf32> to vector<16xf32>
    %115 = vector.shape_cast %114 : vector<16xf32> to vector<16x1xf32>
    %cst_52 = arith.constant 3.200000e+01 : f32
    %116 = vector.broadcast %cst_52 : f32 to vector<16x1xf32>
    %117 = arith.divf %115, %116 : vector<16x1xf32>
    %118 = vector.broadcast %110 : vector<16x1xf32> to vector<16x32xf32>
    %119 = arith.subf %102, %118 : vector<16x32xf32>
    %cst_53 = arith.constant 9.99999974E-6 : f32
    %120 = vector.broadcast %cst_53 : f32 to vector<16x1xf32>
    %121 = arith.addf %117, %120 : vector<16x1xf32>
    %122 = math.rsqrt %121 : vector<16x1xf32>
    %123 = vector.broadcast %122 : vector<16x1xf32> to vector<16x32xf32>
    %124 = arith.mulf %119, %123 : vector<16x32xf32>
    %125 = vector.broadcast %104 : vector<1x32xf32> to vector<16x32xf32>
    %126 = arith.mulf %124, %125 : vector<16x32xf32>
    %127 = vector.broadcast %106 : vector<1x32xf32> to vector<16x32xf32>
    %128 = arith.addf %126, %127 : vector<16x32xf32>
    %c0_54 = arith.constant 0 : index
    %c0_55 = arith.constant 0 : index
    %c0_56 = arith.constant 0 : index
    %129 = vector.load %arg12[%c0_54, %c0_55, %c0_56] : memref<2x32x2048xbf16, #tpu.memory_space<vmem>>, vector<1x32x2048xbf16>
    %130 = vector.shape_cast %129 : vector<1x32x2048xbf16> to vector<32x2048xbf16>
    %c0_57 = arith.constant 0 : index
    %c0_58 = arith.constant 0 : index
    %c0_59 = arith.constant 0 : index
    %131 = vector.load %arg13[%c0_57, %c0_58, %c0_59] : memref<2x1x2048xf32, #tpu.memory_space<vmem>>, vector<1x1x2048xf32>
    %132 = vector.shape_cast %131 : vector<1x1x2048xf32> to vector<1x2048xf32>
    %c0_60 = arith.constant 0 : index
    %c0_61 = arith.constant 0 : index
    %c0_62 = arith.constant 0 : index
    %133 = vector.load %arg14[%c0_60, %c0_61, %c0_62] : memref<2x2048x32xbf16, #tpu.memory_space<vmem>>, vector<1x2048x32xbf16>
    %134 = vector.shape_cast %133 : vector<1x2048x32xbf16> to vector<2048x32xbf16>
    %c0_63 = arith.constant 0 : index
    %c0_64 = arith.constant 0 : index
    %c0_65 = arith.constant 0 : index
    %135 = vector.load %arg15[%c0_63, %c0_64, %c0_65] : memref<2x1x32xf32, #tpu.memory_space<vmem>>, vector<1x1x32xf32>
    %136 = vector.shape_cast %135 : vector<1x1x32xf32> to vector<1x32xf32>
    %137 = arith.truncf %128 : vector<16x32xf32> to vector<16x32xbf16>
    %cst_66 = arith.constant dense<0.000000e+00> : vector<16x2048xf32>
    %138 = tpu.matmul %137, %130, %cst_66 {dimension_numbers = #tpu.dot_dimension_numbers<[1], [0], [0], [1], [0, 0, 1, 1], [], []>} : vector<16x32xbf16>, vector<32x2048xbf16>, vector<16x2048xf32> -> vector<16x2048xf32>
    %139 = vector.broadcast %132 : vector<1x2048xf32> to vector<16x2048xf32>
    %140 = arith.addf %138, %139 : vector<16x2048xf32>
    %cst_67 = arith.constant 0.000000e+00 : f32
    %141 = vector.broadcast %cst_67 : f32 to vector<16x2048xf32>
    %142 = arith.maximumf %140, %141 : vector<16x2048xf32>
    %143 = arith.truncf %142 : vector<16x2048xf32> to vector<16x2048xbf16>
    %cst_68 = arith.constant dense<0.000000e+00> : vector<16x32xf32>
    %144 = tpu.matmul %143, %134, %cst_68 {dimension_numbers = #tpu.dot_dimension_numbers<[1], [0], [0], [1], [0, 0, 1, 1], [], []>} : vector<16x2048xbf16>, vector<2048x32xbf16>, vector<16x32xf32> -> vector<16x32xf32>
    %145 = vector.broadcast %136 : vector<1x32xf32> to vector<16x32xf32>
    %146 = arith.addf %144, %145 : vector<16x32xf32>
    %147 = arith.addf %128, %146 : vector<16x32xf32>
    %c0_69 = arith.constant 0 : index
    %c0_70 = arith.constant 0 : index
    %c0_71 = arith.constant 0 : index
    %148 = vector.load %arg16[%c0_69, %c0_70, %c0_71] : memref<2x1x32xf32, #tpu.memory_space<vmem>>, vector<1x1x32xf32>
    %149 = vector.shape_cast %148 : vector<1x1x32xf32> to vector<1x32xf32>
    %c0_72 = arith.constant 0 : index
    %c0_73 = arith.constant 0 : index
    %c0_74 = arith.constant 0 : index
    %150 = vector.load %arg17[%c0_72, %c0_73, %c0_74] : memref<2x1x32xf32, #tpu.memory_space<vmem>>, vector<1x1x32xf32>
    %151 = vector.shape_cast %150 : vector<1x1x32xf32> to vector<1x32xf32>
    %cst_75 = arith.constant dense<0.000000e+00> : vector<16xf32>
    %152 = vector.multi_reduction <add>, %147, %cst_75 [1] : vector<16x32xf32> to vector<16xf32>
    %153 = vector.shape_cast %152 : vector<16xf32> to vector<16x1xf32>
    %cst_76 = arith.constant 3.200000e+01 : f32
    %154 = vector.broadcast %cst_76 : f32 to vector<16x1xf32>
    %155 = arith.divf %153, %154 : vector<16x1xf32>
    %156 = vector.broadcast %155 : vector<16x1xf32> to vector<16x32xf32>
    %157 = arith.subf %147, %156 : vector<16x32xf32>
    %158 = arith.mulf %157, %157 : vector<16x32xf32>
    %cst_77 = arith.constant dense<0.000000e+00> : vector<16xf32>
    %159 = vector.multi_reduction <add>, %158, %cst_77 [1] : vector<16x32xf32> to vector<16xf32>
    %160 = vector.shape_cast %159 : vector<16xf32> to vector<16x1xf32>
    %cst_78 = arith.constant 3.200000e+01 : f32
    %161 = vector.broadcast %cst_78 : f32 to vector<16x1xf32>
    %162 = arith.divf %160, %161 : vector<16x1xf32>
    %163 = vector.broadcast %155 : vector<16x1xf32> to vector<16x32xf32>
    %164 = arith.subf %147, %163 : vector<16x32xf32>
    %cst_79 = arith.constant 9.99999974E-6 : f32
    %165 = vector.broadcast %cst_79 : f32 to vector<16x1xf32>
    %166 = arith.addf %162, %165 : vector<16x1xf32>
    %167 = math.rsqrt %166 : vector<16x1xf32>
    %168 = vector.broadcast %167 : vector<16x1xf32> to vector<16x32xf32>
    %169 = arith.mulf %164, %168 : vector<16x32xf32>
    %170 = vector.broadcast %149 : vector<1x32xf32> to vector<16x32xf32>
    %171 = arith.mulf %169, %170 : vector<16x32xf32>
    %172 = vector.broadcast %151 : vector<1x32xf32> to vector<16x32xf32>
    %173 = arith.addf %171, %172 : vector<16x32xf32>
    %c1 = arith.constant 1 : index
    %c0_80 = arith.constant 0 : index
    %c0_81 = arith.constant 0 : index
    %174 = vector.load %arg6[%c1, %c0_80, %c0_81] : memref<2x32x96xbf16, #tpu.memory_space<vmem>>, vector<1x32x96xbf16>
    %175 = vector.shape_cast %174 : vector<1x32x96xbf16> to vector<32x96xbf16>
    %176 = arith.truncf %173 : vector<16x32xf32> to vector<16x32xbf16>
    %cst_82 = arith.constant dense<0.000000e+00> : vector<16x96xf32>
    %177 = tpu.matmul %176, %175, %cst_82 {dimension_numbers = #tpu.dot_dimension_numbers<[1], [0], [0], [1], [0, 0, 1, 1], [], []>} : vector<16x32xbf16>, vector<32x96xbf16>, vector<16x96xf32> -> vector<16x96xf32>
    %c1_83 = arith.constant 1 : index
    %c0_84 = arith.constant 0 : index
    %c0_85 = arith.constant 0 : index
    %178 = vector.load %arg7[%c1_83, %c0_84, %c0_85] : memref<2x1x96xf32, #tpu.memory_space<vmem>>, vector<1x1x96xf32>
    %179 = vector.shape_cast %178 : vector<1x1x96xf32> to vector<1x96xf32>
    %180 = vector.broadcast %179 : vector<1x96xf32> to vector<16x96xf32>
    %181 = arith.addf %177, %180 : vector<16x96xf32>
    %182 = vector.extract_strided_slice %181 {offsets = [0, 0], sizes = [16, 32], strides = [1, 1]} : vector<16x96xf32> to vector<16x32xf32>
    %183 = vector.extract_strided_slice %181 {offsets = [0, 32], sizes = [16, 32], strides = [1, 1]} : vector<16x96xf32> to vector<16x32xf32>
    %184 = vector.extract_strided_slice %181 {offsets = [0, 64], sizes = [16, 32], strides = [1, 1]} : vector<16x96xf32> to vector<16x32xf32>
    %c1_86 = arith.constant 1 : index
    %c0_87 = arith.constant 0 : index
    %c0_88 = arith.constant 0 : index
    %185 = vector.load %arg8[%c1_86, %c0_87, %c0_88] : memref<2x32x32xbf16, #tpu.memory_space<vmem>>, vector<1x32x32xbf16>
    %186 = vector.shape_cast %185 : vector<1x32x32xbf16> to vector<32x32xbf16>
    %c1_89 = arith.constant 1 : index
    %c0_90 = arith.constant 0 : index
    %c0_91 = arith.constant 0 : index
    %187 = vector.load %arg9[%c1_89, %c0_90, %c0_91] : memref<2x1x32xf32, #tpu.memory_space<vmem>>, vector<1x1x32xf32>
    %188 = vector.shape_cast %187 : vector<1x1x32xf32> to vector<1x32xf32>
    %189 = vector.extract_strided_slice %182 {offsets = [0, 0], sizes = [16, 8], strides = [1, 1]} : vector<16x32xf32> to vector<16x8xf32>
    %190 = vector.extract_strided_slice %183 {offsets = [0, 0], sizes = [16, 8], strides = [1, 1]} : vector<16x32xf32> to vector<16x8xf32>
    %191 = vector.extract_strided_slice %184 {offsets = [0, 0], sizes = [16, 8], strides = [1, 1]} : vector<16x32xf32> to vector<16x8xf32>
    %cst_92 = arith.constant dense<0.000000e+00> : vector<16x16xf32>
    %192 = tpu.matmul %189, %190, %cst_92 {dimension_numbers = #tpu.dot_dimension_numbers<[1], [1], [0], [0], [0, 0, 1, 0], [], []>} : vector<16x8xf32>, vector<16x8xf32>, vector<16x16xf32> -> vector<16x16xf32>
    %cst_93 = arith.constant 0.353553385 : f32
    %193 = vector.broadcast %cst_93 : f32 to vector<16x16xf32>
    %194 = arith.mulf %192, %193 : vector<16x16xf32>
    %195 = arith.addf %194, %9 : vector<16x16xf32>
    %cst_94 = arith.constant dense<0xFF800000> : vector<16xf32>
    %196 = vector.multi_reduction <maximumf>, %195, %cst_94 [1] : vector<16x16xf32> to vector<16xf32>
    %197 = vector.shape_cast %196 : vector<16xf32> to vector<16x1xf32>
    %198 = vector.broadcast %197 : vector<16x1xf32> to vector<16x16xf32>
    %199 = arith.subf %195, %198 : vector<16x16xf32>
    %200 = math.exp %199 : vector<16x16xf32>
    %cst_95 = arith.constant dense<0.000000e+00> : vector<16xf32>
    %201 = vector.multi_reduction <add>, %200, %cst_95 [1] : vector<16x16xf32> to vector<16xf32>
    %202 = vector.shape_cast %201 : vector<16xf32> to vector<16x1xf32>
    %203 = tpu.reciprocal %202 {approx = true} : vector<16x1xf32> -> vector<16x1xf32>
    %204 = vector.broadcast %203 : vector<16x1xf32> to vector<16x16xf32>
    %205 = arith.mulf %200, %204 : vector<16x16xf32>
    %cst_96 = arith.constant dense<0.000000e+00> : vector<16x8xf32>
    %206 = tpu.matmul %205, %191, %cst_96 {dimension_numbers = #tpu.dot_dimension_numbers<[1], [0], [0], [1], [0, 0, 1, 1], [], []>} : vector<16x16xf32>, vector<16x8xf32>, vector<16x8xf32> -> vector<16x8xf32>
    %207 = vector.extract_strided_slice %182 {offsets = [0, 8], sizes = [16, 8], strides = [1, 1]} : vector<16x32xf32> to vector<16x8xf32>
    %208 = vector.extract_strided_slice %183 {offsets = [0, 8], sizes = [16, 8], strides = [1, 1]} : vector<16x32xf32> to vector<16x8xf32>
    %209 = vector.extract_strided_slice %184 {offsets = [0, 8], sizes = [16, 8], strides = [1, 1]} : vector<16x32xf32> to vector<16x8xf32>
    %cst_97 = arith.constant dense<0.000000e+00> : vector<16x16xf32>
    %210 = tpu.matmul %207, %208, %cst_97 {dimension_numbers = #tpu.dot_dimension_numbers<[1], [1], [0], [0], [0, 0, 1, 0], [], []>} : vector<16x8xf32>, vector<16x8xf32>, vector<16x16xf32> -> vector<16x16xf32>
    %cst_98 = arith.constant 0.353553385 : f32
    %211 = vector.broadcast %cst_98 : f32 to vector<16x16xf32>
    %212 = arith.mulf %210, %211 : vector<16x16xf32>
    %213 = arith.addf %212, %9 : vector<16x16xf32>
    %cst_99 = arith.constant dense<0xFF800000> : vector<16xf32>
    %214 = vector.multi_reduction <maximumf>, %213, %cst_99 [1] : vector<16x16xf32> to vector<16xf32>
    %215 = vector.shape_cast %214 : vector<16xf32> to vector<16x1xf32>
    %216 = vector.broadcast %215 : vector<16x1xf32> to vector<16x16xf32>
    %217 = arith.subf %213, %216 : vector<16x16xf32>
    %218 = math.exp %217 : vector<16x16xf32>
    %cst_100 = arith.constant dense<0.000000e+00> : vector<16xf32>
    %219 = vector.multi_reduction <add>, %218, %cst_100 [1] : vector<16x16xf32> to vector<16xf32>
    %220 = vector.shape_cast %219 : vector<16xf32> to vector<16x1xf32>
    %221 = tpu.reciprocal %220 {approx = true} : vector<16x1xf32> -> vector<16x1xf32>
    %222 = vector.broadcast %221 : vector<16x1xf32> to vector<16x16xf32>
    %223 = arith.mulf %218, %222 : vector<16x16xf32>
    %cst_101 = arith.constant dense<0.000000e+00> : vector<16x8xf32>
    %224 = tpu.matmul %223, %209, %cst_101 {dimension_numbers = #tpu.dot_dimension_numbers<[1], [0], [0], [1], [0, 0, 1, 1], [], []>} : vector<16x16xf32>, vector<16x8xf32>, vector<16x8xf32> -> vector<16x8xf32>
    %225 = vector.extract_strided_slice %182 {offsets = [0, 16], sizes = [16, 8], strides = [1, 1]} : vector<16x32xf32> to vector<16x8xf32>
    %226 = vector.extract_strided_slice %183 {offsets = [0, 16], sizes = [16, 8], strides = [1, 1]} : vector<16x32xf32> to vector<16x8xf32>
    %227 = vector.extract_strided_slice %184 {offsets = [0, 16], sizes = [16, 8], strides = [1, 1]} : vector<16x32xf32> to vector<16x8xf32>
    %cst_102 = arith.constant dense<0.000000e+00> : vector<16x16xf32>
    %228 = tpu.matmul %225, %226, %cst_102 {dimension_numbers = #tpu.dot_dimension_numbers<[1], [1], [0], [0], [0, 0, 1, 0], [], []>} : vector<16x8xf32>, vector<16x8xf32>, vector<16x16xf32> -> vector<16x16xf32>
    %cst_103 = arith.constant 0.353553385 : f32
    %229 = vector.broadcast %cst_103 : f32 to vector<16x16xf32>
    %230 = arith.mulf %228, %229 : vector<16x16xf32>
    %231 = arith.addf %230, %9 : vector<16x16xf32>
    %cst_104 = arith.constant dense<0xFF800000> : vector<16xf32>
    %232 = vector.multi_reduction <maximumf>, %231, %cst_104 [1] : vector<16x16xf32> to vector<16xf32>
    %233 = vector.shape_cast %232 : vector<16xf32> to vector<16x1xf32>
    %234 = vector.broadcast %233 : vector<16x1xf32> to vector<16x16xf32>
    %235 = arith.subf %231, %234 : vector<16x16xf32>
    %236 = math.exp %235 : vector<16x16xf32>
    %cst_105 = arith.constant dense<0.000000e+00> : vector<16xf32>
    %237 = vector.multi_reduction <add>, %236, %cst_105 [1] : vector<16x16xf32> to vector<16xf32>
    %238 = vector.shape_cast %237 : vector<16xf32> to vector<16x1xf32>
    %239 = tpu.reciprocal %238 {approx = true} : vector<16x1xf32> -> vector<16x1xf32>
    %240 = vector.broadcast %239 : vector<16x1xf32> to vector<16x16xf32>
    %241 = arith.mulf %236, %240 : vector<16x16xf32>
    %cst_106 = arith.constant dense<0.000000e+00> : vector<16x8xf32>
    %242 = tpu.matmul %241, %227, %cst_106 {dimension_numbers = #tpu.dot_dimension_numbers<[1], [0], [0], [1], [0, 0, 1, 1], [], []>} : vector<16x16xf32>, vector<16x8xf32>, vector<16x8xf32> -> vector<16x8xf32>
    %243 = vector.extract_strided_slice %182 {offsets = [0, 24], sizes = [16, 8], strides = [1, 1]} : vector<16x32xf32> to vector<16x8xf32>
    %244 = vector.extract_strided_slice %183 {offsets = [0, 24], sizes = [16, 8], strides = [1, 1]} : vector<16x32xf32> to vector<16x8xf32>
    %245 = vector.extract_strided_slice %184 {offsets = [0, 24], sizes = [16, 8], strides = [1, 1]} : vector<16x32xf32> to vector<16x8xf32>
    %cst_107 = arith.constant dense<0.000000e+00> : vector<16x16xf32>
    %246 = tpu.matmul %243, %244, %cst_107 {dimension_numbers = #tpu.dot_dimension_numbers<[1], [1], [0], [0], [0, 0, 1, 0], [], []>} : vector<16x8xf32>, vector<16x8xf32>, vector<16x16xf32> -> vector<16x16xf32>
    %cst_108 = arith.constant 0.353553385 : f32
    %247 = vector.broadcast %cst_108 : f32 to vector<16x16xf32>
    %248 = arith.mulf %246, %247 : vector<16x16xf32>
    %249 = arith.addf %248, %9 : vector<16x16xf32>
    %cst_109 = arith.constant dense<0xFF800000> : vector<16xf32>
    %250 = vector.multi_reduction <maximumf>, %249, %cst_109 [1] : vector<16x16xf32> to vector<16xf32>
    %251 = vector.shape_cast %250 : vector<16xf32> to vector<16x1xf32>
    %252 = vector.broadcast %251 : vector<16x1xf32> to vector<16x16xf32>
    %253 = arith.subf %249, %252 : vector<16x16xf32>
    %254 = math.exp %253 : vector<16x16xf32>
    %cst_110 = arith.constant dense<0.000000e+00> : vector<16xf32>
    %255 = vector.multi_reduction <add>, %254, %cst_110 [1] : vector<16x16xf32> to vector<16xf32>
    %256 = vector.shape_cast %255 : vector<16xf32> to vector<16x1xf32>
    %257 = tpu.reciprocal %256 {approx = true} : vector<16x1xf32> -> vector<16x1xf32>
    %258 = vector.broadcast %257 : vector<16x1xf32> to vector<16x16xf32>
    %259 = arith.mulf %254, %258 : vector<16x16xf32>
    %cst_111 = arith.constant dense<0.000000e+00> : vector<16x8xf32>
    %260 = tpu.matmul %259, %245, %cst_111 {dimension_numbers = #tpu.dot_dimension_numbers<[1], [0], [0], [1], [0, 0, 1, 1], [], []>} : vector<16x16xf32>, vector<16x8xf32>, vector<16x8xf32> -> vector<16x8xf32>
    %261 = tpu.concatenate %206, %224, %242, %260 in 1 : vector<16x8xf32>, vector<16x8xf32>, vector<16x8xf32>, vector<16x8xf32> -> vector<16x32xf32>
    %262 = arith.truncf %261 : vector<16x32xf32> to vector<16x32xbf16>
    %cst_112 = arith.constant dense<0.000000e+00> : vector<16x32xf32>
    %263 = tpu.matmul %262, %186, %cst_112 {dimension_numbers = #tpu.dot_dimension_numbers<[1], [0], [0], [1], [0, 0, 1, 1], [], []>} : vector<16x32xbf16>, vector<32x32xbf16>, vector<16x32xf32> -> vector<16x32xf32>
    %264 = vector.broadcast %188 : vector<1x32xf32> to vector<16x32xf32>
    %265 = arith.addf %263, %264 : vector<16x32xf32>
    %266 = arith.addf %173, %265 : vector<16x32xf32>
    %c1_113 = arith.constant 1 : index
    %c0_114 = arith.constant 0 : index
    %c0_115 = arith.constant 0 : index
    %267 = vector.load %arg10[%c1_113, %c0_114, %c0_115] : memref<2x1x32xf32, #tpu.memory_space<vmem>>, vector<1x1x32xf32>
    %268 = vector.shape_cast %267 : vector<1x1x32xf32> to vector<1x32xf32>
    %c1_116 = arith.constant 1 : index
    %c0_117 = arith.constant 0 : index
    %c0_118 = arith.constant 0 : index
    %269 = vector.load %arg11[%c1_116, %c0_117, %c0_118] : memref<2x1x32xf32, #tpu.memory_space<vmem>>, vector<1x1x32xf32>
    %270 = vector.shape_cast %269 : vector<1x1x32xf32> to vector<1x32xf32>
    %cst_119 = arith.constant dense<0.000000e+00> : vector<16xf32>
    %271 = vector.multi_reduction <add>, %266, %cst_119 [1] : vector<16x32xf32> to vector<16xf32>
    %272 = vector.shape_cast %271 : vector<16xf32> to vector<16x1xf32>
    %cst_120 = arith.constant 3.200000e+01 : f32
    %273 = vector.broadcast %cst_120 : f32 to vector<16x1xf32>
    %274 = arith.divf %272, %273 : vector<16x1xf32>
    %275 = vector.broadcast %274 : vector<16x1xf32> to vector<16x32xf32>
    %276 = arith.subf %266, %275 : vector<16x32xf32>
    %277 = arith.mulf %276, %276 : vector<16x32xf32>
    %cst_121 = arith.constant dense<0.000000e+00> : vector<16xf32>
    %278 = vector.multi_reduction <add>, %277, %cst_121 [1] : vector<16x32xf32> to vector<16xf32>
    %279 = vector.shape_cast %278 : vector<16xf32> to vector<16x1xf32>
    %cst_122 = arith.constant 3.200000e+01 : f32
    %280 = vector.broadcast %cst_122 : f32 to vector<16x1xf32>
    %281 = arith.divf %279, %280 : vector<16x1xf32>
    %282 = vector.broadcast %274 : vector<16x1xf32> to vector<16x32xf32>
    %283 = arith.subf %266, %282 : vector<16x32xf32>
    %cst_123 = arith.constant 9.99999974E-6 : f32
    %284 = vector.broadcast %cst_123 : f32 to vector<16x1xf32>
    %285 = arith.addf %281, %284 : vector<16x1xf32>
    %286 = math.rsqrt %285 : vector<16x1xf32>
    %287 = vector.broadcast %286 : vector<16x1xf32> to vector<16x32xf32>
    %288 = arith.mulf %283, %287 : vector<16x32xf32>
    %289 = vector.broadcast %268 : vector<1x32xf32> to vector<16x32xf32>
    %290 = arith.mulf %288, %289 : vector<16x32xf32>
    %291 = vector.broadcast %270 : vector<1x32xf32> to vector<16x32xf32>
    %292 = arith.addf %290, %291 : vector<16x32xf32>
    %c1_124 = arith.constant 1 : index
    %c0_125 = arith.constant 0 : index
    %c0_126 = arith.constant 0 : index
    %293 = vector.load %arg12[%c1_124, %c0_125, %c0_126] : memref<2x32x2048xbf16, #tpu.memory_space<vmem>>, vector<1x32x2048xbf16>
    %294 = vector.shape_cast %293 : vector<1x32x2048xbf16> to vector<32x2048xbf16>
    %c1_127 = arith.constant 1 : index
    %c0_128 = arith.constant 0 : index
    %c0_129 = arith.constant 0 : index
    %295 = vector.load %arg13[%c1_127, %c0_128, %c0_129] : memref<2x1x2048xf32, #tpu.memory_space<vmem>>, vector<1x1x2048xf32>
    %296 = vector.shape_cast %295 : vector<1x1x2048xf32> to vector<1x2048xf32>
    %c1_130 = arith.constant 1 : index
    %c0_131 = arith.constant 0 : index
    %c0_132 = arith.constant 0 : index
    %297 = vector.load %arg14[%c1_130, %c0_131, %c0_132] : memref<2x2048x32xbf16, #tpu.memory_space<vmem>>, vector<1x2048x32xbf16>
    %298 = vector.shape_cast %297 : vector<1x2048x32xbf16> to vector<2048x32xbf16>
    %c1_133 = arith.constant 1 : index
    %c0_134 = arith.constant 0 : index
    %c0_135 = arith.constant 0 : index
    %299 = vector.load %arg15[%c1_133, %c0_134, %c0_135] : memref<2x1x32xf32, #tpu.memory_space<vmem>>, vector<1x1x32xf32>
    %300 = vector.shape_cast %299 : vector<1x1x32xf32> to vector<1x32xf32>
    %301 = arith.truncf %292 : vector<16x32xf32> to vector<16x32xbf16>
    %cst_136 = arith.constant dense<0.000000e+00> : vector<16x2048xf32>
    %302 = tpu.matmul %301, %294, %cst_136 {dimension_numbers = #tpu.dot_dimension_numbers<[1], [0], [0], [1], [0, 0, 1, 1], [], []>} : vector<16x32xbf16>, vector<32x2048xbf16>, vector<16x2048xf32> -> vector<16x2048xf32>
    %303 = vector.broadcast %296 : vector<1x2048xf32> to vector<16x2048xf32>
    %304 = arith.addf %302, %303 : vector<16x2048xf32>
    %cst_137 = arith.constant 0.000000e+00 : f32
    %305 = vector.broadcast %cst_137 : f32 to vector<16x2048xf32>
    %306 = arith.maximumf %304, %305 : vector<16x2048xf32>
    %307 = arith.truncf %306 : vector<16x2048xf32> to vector<16x2048xbf16>
    %cst_138 = arith.constant dense<0.000000e+00> : vector<16x32xf32>
    %308 = tpu.matmul %307, %298, %cst_138 {dimension_numbers = #tpu.dot_dimension_numbers<[1], [0], [0], [1], [0, 0, 1, 1], [], []>} : vector<16x2048xbf16>, vector<2048x32xbf16>, vector<16x32xf32> -> vector<16x32xf32>
    %309 = vector.broadcast %300 : vector<1x32xf32> to vector<16x32xf32>
    %310 = arith.addf %308, %309 : vector<16x32xf32>
    %311 = arith.addf %292, %310 : vector<16x32xf32>
    %c1_139 = arith.constant 1 : index
    %c0_140 = arith.constant 0 : index
    %c0_141 = arith.constant 0 : index
    %312 = vector.load %arg16[%c1_139, %c0_140, %c0_141] : memref<2x1x32xf32, #tpu.memory_space<vmem>>, vector<1x1x32xf32>
    %313 = vector.shape_cast %312 : vector<1x1x32xf32> to vector<1x32xf32>
    %c1_142 = arith.constant 1 : index
    %c0_143 = arith.constant 0 : index
    %c0_144 = arith.constant 0 : index
    %314 = vector.load %arg17[%c1_142, %c0_143, %c0_144] : memref<2x1x32xf32, #tpu.memory_space<vmem>>, vector<1x1x32xf32>
    %315 = vector.shape_cast %314 : vector<1x1x32xf32> to vector<1x32xf32>
    %cst_145 = arith.constant dense<0.000000e+00> : vector<16xf32>
    %316 = vector.multi_reduction <add>, %311, %cst_145 [1] : vector<16x32xf32> to vector<16xf32>
    %317 = vector.shape_cast %316 : vector<16xf32> to vector<16x1xf32>
    %cst_146 = arith.constant 3.200000e+01 : f32
    %318 = vector.broadcast %cst_146 : f32 to vector<16x1xf32>
    %319 = arith.divf %317, %318 : vector<16x1xf32>
    %320 = vector.broadcast %319 : vector<16x1xf32> to vector<16x32xf32>
    %321 = arith.subf %311, %320 : vector<16x32xf32>
    %322 = arith.mulf %321, %321 : vector<16x32xf32>
    %cst_147 = arith.constant dense<0.000000e+00> : vector<16xf32>
    %323 = vector.multi_reduction <add>, %322, %cst_147 [1] : vector<16x32xf32> to vector<16xf32>
    %324 = vector.shape_cast %323 : vector<16xf32> to vector<16x1xf32>
    %cst_148 = arith.constant 3.200000e+01 : f32
    %325 = vector.broadcast %cst_148 : f32 to vector<16x1xf32>
    %326 = arith.divf %324, %325 : vector<16x1xf32>
    %327 = vector.broadcast %319 : vector<16x1xf32> to vector<16x32xf32>
    %328 = arith.subf %311, %327 : vector<16x32xf32>
    %cst_149 = arith.constant 9.99999974E-6 : f32
    %329 = vector.broadcast %cst_149 : f32 to vector<16x1xf32>
    %330 = arith.addf %326, %329 : vector<16x1xf32>
    %331 = math.rsqrt %330 : vector<16x1xf32>
    %332 = vector.broadcast %331 : vector<16x1xf32> to vector<16x32xf32>
    %333 = arith.mulf %328, %332 : vector<16x32xf32>
    %334 = vector.broadcast %313 : vector<1x32xf32> to vector<16x32xf32>
    %335 = arith.mulf %333, %334 : vector<16x32xf32>
    %336 = vector.broadcast %315 : vector<1x32xf32> to vector<16x32xf32>
    %337 = arith.addf %335, %336 : vector<16x32xf32>
    %c0_150 = arith.constant 0 : index
    %c0_151 = arith.constant 0 : index
    %338 = vector.load %arg18[%c0_150, %c0_151] : memref<1x32xf32, #tpu.memory_space<vmem>>, vector<1x32xf32>
    %c0_152 = arith.constant 0 : index
    %c0_153 = arith.constant 0 : index
    %339 = vector.load %arg19[%c0_152, %c0_153] : memref<1x32xf32, #tpu.memory_space<vmem>>, vector<1x32xf32>
    %cst_154 = arith.constant dense<0.000000e+00> : vector<16xf32>
    %340 = vector.multi_reduction <add>, %337, %cst_154 [1] : vector<16x32xf32> to vector<16xf32>
    %341 = vector.shape_cast %340 : vector<16xf32> to vector<16x1xf32>
    %cst_155 = arith.constant 3.200000e+01 : f32
    %342 = vector.broadcast %cst_155 : f32 to vector<16x1xf32>
    %343 = arith.divf %341, %342 : vector<16x1xf32>
    %344 = vector.broadcast %343 : vector<16x1xf32> to vector<16x32xf32>
    %345 = arith.subf %337, %344 : vector<16x32xf32>
    %346 = arith.mulf %345, %345 : vector<16x32xf32>
    %cst_156 = arith.constant dense<0.000000e+00> : vector<16xf32>
    %347 = vector.multi_reduction <add>, %346, %cst_156 [1] : vector<16x32xf32> to vector<16xf32>
    %348 = vector.shape_cast %347 : vector<16xf32> to vector<16x1xf32>
    %cst_157 = arith.constant 3.200000e+01 : f32
    %349 = vector.broadcast %cst_157 : f32 to vector<16x1xf32>
    %350 = arith.divf %348, %349 : vector<16x1xf32>
    %351 = vector.broadcast %343 : vector<16x1xf32> to vector<16x32xf32>
    %352 = arith.subf %337, %351 : vector<16x32xf32>
    %cst_158 = arith.constant 9.99999974E-6 : f32
    %353 = vector.broadcast %cst_158 : f32 to vector<16x1xf32>
    %354 = arith.addf %350, %353 : vector<16x1xf32>
    %355 = math.rsqrt %354 : vector<16x1xf32>
    %356 = vector.broadcast %355 : vector<16x1xf32> to vector<16x32xf32>
    %357 = arith.mulf %352, %356 : vector<16x32xf32>
    %358 = vector.broadcast %338 : vector<1x32xf32> to vector<16x32xf32>
    %359 = arith.mulf %357, %358 : vector<16x32xf32>
    %360 = vector.broadcast %339 : vector<1x32xf32> to vector<16x32xf32>
    %361 = arith.addf %359, %360 : vector<16x32xf32>
    %c0_159 = arith.constant 0 : index
    %c0_160 = arith.constant 0 : index
    %362 = vector.load %arg1[%c0_159, %c0_160] : memref<8x5xf32, #tpu.memory_space<vmem>>, vector<8x5xf32>
    %c0_161 = arith.constant 0 : index
    %c0_162 = arith.constant 0 : index
    %363 = vector.load %arg20[%c0_161, %c0_162] : memref<5x32xbf16, #tpu.memory_space<vmem>>, vector<5x32xbf16>
    %364 = arith.truncf %362 : vector<8x5xf32> to vector<8x5xbf16>
    %cst_163 = arith.constant dense<0.000000e+00> : vector<8x32xf32>
    %365 = tpu.matmul %364, %363, %cst_163 {dimension_numbers = #tpu.dot_dimension_numbers<[1], [0], [0], [1], [0, 0, 1, 1], [], []>} : vector<8x5xbf16>, vector<5x32xbf16>, vector<8x32xf32> -> vector<8x32xf32>
    %c0_164 = arith.constant 0 : index
    %c0_165 = arith.constant 0 : index
    %366 = vector.load %arg21[%c0_164, %c0_165] : memref<1x32xf32, #tpu.memory_space<vmem>>, vector<1x32xf32>
    %367 = vector.broadcast %366 : vector<1x32xf32> to vector<8x32xf32>
    %368 = arith.addf %365, %367 : vector<8x32xf32>
    %c0_166 = arith.constant 0 : index
    %c0_167 = arith.constant 0 : index
    %369 = vector.load %arg22[%c0_166, %c0_167] : memref<8x32xf32, #tpu.memory_space<vmem>>, vector<8x32xf32>
    %370 = arith.addf %368, %369 : vector<8x32xf32>
    %c0_168 = arith.constant 0 : index
    %c0_169 = arith.constant 0 : index
    %371 = vector.load %arg23[%c0_168, %c0_169] : memref<8x8xf32, #tpu.memory_space<vmem>>, vector<8x8xf32>
    %c0_170 = arith.constant 0 : index
    %c0_171 = arith.constant 0 : index
    %372 = vector.load %arg24[%c0_170, %c0_171] : memref<8x16xf32, #tpu.memory_space<vmem>>, vector<8x16xf32>
    %c0_172 = arith.constant 0 : index
    %c0_173 = arith.constant 0 : index
    %c0_174 = arith.constant 0 : index
    %373 = vector.load %arg25[%c0_172, %c0_173, %c0_174] : memref<2x32x96xbf16, #tpu.memory_space<vmem>>, vector<1x32x96xbf16>
    %374 = vector.shape_cast %373 : vector<1x32x96xbf16> to vector<32x96xbf16>
    %375 = arith.truncf %370 : vector<8x32xf32> to vector<8x32xbf16>
    %cst_175 = arith.constant dense<0.000000e+00> : vector<8x96xf32>
    %376 = tpu.matmul %375, %374, %cst_175 {dimension_numbers = #tpu.dot_dimension_numbers<[1], [0], [0], [1], [0, 0, 1, 1], [], []>} : vector<8x32xbf16>, vector<32x96xbf16>, vector<8x96xf32> -> vector<8x96xf32>
    %c0_176 = arith.constant 0 : index
    %c0_177 = arith.constant 0 : index
    %c0_178 = arith.constant 0 : index
    %377 = vector.load %arg26[%c0_176, %c0_177, %c0_178] : memref<2x1x96xf32, #tpu.memory_space<vmem>>, vector<1x1x96xf32>
    %378 = vector.shape_cast %377 : vector<1x1x96xf32> to vector<1x96xf32>
    %379 = vector.broadcast %378 : vector<1x96xf32> to vector<8x96xf32>
    %380 = arith.addf %376, %379 : vector<8x96xf32>
    %381 = vector.extract_strided_slice %380 {offsets = [0, 0], sizes = [8, 32], strides = [1, 1]} : vector<8x96xf32> to vector<8x32xf32>
    %382 = vector.extract_strided_slice %380 {offsets = [0, 32], sizes = [8, 32], strides = [1, 1]} : vector<8x96xf32> to vector<8x32xf32>
    %383 = vector.extract_strided_slice %380 {offsets = [0, 64], sizes = [8, 32], strides = [1, 1]} : vector<8x96xf32> to vector<8x32xf32>
    %c0_179 = arith.constant 0 : index
    %c0_180 = arith.constant 0 : index
    %c0_181 = arith.constant 0 : index
    %384 = vector.load %arg27[%c0_179, %c0_180, %c0_181] : memref<2x32x32xbf16, #tpu.memory_space<vmem>>, vector<1x32x32xbf16>
    %385 = vector.shape_cast %384 : vector<1x32x32xbf16> to vector<32x32xbf16>
    %c0_182 = arith.constant 0 : index
    %c0_183 = arith.constant 0 : index
    %c0_184 = arith.constant 0 : index
    %386 = vector.load %arg28[%c0_182, %c0_183, %c0_184] : memref<2x1x32xf32, #tpu.memory_space<vmem>>, vector<1x1x32xf32>
    %387 = vector.shape_cast %386 : vector<1x1x32xf32> to vector<1x32xf32>
    %388 = vector.extract_strided_slice %381 {offsets = [0, 0], sizes = [8, 8], strides = [1, 1]} : vector<8x32xf32> to vector<8x8xf32>
    %389 = vector.extract_strided_slice %382 {offsets = [0, 0], sizes = [8, 8], strides = [1, 1]} : vector<8x32xf32> to vector<8x8xf32>
    %390 = vector.extract_strided_slice %383 {offsets = [0, 0], sizes = [8, 8], strides = [1, 1]} : vector<8x32xf32> to vector<8x8xf32>
    %cst_185 = arith.constant dense<0.000000e+00> : vector<8x8xf32>
    %391 = tpu.matmul %388, %389, %cst_185 {dimension_numbers = #tpu.dot_dimension_numbers<[1], [1], [0], [0], [0, 0, 1, 0], [], []>} : vector<8x8xf32>, vector<8x8xf32>, vector<8x8xf32> -> vector<8x8xf32>
    %cst_186 = arith.constant 0.353553385 : f32
    %392 = vector.broadcast %cst_186 : f32 to vector<8x8xf32>
    %393 = arith.mulf %391, %392 : vector<8x8xf32>
    %394 = arith.addf %393, %371 : vector<8x8xf32>
    %cst_187 = arith.constant dense<0xFF800000> : vector<8xf32>
    %395 = vector.multi_reduction <maximumf>, %394, %cst_187 [1] : vector<8x8xf32> to vector<8xf32>
    %396 = vector.shape_cast %395 : vector<8xf32> to vector<8x1xf32>
    %397 = vector.broadcast %396 : vector<8x1xf32> to vector<8x8xf32>
    %398 = arith.subf %394, %397 : vector<8x8xf32>
    %399 = math.exp %398 : vector<8x8xf32>
    %cst_188 = arith.constant dense<0.000000e+00> : vector<8xf32>
    %400 = vector.multi_reduction <add>, %399, %cst_188 [1] : vector<8x8xf32> to vector<8xf32>
    %401 = vector.shape_cast %400 : vector<8xf32> to vector<8x1xf32>
    %402 = tpu.reciprocal %401 {approx = true} : vector<8x1xf32> -> vector<8x1xf32>
    %403 = vector.broadcast %402 : vector<8x1xf32> to vector<8x8xf32>
    %404 = arith.mulf %399, %403 : vector<8x8xf32>
    %cst_189 = arith.constant dense<0.000000e+00> : vector<8x8xf32>
    %405 = tpu.matmul %404, %390, %cst_189 {dimension_numbers = #tpu.dot_dimension_numbers<[1], [0], [0], [1], [0, 0, 1, 1], [], []>} : vector<8x8xf32>, vector<8x8xf32>, vector<8x8xf32> -> vector<8x8xf32>
    %406 = vector.extract_strided_slice %381 {offsets = [0, 8], sizes = [8, 8], strides = [1, 1]} : vector<8x32xf32> to vector<8x8xf32>
    %407 = vector.extract_strided_slice %382 {offsets = [0, 8], sizes = [8, 8], strides = [1, 1]} : vector<8x32xf32> to vector<8x8xf32>
    %408 = vector.extract_strided_slice %383 {offsets = [0, 8], sizes = [8, 8], strides = [1, 1]} : vector<8x32xf32> to vector<8x8xf32>
    %cst_190 = arith.constant dense<0.000000e+00> : vector<8x8xf32>
    %409 = tpu.matmul %406, %407, %cst_190 {dimension_numbers = #tpu.dot_dimension_numbers<[1], [1], [0], [0], [0, 0, 1, 0], [], []>} : vector<8x8xf32>, vector<8x8xf32>, vector<8x8xf32> -> vector<8x8xf32>
    %cst_191 = arith.constant 0.353553385 : f32
    %410 = vector.broadcast %cst_191 : f32 to vector<8x8xf32>
    %411 = arith.mulf %409, %410 : vector<8x8xf32>
    %412 = arith.addf %411, %371 : vector<8x8xf32>
    %cst_192 = arith.constant dense<0xFF800000> : vector<8xf32>
    %413 = vector.multi_reduction <maximumf>, %412, %cst_192 [1] : vector<8x8xf32> to vector<8xf32>
    %414 = vector.shape_cast %413 : vector<8xf32> to vector<8x1xf32>
    %415 = vector.broadcast %414 : vector<8x1xf32> to vector<8x8xf32>
    %416 = arith.subf %412, %415 : vector<8x8xf32>
    %417 = math.exp %416 : vector<8x8xf32>
    %cst_193 = arith.constant dense<0.000000e+00> : vector<8xf32>
    %418 = vector.multi_reduction <add>, %417, %cst_193 [1] : vector<8x8xf32> to vector<8xf32>
    %419 = vector.shape_cast %418 : vector<8xf32> to vector<8x1xf32>
    %420 = tpu.reciprocal %419 {approx = true} : vector<8x1xf32> -> vector<8x1xf32>
    %421 = vector.broadcast %420 : vector<8x1xf32> to vector<8x8xf32>
    %422 = arith.mulf %417, %421 : vector<8x8xf32>
    %cst_194 = arith.constant dense<0.000000e+00> : vector<8x8xf32>
    %423 = tpu.matmul %422, %408, %cst_194 {dimension_numbers = #tpu.dot_dimension_numbers<[1], [0], [0], [1], [0, 0, 1, 1], [], []>} : vector<8x8xf32>, vector<8x8xf32>, vector<8x8xf32> -> vector<8x8xf32>
    %424 = vector.extract_strided_slice %381 {offsets = [0, 16], sizes = [8, 8], strides = [1, 1]} : vector<8x32xf32> to vector<8x8xf32>
    %425 = vector.extract_strided_slice %382 {offsets = [0, 16], sizes = [8, 8], strides = [1, 1]} : vector<8x32xf32> to vector<8x8xf32>
    %426 = vector.extract_strided_slice %383 {offsets = [0, 16], sizes = [8, 8], strides = [1, 1]} : vector<8x32xf32> to vector<8x8xf32>
    %cst_195 = arith.constant dense<0.000000e+00> : vector<8x8xf32>
    %427 = tpu.matmul %424, %425, %cst_195 {dimension_numbers = #tpu.dot_dimension_numbers<[1], [1], [0], [0], [0, 0, 1, 0], [], []>} : vector<8x8xf32>, vector<8x8xf32>, vector<8x8xf32> -> vector<8x8xf32>
    %cst_196 = arith.constant 0.353553385 : f32
    %428 = vector.broadcast %cst_196 : f32 to vector<8x8xf32>
    %429 = arith.mulf %427, %428 : vector<8x8xf32>
    %430 = arith.addf %429, %371 : vector<8x8xf32>
    %cst_197 = arith.constant dense<0xFF800000> : vector<8xf32>
    %431 = vector.multi_reduction <maximumf>, %430, %cst_197 [1] : vector<8x8xf32> to vector<8xf32>
    %432 = vector.shape_cast %431 : vector<8xf32> to vector<8x1xf32>
    %433 = vector.broadcast %432 : vector<8x1xf32> to vector<8x8xf32>
    %434 = arith.subf %430, %433 : vector<8x8xf32>
    %435 = math.exp %434 : vector<8x8xf32>
    %cst_198 = arith.constant dense<0.000000e+00> : vector<8xf32>
    %436 = vector.multi_reduction <add>, %435, %cst_198 [1] : vector<8x8xf32> to vector<8xf32>
    %437 = vector.shape_cast %436 : vector<8xf32> to vector<8x1xf32>
    %438 = tpu.reciprocal %437 {approx = true} : vector<8x1xf32> -> vector<8x1xf32>
    %439 = vector.broadcast %438 : vector<8x1xf32> to vector<8x8xf32>
    %440 = arith.mulf %435, %439 : vector<8x8xf32>
    %cst_199 = arith.constant dense<0.000000e+00> : vector<8x8xf32>
    %441 = tpu.matmul %440, %426, %cst_199 {dimension_numbers = #tpu.dot_dimension_numbers<[1], [0], [0], [1], [0, 0, 1, 1], [], []>} : vector<8x8xf32>, vector<8x8xf32>, vector<8x8xf32> -> vector<8x8xf32>
    %442 = vector.extract_strided_slice %381 {offsets = [0, 24], sizes = [8, 8], strides = [1, 1]} : vector<8x32xf32> to vector<8x8xf32>
    %443 = vector.extract_strided_slice %382 {offsets = [0, 24], sizes = [8, 8], strides = [1, 1]} : vector<8x32xf32> to vector<8x8xf32>
    %444 = vector.extract_strided_slice %383 {offsets = [0, 24], sizes = [8, 8], strides = [1, 1]} : vector<8x32xf32> to vector<8x8xf32>
    %cst_200 = arith.constant dense<0.000000e+00> : vector<8x8xf32>
    %445 = tpu.matmul %442, %443, %cst_200 {dimension_numbers = #tpu.dot_dimension_numbers<[1], [1], [0], [0], [0, 0, 1, 0], [], []>} : vector<8x8xf32>, vector<8x8xf32>, vector<8x8xf32> -> vector<8x8xf32>
    %cst_201 = arith.constant 0.353553385 : f32
    %446 = vector.broadcast %cst_201 : f32 to vector<8x8xf32>
    %447 = arith.mulf %445, %446 : vector<8x8xf32>
    %448 = arith.addf %447, %371 : vector<8x8xf32>
    %cst_202 = arith.constant dense<0xFF800000> : vector<8xf32>
    %449 = vector.multi_reduction <maximumf>, %448, %cst_202 [1] : vector<8x8xf32> to vector<8xf32>
    %450 = vector.shape_cast %449 : vector<8xf32> to vector<8x1xf32>
    %451 = vector.broadcast %450 : vector<8x1xf32> to vector<8x8xf32>
    %452 = arith.subf %448, %451 : vector<8x8xf32>
    %453 = math.exp %452 : vector<8x8xf32>
    %cst_203 = arith.constant dense<0.000000e+00> : vector<8xf32>
    %454 = vector.multi_reduction <add>, %453, %cst_203 [1] : vector<8x8xf32> to vector<8xf32>
    %455 = vector.shape_cast %454 : vector<8xf32> to vector<8x1xf32>
    %456 = tpu.reciprocal %455 {approx = true} : vector<8x1xf32> -> vector<8x1xf32>
    %457 = vector.broadcast %456 : vector<8x1xf32> to vector<8x8xf32>
    %458 = arith.mulf %453, %457 : vector<8x8xf32>
    %cst_204 = arith.constant dense<0.000000e+00> : vector<8x8xf32>
    %459 = tpu.matmul %458, %444, %cst_204 {dimension_numbers = #tpu.dot_dimension_numbers<[1], [0], [0], [1], [0, 0, 1, 1], [], []>} : vector<8x8xf32>, vector<8x8xf32>, vector<8x8xf32> -> vector<8x8xf32>
    %460 = tpu.concatenate %405, %423, %441, %459 in 1 : vector<8x8xf32>, vector<8x8xf32>, vector<8x8xf32>, vector<8x8xf32> -> vector<8x32xf32>
    %461 = arith.truncf %460 : vector<8x32xf32> to vector<8x32xbf16>
    %cst_205 = arith.constant dense<0.000000e+00> : vector<8x32xf32>
    %462 = tpu.matmul %461, %385, %cst_205 {dimension_numbers = #tpu.dot_dimension_numbers<[1], [0], [0], [1], [0, 0, 1, 1], [], []>} : vector<8x32xbf16>, vector<32x32xbf16>, vector<8x32xf32> -> vector<8x32xf32>
    %463 = vector.broadcast %387 : vector<1x32xf32> to vector<8x32xf32>
    %464 = arith.addf %462, %463 : vector<8x32xf32>
    %465 = arith.addf %370, %464 : vector<8x32xf32>
    %c0_206 = arith.constant 0 : index
    %c0_207 = arith.constant 0 : index
    %c0_208 = arith.constant 0 : index
    %466 = vector.load %arg29[%c0_206, %c0_207, %c0_208] : memref<2x1x32xf32, #tpu.memory_space<vmem>>, vector<1x1x32xf32>
    %467 = vector.shape_cast %466 : vector<1x1x32xf32> to vector<1x32xf32>
    %c0_209 = arith.constant 0 : index
    %c0_210 = arith.constant 0 : index
    %c0_211 = arith.constant 0 : index
    %468 = vector.load %arg30[%c0_209, %c0_210, %c0_211] : memref<2x1x32xf32, #tpu.memory_space<vmem>>, vector<1x1x32xf32>
    %469 = vector.shape_cast %468 : vector<1x1x32xf32> to vector<1x32xf32>
    %cst_212 = arith.constant dense<0.000000e+00> : vector<8xf32>
    %470 = vector.multi_reduction <add>, %465, %cst_212 [1] : vector<8x32xf32> to vector<8xf32>
    %471 = vector.shape_cast %470 : vector<8xf32> to vector<8x1xf32>
    %cst_213 = arith.constant 3.200000e+01 : f32
    %472 = vector.broadcast %cst_213 : f32 to vector<8x1xf32>
    %473 = arith.divf %471, %472 : vector<8x1xf32>
    %474 = vector.broadcast %473 : vector<8x1xf32> to vector<8x32xf32>
    %475 = arith.subf %465, %474 : vector<8x32xf32>
    %476 = arith.mulf %475, %475 : vector<8x32xf32>
    %cst_214 = arith.constant dense<0.000000e+00> : vector<8xf32>
    %477 = vector.multi_reduction <add>, %476, %cst_214 [1] : vector<8x32xf32> to vector<8xf32>
    %478 = vector.shape_cast %477 : vector<8xf32> to vector<8x1xf32>
    %cst_215 = arith.constant 3.200000e+01 : f32
    %479 = vector.broadcast %cst_215 : f32 to vector<8x1xf32>
    %480 = arith.divf %478, %479 : vector<8x1xf32>
    %481 = vector.broadcast %473 : vector<8x1xf32> to vector<8x32xf32>
    %482 = arith.subf %465, %481 : vector<8x32xf32>
    %cst_216 = arith.constant 9.99999974E-6 : f32
    %483 = vector.broadcast %cst_216 : f32 to vector<8x1xf32>
    %484 = arith.addf %480, %483 : vector<8x1xf32>
    %485 = math.rsqrt %484 : vector<8x1xf32>
    %486 = vector.broadcast %485 : vector<8x1xf32> to vector<8x32xf32>
    %487 = arith.mulf %482, %486 : vector<8x32xf32>
    %488 = vector.broadcast %467 : vector<1x32xf32> to vector<8x32xf32>
    %489 = arith.mulf %487, %488 : vector<8x32xf32>
    %490 = vector.broadcast %469 : vector<1x32xf32> to vector<8x32xf32>
    %491 = arith.addf %489, %490 : vector<8x32xf32>
    %c0_217 = arith.constant 0 : index
    %c0_218 = arith.constant 0 : index
    %c0_219 = arith.constant 0 : index
    %492 = vector.load %arg31[%c0_217, %c0_218, %c0_219] : memref<2x32x32xbf16, #tpu.memory_space<vmem>>, vector<1x32x32xbf16>
    %493 = vector.shape_cast %492 : vector<1x32x32xbf16> to vector<32x32xbf16>
    %494 = arith.truncf %491 : vector<8x32xf32> to vector<8x32xbf16>
    %cst_220 = arith.constant dense<0.000000e+00> : vector<8x32xf32>
    %495 = tpu.matmul %494, %493, %cst_220 {dimension_numbers = #tpu.dot_dimension_numbers<[1], [0], [0], [1], [0, 0, 1, 1], [], []>} : vector<8x32xbf16>, vector<32x32xbf16>, vector<8x32xf32> -> vector<8x32xf32>
    %c0_221 = arith.constant 0 : index
    %c0_222 = arith.constant 0 : index
    %c0_223 = arith.constant 0 : index
    %496 = vector.load %arg32[%c0_221, %c0_222, %c0_223] : memref<2x1x32xf32, #tpu.memory_space<vmem>>, vector<1x1x32xf32>
    %497 = vector.shape_cast %496 : vector<1x1x32xf32> to vector<1x32xf32>
    %498 = vector.broadcast %497 : vector<1x32xf32> to vector<8x32xf32>
    %499 = arith.addf %495, %498 : vector<8x32xf32>
    %c0_224 = arith.constant 0 : index
    %c0_225 = arith.constant 0 : index
    %c0_226 = arith.constant 0 : index
    %500 = vector.load %arg33[%c0_224, %c0_225, %c0_226] : memref<2x32x64xbf16, #tpu.memory_space<vmem>>, vector<1x32x64xbf16>
    %501 = vector.shape_cast %500 : vector<1x32x64xbf16> to vector<32x64xbf16>
    %502 = arith.truncf %361 : vector<16x32xf32> to vector<16x32xbf16>
    %cst_227 = arith.constant dense<0.000000e+00> : vector<16x64xf32>
    %503 = tpu.matmul %502, %501, %cst_227 {dimension_numbers = #tpu.dot_dimension_numbers<[1], [0], [0], [1], [0, 0, 1, 1], [], []>} : vector<16x32xbf16>, vector<32x64xbf16>, vector<16x64xf32> -> vector<16x64xf32>
    %c0_228 = arith.constant 0 : index
    %c0_229 = arith.constant 0 : index
    %c0_230 = arith.constant 0 : index
    %504 = vector.load %arg34[%c0_228, %c0_229, %c0_230] : memref<2x1x64xf32, #tpu.memory_space<vmem>>, vector<1x1x64xf32>
    %505 = vector.shape_cast %504 : vector<1x1x64xf32> to vector<1x64xf32>
    %506 = vector.broadcast %505 : vector<1x64xf32> to vector<16x64xf32>
    %507 = arith.addf %503, %506 : vector<16x64xf32>
    %508 = vector.extract_strided_slice %507 {offsets = [0, 0], sizes = [16, 32], strides = [1, 1]} : vector<16x64xf32> to vector<16x32xf32>
    %509 = vector.extract_strided_slice %507 {offsets = [0, 32], sizes = [16, 32], strides = [1, 1]} : vector<16x64xf32> to vector<16x32xf32>
    %c0_231 = arith.constant 0 : index
    %c0_232 = arith.constant 0 : index
    %c0_233 = arith.constant 0 : index
    %510 = vector.load %arg35[%c0_231, %c0_232, %c0_233] : memref<2x32x32xbf16, #tpu.memory_space<vmem>>, vector<1x32x32xbf16>
    %511 = vector.shape_cast %510 : vector<1x32x32xbf16> to vector<32x32xbf16>
    %c0_234 = arith.constant 0 : index
    %c0_235 = arith.constant 0 : index
    %c0_236 = arith.constant 0 : index
    %512 = vector.load %arg36[%c0_234, %c0_235, %c0_236] : memref<2x1x32xf32, #tpu.memory_space<vmem>>, vector<1x1x32xf32>
    %513 = vector.shape_cast %512 : vector<1x1x32xf32> to vector<1x32xf32>
    %514 = vector.extract_strided_slice %499 {offsets = [0, 0], sizes = [8, 8], strides = [1, 1]} : vector<8x32xf32> to vector<8x8xf32>
    %515 = vector.extract_strided_slice %508 {offsets = [0, 0], sizes = [16, 8], strides = [1, 1]} : vector<16x32xf32> to vector<16x8xf32>
    %516 = vector.extract_strided_slice %509 {offsets = [0, 0], sizes = [16, 8], strides = [1, 1]} : vector<16x32xf32> to vector<16x8xf32>
    %cst_237 = arith.constant dense<0.000000e+00> : vector<8x16xf32>
    %517 = tpu.matmul %514, %515, %cst_237 {dimension_numbers = #tpu.dot_dimension_numbers<[1], [1], [0], [0], [0, 0, 1, 0], [], []>} : vector<8x8xf32>, vector<16x8xf32>, vector<8x16xf32> -> vector<8x16xf32>
    %cst_238 = arith.constant 0.353553385 : f32
    %518 = vector.broadcast %cst_238 : f32 to vector<8x16xf32>
    %519 = arith.mulf %517, %518 : vector<8x16xf32>
    %520 = arith.addf %519, %372 : vector<8x16xf32>
    %cst_239 = arith.constant dense<0xFF800000> : vector<8xf32>
    %521 = vector.multi_reduction <maximumf>, %520, %cst_239 [1] : vector<8x16xf32> to vector<8xf32>
    %522 = vector.shape_cast %521 : vector<8xf32> to vector<8x1xf32>
    %523 = vector.broadcast %522 : vector<8x1xf32> to vector<8x16xf32>
    %524 = arith.subf %520, %523 : vector<8x16xf32>
    %525 = math.exp %524 : vector<8x16xf32>
    %cst_240 = arith.constant dense<0.000000e+00> : vector<8xf32>
    %526 = vector.multi_reduction <add>, %525, %cst_240 [1] : vector<8x16xf32> to vector<8xf32>
    %527 = vector.shape_cast %526 : vector<8xf32> to vector<8x1xf32>
    %528 = tpu.reciprocal %527 {approx = true} : vector<8x1xf32> -> vector<8x1xf32>
    %529 = vector.broadcast %528 : vector<8x1xf32> to vector<8x16xf32>
    %530 = arith.mulf %525, %529 : vector<8x16xf32>
    %cst_241 = arith.constant dense<0.000000e+00> : vector<8x8xf32>
    %531 = tpu.matmul %530, %516, %cst_241 {dimension_numbers = #tpu.dot_dimension_numbers<[1], [0], [0], [1], [0, 0, 1, 1], [], []>} : vector<8x16xf32>, vector<16x8xf32>, vector<8x8xf32> -> vector<8x8xf32>
    %532 = vector.extract_strided_slice %499 {offsets = [0, 8], sizes = [8, 8], strides = [1, 1]} : vector<8x32xf32> to vector<8x8xf32>
    %533 = vector.extract_strided_slice %508 {offsets = [0, 8], sizes = [16, 8], strides = [1, 1]} : vector<16x32xf32> to vector<16x8xf32>
    %534 = vector.extract_strided_slice %509 {offsets = [0, 8], sizes = [16, 8], strides = [1, 1]} : vector<16x32xf32> to vector<16x8xf32>
    %cst_242 = arith.constant dense<0.000000e+00> : vector<8x16xf32>
    %535 = tpu.matmul %532, %533, %cst_242 {dimension_numbers = #tpu.dot_dimension_numbers<[1], [1], [0], [0], [0, 0, 1, 0], [], []>} : vector<8x8xf32>, vector<16x8xf32>, vector<8x16xf32> -> vector<8x16xf32>
    %cst_243 = arith.constant 0.353553385 : f32
    %536 = vector.broadcast %cst_243 : f32 to vector<8x16xf32>
    %537 = arith.mulf %535, %536 : vector<8x16xf32>
    %538 = arith.addf %537, %372 : vector<8x16xf32>
    %cst_244 = arith.constant dense<0xFF800000> : vector<8xf32>
    %539 = vector.multi_reduction <maximumf>, %538, %cst_244 [1] : vector<8x16xf32> to vector<8xf32>
    %540 = vector.shape_cast %539 : vector<8xf32> to vector<8x1xf32>
    %541 = vector.broadcast %540 : vector<8x1xf32> to vector<8x16xf32>
    %542 = arith.subf %538, %541 : vector<8x16xf32>
    %543 = math.exp %542 : vector<8x16xf32>
    %cst_245 = arith.constant dense<0.000000e+00> : vector<8xf32>
    %544 = vector.multi_reduction <add>, %543, %cst_245 [1] : vector<8x16xf32> to vector<8xf32>
    %545 = vector.shape_cast %544 : vector<8xf32> to vector<8x1xf32>
    %546 = tpu.reciprocal %545 {approx = true} : vector<8x1xf32> -> vector<8x1xf32>
    %547 = vector.broadcast %546 : vector<8x1xf32> to vector<8x16xf32>
    %548 = arith.mulf %543, %547 : vector<8x16xf32>
    %cst_246 = arith.constant dense<0.000000e+00> : vector<8x8xf32>
    %549 = tpu.matmul %548, %534, %cst_246 {dimension_numbers = #tpu.dot_dimension_numbers<[1], [0], [0], [1], [0, 0, 1, 1], [], []>} : vector<8x16xf32>, vector<16x8xf32>, vector<8x8xf32> -> vector<8x8xf32>
    %550 = vector.extract_strided_slice %499 {offsets = [0, 16], sizes = [8, 8], strides = [1, 1]} : vector<8x32xf32> to vector<8x8xf32>
    %551 = vector.extract_strided_slice %508 {offsets = [0, 16], sizes = [16, 8], strides = [1, 1]} : vector<16x32xf32> to vector<16x8xf32>
    %552 = vector.extract_strided_slice %509 {offsets = [0, 16], sizes = [16, 8], strides = [1, 1]} : vector<16x32xf32> to vector<16x8xf32>
    %cst_247 = arith.constant dense<0.000000e+00> : vector<8x16xf32>
    %553 = tpu.matmul %550, %551, %cst_247 {dimension_numbers = #tpu.dot_dimension_numbers<[1], [1], [0], [0], [0, 0, 1, 0], [], []>} : vector<8x8xf32>, vector<16x8xf32>, vector<8x16xf32> -> vector<8x16xf32>
    %cst_248 = arith.constant 0.353553385 : f32
    %554 = vector.broadcast %cst_248 : f32 to vector<8x16xf32>
    %555 = arith.mulf %553, %554 : vector<8x16xf32>
    %556 = arith.addf %555, %372 : vector<8x16xf32>
    %cst_249 = arith.constant dense<0xFF800000> : vector<8xf32>
    %557 = vector.multi_reduction <maximumf>, %556, %cst_249 [1] : vector<8x16xf32> to vector<8xf32>
    %558 = vector.shape_cast %557 : vector<8xf32> to vector<8x1xf32>
    %559 = vector.broadcast %558 : vector<8x1xf32> to vector<8x16xf32>
    %560 = arith.subf %556, %559 : vector<8x16xf32>
    %561 = math.exp %560 : vector<8x16xf32>
    %cst_250 = arith.constant dense<0.000000e+00> : vector<8xf32>
    %562 = vector.multi_reduction <add>, %561, %cst_250 [1] : vector<8x16xf32> to vector<8xf32>
    %563 = vector.shape_cast %562 : vector<8xf32> to vector<8x1xf32>
    %564 = tpu.reciprocal %563 {approx = true} : vector<8x1xf32> -> vector<8x1xf32>
    %565 = vector.broadcast %564 : vector<8x1xf32> to vector<8x16xf32>
    %566 = arith.mulf %561, %565 : vector<8x16xf32>
    %cst_251 = arith.constant dense<0.000000e+00> : vector<8x8xf32>
    %567 = tpu.matmul %566, %552, %cst_251 {dimension_numbers = #tpu.dot_dimension_numbers<[1], [0], [0], [1], [0, 0, 1, 1], [], []>} : vector<8x16xf32>, vector<16x8xf32>, vector<8x8xf32> -> vector<8x8xf32>
    %568 = vector.extract_strided_slice %499 {offsets = [0, 24], sizes = [8, 8], strides = [1, 1]} : vector<8x32xf32> to vector<8x8xf32>
    %569 = vector.extract_strided_slice %508 {offsets = [0, 24], sizes = [16, 8], strides = [1, 1]} : vector<16x32xf32> to vector<16x8xf32>
    %570 = vector.extract_strided_slice %509 {offsets = [0, 24], sizes = [16, 8], strides = [1, 1]} : vector<16x32xf32> to vector<16x8xf32>
    %cst_252 = arith.constant dense<0.000000e+00> : vector<8x16xf32>
    %571 = tpu.matmul %568, %569, %cst_252 {dimension_numbers = #tpu.dot_dimension_numbers<[1], [1], [0], [0], [0, 0, 1, 0], [], []>} : vector<8x8xf32>, vector<16x8xf32>, vector<8x16xf32> -> vector<8x16xf32>
    %cst_253 = arith.constant 0.353553385 : f32
    %572 = vector.broadcast %cst_253 : f32 to vector<8x16xf32>
    %573 = arith.mulf %571, %572 : vector<8x16xf32>
    %574 = arith.addf %573, %372 : vector<8x16xf32>
    %cst_254 = arith.constant dense<0xFF800000> : vector<8xf32>
    %575 = vector.multi_reduction <maximumf>, %574, %cst_254 [1] : vector<8x16xf32> to vector<8xf32>
    %576 = vector.shape_cast %575 : vector<8xf32> to vector<8x1xf32>
    %577 = vector.broadcast %576 : vector<8x1xf32> to vector<8x16xf32>
    %578 = arith.subf %574, %577 : vector<8x16xf32>
    %579 = math.exp %578 : vector<8x16xf32>
    %cst_255 = arith.constant dense<0.000000e+00> : vector<8xf32>
    %580 = vector.multi_reduction <add>, %579, %cst_255 [1] : vector<8x16xf32> to vector<8xf32>
    %581 = vector.shape_cast %580 : vector<8xf32> to vector<8x1xf32>
    %582 = tpu.reciprocal %581 {approx = true} : vector<8x1xf32> -> vector<8x1xf32>
    %583 = vector.broadcast %582 : vector<8x1xf32> to vector<8x16xf32>
    %584 = arith.mulf %579, %583 : vector<8x16xf32>
    %cst_256 = arith.constant dense<0.000000e+00> : vector<8x8xf32>
    %585 = tpu.matmul %584, %570, %cst_256 {dimension_numbers = #tpu.dot_dimension_numbers<[1], [0], [0], [1], [0, 0, 1, 1], [], []>} : vector<8x16xf32>, vector<16x8xf32>, vector<8x8xf32> -> vector<8x8xf32>
    %586 = tpu.concatenate %531, %549, %567, %585 in 1 : vector<8x8xf32>, vector<8x8xf32>, vector<8x8xf32>, vector<8x8xf32> -> vector<8x32xf32>
    %587 = arith.truncf %586 : vector<8x32xf32> to vector<8x32xbf16>
    %cst_257 = arith.constant dense<0.000000e+00> : vector<8x32xf32>
    %588 = tpu.matmul %587, %511, %cst_257 {dimension_numbers = #tpu.dot_dimension_numbers<[1], [0], [0], [1], [0, 0, 1, 1], [], []>} : vector<8x32xbf16>, vector<32x32xbf16>, vector<8x32xf32> -> vector<8x32xf32>
    %589 = vector.broadcast %513 : vector<1x32xf32> to vector<8x32xf32>
    %590 = arith.addf %588, %589 : vector<8x32xf32>
    %591 = arith.addf %491, %590 : vector<8x32xf32>
    %c0_258 = arith.constant 0 : index
    %c0_259 = arith.constant 0 : index
    %c0_260 = arith.constant 0 : index
    %592 = vector.load %arg37[%c0_258, %c0_259, %c0_260] : memref<2x1x32xf32, #tpu.memory_space<vmem>>, vector<1x1x32xf32>
    %593 = vector.shape_cast %592 : vector<1x1x32xf32> to vector<1x32xf32>
    %c0_261 = arith.constant 0 : index
    %c0_262 = arith.constant 0 : index
    %c0_263 = arith.constant 0 : index
    %594 = vector.load %arg38[%c0_261, %c0_262, %c0_263] : memref<2x1x32xf32, #tpu.memory_space<vmem>>, vector<1x1x32xf32>
    %595 = vector.shape_cast %594 : vector<1x1x32xf32> to vector<1x32xf32>
    %cst_264 = arith.constant dense<0.000000e+00> : vector<8xf32>
    %596 = vector.multi_reduction <add>, %591, %cst_264 [1] : vector<8x32xf32> to vector<8xf32>
    %597 = vector.shape_cast %596 : vector<8xf32> to vector<8x1xf32>
    %cst_265 = arith.constant 3.200000e+01 : f32
    %598 = vector.broadcast %cst_265 : f32 to vector<8x1xf32>
    %599 = arith.divf %597, %598 : vector<8x1xf32>
    %600 = vector.broadcast %599 : vector<8x1xf32> to vector<8x32xf32>
    %601 = arith.subf %591, %600 : vector<8x32xf32>
    %602 = arith.mulf %601, %601 : vector<8x32xf32>
    %cst_266 = arith.constant dense<0.000000e+00> : vector<8xf32>
    %603 = vector.multi_reduction <add>, %602, %cst_266 [1] : vector<8x32xf32> to vector<8xf32>
    %604 = vector.shape_cast %603 : vector<8xf32> to vector<8x1xf32>
    %cst_267 = arith.constant 3.200000e+01 : f32
    %605 = vector.broadcast %cst_267 : f32 to vector<8x1xf32>
    %606 = arith.divf %604, %605 : vector<8x1xf32>
    %607 = vector.broadcast %599 : vector<8x1xf32> to vector<8x32xf32>
    %608 = arith.subf %591, %607 : vector<8x32xf32>
    %cst_268 = arith.constant 9.99999974E-6 : f32
    %609 = vector.broadcast %cst_268 : f32 to vector<8x1xf32>
    %610 = arith.addf %606, %609 : vector<8x1xf32>
    %611 = math.rsqrt %610 : vector<8x1xf32>
    %612 = vector.broadcast %611 : vector<8x1xf32> to vector<8x32xf32>
    %613 = arith.mulf %608, %612 : vector<8x32xf32>
    %614 = vector.broadcast %593 : vector<1x32xf32> to vector<8x32xf32>
    %615 = arith.mulf %613, %614 : vector<8x32xf32>
    %616 = vector.broadcast %595 : vector<1x32xf32> to vector<8x32xf32>
    %617 = arith.addf %615, %616 : vector<8x32xf32>
    %c0_269 = arith.constant 0 : index
    %c0_270 = arith.constant 0 : index
    %c0_271 = arith.constant 0 : index
    %618 = vector.load %arg39[%c0_269, %c0_270, %c0_271] : memref<2x32x2048xbf16, #tpu.memory_space<vmem>>, vector<1x32x2048xbf16>
    %619 = vector.shape_cast %618 : vector<1x32x2048xbf16> to vector<32x2048xbf16>
    %c0_272 = arith.constant 0 : index
    %c0_273 = arith.constant 0 : index
    %c0_274 = arith.constant 0 : index
    %620 = vector.load %arg40[%c0_272, %c0_273, %c0_274] : memref<2x1x2048xf32, #tpu.memory_space<vmem>>, vector<1x1x2048xf32>
    %621 = vector.shape_cast %620 : vector<1x1x2048xf32> to vector<1x2048xf32>
    %c0_275 = arith.constant 0 : index
    %c0_276 = arith.constant 0 : index
    %c0_277 = arith.constant 0 : index
    %622 = vector.load %arg41[%c0_275, %c0_276, %c0_277] : memref<2x2048x32xbf16, #tpu.memory_space<vmem>>, vector<1x2048x32xbf16>
    %623 = vector.shape_cast %622 : vector<1x2048x32xbf16> to vector<2048x32xbf16>
    %c0_278 = arith.constant 0 : index
    %c0_279 = arith.constant 0 : index
    %c0_280 = arith.constant 0 : index
    %624 = vector.load %arg42[%c0_278, %c0_279, %c0_280] : memref<2x1x32xf32, #tpu.memory_space<vmem>>, vector<1x1x32xf32>
    %625 = vector.shape_cast %624 : vector<1x1x32xf32> to vector<1x32xf32>
    %626 = arith.truncf %617 : vector<8x32xf32> to vector<8x32xbf16>
    %cst_281 = arith.constant dense<0.000000e+00> : vector<8x2048xf32>
    %627 = tpu.matmul %626, %619, %cst_281 {dimension_numbers = #tpu.dot_dimension_numbers<[1], [0], [0], [1], [0, 0, 1, 1], [], []>} : vector<8x32xbf16>, vector<32x2048xbf16>, vector<8x2048xf32> -> vector<8x2048xf32>
    %628 = vector.broadcast %621 : vector<1x2048xf32> to vector<8x2048xf32>
    %629 = arith.addf %627, %628 : vector<8x2048xf32>
    %cst_282 = arith.constant 0.000000e+00 : f32
    %630 = vector.broadcast %cst_282 : f32 to vector<8x2048xf32>
    %631 = arith.maximumf %629, %630 : vector<8x2048xf32>
    %632 = arith.truncf %631 : vector<8x2048xf32> to vector<8x2048xbf16>
    %cst_283 = arith.constant dense<0.000000e+00> : vector<8x32xf32>
    %633 = tpu.matmul %632, %623, %cst_283 {dimension_numbers = #tpu.dot_dimension_numbers<[1], [0], [0], [1], [0, 0, 1, 1], [], []>} : vector<8x2048xbf16>, vector<2048x32xbf16>, vector<8x32xf32> -> vector<8x32xf32>
    %634 = vector.broadcast %625 : vector<1x32xf32> to vector<8x32xf32>
    %635 = arith.addf %633, %634 : vector<8x32xf32>
    %636 = arith.addf %617, %635 : vector<8x32xf32>
    %c0_284 = arith.constant 0 : index
    %c0_285 = arith.constant 0 : index
    %c0_286 = arith.constant 0 : index
    %637 = vector.load %arg43[%c0_284, %c0_285, %c0_286] : memref<2x1x32xf32, #tpu.memory_space<vmem>>, vector<1x1x32xf32>
    %638 = vector.shape_cast %637 : vector<1x1x32xf32> to vector<1x32xf32>
    %c0_287 = arith.constant 0 : index
    %c0_288 = arith.constant 0 : index
    %c0_289 = arith.constant 0 : index
    %639 = vector.load %arg44[%c0_287, %c0_288, %c0_289] : memref<2x1x32xf32, #tpu.memory_space<vmem>>, vector<1x1x32xf32>
    %640 = vector.shape_cast %639 : vector<1x1x32xf32> to vector<1x32xf32>
    %cst_290 = arith.constant dense<0.000000e+00> : vector<8xf32>
    %641 = vector.multi_reduction <add>, %636, %cst_290 [1] : vector<8x32xf32> to vector<8xf32>
    %642 = vector.shape_cast %641 : vector<8xf32> to vector<8x1xf32>
    %cst_291 = arith.constant 3.200000e+01 : f32
    %643 = vector.broadcast %cst_291 : f32 to vector<8x1xf32>
    %644 = arith.divf %642, %643 : vector<8x1xf32>
    %645 = vector.broadcast %644 : vector<8x1xf32> to vector<8x32xf32>
    %646 = arith.subf %636, %645 : vector<8x32xf32>
    %647 = arith.mulf %646, %646 : vector<8x32xf32>
    %cst_292 = arith.constant dense<0.000000e+00> : vector<8xf32>
    %648 = vector.multi_reduction <add>, %647, %cst_292 [1] : vector<8x32xf32> to vector<8xf32>
    %649 = vector.shape_cast %648 : vector<8xf32> to vector<8x1xf32>
    %cst_293 = arith.constant 3.200000e+01 : f32
    %650 = vector.broadcast %cst_293 : f32 to vector<8x1xf32>
    %651 = arith.divf %649, %650 : vector<8x1xf32>
    %652 = vector.broadcast %644 : vector<8x1xf32> to vector<8x32xf32>
    %653 = arith.subf %636, %652 : vector<8x32xf32>
    %cst_294 = arith.constant 9.99999974E-6 : f32
    %654 = vector.broadcast %cst_294 : f32 to vector<8x1xf32>
    %655 = arith.addf %651, %654 : vector<8x1xf32>
    %656 = math.rsqrt %655 : vector<8x1xf32>
    %657 = vector.broadcast %656 : vector<8x1xf32> to vector<8x32xf32>
    %658 = arith.mulf %653, %657 : vector<8x32xf32>
    %659 = vector.broadcast %638 : vector<1x32xf32> to vector<8x32xf32>
    %660 = arith.mulf %658, %659 : vector<8x32xf32>
    %661 = vector.broadcast %640 : vector<1x32xf32> to vector<8x32xf32>
    %662 = arith.addf %660, %661 : vector<8x32xf32>
    %c1_295 = arith.constant 1 : index
    %c0_296 = arith.constant 0 : index
    %c0_297 = arith.constant 0 : index
    %663 = vector.load %arg25[%c1_295, %c0_296, %c0_297] : memref<2x32x96xbf16, #tpu.memory_space<vmem>>, vector<1x32x96xbf16>
    %664 = vector.shape_cast %663 : vector<1x32x96xbf16> to vector<32x96xbf16>
    %665 = arith.truncf %662 : vector<8x32xf32> to vector<8x32xbf16>
    %cst_298 = arith.constant dense<0.000000e+00> : vector<8x96xf32>
    %666 = tpu.matmul %665, %664, %cst_298 {dimension_numbers = #tpu.dot_dimension_numbers<[1], [0], [0], [1], [0, 0, 1, 1], [], []>} : vector<8x32xbf16>, vector<32x96xbf16>, vector<8x96xf32> -> vector<8x96xf32>
    %c1_299 = arith.constant 1 : index
    %c0_300 = arith.constant 0 : index
    %c0_301 = arith.constant 0 : index
    %667 = vector.load %arg26[%c1_299, %c0_300, %c0_301] : memref<2x1x96xf32, #tpu.memory_space<vmem>>, vector<1x1x96xf32>
    %668 = vector.shape_cast %667 : vector<1x1x96xf32> to vector<1x96xf32>
    %669 = vector.broadcast %668 : vector<1x96xf32> to vector<8x96xf32>
    %670 = arith.addf %666, %669 : vector<8x96xf32>
    %671 = vector.extract_strided_slice %670 {offsets = [0, 0], sizes = [8, 32], strides = [1, 1]} : vector<8x96xf32> to vector<8x32xf32>
    %672 = vector.extract_strided_slice %670 {offsets = [0, 32], sizes = [8, 32], strides = [1, 1]} : vector<8x96xf32> to vector<8x32xf32>
    %673 = vector.extract_strided_slice %670 {offsets = [0, 64], sizes = [8, 32], strides = [1, 1]} : vector<8x96xf32> to vector<8x32xf32>
    %c1_302 = arith.constant 1 : index
    %c0_303 = arith.constant 0 : index
    %c0_304 = arith.constant 0 : index
    %674 = vector.load %arg27[%c1_302, %c0_303, %c0_304] : memref<2x32x32xbf16, #tpu.memory_space<vmem>>, vector<1x32x32xbf16>
    %675 = vector.shape_cast %674 : vector<1x32x32xbf16> to vector<32x32xbf16>
    %c1_305 = arith.constant 1 : index
    %c0_306 = arith.constant 0 : index
    %c0_307 = arith.constant 0 : index
    %676 = vector.load %arg28[%c1_305, %c0_306, %c0_307] : memref<2x1x32xf32, #tpu.memory_space<vmem>>, vector<1x1x32xf32>
    %677 = vector.shape_cast %676 : vector<1x1x32xf32> to vector<1x32xf32>
    %678 = vector.extract_strided_slice %671 {offsets = [0, 0], sizes = [8, 8], strides = [1, 1]} : vector<8x32xf32> to vector<8x8xf32>
    %679 = vector.extract_strided_slice %672 {offsets = [0, 0], sizes = [8, 8], strides = [1, 1]} : vector<8x32xf32> to vector<8x8xf32>
    %680 = vector.extract_strided_slice %673 {offsets = [0, 0], sizes = [8, 8], strides = [1, 1]} : vector<8x32xf32> to vector<8x8xf32>
    %cst_308 = arith.constant dense<0.000000e+00> : vector<8x8xf32>
    %681 = tpu.matmul %678, %679, %cst_308 {dimension_numbers = #tpu.dot_dimension_numbers<[1], [1], [0], [0], [0, 0, 1, 0], [], []>} : vector<8x8xf32>, vector<8x8xf32>, vector<8x8xf32> -> vector<8x8xf32>
    %cst_309 = arith.constant 0.353553385 : f32
    %682 = vector.broadcast %cst_309 : f32 to vector<8x8xf32>
    %683 = arith.mulf %681, %682 : vector<8x8xf32>
    %684 = arith.addf %683, %371 : vector<8x8xf32>
    %cst_310 = arith.constant dense<0xFF800000> : vector<8xf32>
    %685 = vector.multi_reduction <maximumf>, %684, %cst_310 [1] : vector<8x8xf32> to vector<8xf32>
    %686 = vector.shape_cast %685 : vector<8xf32> to vector<8x1xf32>
    %687 = vector.broadcast %686 : vector<8x1xf32> to vector<8x8xf32>
    %688 = arith.subf %684, %687 : vector<8x8xf32>
    %689 = math.exp %688 : vector<8x8xf32>
    %cst_311 = arith.constant dense<0.000000e+00> : vector<8xf32>
    %690 = vector.multi_reduction <add>, %689, %cst_311 [1] : vector<8x8xf32> to vector<8xf32>
    %691 = vector.shape_cast %690 : vector<8xf32> to vector<8x1xf32>
    %692 = tpu.reciprocal %691 {approx = true} : vector<8x1xf32> -> vector<8x1xf32>
    %693 = vector.broadcast %692 : vector<8x1xf32> to vector<8x8xf32>
    %694 = arith.mulf %689, %693 : vector<8x8xf32>
    %cst_312 = arith.constant dense<0.000000e+00> : vector<8x8xf32>
    %695 = tpu.matmul %694, %680, %cst_312 {dimension_numbers = #tpu.dot_dimension_numbers<[1], [0], [0], [1], [0, 0, 1, 1], [], []>} : vector<8x8xf32>, vector<8x8xf32>, vector<8x8xf32> -> vector<8x8xf32>
    %696 = vector.extract_strided_slice %671 {offsets = [0, 8], sizes = [8, 8], strides = [1, 1]} : vector<8x32xf32> to vector<8x8xf32>
    %697 = vector.extract_strided_slice %672 {offsets = [0, 8], sizes = [8, 8], strides = [1, 1]} : vector<8x32xf32> to vector<8x8xf32>
    %698 = vector.extract_strided_slice %673 {offsets = [0, 8], sizes = [8, 8], strides = [1, 1]} : vector<8x32xf32> to vector<8x8xf32>
    %cst_313 = arith.constant dense<0.000000e+00> : vector<8x8xf32>
    %699 = tpu.matmul %696, %697, %cst_313 {dimension_numbers = #tpu.dot_dimension_numbers<[1], [1], [0], [0], [0, 0, 1, 0], [], []>} : vector<8x8xf32>, vector<8x8xf32>, vector<8x8xf32> -> vector<8x8xf32>
    %cst_314 = arith.constant 0.353553385 : f32
    %700 = vector.broadcast %cst_314 : f32 to vector<8x8xf32>
    %701 = arith.mulf %699, %700 : vector<8x8xf32>
    %702 = arith.addf %701, %371 : vector<8x8xf32>
    %cst_315 = arith.constant dense<0xFF800000> : vector<8xf32>
    %703 = vector.multi_reduction <maximumf>, %702, %cst_315 [1] : vector<8x8xf32> to vector<8xf32>
    %704 = vector.shape_cast %703 : vector<8xf32> to vector<8x1xf32>
    %705 = vector.broadcast %704 : vector<8x1xf32> to vector<8x8xf32>
    %706 = arith.subf %702, %705 : vector<8x8xf32>
    %707 = math.exp %706 : vector<8x8xf32>
    %cst_316 = arith.constant dense<0.000000e+00> : vector<8xf32>
    %708 = vector.multi_reduction <add>, %707, %cst_316 [1] : vector<8x8xf32> to vector<8xf32>
    %709 = vector.shape_cast %708 : vector<8xf32> to vector<8x1xf32>
    %710 = tpu.reciprocal %709 {approx = true} : vector<8x1xf32> -> vector<8x1xf32>
    %711 = vector.broadcast %710 : vector<8x1xf32> to vector<8x8xf32>
    %712 = arith.mulf %707, %711 : vector<8x8xf32>
    %cst_317 = arith.constant dense<0.000000e+00> : vector<8x8xf32>
    %713 = tpu.matmul %712, %698, %cst_317 {dimension_numbers = #tpu.dot_dimension_numbers<[1], [0], [0], [1], [0, 0, 1, 1], [], []>} : vector<8x8xf32>, vector<8x8xf32>, vector<8x8xf32> -> vector<8x8xf32>
    %714 = vector.extract_strided_slice %671 {offsets = [0, 16], sizes = [8, 8], strides = [1, 1]} : vector<8x32xf32> to vector<8x8xf32>
    %715 = vector.extract_strided_slice %672 {offsets = [0, 16], sizes = [8, 8], strides = [1, 1]} : vector<8x32xf32> to vector<8x8xf32>
    %716 = vector.extract_strided_slice %673 {offsets = [0, 16], sizes = [8, 8], strides = [1, 1]} : vector<8x32xf32> to vector<8x8xf32>
    %cst_318 = arith.constant dense<0.000000e+00> : vector<8x8xf32>
    %717 = tpu.matmul %714, %715, %cst_318 {dimension_numbers = #tpu.dot_dimension_numbers<[1], [1], [0], [0], [0, 0, 1, 0], [], []>} : vector<8x8xf32>, vector<8x8xf32>, vector<8x8xf32> -> vector<8x8xf32>
    %cst_319 = arith.constant 0.353553385 : f32
    %718 = vector.broadcast %cst_319 : f32 to vector<8x8xf32>
    %719 = arith.mulf %717, %718 : vector<8x8xf32>
    %720 = arith.addf %719, %371 : vector<8x8xf32>
    %cst_320 = arith.constant dense<0xFF800000> : vector<8xf32>
    %721 = vector.multi_reduction <maximumf>, %720, %cst_320 [1] : vector<8x8xf32> to vector<8xf32>
    %722 = vector.shape_cast %721 : vector<8xf32> to vector<8x1xf32>
    %723 = vector.broadcast %722 : vector<8x1xf32> to vector<8x8xf32>
    %724 = arith.subf %720, %723 : vector<8x8xf32>
    %725 = math.exp %724 : vector<8x8xf32>
    %cst_321 = arith.constant dense<0.000000e+00> : vector<8xf32>
    %726 = vector.multi_reduction <add>, %725, %cst_321 [1] : vector<8x8xf32> to vector<8xf32>
    %727 = vector.shape_cast %726 : vector<8xf32> to vector<8x1xf32>
    %728 = tpu.reciprocal %727 {approx = true} : vector<8x1xf32> -> vector<8x1xf32>
    %729 = vector.broadcast %728 : vector<8x1xf32> to vector<8x8xf32>
    %730 = arith.mulf %725, %729 : vector<8x8xf32>
    %cst_322 = arith.constant dense<0.000000e+00> : vector<8x8xf32>
    %731 = tpu.matmul %730, %716, %cst_322 {dimension_numbers = #tpu.dot_dimension_numbers<[1], [0], [0], [1], [0, 0, 1, 1], [], []>} : vector<8x8xf32>, vector<8x8xf32>, vector<8x8xf32> -> vector<8x8xf32>
    %732 = vector.extract_strided_slice %671 {offsets = [0, 24], sizes = [8, 8], strides = [1, 1]} : vector<8x32xf32> to vector<8x8xf32>
    %733 = vector.extract_strided_slice %672 {offsets = [0, 24], sizes = [8, 8], strides = [1, 1]} : vector<8x32xf32> to vector<8x8xf32>
    %734 = vector.extract_strided_slice %673 {offsets = [0, 24], sizes = [8, 8], strides = [1, 1]} : vector<8x32xf32> to vector<8x8xf32>
    %cst_323 = arith.constant dense<0.000000e+00> : vector<8x8xf32>
    %735 = tpu.matmul %732, %733, %cst_323 {dimension_numbers = #tpu.dot_dimension_numbers<[1], [1], [0], [0], [0, 0, 1, 0], [], []>} : vector<8x8xf32>, vector<8x8xf32>, vector<8x8xf32> -> vector<8x8xf32>
    %cst_324 = arith.constant 0.353553385 : f32
    %736 = vector.broadcast %cst_324 : f32 to vector<8x8xf32>
    %737 = arith.mulf %735, %736 : vector<8x8xf32>
    %738 = arith.addf %737, %371 : vector<8x8xf32>
    %cst_325 = arith.constant dense<0xFF800000> : vector<8xf32>
    %739 = vector.multi_reduction <maximumf>, %738, %cst_325 [1] : vector<8x8xf32> to vector<8xf32>
    %740 = vector.shape_cast %739 : vector<8xf32> to vector<8x1xf32>
    %741 = vector.broadcast %740 : vector<8x1xf32> to vector<8x8xf32>
    %742 = arith.subf %738, %741 : vector<8x8xf32>
    %743 = math.exp %742 : vector<8x8xf32>
    %cst_326 = arith.constant dense<0.000000e+00> : vector<8xf32>
    %744 = vector.multi_reduction <add>, %743, %cst_326 [1] : vector<8x8xf32> to vector<8xf32>
    %745 = vector.shape_cast %744 : vector<8xf32> to vector<8x1xf32>
    %746 = tpu.reciprocal %745 {approx = true} : vector<8x1xf32> -> vector<8x1xf32>
    %747 = vector.broadcast %746 : vector<8x1xf32> to vector<8x8xf32>
    %748 = arith.mulf %743, %747 : vector<8x8xf32>
    %cst_327 = arith.constant dense<0.000000e+00> : vector<8x8xf32>
    %749 = tpu.matmul %748, %734, %cst_327 {dimension_numbers = #tpu.dot_dimension_numbers<[1], [0], [0], [1], [0, 0, 1, 1], [], []>} : vector<8x8xf32>, vector<8x8xf32>, vector<8x8xf32> -> vector<8x8xf32>
    %750 = tpu.concatenate %695, %713, %731, %749 in 1 : vector<8x8xf32>, vector<8x8xf32>, vector<8x8xf32>, vector<8x8xf32> -> vector<8x32xf32>
    %751 = arith.truncf %750 : vector<8x32xf32> to vector<8x32xbf16>
    %cst_328 = arith.constant dense<0.000000e+00> : vector<8x32xf32>
    %752 = tpu.matmul %751, %675, %cst_328 {dimension_numbers = #tpu.dot_dimension_numbers<[1], [0], [0], [1], [0, 0, 1, 1], [], []>} : vector<8x32xbf16>, vector<32x32xbf16>, vector<8x32xf32> -> vector<8x32xf32>
    %753 = vector.broadcast %677 : vector<1x32xf32> to vector<8x32xf32>
    %754 = arith.addf %752, %753 : vector<8x32xf32>
    %755 = arith.addf %662, %754 : vector<8x32xf32>
    %c1_329 = arith.constant 1 : index
    %c0_330 = arith.constant 0 : index
    %c0_331 = arith.constant 0 : index
    %756 = vector.load %arg29[%c1_329, %c0_330, %c0_331] : memref<2x1x32xf32, #tpu.memory_space<vmem>>, vector<1x1x32xf32>
    %757 = vector.shape_cast %756 : vector<1x1x32xf32> to vector<1x32xf32>
    %c1_332 = arith.constant 1 : index
    %c0_333 = arith.constant 0 : index
    %c0_334 = arith.constant 0 : index
    %758 = vector.load %arg30[%c1_332, %c0_333, %c0_334] : memref<2x1x32xf32, #tpu.memory_space<vmem>>, vector<1x1x32xf32>
    %759 = vector.shape_cast %758 : vector<1x1x32xf32> to vector<1x32xf32>
    %cst_335 = arith.constant dense<0.000000e+00> : vector<8xf32>
    %760 = vector.multi_reduction <add>, %755, %cst_335 [1] : vector<8x32xf32> to vector<8xf32>
    %761 = vector.shape_cast %760 : vector<8xf32> to vector<8x1xf32>
    %cst_336 = arith.constant 3.200000e+01 : f32
    %762 = vector.broadcast %cst_336 : f32 to vector<8x1xf32>
    %763 = arith.divf %761, %762 : vector<8x1xf32>
    %764 = vector.broadcast %763 : vector<8x1xf32> to vector<8x32xf32>
    %765 = arith.subf %755, %764 : vector<8x32xf32>
    %766 = arith.mulf %765, %765 : vector<8x32xf32>
    %cst_337 = arith.constant dense<0.000000e+00> : vector<8xf32>
    %767 = vector.multi_reduction <add>, %766, %cst_337 [1] : vector<8x32xf32> to vector<8xf32>
    %768 = vector.shape_cast %767 : vector<8xf32> to vector<8x1xf32>
    %cst_338 = arith.constant 3.200000e+01 : f32
    %769 = vector.broadcast %cst_338 : f32 to vector<8x1xf32>
    %770 = arith.divf %768, %769 : vector<8x1xf32>
    %771 = vector.broadcast %763 : vector<8x1xf32> to vector<8x32xf32>
    %772 = arith.subf %755, %771 : vector<8x32xf32>
    %cst_339 = arith.constant 9.99999974E-6 : f32
    %773 = vector.broadcast %cst_339 : f32 to vector<8x1xf32>
    %774 = arith.addf %770, %773 : vector<8x1xf32>
    %775 = math.rsqrt %774 : vector<8x1xf32>
    %776 = vector.broadcast %775 : vector<8x1xf32> to vector<8x32xf32>
    %777 = arith.mulf %772, %776 : vector<8x32xf32>
    %778 = vector.broadcast %757 : vector<1x32xf32> to vector<8x32xf32>
    %779 = arith.mulf %777, %778 : vector<8x32xf32>
    %780 = vector.broadcast %759 : vector<1x32xf32> to vector<8x32xf32>
    %781 = arith.addf %779, %780 : vector<8x32xf32>
    %c1_340 = arith.constant 1 : index
    %c0_341 = arith.constant 0 : index
    %c0_342 = arith.constant 0 : index
    %782 = vector.load %arg31[%c1_340, %c0_341, %c0_342] : memref<2x32x32xbf16, #tpu.memory_space<vmem>>, vector<1x32x32xbf16>
    %783 = vector.shape_cast %782 : vector<1x32x32xbf16> to vector<32x32xbf16>
    %784 = arith.truncf %781 : vector<8x32xf32> to vector<8x32xbf16>
    %cst_343 = arith.constant dense<0.000000e+00> : vector<8x32xf32>
    %785 = tpu.matmul %784, %783, %cst_343 {dimension_numbers = #tpu.dot_dimension_numbers<[1], [0], [0], [1], [0, 0, 1, 1], [], []>} : vector<8x32xbf16>, vector<32x32xbf16>, vector<8x32xf32> -> vector<8x32xf32>
    %c1_344 = arith.constant 1 : index
    %c0_345 = arith.constant 0 : index
    %c0_346 = arith.constant 0 : index
    %786 = vector.load %arg32[%c1_344, %c0_345, %c0_346] : memref<2x1x32xf32, #tpu.memory_space<vmem>>, vector<1x1x32xf32>
    %787 = vector.shape_cast %786 : vector<1x1x32xf32> to vector<1x32xf32>
    %788 = vector.broadcast %787 : vector<1x32xf32> to vector<8x32xf32>
    %789 = arith.addf %785, %788 : vector<8x32xf32>
    %c1_347 = arith.constant 1 : index
    %c0_348 = arith.constant 0 : index
    %c0_349 = arith.constant 0 : index
    %790 = vector.load %arg33[%c1_347, %c0_348, %c0_349] : memref<2x32x64xbf16, #tpu.memory_space<vmem>>, vector<1x32x64xbf16>
    %791 = vector.shape_cast %790 : vector<1x32x64xbf16> to vector<32x64xbf16>
    %792 = arith.truncf %361 : vector<16x32xf32> to vector<16x32xbf16>
    %cst_350 = arith.constant dense<0.000000e+00> : vector<16x64xf32>
    %793 = tpu.matmul %792, %791, %cst_350 {dimension_numbers = #tpu.dot_dimension_numbers<[1], [0], [0], [1], [0, 0, 1, 1], [], []>} : vector<16x32xbf16>, vector<32x64xbf16>, vector<16x64xf32> -> vector<16x64xf32>
    %c1_351 = arith.constant 1 : index
    %c0_352 = arith.constant 0 : index
    %c0_353 = arith.constant 0 : index
    %794 = vector.load %arg34[%c1_351, %c0_352, %c0_353] : memref<2x1x64xf32, #tpu.memory_space<vmem>>, vector<1x1x64xf32>
    %795 = vector.shape_cast %794 : vector<1x1x64xf32> to vector<1x64xf32>
    %796 = vector.broadcast %795 : vector<1x64xf32> to vector<16x64xf32>
    %797 = arith.addf %793, %796 : vector<16x64xf32>
    %798 = vector.extract_strided_slice %797 {offsets = [0, 0], sizes = [16, 32], strides = [1, 1]} : vector<16x64xf32> to vector<16x32xf32>
    %799 = vector.extract_strided_slice %797 {offsets = [0, 32], sizes = [16, 32], strides = [1, 1]} : vector<16x64xf32> to vector<16x32xf32>
    %c1_354 = arith.constant 1 : index
    %c0_355 = arith.constant 0 : index
    %c0_356 = arith.constant 0 : index
    %800 = vector.load %arg35[%c1_354, %c0_355, %c0_356] : memref<2x32x32xbf16, #tpu.memory_space<vmem>>, vector<1x32x32xbf16>
    %801 = vector.shape_cast %800 : vector<1x32x32xbf16> to vector<32x32xbf16>
    %c1_357 = arith.constant 1 : index
    %c0_358 = arith.constant 0 : index
    %c0_359 = arith.constant 0 : index
    %802 = vector.load %arg36[%c1_357, %c0_358, %c0_359] : memref<2x1x32xf32, #tpu.memory_space<vmem>>, vector<1x1x32xf32>
    %803 = vector.shape_cast %802 : vector<1x1x32xf32> to vector<1x32xf32>
    %804 = vector.extract_strided_slice %789 {offsets = [0, 0], sizes = [8, 8], strides = [1, 1]} : vector<8x32xf32> to vector<8x8xf32>
    %805 = vector.extract_strided_slice %798 {offsets = [0, 0], sizes = [16, 8], strides = [1, 1]} : vector<16x32xf32> to vector<16x8xf32>
    %806 = vector.extract_strided_slice %799 {offsets = [0, 0], sizes = [16, 8], strides = [1, 1]} : vector<16x32xf32> to vector<16x8xf32>
    %cst_360 = arith.constant dense<0.000000e+00> : vector<8x16xf32>
    %807 = tpu.matmul %804, %805, %cst_360 {dimension_numbers = #tpu.dot_dimension_numbers<[1], [1], [0], [0], [0, 0, 1, 0], [], []>} : vector<8x8xf32>, vector<16x8xf32>, vector<8x16xf32> -> vector<8x16xf32>
    %cst_361 = arith.constant 0.353553385 : f32
    %808 = vector.broadcast %cst_361 : f32 to vector<8x16xf32>
    %809 = arith.mulf %807, %808 : vector<8x16xf32>
    %810 = arith.addf %809, %372 : vector<8x16xf32>
    %cst_362 = arith.constant dense<0xFF800000> : vector<8xf32>
    %811 = vector.multi_reduction <maximumf>, %810, %cst_362 [1] : vector<8x16xf32> to vector<8xf32>
    %812 = vector.shape_cast %811 : vector<8xf32> to vector<8x1xf32>
    %813 = vector.broadcast %812 : vector<8x1xf32> to vector<8x16xf32>
    %814 = arith.subf %810, %813 : vector<8x16xf32>
    %815 = math.exp %814 : vector<8x16xf32>
    %cst_363 = arith.constant dense<0.000000e+00> : vector<8xf32>
    %816 = vector.multi_reduction <add>, %815, %cst_363 [1] : vector<8x16xf32> to vector<8xf32>
    %817 = vector.shape_cast %816 : vector<8xf32> to vector<8x1xf32>
    %818 = tpu.reciprocal %817 {approx = true} : vector<8x1xf32> -> vector<8x1xf32>
    %819 = vector.broadcast %818 : vector<8x1xf32> to vector<8x16xf32>
    %820 = arith.mulf %815, %819 : vector<8x16xf32>
    %cst_364 = arith.constant dense<0.000000e+00> : vector<8x8xf32>
    %821 = tpu.matmul %820, %806, %cst_364 {dimension_numbers = #tpu.dot_dimension_numbers<[1], [0], [0], [1], [0, 0, 1, 1], [], []>} : vector<8x16xf32>, vector<16x8xf32>, vector<8x8xf32> -> vector<8x8xf32>
    %822 = vector.extract_strided_slice %789 {offsets = [0, 8], sizes = [8, 8], strides = [1, 1]} : vector<8x32xf32> to vector<8x8xf32>
    %823 = vector.extract_strided_slice %798 {offsets = [0, 8], sizes = [16, 8], strides = [1, 1]} : vector<16x32xf32> to vector<16x8xf32>
    %824 = vector.extract_strided_slice %799 {offsets = [0, 8], sizes = [16, 8], strides = [1, 1]} : vector<16x32xf32> to vector<16x8xf32>
    %cst_365 = arith.constant dense<0.000000e+00> : vector<8x16xf32>
    %825 = tpu.matmul %822, %823, %cst_365 {dimension_numbers = #tpu.dot_dimension_numbers<[1], [1], [0], [0], [0, 0, 1, 0], [], []>} : vector<8x8xf32>, vector<16x8xf32>, vector<8x16xf32> -> vector<8x16xf32>
    %cst_366 = arith.constant 0.353553385 : f32
    %826 = vector.broadcast %cst_366 : f32 to vector<8x16xf32>
    %827 = arith.mulf %825, %826 : vector<8x16xf32>
    %828 = arith.addf %827, %372 : vector<8x16xf32>
    %cst_367 = arith.constant dense<0xFF800000> : vector<8xf32>
    %829 = vector.multi_reduction <maximumf>, %828, %cst_367 [1] : vector<8x16xf32> to vector<8xf32>
    %830 = vector.shape_cast %829 : vector<8xf32> to vector<8x1xf32>
    %831 = vector.broadcast %830 : vector<8x1xf32> to vector<8x16xf32>
    %832 = arith.subf %828, %831 : vector<8x16xf32>
    %833 = math.exp %832 : vector<8x16xf32>
    %cst_368 = arith.constant dense<0.000000e+00> : vector<8xf32>
    %834 = vector.multi_reduction <add>, %833, %cst_368 [1] : vector<8x16xf32> to vector<8xf32>
    %835 = vector.shape_cast %834 : vector<8xf32> to vector<8x1xf32>
    %836 = tpu.reciprocal %835 {approx = true} : vector<8x1xf32> -> vector<8x1xf32>
    %837 = vector.broadcast %836 : vector<8x1xf32> to vector<8x16xf32>
    %838 = arith.mulf %833, %837 : vector<8x16xf32>
    %cst_369 = arith.constant dense<0.000000e+00> : vector<8x8xf32>
    %839 = tpu.matmul %838, %824, %cst_369 {dimension_numbers = #tpu.dot_dimension_numbers<[1], [0], [0], [1], [0, 0, 1, 1], [], []>} : vector<8x16xf32>, vector<16x8xf32>, vector<8x8xf32> -> vector<8x8xf32>
    %840 = vector.extract_strided_slice %789 {offsets = [0, 16], sizes = [8, 8], strides = [1, 1]} : vector<8x32xf32> to vector<8x8xf32>
    %841 = vector.extract_strided_slice %798 {offsets = [0, 16], sizes = [16, 8], strides = [1, 1]} : vector<16x32xf32> to vector<16x8xf32>
    %842 = vector.extract_strided_slice %799 {offsets = [0, 16], sizes = [16, 8], strides = [1, 1]} : vector<16x32xf32> to vector<16x8xf32>
    %cst_370 = arith.constant dense<0.000000e+00> : vector<8x16xf32>
    %843 = tpu.matmul %840, %841, %cst_370 {dimension_numbers = #tpu.dot_dimension_numbers<[1], [1], [0], [0], [0, 0, 1, 0], [], []>} : vector<8x8xf32>, vector<16x8xf32>, vector<8x16xf32> -> vector<8x16xf32>
    %cst_371 = arith.constant 0.353553385 : f32
    %844 = vector.broadcast %cst_371 : f32 to vector<8x16xf32>
    %845 = arith.mulf %843, %844 : vector<8x16xf32>
    %846 = arith.addf %845, %372 : vector<8x16xf32>
    %cst_372 = arith.constant dense<0xFF800000> : vector<8xf32>
    %847 = vector.multi_reduction <maximumf>, %846, %cst_372 [1] : vector<8x16xf32> to vector<8xf32>
    %848 = vector.shape_cast %847 : vector<8xf32> to vector<8x1xf32>
    %849 = vector.broadcast %848 : vector<8x1xf32> to vector<8x16xf32>
    %850 = arith.subf %846, %849 : vector<8x16xf32>
    %851 = math.exp %850 : vector<8x16xf32>
    %cst_373 = arith.constant dense<0.000000e+00> : vector<8xf32>
    %852 = vector.multi_reduction <add>, %851, %cst_373 [1] : vector<8x16xf32> to vector<8xf32>
    %853 = vector.shape_cast %852 : vector<8xf32> to vector<8x1xf32>
    %854 = tpu.reciprocal %853 {approx = true} : vector<8x1xf32> -> vector<8x1xf32>
    %855 = vector.broadcast %854 : vector<8x1xf32> to vector<8x16xf32>
    %856 = arith.mulf %851, %855 : vector<8x16xf32>
    %cst_374 = arith.constant dense<0.000000e+00> : vector<8x8xf32>
    %857 = tpu.matmul %856, %842, %cst_374 {dimension_numbers = #tpu.dot_dimension_numbers<[1], [0], [0], [1], [0, 0, 1, 1], [], []>} : vector<8x16xf32>, vector<16x8xf32>, vector<8x8xf32> -> vector<8x8xf32>
    %858 = vector.extract_strided_slice %789 {offsets = [0, 24], sizes = [8, 8], strides = [1, 1]} : vector<8x32xf32> to vector<8x8xf32>
    %859 = vector.extract_strided_slice %798 {offsets = [0, 24], sizes = [16, 8], strides = [1, 1]} : vector<16x32xf32> to vector<16x8xf32>
    %860 = vector.extract_strided_slice %799 {offsets = [0, 24], sizes = [16, 8], strides = [1, 1]} : vector<16x32xf32> to vector<16x8xf32>
    %cst_375 = arith.constant dense<0.000000e+00> : vector<8x16xf32>
    %861 = tpu.matmul %858, %859, %cst_375 {dimension_numbers = #tpu.dot_dimension_numbers<[1], [1], [0], [0], [0, 0, 1, 0], [], []>} : vector<8x8xf32>, vector<16x8xf32>, vector<8x16xf32> -> vector<8x16xf32>
    %cst_376 = arith.constant 0.353553385 : f32
    %862 = vector.broadcast %cst_376 : f32 to vector<8x16xf32>
    %863 = arith.mulf %861, %862 : vector<8x16xf32>
    %864 = arith.addf %863, %372 : vector<8x16xf32>
    %cst_377 = arith.constant dense<0xFF800000> : vector<8xf32>
    %865 = vector.multi_reduction <maximumf>, %864, %cst_377 [1] : vector<8x16xf32> to vector<8xf32>
    %866 = vector.shape_cast %865 : vector<8xf32> to vector<8x1xf32>
    %867 = vector.broadcast %866 : vector<8x1xf32> to vector<8x16xf32>
    %868 = arith.subf %864, %867 : vector<8x16xf32>
    %869 = math.exp %868 : vector<8x16xf32>
    %cst_378 = arith.constant dense<0.000000e+00> : vector<8xf32>
    %870 = vector.multi_reduction <add>, %869, %cst_378 [1] : vector<8x16xf32> to vector<8xf32>
    %871 = vector.shape_cast %870 : vector<8xf32> to vector<8x1xf32>
    %872 = tpu.reciprocal %871 {approx = true} : vector<8x1xf32> -> vector<8x1xf32>
    %873 = vector.broadcast %872 : vector<8x1xf32> to vector<8x16xf32>
    %874 = arith.mulf %869, %873 : vector<8x16xf32>
    %cst_379 = arith.constant dense<0.000000e+00> : vector<8x8xf32>
    %875 = tpu.matmul %874, %860, %cst_379 {dimension_numbers = #tpu.dot_dimension_numbers<[1], [0], [0], [1], [0, 0, 1, 1], [], []>} : vector<8x16xf32>, vector<16x8xf32>, vector<8x8xf32> -> vector<8x8xf32>
    %876 = tpu.concatenate %821, %839, %857, %875 in 1 : vector<8x8xf32>, vector<8x8xf32>, vector<8x8xf32>, vector<8x8xf32> -> vector<8x32xf32>
    %877 = arith.truncf %876 : vector<8x32xf32> to vector<8x32xbf16>
    %cst_380 = arith.constant dense<0.000000e+00> : vector<8x32xf32>
    %878 = tpu.matmul %877, %801, %cst_380 {dimension_numbers = #tpu.dot_dimension_numbers<[1], [0], [0], [1], [0, 0, 1, 1], [], []>} : vector<8x32xbf16>, vector<32x32xbf16>, vector<8x32xf32> -> vector<8x32xf32>
    %879 = vector.broadcast %803 : vector<1x32xf32> to vector<8x32xf32>
    %880 = arith.addf %878, %879 : vector<8x32xf32>
    %881 = arith.addf %781, %880 : vector<8x32xf32>
    %c1_381 = arith.constant 1 : index
    %c0_382 = arith.constant 0 : index
    %c0_383 = arith.constant 0 : index
    %882 = vector.load %arg37[%c1_381, %c0_382, %c0_383] : memref<2x1x32xf32, #tpu.memory_space<vmem>>, vector<1x1x32xf32>
    %883 = vector.shape_cast %882 : vector<1x1x32xf32> to vector<1x32xf32>
    %c1_384 = arith.constant 1 : index
    %c0_385 = arith.constant 0 : index
    %c0_386 = arith.constant 0 : index
    %884 = vector.load %arg38[%c1_384, %c0_385, %c0_386] : memref<2x1x32xf32, #tpu.memory_space<vmem>>, vector<1x1x32xf32>
    %885 = vector.shape_cast %884 : vector<1x1x32xf32> to vector<1x32xf32>
    %cst_387 = arith.constant dense<0.000000e+00> : vector<8xf32>
    %886 = vector.multi_reduction <add>, %881, %cst_387 [1] : vector<8x32xf32> to vector<8xf32>
    %887 = vector.shape_cast %886 : vector<8xf32> to vector<8x1xf32>
    %cst_388 = arith.constant 3.200000e+01 : f32
    %888 = vector.broadcast %cst_388 : f32 to vector<8x1xf32>
    %889 = arith.divf %887, %888 : vector<8x1xf32>
    %890 = vector.broadcast %889 : vector<8x1xf32> to vector<8x32xf32>
    %891 = arith.subf %881, %890 : vector<8x32xf32>
    %892 = arith.mulf %891, %891 : vector<8x32xf32>
    %cst_389 = arith.constant dense<0.000000e+00> : vector<8xf32>
    %893 = vector.multi_reduction <add>, %892, %cst_389 [1] : vector<8x32xf32> to vector<8xf32>
    %894 = vector.shape_cast %893 : vector<8xf32> to vector<8x1xf32>
    %cst_390 = arith.constant 3.200000e+01 : f32
    %895 = vector.broadcast %cst_390 : f32 to vector<8x1xf32>
    %896 = arith.divf %894, %895 : vector<8x1xf32>
    %897 = vector.broadcast %889 : vector<8x1xf32> to vector<8x32xf32>
    %898 = arith.subf %881, %897 : vector<8x32xf32>
    %cst_391 = arith.constant 9.99999974E-6 : f32
    %899 = vector.broadcast %cst_391 : f32 to vector<8x1xf32>
    %900 = arith.addf %896, %899 : vector<8x1xf32>
    %901 = math.rsqrt %900 : vector<8x1xf32>
    %902 = vector.broadcast %901 : vector<8x1xf32> to vector<8x32xf32>
    %903 = arith.mulf %898, %902 : vector<8x32xf32>
    %904 = vector.broadcast %883 : vector<1x32xf32> to vector<8x32xf32>
    %905 = arith.mulf %903, %904 : vector<8x32xf32>
    %906 = vector.broadcast %885 : vector<1x32xf32> to vector<8x32xf32>
    %907 = arith.addf %905, %906 : vector<8x32xf32>
    %c1_392 = arith.constant 1 : index
    %c0_393 = arith.constant 0 : index
    %c0_394 = arith.constant 0 : index
    %908 = vector.load %arg39[%c1_392, %c0_393, %c0_394] : memref<2x32x2048xbf16, #tpu.memory_space<vmem>>, vector<1x32x2048xbf16>
    %909 = vector.shape_cast %908 : vector<1x32x2048xbf16> to vector<32x2048xbf16>
    %c1_395 = arith.constant 1 : index
    %c0_396 = arith.constant 0 : index
    %c0_397 = arith.constant 0 : index
    %910 = vector.load %arg40[%c1_395, %c0_396, %c0_397] : memref<2x1x2048xf32, #tpu.memory_space<vmem>>, vector<1x1x2048xf32>
    %911 = vector.shape_cast %910 : vector<1x1x2048xf32> to vector<1x2048xf32>
    %c1_398 = arith.constant 1 : index
    %c0_399 = arith.constant 0 : index
    %c0_400 = arith.constant 0 : index
    %912 = vector.load %arg41[%c1_398, %c0_399, %c0_400] : memref<2x2048x32xbf16, #tpu.memory_space<vmem>>, vector<1x2048x32xbf16>
    %913 = vector.shape_cast %912 : vector<1x2048x32xbf16> to vector<2048x32xbf16>
    %c1_401 = arith.constant 1 : index
    %c0_402 = arith.constant 0 : index
    %c0_403 = arith.constant 0 : index
    %914 = vector.load %arg42[%c1_401, %c0_402, %c0_403] : memref<2x1x32xf32, #tpu.memory_space<vmem>>, vector<1x1x32xf32>
    %915 = vector.shape_cast %914 : vector<1x1x32xf32> to vector<1x32xf32>
    %916 = arith.truncf %907 : vector<8x32xf32> to vector<8x32xbf16>
    %cst_404 = arith.constant dense<0.000000e+00> : vector<8x2048xf32>
    %917 = tpu.matmul %916, %909, %cst_404 {dimension_numbers = #tpu.dot_dimension_numbers<[1], [0], [0], [1], [0, 0, 1, 1], [], []>} : vector<8x32xbf16>, vector<32x2048xbf16>, vector<8x2048xf32> -> vector<8x2048xf32>
    %918 = vector.broadcast %911 : vector<1x2048xf32> to vector<8x2048xf32>
    %919 = arith.addf %917, %918 : vector<8x2048xf32>
    %cst_405 = arith.constant 0.000000e+00 : f32
    %920 = vector.broadcast %cst_405 : f32 to vector<8x2048xf32>
    %921 = arith.maximumf %919, %920 : vector<8x2048xf32>
    %922 = arith.truncf %921 : vector<8x2048xf32> to vector<8x2048xbf16>
    %cst_406 = arith.constant dense<0.000000e+00> : vector<8x32xf32>
    %923 = tpu.matmul %922, %913, %cst_406 {dimension_numbers = #tpu.dot_dimension_numbers<[1], [0], [0], [1], [0, 0, 1, 1], [], []>} : vector<8x2048xbf16>, vector<2048x32xbf16>, vector<8x32xf32> -> vector<8x32xf32>
    %924 = vector.broadcast %915 : vector<1x32xf32> to vector<8x32xf32>
    %925 = arith.addf %923, %924 : vector<8x32xf32>
    %926 = arith.addf %907, %925 : vector<8x32xf32>
    %c1_407 = arith.constant 1 : index
    %c0_408 = arith.constant 0 : index
    %c0_409 = arith.constant 0 : index
    %927 = vector.load %arg43[%c1_407, %c0_408, %c0_409] : memref<2x1x32xf32, #tpu.memory_space<vmem>>, vector<1x1x32xf32>
    %928 = vector.shape_cast %927 : vector<1x1x32xf32> to vector<1x32xf32>
    %c1_410 = arith.constant 1 : index
    %c0_411 = arith.constant 0 : index
    %c0_412 = arith.constant 0 : index
    %929 = vector.load %arg44[%c1_410, %c0_411, %c0_412] : memref<2x1x32xf32, #tpu.memory_space<vmem>>, vector<1x1x32xf32>
    %930 = vector.shape_cast %929 : vector<1x1x32xf32> to vector<1x32xf32>
    %cst_413 = arith.constant dense<0.000000e+00> : vector<8xf32>
    %931 = vector.multi_reduction <add>, %926, %cst_413 [1] : vector<8x32xf32> to vector<8xf32>
    %932 = vector.shape_cast %931 : vector<8xf32> to vector<8x1xf32>
    %cst_414 = arith.constant 3.200000e+01 : f32
    %933 = vector.broadcast %cst_414 : f32 to vector<8x1xf32>
    %934 = arith.divf %932, %933 : vector<8x1xf32>
    %935 = vector.broadcast %934 : vector<8x1xf32> to vector<8x32xf32>
    %936 = arith.subf %926, %935 : vector<8x32xf32>
    %937 = arith.mulf %936, %936 : vector<8x32xf32>
    %cst_415 = arith.constant dense<0.000000e+00> : vector<8xf32>
    %938 = vector.multi_reduction <add>, %937, %cst_415 [1] : vector<8x32xf32> to vector<8xf32>
    %939 = vector.shape_cast %938 : vector<8xf32> to vector<8x1xf32>
    %cst_416 = arith.constant 3.200000e+01 : f32
    %940 = vector.broadcast %cst_416 : f32 to vector<8x1xf32>
    %941 = arith.divf %939, %940 : vector<8x1xf32>
    %942 = vector.broadcast %934 : vector<8x1xf32> to vector<8x32xf32>
    %943 = arith.subf %926, %942 : vector<8x32xf32>
    %cst_417 = arith.constant 9.99999974E-6 : f32
    %944 = vector.broadcast %cst_417 : f32 to vector<8x1xf32>
    %945 = arith.addf %941, %944 : vector<8x1xf32>
    %946 = math.rsqrt %945 : vector<8x1xf32>
    %947 = vector.broadcast %946 : vector<8x1xf32> to vector<8x32xf32>
    %948 = arith.mulf %943, %947 : vector<8x32xf32>
    %949 = vector.broadcast %928 : vector<1x32xf32> to vector<8x32xf32>
    %950 = arith.mulf %948, %949 : vector<8x32xf32>
    %951 = vector.broadcast %930 : vector<1x32xf32> to vector<8x32xf32>
    %952 = arith.addf %950, %951 : vector<8x32xf32>
    %c0_418 = arith.constant 0 : index
    %c0_419 = arith.constant 0 : index
    %953 = vector.load %arg45[%c0_418, %c0_419] : memref<1x32xf32, #tpu.memory_space<vmem>>, vector<1x32xf32>
    %c0_420 = arith.constant 0 : index
    %c0_421 = arith.constant 0 : index
    %954 = vector.load %arg46[%c0_420, %c0_421] : memref<1x32xf32, #tpu.memory_space<vmem>>, vector<1x32xf32>
    %cst_422 = arith.constant dense<0.000000e+00> : vector<8xf32>
    %955 = vector.multi_reduction <add>, %952, %cst_422 [1] : vector<8x32xf32> to vector<8xf32>
    %956 = vector.shape_cast %955 : vector<8xf32> to vector<8x1xf32>
    %cst_423 = arith.constant 3.200000e+01 : f32
    %957 = vector.broadcast %cst_423 : f32 to vector<8x1xf32>
    %958 = arith.divf %956, %957 : vector<8x1xf32>
    %959 = vector.broadcast %958 : vector<8x1xf32> to vector<8x32xf32>
    %960 = arith.subf %952, %959 : vector<8x32xf32>
    %961 = arith.mulf %960, %960 : vector<8x32xf32>
    %cst_424 = arith.constant dense<0.000000e+00> : vector<8xf32>
    %962 = vector.multi_reduction <add>, %961, %cst_424 [1] : vector<8x32xf32> to vector<8xf32>
    %963 = vector.shape_cast %962 : vector<8xf32> to vector<8x1xf32>
    %cst_425 = arith.constant 3.200000e+01 : f32
    %964 = vector.broadcast %cst_425 : f32 to vector<8x1xf32>
    %965 = arith.divf %963, %964 : vector<8x1xf32>
    %966 = vector.broadcast %958 : vector<8x1xf32> to vector<8x32xf32>
    %967 = arith.subf %952, %966 : vector<8x32xf32>
    %cst_426 = arith.constant 9.99999974E-6 : f32
    %968 = vector.broadcast %cst_426 : f32 to vector<8x1xf32>
    %969 = arith.addf %965, %968 : vector<8x1xf32>
    %970 = math.rsqrt %969 : vector<8x1xf32>
    %971 = vector.broadcast %970 : vector<8x1xf32> to vector<8x32xf32>
    %972 = arith.mulf %967, %971 : vector<8x32xf32>
    %973 = vector.broadcast %953 : vector<1x32xf32> to vector<8x32xf32>
    %974 = arith.mulf %972, %973 : vector<8x32xf32>
    %975 = vector.broadcast %954 : vector<1x32xf32> to vector<8x32xf32>
    %976 = arith.addf %974, %975 : vector<8x32xf32>
    %c0_427 = arith.constant 0 : index
    %c0_428 = arith.constant 0 : index
    %977 = vector.load %arg47[%c0_427, %c0_428] : memref<32x2xbf16, #tpu.memory_space<vmem>>, vector<32x2xbf16>
    %978 = arith.truncf %976 : vector<8x32xf32> to vector<8x32xbf16>
    %cst_429 = arith.constant dense<0.000000e+00> : vector<8x2xf32>
    %979 = tpu.matmul %978, %977, %cst_429 {dimension_numbers = #tpu.dot_dimension_numbers<[1], [0], [0], [1], [0, 0, 1, 1], [], []>} : vector<8x32xbf16>, vector<32x2xbf16>, vector<8x2xf32> -> vector<8x2xf32>
    %c0_430 = arith.constant 0 : index
    %c0_431 = arith.constant 0 : index
    %980 = vector.load %arg48[%c0_430, %c0_431] : memref<1x2xf32, #tpu.memory_space<vmem>>, vector<1x2xf32>
    %981 = vector.broadcast %980 : vector<1x2xf32> to vector<8x2xf32>
    %982 = arith.addf %979, %981 : vector<8x2xf32>
    %c0_432 = arith.constant 0 : index
    %c0_433 = arith.constant 0 : index
    %983 = vector.load %arg49[%c0_432, %c0_433] : memref<8x2xf32, #tpu.memory_space<vmem>>, vector<8x2xf32>
    tpu.vector_store %arg49[%c0_432, %c0_433], %982 {strides = array<i32>} : memref<8x2xf32, #tpu.memory_space<vmem>>, vector<8x2xf32>,
    return
  }
}

</mosaic_0001>

<bundles_post_ra>
// kernel: transformer_forward.1
= control target key start
LH: loop header
LB: loop body
LE: loop exit
PB: predicated region body
PF: predicated region fallthrough
CT: control target
= control target key end

     0   :  { %s15165_s6 = smov 1   ;;  %s15166_s10 = smov 2   ;;  %s17293_s0 = inlined_call_operand.smem [shape: u32[50], index: -1, kind: input, shape index: {}] }
   0x1   :  { %s15243_s5 = sld [smem:[%s17293_s0]]   ;;  %s15167_s14 = smov 3  }
   0x2   :  { %s15248_s9 = sld [smem:[%s17293_s0 + %s15165_s6]]   ;;  %s15168_s18 = smov 4  }
   0x3   :  { %s15253_s13 = sld [smem:[%s17293_s0 + %s15166_s10]]   ;;  %s15169_s22 = smov 5  }
   0x4   :  { %s15258_s17 = sld [smem:[%s17293_s0 + %s15167_s14]]   ;;  %s15170_s26 = smov 6  }
   0x5   :  { %s15263_s21 = sld [smem:[%s17293_s0 + %s15168_s18]]   ;;  %s15171_s30 = smov 7  }
   0x6   :  { %s15268_s25 = sld [smem:[%s17293_s0 + %s15169_s22]]   ;;  %s15172_s4 = smov 8  }
   0x7   :  { %s15273_s29 = sld [smem:[%s17293_s0 + %s15170_s26]]   ;;  %s15173_s10 = smov 9  }
   0x8   :  { %17332 = sst [smem:[#allocation13_spill]] %s15248_s9  ;;  %s15174_s15 = smov 10  }
   0x9   :  { %s15278_s3 = sld [smem:[%s17293_s0 + %s15171_s30]]   ;;  %s15175_s20 = smov 11  }
   0xa   :  { %s15283_s8 = sld [smem:[%s17293_s0 + %s15172_s4]]   ;;  %s15176_s26 = smov 12  }
   0xb   :  { %s15288_s14 = sld [smem:[%s17293_s0 + %s15173_s10]]   ;;  %s15177_s1 = smov 13  }
   0xc   :  { %s15293_s19 = sld [smem:[%s17293_s0 + %s15174_s15]]   ;;  %s15178_s7 = smov 14  }
   0xd   :  { %s15298_s24 = sld [smem:[%s17293_s0 + %s15175_s20]]   ;;  %s15179_s15 = smov 15  }
   0xe   :  { %s15303_s30 = sld [smem:[%s17293_s0 + %s15176_s26]]   ;;  %s15180_s22 = smov 16  }
   0xf   :  { %s15308_s6 = sld [smem:[%s17293_s0 + %s15177_s1]]   ;;  %s15181_s28 = smov 17  }
  0x10   :  { %s15313_s12 = sld [smem:[%s17293_s0 + %s15178_s7]]   ;;  %s15182_s7 = smov 18  }
  0x11   :  { %s15318_s20 = sld [smem:[%s17293_s0 + %s15179_s15]]   ;;  %s15183_s15 = smov 19  }
  0x12   :  { %s15323_s27 = sld [smem:[%s17293_s0 + %s15180_s22]]   ;;  %s15184_s22 = smov 20  }
  0x13   :  { %17333 = sst [smem:[#allocation14_spill]] %s15298_s24 }
  0x14   :  { %s15328_s4 = sld [smem:[%s17293_s0 + %s15181_s28]]   ;;  %s15185_s28 = smov 21  }
  0x15   :  { %17334 = sst [smem:[#allocation15_spill]] %s15308_s6 }
  0x16   :  { %17335 = sst [smem:[#allocation16_spill]] %s15313_s12 }
  0x17   :  { %17336 = sst [smem:[#allocation17_spill]] %s15318_s20 }
  0x18   :  { %17337 = sst [smem:[#allocation18_spill]] %s15323_s27 }
  0x19   :  { %s15333_s9 = sld [smem:[%s17293_s0 + %s15182_s7]]   ;;  %s15186_s7 = smov 22  }
  0x1a   :  { %17338 = sst [smem:[#allocation19_spill]] %s15328_s4 }
  0x1b   :  { %s15338_s20 = sld [smem:[%s17293_s0 + %s15183_s15]]   ;;  %s15187_s15 = smov 23  }
  0x1c   :  { %s15343_s27 = sld [smem:[%s17293_s0 + %s15184_s22]]   ;;  %s15188_s22 = smov 24  }
  0x1d   :  { %s15348_s4 = sld [smem:[%s17293_s0 + %s15185_s28]]   ;;  %s15189_s28 = smov 25  }
  0x1e   :  { %s15358_s6 = sld [smem:[%s17293_s0 + %s15187_s15]]   ;;  %s15191_s15 = smov 27  }
  0x1f   :  { %17339 = sst [smem:[#allocation20_spill]] %s15333_s9 }
  0x20   :  { %s15353_s9 = sld [smem:[%s17293_s0 + %s15186_s7]]   ;;  %s15190_s7 = smov 26  }
  0x21   :  { %s15368_s12 = sld [smem:[%s17293_s0 + %s15189_s28]]   ;;  %s15193_s28 = smov 29  }
  0x22   :  { %17340 = sst [smem:[#allocation21_spill]] %s15343_s27 }
  0x23   :  { %s15363_s27 = sld [smem:[%s17293_s0 + %s15188_s22]]   ;;  %s15192_s22 = smov 28  }
  0x24   :  { %17342 = sst [smem:[#allocation23_spill]] %s15358_s6 }
  0x25   :  { %s15378_s6 = sld [smem:[%s17293_s0 + %s15191_s15]]   ;;  %s15195_s15 = smov 31  }
  0x26   :  { %17341 = sst [smem:[#allocation22_spill]] %s15353_s9 }
  0x27   :  { %17344 = sst [smem:[#allocation25_spill]] %s15368_s12 }
  0x28   :  { %s15373_s9 = sld [smem:[%s17293_s0 + %s15190_s7]]   ;;  %s15194_s7 = smov 30  }
  0x29   :  { %17343 = sst [smem:[#allocation24_spill]] %s15363_s27 }
  0x2a   :  { %s15383_s27 = sld [smem:[%s17293_s0 + %s15192_s22]]   ;;  %s15196_s22 = smov 32  }
  0x2b   :  { %17346 = sst [smem:[#allocation27_spill]] %s15378_s6 }
  0x2c   :  { %s15388_s12 = sld [smem:[%s17293_s0 + %s15193_s28]]   ;;  %s15197_s28 = smov 33  }
  0x2d   :  { %s15398_s6 = sld [smem:[%s17293_s0 + %s15195_s15]]   ;;  %s15199_s15 = smov 35  }
  0x2e   :  { %17345 = sst [smem:[#allocation26_spill]] %s15373_s9 }
  0x2f   :  { %s15393_s9 = sld [smem:[%s17293_s0 + %s15194_s7]]   ;;  %s15198_s7 = smov 34  }
  0x30   :  { %17347 = sst [smem:[#allocation28_spill]] %s15383_s27 }
  0x31   :  { %s15403_s27 = sld [smem:[%s17293_s0 + %s15196_s22]]   ;;  %s15200_s22 = smov 36  }
  0x32   :  { %17348 = sst [smem:[#allocation29_spill]] %s15388_s12 }
  0x33   :  { %17350 = sst [smem:[#allocation31_spill]] %s15398_s6 }
  0x34   :  { %s15408_s12 = sld [smem:[%s17293_s0 + %s15197_s28]]   ;;  %s15201_s28 = smov 37  }
  0x35   :  { %17349 = sst [smem:[#allocation30_spill]] %s15393_s9 }
  0x36   :  { %s15413_s9 = sld [smem:[%s17293_s0 + %s15198_s7]]   ;;  %s15202_s7 = smov 38  }
  0x37   :  { %17351 = sst [smem:[#allocation32_spill]] %s15403_s27 }
  0x38   :  { %s15418_s6 = sld [smem:[%s17293_s0 + %s15199_s15]]   ;;  %s15203_s15 = smov 39  }
  0x39   :  { %s15423_s27 = sld [smem:[%s17293_s0 + %s15200_s22]]   ;;  %s15204_s22 = smov 40  }
  0x3a   :  { %17352 = sst [smem:[#allocation33_spill]] %s15408_s12 }
  0x3b   :  { %s15428_s12 = sld [smem:[%s17293_s0 + %s15201_s28]]   ;;  %s15205_s28 = smov 41  }
  0x3c   :  { %17353 = sst [smem:[#allocation34_spill]] %s15413_s9 }
  0x3d   :  { %s15433_s9 = sld [smem:[%s17293_s0 + %s15202_s7]]   ;;  %s15206_s7 = smov 42  }
  0x3e   :  { %17354 = sst [smem:[#allocation35_spill]] %s15418_s6 }
  0x3f   :  { %17355 = sst [smem:[#allocation36_spill]] %s15423_s27 }
  0x40   :  { %s15438_s6 = sld [smem:[%s17293_s0 + %s15203_s15]]   ;;  %s15207_s15 = smov 43  }
  0x41   :  { %17356 = sst [smem:[#allocation37_spill]] %s15428_s12 }
  0x42   :  { %s15443_s27 = sld [smem:[%s17293_s0 + %s15204_s22]]   ;;  %s15208_s22 = smov 44  }
  0x43   :  { %17357 = sst [smem:[#allocation38_spill]] %s15433_s9 }
  0x44   :  { %s15448_s12 = sld [smem:[%s17293_s0 + %s15205_s28]]   ;;  %s15209_s28 = smov 45  }
  0x45   :  { %s15453_s9 = sld [smem:[%s17293_s0 + %s15206_s7]]   ;;  %s15210_s7 = smov 46  }
  0x46   :  { %17358 = sst [smem:[#allocation39_spill]] %s15438_s6 }
  0x47   :  { %s15458_s6 = sld [smem:[%s17293_s0 + %s15207_s15]]   ;;  %s15211_s15 = smov 47  }
  0x48   :  { %17359 = sst [smem:[#allocation40_spill]] %s15443_s27 }
  0x49   :  { %s15463_s27 = sld [smem:[%s17293_s0 + %s15208_s22]]   ;;  %s15212_s22 = smov 48  }
  0x4a   :  { %17360 = sst [smem:[#allocation41_spill]] %s15448_s12 }
  0x4b   :  { %17361 = sst [smem:[#allocation42_spill]] %s15453_s9 }
  0x4c   :  { %s15468_s12 = sld [smem:[%s17293_s0 + %s15209_s28]]   ;;  %s15213_s28 = smov 49  }
  0x4d   :  { %17362 = sst [smem:[#allocation43_spill]] %s15458_s6 }
  0x4e   :  { %s15473_s9 = sld [smem:[%s17293_s0 + %s15210_s7]]  }
  0x4f   :  { %17363 = sst [smem:[#allocation44_spill]] %s15463_s27 }
  0x50   :  { %s15478_s6 = sld [smem:[%s17293_s0 + %s15211_s15]]  }
  0x51   :  { %s15483_s27 = sld [smem:[%s17293_s0 + %s15212_s22]]  }
  0x52   :  { %s15488_s24 = sld [smem:[%s17293_s0 + %s15213_s28]]  }
  0x53   :  { %104 = vsyncpa [#allocation3], 0 }
  0x54   :  { %105 = vsyncpa [#allocation5], 0  ;;  %s163_s7 = sshll.u32 %s15348_s4, 4  ;;  %s164_s7 = int_to_ptr.hbm [resolvable:$true] %s163_s7 }
  0x55   :  { %106 = vsyncpa [#allocation8], 0  ;;  %s15214_s10 = smov [#allocation4]   ;;  %s231_s15 = sshll.u32 %s15473_s9, 4  ;;  %s232_s15 = int_to_ptr.hbm [resolvable:$true] %s231_s15 }
  0x56   :  { %s165_s11 = sshll.u32 %s15214_s10, 4  ;;  %s15039_s16 = sshra.s32 %s164_s7, 4  ;;  %s166_s11 = int_to_ptr.vmem [resolvable:$true] %s165_s11  ;;  %s15040_s16 = int_to_ptr.hbm [resolvable:$true] %s15039_s16 }
  0x57   :  { %s15041_s18 = scalar_lea.hbm %s15040_s16, 1  ;;  %s15043_s22 = scalar_lea.hbm %s15348_s4, 1 }
  0x58   :  { %p15042_p0 = scmp.ne.s32.totalorder %s15040_s16, %s15041_s18  ;;  %p15044_p1 = scmp.lt.s32.totalorder %s15040_s16, %s15348_s4 }
  0x59   :  { %p15045_p2 = scmp.lt.s32.totalorder %s15043_s22, %s15041_s18 }
  0x5b   :  { %p15046_p3 = por %p15045_p2, %p15044_p1 }
  0x5d   :  { %p15047_p4 = pnand %p15046_p3, %p15042_p0 }
  0x5f   :  { %15050 = shalt.err (!%p15047_p4)
}
  0x60   :  { %168 = dma.hbm_to_vmem [thread:$0]  %s164_s7, 16, %s166_s11, [#allocation5]  }
  0x61   :  { %s15215_s0 = smov [#allocation7]   ;;  %s150_s26 = sshll.u32 %s15338_s20, 4  ;;  %s151_s26 = int_to_ptr.hbm [resolvable:$true] %s150_s26 }
  0x62   :  { %s233_s23 = sshll.u32 %s15215_s0, 4  ;;  %s15063_s28 = sshra.s32 %s232_s15, 4  ;;  %s234_s23 = int_to_ptr.vmem [resolvable:$true] %s233_s23  ;;  %s15064_s28 = int_to_ptr.hbm [resolvable:$true] %s15063_s28 }
  0x63   :  { %s15065_s1 = scalar_lea.hbm %s15064_s28, 1  ;;  %s15067_s2 = scalar_lea.hbm %s15473_s9, 1 }
  0x64   :  { %p15066_p5 = scmp.ne.s32.totalorder %s15064_s28, %s15065_s1  ;;  %p15068_p6 = scmp.lt.s32.totalorder %s15064_s28, %s15473_s9 }
  0x65   :  { %p15069_p7 = scmp.lt.s32.totalorder %s15067_s2, %s15065_s1 }
  0x67   :  { %p15070_p8 = por %p15069_p7, %p15068_p6 }
  0x69   :  { %p15071_p9 = pnand %p15070_p8, %p15066_p5 }
  0x6b   :  { %15074 = shalt.err (!%p15071_p9)
}
  0x6c   :  { %236 = dma.hbm_to_vmem [thread:$0]  %s232_s15, 16, %s234_s23, [#allocation8]  }
  0x6d   :  { %s220_s4 = sshll.u32 %s15468_s12, 4  ;;  %s15216_s7 = smov [#allocation2]   ;;  %s221_s4 = int_to_ptr.hbm [resolvable:$true] %s220_s4 }
  0x6e   :  { %s152_s10 = sshll.u32 %s15216_s7, 4  ;;  %s15087_s11 = sshra.s32 %s151_s26, 4  ;;  %s153_s10 = int_to_ptr.vmem [resolvable:$true] %s152_s10  ;;  %s15088_s11 = int_to_ptr.hbm [resolvable:$true] %s15087_s11 }
  0x6f   :  { %s15089_s16 = scalar_lea.hbm %s15088_s11, 1  ;;  %s15091_s18 = scalar_lea.hbm %s15338_s20, 1 }
  0x70   :  { %p15090_p10 = scmp.ne.s32.totalorder %s15088_s11, %s15089_s16  ;;  %p15092_p11 = scmp.lt.s32.totalorder %s15088_s11, %s15338_s20 }
  0x71   :  { %p15093_p12 = scmp.lt.s32.totalorder %s15091_s18, %s15089_s16 }
  0x73   :  { %p15094_p13 = por %p15093_p12, %p15092_p11 }
  0x75   :  { %p15095_p0 = pnand %p15094_p13, %p15090_p10 }
  0x77   :  { %15098 = shalt.err (!%p15095_p0)
}
  0x78   :  { %155 = dma.hbm_to_vmem [thread:$0]  %s151_s26, 16, %s153_s10, [#allocation3]  }
  0x79   :  { %s15217_s9 = smov [#allocation6]   ;;  %s244_s22 = sshll.u32 %s15483_s27, 4  ;;  %s245_s22 = int_to_ptr.hbm [resolvable:$true] %s244_s22 }
  0x7a   :  { %s222_s15 = sshll.u32 %s15217_s9, 4  ;;  %s15111_s0 = sshra.s32 %s221_s4, 4  ;;  %s223_s15 = int_to_ptr.vmem [resolvable:$true] %s222_s15  ;;  %s15112_s0 = int_to_ptr.hbm [resolvable:$true] %s15111_s0 }
  0x7b   :  { %s15113_s23 = scalar_lea.hbm %s15112_s0, 1  ;;  %s15115_s28 = scalar_lea.hbm %s15468_s12, 1 }
  0x7c   :  { %p15114_p1 = scmp.ne.s32.totalorder %s15112_s0, %s15113_s23  ;;  %p15116_p2 = scmp.lt.s32.totalorder %s15112_s0, %s15468_s12 }
  0x7d   :  { %p15117_p3 = scmp.lt.s32.totalorder %s15115_s28, %s15113_s23 }
  0x7f   :  { %p15118_p4 = por %p15117_p3, %p15116_p2 }
  0x81   :  { %p15119_p5 = pnand %p15118_p4, %p15114_p1 }
  0x83   :  { %15122 = shalt.err (!%p15119_p5)
}
  0x84   :  { %225 = dma.hbm_to_vmem [thread:$0]  %s221_s4, 16, %s223_s15, [#allocation5]  }
  0x85   :  { %s15218_s20 = smov [#allocation9]   ;;  %s15135_s1 = sshra.s32 %s245_s22, 4  ;;  %s15136_s1 = int_to_ptr.hbm [resolvable:$true] %s15135_s1 }
  0x86   :  { %s246_s26 = sshll.u32 %s15218_s20, 4  ;;  %s15137_s2 = scalar_lea.hbm %s15136_s1, 1  ;;  %s247_s26 = int_to_ptr.vmem [resolvable:$true] %s246_s26 }
  0x87   :  { %p15138_p6 = scmp.ne.s32.totalorder %s15136_s1, %s15137_s2  ;;  %s15139_s7 = scalar_lea.hbm %s15483_s27, 1 }
  0x88   :  { %p15140_p7 = scmp.lt.s32.totalorder %s15136_s1, %s15483_s27  ;;  %p15141_p8 = scmp.lt.s32.totalorder %s15139_s7, %s15137_s2 }
  0x8a   :  { %p15142_p9 = por %p15141_p8, %p15140_p7 }
  0x8c   :  { %p15143_p10 = pnand %p15142_p9, %p15138_p6 }
  0x8e   :  { %15146 = shalt.err (!%p15143_p10)
}
  0x8f   :  { %249 = dma.hbm_to_vmem [thread:$0]  %s245_s22, 16, %s247_s26, [#allocation8]  }
  0x90   :  { %15159 = dma.done.wait [#allocation3], 16  }
  0x91   :  { %15160 = vsyncadd [#allocation3], 4294967280 }
  0x92   :  { %15161 = dma.done.wait [#allocation5], 32  }
  0x93   :  { %15162 = vsyncadd [#allocation5], 4294967264 }
  0x94   :  { %15163 = dma.done.wait [#allocation8], 32  }
  0x95   :  { %15164 = vsyncadd [#allocation8], 4294967264  ;;  %vm283_vm0 = vcmask 1041408   ;;  %vm284_vm1 = vcmask 1042432   ;;  %v15219_v0 = vmov 65535   ;;  %v271_v4 = vld [vmem:[%s15243_s5] sm:$0xff] }
  0x96   :  { %v285_v1 = vsel %vm283_vm0, 4294967295, %v15219_v0  ;;  %v273_v3 = vld [vmem:[%s15253_s13] sm:$0x7]  ;;  %v272_v6 = vld [vmem:[%s15243_s5 + $0x8] sm:$0xff]  ;;  %vm279_vm2 = vcmask 39936   ;;  %vm331_vm3 = vcmask 261120  }
  0x97   :  { %v15505_v2 = vsel %vm284_vm1, %v285_v1, 0  ;;  %v274_v7 = vpack.c.bf16 %v272_v6, %v271_v4  ;;  %v13973_v8 = vld [vmem:[%s15273_s29 + $0x8] sm:$0xff]  ;;  %v13972_v9 = vld [vmem:[%s15273_s29] sm:$0xff]  ;;  %s15220_s5 = smov 120   ;;  %s15221_s13 = smov 88   ;;  %vm360_vm4 = vcmask 64512  }
  0x98   :  { %v288_v5 = vand.u32 %v15505_v2, %v273_v3  ;;  %341 = vmatpush.bf16.msra.mxu1 %v13973_v8  ;;  %v14826_v11 = vld [vmem:[%s15258_s17] ss:$0 sm:$0xff]  ;;  %v305_v15 = vld [vmem:[%s15263_s21 + $0x8] sm:$0xff]  ;;  %s15222_s17 = smov 96   ;;  %s15224_s12 = smov 80   ;;  %vm396_vm5 = vcmask 130048  }
  0x99   :  { %v304_v13 = vld [vmem:[%s15263_s21] sm:$0xff]  ;;  %s15223_s21 = smov 112   ;;  %s15225_s27 = smov 72   ;;  %v309_v50 = vld [vmem:[%s15268_s25 + $0x8] sm:$0xff]  ;;  %vm782_vm6 = vcmask 195584  }
  0x9a   :  { %297 = vmatpush.bf16.msra.mxu0 %v288_v5  ;;  %v14827_v20 = vld [vmem:[%s15278_s3] ss:$0 sm:$0xff]  ;;  %s15226_s4 = smov 104   ;;  %s17331_s10 = smov 64  }
  0x9b   :  { %v308_v40 = vld [vmem:[%s15268_s25] sm:$0xff]  ;;  %s17329_s11 = smov 48   ;;  %s17328_s16 = smov 56  }
  0x9c   :  { %342 = vmatpush.bf16.msra.mxu1 %v13972_v9  ;;  %s17330_s18 = smov 40   ;;  %s17326_s9 = smov 8  }
  0x9d   :  { %10480 = vmatmul.msk.bf16.vlgmr.msra.gmra.mxu0 %vm279_vm2, %v274_v7  ;;  %s17324_s15 = smov 16   ;;  %s17322_s22 = smov 24  }
  0x9e   :  { %s17364_s0 = sld [smem:[#allocation14_spill]] }
  0x9f   :  { %s17365_s23 = sld [smem:[#allocation16_spill]] }
  0xa0   :  { %s17366_s28 = sld [smem:[#allocation15_spill]] }
  0xa1   :  { %s17367_s20 = sld [smem:[#allocation17_spill]] }
  0xa2   :  { %s17368_s26 = sld [smem:[#allocation18_spill]] }
  0xa3   :  { %s17369_s1 = sld [smem:[#allocation19_spill]] }
  0xa4   :  { %s17377_s2 = sld [smem:[#allocation28_spill]] }
  0xa5   :  { %s17378_s7 = sld [smem:[#allocation31_spill]] }
 0x11a   :  { %v299_v10 = vpop.f32.mrf.mxu0 }
 0x11b   :  { %v300_v12 = vadd.f32 %v14826_v11, %v299_v10 }
 0x11d   :  { %v15517_v17 = vadd.f32 %v304_v13, %v300_v12 }
 0x122   :  { %v301_v14 = vpop.f32.mrf.mxu0 }
 0x123   :  { %v302_v16 = vadd.f32 %v14826_v11, %v301_v14 }
 0x125   :  { %v15519_v18 = vadd.f32 %v305_v15, %v302_v16 }
 0x127   :  { %v314_v19 = vpack.c.bf16 %v15519_v18, %v15517_v17 }
 0x129   :  { %10489 = vmatmul.msk.bf16.vlgmr.msra.gmra.mxu1 %vm331_vm3, %v314_v19 }
 0x1a6   :  { %v344_v21 = vpop.f32.mrf.mxu1 }
 0x1a7   :  { %v15525_v22 = vadd.f32 %v14827_v20, %v344_v21 }
 0x1a9   :  { %454 = vrot.lane.b32.xlu2 %v15525_v22, %s15220_s5 }
 0x1ae   :  { %v346_v23 = vpop.f32.mrf.mxu1 }
 0x1af   :  { %v15529_v24 = vadd.f32 %v14827_v20, %v346_v23 }
 0x1b1   :  { %460 = vrot.lane.b32.xlu1 %v15529_v24, %s15221_s13  ;;  %358 = vrot.lane.b32.xlu0 %v15529_v24, %s15222_s17  ;;  %v15592_v10 = vpack.i.bf16 %v15525_v22, %v15529_v24 }
 0x1b2   :  { %456 = vrot.lane.b32.xlu2 %v15529_v24, %s15220_s5 }
 0x1b9   :  { %458 = vrot.lane.b32.xlu1 %v15525_v22, %s15221_s13  ;;  %356 = vrot.lane.b32.xlu0 %v15525_v22, %s15222_s17 }
 0x1ba   :  { %554 = vrot.lane.b32.xlu2 %v15525_v22, %s15223_s21 }
 0x1c1   :  { %558 = vrot.lane.b32.xlu1 %v15525_v22, %s15224_s12  ;;  %560 = vrot.lane.b32.xlu0 %v15529_v24, %s15224_s12 }
 0x1c2   :  { %658 = vrot.lane.b32.xlu2 %v15525_v22, %s15225_s27 }
 0x1c9   :  { %660 = vrot.lane.b32.xlu1 %v15529_v24, %s15225_s27  ;;  %556 = vrot.lane.b32.xlu0 %v15529_v24, %s15223_s21 }
 0x1d1   :  { %656 = vrot.lane.b32.xlu1 %v15529_v24, %s15226_s4  ;;  %654 = vrot.lane.b32.xlu0 %v15525_v22, %s15226_s4 }
 0x203   :  { %v455_v25 = vpop.permute.xlu2 %454 }
 0x20c   :  { %v457_v28 = vpop.permute.xlu2 %456 }
 0x214   :  { %v555_v33 = vpop.permute.xlu2 %554 }
 0x21c   :  { %v659_v36 = vpop.permute.xlu2 %658 }
 0x223   :  { %v461_v26 = vpop.permute.xlu1 %460  ;;  %v359_v27 = vpop.permute.xlu0 %358 }
 0x224   :  { %10490 = vmatpush.xpose.msk.msra.mxu2 %vm360_vm4, %v359_v27  ;;  %10496 = vmatpush.xpose.msk.msrb.mxu0 %vm360_vm4, %v461_v26 }
 0x22b   :  { %v459_v29 = vpop.permute.xlu1 %458  ;;  %v357_v30 = vpop.permute.xlu0 %356 }
 0x22c   :  { %10491 = vmatpush.xpose.msk.msra.mxu2 %vm360_vm4, %v357_v30  ;;  %10497 = vmatpush.xpose.msk.msrb.mxu0 %vm360_vm4, %v459_v29 }
 0x22f   :  { %10492 = vmatmul.msk.f32.vlgmr.msra.gmra.mxu2 %vm360_vm4, %v15525_v22  ;;  %10498 = vmatmul.msk.f32.vlgmr.msrb.gmra.mxu0 %vm360_vm4, %v455_v25 }
 0x233   :  { %v559_v31 = vpop.permute.xlu1 %558  ;;  %v561_v32 = vpop.permute.xlu0 %560 }
 0x234   :  { %10502 = vmatpush.xpose.msk.msra.mxu0 %vm360_vm4, %v561_v32  ;;  %14642 = vmatpush.xpose.msk.msrb.mxu1 %vm360_vm4, %v561_v32 }
 0x237   :  { %10493 = vmatmul.msk.f32.gmra.mxu2 %vm360_vm4, %v15529_v24  ;;  %10499 = vmatmul.msk.f32.gmra.mxu0 %vm360_vm4, %v457_v28 }
 0x238   :  { %10503 = vmatpush.xpose.msk.msra.mxu0 %vm360_vm4, %v559_v31  ;;  %14643 = vmatpush.xpose.msk.msrb.mxu1 %vm360_vm4, %v559_v31 }
 0x23b   :  { %v661_v34 = vpop.permute.xlu1 %660  ;;  %v557_v35 = vpop.permute.xlu0 %556 }
 0x23c   :  { %10505 = vmatmul.msk.f32.vlgmr.msrb.gmra.mxu1 %vm360_vm4, %v557_v35  ;;  %10508 = vmatpush.xpose.msk.msrb.mxu0 %vm360_vm4, %v661_v34 }
 0x23f   :  { %10504 = vmatmul.msk.f32.vlgmr.msra.gmra.mxu0 %vm360_vm4, %v555_v33 }
 0x240   :  { %10509 = vmatpush.xpose.msk.msrb.mxu0 %vm360_vm4, %v659_v36 }
 0x243   :  { %v655_v37 = vpop.permute.xlu0 %654  ;;  %v657_v38 = vpop.permute.xlu1 %656 }
 0x247   :  { %10510 = vmatmul.msk.f32.vlgmr.msrb.gmra.mxu0 %vm360_vm4, %v655_v37 }
 0x24f   :  { %10511 = vmatmul.msk.f32.gmra.mxu0 %vm360_vm4, %v657_v38 }
 0x2ac   :  { %v487_v39 = vpop.f32.mrf.mxu0 }
 0x2ad   :  { %v493_v41 = vmul.f32 0.35355338, %v487_v39 }
 0x2af   :  { %v495_v42 = vadd.f32 %v493_v41, %v308_v40 }
 0x2b1   :  { %v497_v43 = vsel %vm396_vm5, %v495_v42, -inf }
 0x2b2   :  { %498 = vmax.xlane.f32.xlu1 %v497_v43  ;;  %v386_v44 = vpop.f32.mrf.mxu2 }
 0x2b3   :  { %v392_v45 = vmul.f32 0.35355338, %v386_v44 }
 0x2b4   :  { %v490_v46 = vpop.f32.mrf.mxu0 }
 0x2b5   :  { %v394_v47 = vadd.f32 %v392_v45, %v308_v40  ;;  %v494_v48 = vmul.f32 0.35355338, %v490_v46 }
 0x2b7   :  { %v397_v49 = vsel %vm396_vm5, %v394_v47, -inf  ;;  %v496_v53 = vadd.f32 %v494_v48, %v309_v50 }
 0x2b8   :  { %398 = vmax.xlane.f32.xlu2 %v397_v49 }
 0x2b9   :  { %v590_v54 = vpop.f32.mrf.mxu1  ;;  %v500_v59 = vsel %vm396_vm5, %v496_v53, -inf }
 0x2ba   :  { %v389_v51 = vpop.f32.mrf.mxu2  ;;  %v594_v58 = vmul.f32 0.35355338, %v590_v54 }
 0x2bb   :  { %v393_v52 = vmul.f32 0.35355338, %v389_v51 }
 0x2bc   :  { %v587_v55 = vpop.f32.mrf.mxu0  ;;  %v596_v63 = vadd.f32 %v594_v58, %v309_v50 }
 0x2bd   :  { %v593_v56 = vmul.f32 0.35355338, %v587_v55  ;;  %v395_v57 = vadd.f32 %v393_v52, %v309_v50 }
 0x2be   :  { %v600_v3 = vsel %vm396_vm5, %v596_v63, -inf }
 0x2bf   :  { %v400_v60 = vsel %vm396_vm5, %v395_v57, -inf  ;;  %v595_v61 = vadd.f32 %v593_v56, %v308_v40 }
 0x2c0   :  { %501 = vmax.xlane.f32.xlu2 %v500_v59  ;;  %401 = vmax.xlane.f32.xlu0 %v400_v60 }
 0x2c1   :  { %v597_v62 = vsel %vm396_vm5, %v595_v61, -inf }
 0x2c2   :  { %598 = vmax.xlane.f32.xlu1 %v597_v62 }
 0x2c4   :  { %v687_v0 = vpop.f32.mrf.mxu0 }
 0x2c5   :  { %v693_v1 = vmul.f32 0.35355338, %v687_v0 }
 0x2c7   :  { %v695_v4 = vadd.f32 %v693_v1, %v308_v40 }
 0x2c8   :  { %601 = vmax.xlane.f32.xlu2 %v600_v3 }
 0x2c9   :  { %v697_v5 = vsel %vm396_vm5, %v695_v4, -inf }
 0x2ca   :  { %698 = vmax.xlane.f32.xlu0 %v697_v5 }
 0x2cc   :  { %v690_v6 = vpop.f32.mrf.mxu0 }
 0x2cd   :  { %v694_v7 = vmul.f32 0.35355338, %v690_v6 }
 0x2cf   :  { %v15586_v8 = vadd.f32 %v694_v7, %v309_v50 }
 0x2d1   :  { %v700_v9 = vsel %vm396_vm5, %v15586_v8, -inf }
 0x2d2   :  { %701 = vmax.xlane.f32.xlu2 %v700_v9 }
 0x2db   :  { %14717 = vrot.lane.b32.xlu1 %v15592_v10, %s17331_s10 }
 0x2e3   :  { %14727 = vrot.lane.b32.xlu1 %v15592_v10, %s17329_s11 }
 0x2ea   :  { %14722 = vrot.lane.b32.xlu2 %v15592_v10, %s17328_s16 }
 0x325   :  { %v499_v11 = vpop.xlane.xlu1 %498 }
 0x326   :  { %v503_v14 = vsub.f32 %v495_v42, %v499_v11 }
 0x328   :  { %v505_v16 = vmul.f32 1.442695, %v503_v14 }
 0x32b   :  { %v399_v12 = vpop.xlane.xlu2 %398 }
 0x32c   :  { %v403_v13 = vsub.f32 %v394_v47, %v399_v12 }
 0x32e   :  { %v405_v15 = vmul.f32 1.442695, %v403_v13 }
 0x330   :  { %14871 = vpow2.f32 %v405_v15 }
 0x331   :  { %14873 = vpow2.f32 %v505_v16 }
 0x333   :  { %v502_v19 = vpop.xlane.xlu2 %501  ;;  %v402_v20 = vpop.xlane.xlu0 %401 }
 0x334   :  { %v404_v21 = vsub.f32 %v395_v57, %v402_v20  ;;  %v504_v24 = vsub.f32 %v496_v53, %v502_v19 }
 0x335   :  { %v599_v22 = vpop.xlane.xlu1 %598 }
 0x336   :  { %v15600_v23 = vpop.eup %14871  ;;  %v407_v25 = vmul.f32 1.442695, %v404_v21  ;;  %v603_v26 = vsub.f32 %v595_v61, %v599_v22  ;;  %v507_v29 = vmul.f32 1.442695, %v504_v24 }
 0x337   :  { %v409_v27 = vsel %vm396_vm5, %v15600_v23, 0.0  ;;  %v15604_v31 = vpop.eup %14873 }
 0x338   :  { %v605_v28 = vmul.f32 1.442695, %v603_v26  ;;  %410 = vadd.xlane.f32.xlu0 %v409_v27  ;;  %14875 = vpow2.f32 %v407_v25  ;;  %v509_v34 = vsel %vm396_vm5, %v15604_v31, 0.0 }
 0x33a   :  { %14877 = vpow2.f32 %v605_v28 }
 0x33b   :  { %v602_v30 = vpop.xlane.xlu2 %601  ;;  %14879 = vpow2.f32 %v507_v29 }
 0x33c   :  { %v604_v32 = vsub.f32 %v596_v63, %v602_v30 }
 0x33d   :  { %v699_v39 = vpop.xlane.xlu0 %698 }
 0x33e   :  { %v15606_v33 = vpop.eup %14875  ;;  %v607_v38 = vmul.f32 1.442695, %v604_v32  ;;  %v703_v42 = vsub.f32 %v695_v4, %v699_v39  ;;  %v13975_v39 = vld [vmem:[%s15283_s8 + $0x8] sm:$0xff] }
 0x33f   :  { %v412_v36 = vsel %vm396_vm5, %v15606_v33, 0.0  ;;  %810 = vmatpush.bf16.msra.mxu1 %v13975_v39  ;;  %v10527_v39 = vld [vmem:[%s15303_s30 + $0x40] sm:$0xf0] }
 0x340   :  { %v14878_v35 = vpop.eup %14877  ;;  %510 = vadd.xlane.f32.xlu0 %v509_v34  ;;  %413 = vadd.xlane.f32.xlu2 %v412_v36  ;;  %14881 = vpow2.f32 %v607_v38  ;;  %v705_v44 = vmul.f32 1.442695, %v703_v42 }
 0x341   :  { %v609_v37 = vsel %vm396_vm5, %v14878_v35, 0.0  ;;  %v15613_v40 = vpop.eup %14879 }
 0x342   :  { %610 = vadd.xlane.f32.xlu1 %v609_v37  ;;  %v512_v43 = vsel %vm396_vm5, %v15613_v40, 0.0  ;;  %14883 = vpow2.f32 %v705_v44 }
 0x345   :  { %v702_v41 = vpop.xlane.xlu2 %701 }
 0x346   :  { %v15617_v45 = vpop.eup %14881  ;;  %v704_v47 = vsub.f32 %v15586_v8, %v702_v41 }
 0x347   :  { %v612_v50 = vsel %vm396_vm5, %v15617_v45, 0.0 }
 0x348   :  { %513 = vadd.xlane.f32.xlu0 %v512_v43  ;;  %v707_v53 = vmul.f32 1.442695, %v704_v47  ;;  %v14884_v55 = vpop.eup %14883 }
 0x349   :  { %v709_v58 = vsel %vm396_vm5, %v14884_v55, 0.0 }
 0x34a   :  { %14885 = vpow2.f32 %v707_v53 }
 0x34d   :  { %v14718_v46 = vpop.permute.xlu1 %14717  ;;  %v14723_v48 = vpop.permute.xlu2 %14722 }
 0x34e   :  { %v14719_v49 = vunpack.i.l.bf16 %v14718_v46  ;;  %v14720_v51 = vunpack.i.h.bf16 %v14718_v46  ;;  %v14724_v52 = vunpack.i.l.bf16 %v14723_v48  ;;  %v14725_v54 = vunpack.i.h.bf16 %v14723_v48 }
 0x350   :  { %445 = vmatpush.msra.mxu3 %v14719_v49  ;;  %613 = vadd.xlane.f32.xlu0 %v612_v50  ;;  %v14886_v60 = vpop.eup %14885 }
 0x351   :  { %v712_v61 = vsel %vm396_vm5, %v14886_v60, 0.0 }
 0x352   :  { %446 = vmatpush.msra.mxu3 %v14720_v51 }
 0x354   :  { %545 = vmatpush.msrb.mxu3 %v14724_v52 }
 0x355   :  { %v14728_v56 = vpop.permute.xlu1 %14727 }
 0x356   :  { %546 = vmatpush.msrb.mxu3 %v14725_v54  ;;  %v14729_v57 = vunpack.i.l.bf16 %v14728_v56  ;;  %v14730_v59 = vunpack.i.h.bf16 %v14728_v56 }
 0x358   :  { %645 = vmatpush.msrb.mxu2 %v14729_v57  ;;  %710 = vadd.xlane.f32.xlu0 %v709_v58 }
 0x359   :  { %14732 = vrot.lane.b32.xlu2 %v15592_v10, %s17330_s18 }
 0x35a   :  { %646 = vmatpush.msrb.mxu2 %v14730_v59 }
 0x360   :  { %713 = vadd.xlane.f32.xlu0 %v712_v61 }
 0x3ab   :  { %v411_v62 = vpop.xlane.xlu0 %410 }
 0x3ac   :  { %14887 = vrcp.f32 %v411_v62 }
 0x3b2   :  { %v14888_v63 = vpop.eup %14887 }
 0x3b3   :  { %v511_v0 = vpop.xlane.xlu0 %510  ;;  %v417_v1 = vmul.f32 %v14888_v63, %v15600_v23  ;;  %v414_v3 = vpop.xlane.xlu2 %413 }
 0x3b4   :  { %14889 = vrcp.f32 %v414_v3  ;;  %v15234_v3 = vmov 32.0  }
 0x3b5   :  { %v611_v4 = vpop.xlane.xlu1 %610  ;;  %10494 = vmatmul.msk.f32.vlgmr.msra.gmra.mxu3 %vm396_vm5, %v417_v1 }
 0x3b6   :  { %14891 = vrcp.f32 %v611_v4  ;;  %14644 = vmatpush.msra.mxu3 %v14729_v57  ;;  %v14828_v57 = vld [vmem:[%s15288_s14] ss:$0 sm:$0xff] }
 0x3b7   :  { %14893 = vrcp.f32 %v511_v0 }
 0x3b8   :  { %14645 = vmatpush.msra.mxu3 %v14730_v59 }
 0x3ba   :  { %v14890_v5 = vpop.eup %14889 }
 0x3bb   :  { %v514_v6 = vpop.xlane.xlu0 %513  ;;  %v418_v8 = vmul.f32 %v14890_v5, %v15606_v33  ;;  %v14733_v11 = vpop.permute.xlu2 %14732 }
 0x3bc   :  { %v14892_v7 = vpop.eup %14891  ;;  %14895 = vrcp.f32 %v514_v6  ;;  %v14734_v14 = vunpack.i.l.bf16 %v14733_v11  ;;  %v14735_v15 = vunpack.i.h.bf16 %v14733_v11 }
 0x3bd   :  { %v617_v9 = vmul.f32 %v14892_v7, %v14878_v35  ;;  %10495 = vmatmul.msk.f32.gmra.mxu3 %vm396_vm5, %v418_v8  ;;  %v14894_v10 = vpop.eup %14893 }
 0x3be   :  { %v517_v13 = vmul.f32 %v14894_v10, %v15604_v31 }
 0x3bf   :  { %10506 = vmatmul.msk.f32.vlgmr.msrb.gmra.mxu2 %vm396_vm5, %v617_v9 }
 0x3c2   :  { %v14896_v16 = vpop.eup %14895 }
 0x3c3   :  { %v614_v12 = vpop.xlane.xlu0 %613  ;;  %v518_v19 = vmul.f32 %v14896_v16, %v15613_v40  ;;  %v13974_v40 = vld [vmem:[%s15283_s8] sm:$0xff] }
 0x3c4   :  { %14897 = vrcp.f32 %v614_v12  ;;  %811 = vmatpush.bf16.msra.mxu1 %v13974_v40  ;;  %v10533_v40 = vld [vmem:[%s15303_s30 + $0x8] sm:$0xf] }
 0x3c5   :  { %10500 = vmatmul.msk.f32.vlgmr.msrb.gmra.mxu3 %vm396_vm5, %v517_v13 }
 0x3c6   :  { %745 = vmatpush.msrb.mxu3 %v14734_v14 }
 0x3c8   :  { %746 = vmatpush.msrb.mxu3 %v14735_v15 }
 0x3ca   :  { %v14898_v21 = vpop.eup %14897 }
 0x3cb   :  { %v711_v20 = vpop.xlane.xlu0 %710  ;;  %v618_v22 = vmul.f32 %v14898_v21, %v15617_v45  ;;  %v14000_v21 = vld [vmem:[%s15303_s30 + $0xbc] sm:$0xf0] }
 0x3cc   :  { %14899 = vrcp.f32 %v711_v20  ;;  %v10589_v20 = vld [vmem:[%s15303_s30 + $0x80] sm:$0xf] }
 0x3cd   :  { %10501 = vmatmul.msk.f32.gmra.mxu3 %vm396_vm5, %v518_v19 }
 0x3d2   :  { %v14900_v24 = vpop.eup %14899 }
 0x3d3   :  { %v714_v23 = vpop.xlane.xlu0 %713  ;;  %v717_v25 = vmul.f32 %v14900_v24, %v14884_v55  ;;  %v10591_v24 = vld [vmem:[%s15303_s30 + $0xc0] sm:$0xf0] }
 0x3d4   :  { %14901 = vrcp.f32 %v714_v23  ;;  %v10590_v23 = vor.u32 %v14000_v21, %v10589_v20 }
 0x3d5   :  { %10507 = vmatmul.msk.f32.vlgmr.msra.gmra.mxu3 %vm396_vm5, %v618_v22  ;;  %14903 = vrcp.f32 %v15234_v3  ;;  %v13992_v22 = vld [vmem:[%s15303_s30 + $0x84] sm:$0xf] }
 0x3d6   :  { %1378 = vmatpush.bf16.msra.mxu2 %v10590_v23 }
 0x3da   :  { %v14902_v26 = vpop.eup %14901 }
 0x3db   :  { %v718_v27 = vmul.f32 %v14902_v26, %v14886_v60  ;;  %v14904_v4 = vpop.eup %14903  ;;  %v14001_v26 = vld [vmem:[%s15303_s30 + $0xc4] sm:$0xf0] }
 0x3dc   :  { %v829_v5 = vmul.f32 32.0, %v14904_v4  ;;  %vm833_vm7 = vweird.f32 %v14904_v4 }
 0x3dd   :  { %10512 = vmatmul.msk.f32.vlgmr.msrb.gmra.mxu3 %vm396_vm5, %v717_v25  ;;  %v10597_v25 = vld [vmem:[%s15303_s30 + $0x88] sm:$0xf] }
 0x3de   :  { %v830_v6 = vsub.f32 1.0, %v829_v5  ;;  %v10543_v5 = vld [vmem:[%s15303_s30 + $0x50] sm:$0xf0] }
 0x3e0   :  { %v831_v7 = vmul.f32 %v14904_v4, %v830_v6  ;;  %v10549_v6 = vld [vmem:[%s15303_s30 + $0x18] sm:$0xf] }
 0x3e2   :  { %v832_v8 = vadd.f32 %v14904_v4, %v831_v7  ;;  %v13987_v7 = vld [vmem:[%s15303_s30 + $0x54] sm:$0xf0] }
 0x3e5   :  { %10513 = vmatmul.msk.f32.gmra.mxu3 %vm396_vm5, %v718_v27 }
 0x438   :  { %v448_v28 = vpop.f32.mrf.mxu3 }
 0x440   :  { %v451_v29 = vpop.f32.mrf.mxu3 }
 0x442   :  { %v648_v33 = vpop.f32.mrf.mxu2 }
 0x448   :  { %v548_v30 = vpop.f32.mrf.mxu3 }
 0x450   :  { %v551_v31 = vpop.f32.mrf.mxu3 }
 0x451   :  { %v14736_v32 = vpack.i.bf16 %v551_v31, %v548_v30  ;;  %v13993_v30 = vld [vmem:[%s15303_s30 + $0x8c] sm:$0xf] }
 0x452   :  { %v10599_v31 = vld [vmem:[%s15303_s30 + $0xc8] sm:$0xf0] }
 0x453   :  { %14737 = vrot.lane.b32.xlu2 %v14736_v32, %s17326_s9 }
 0x458   :  { %v651_v34 = vpop.f32.mrf.mxu3 }
 0x459   :  { %v14741_v35 = vpack.i.bf16 %v651_v34, %v648_v33  ;;  %v10602_v33 = vor.u32 %v13993_v30, %v10599_v31  ;;  %v10525_v34 = vld [vmem:[%s15303_s30] sm:$0xf] }
 0x45a   :  { %v14830_v30 = vld [vmem:[%s17364_s0] ss:$0 sm:$0xff] }
 0x45b   :  { %14742 = vrot.lane.b32.xlu0 %v14741_v35, %s17324_s15  ;;  %v13984_v35 = vld [vmem:[%s15303_s30 + $0x3c] sm:$0xf0]  ;;  %1420 = vmatpush.bf16.msrb.mxu1 %v10602_v33 }
 0x460   :  { %v748_v36 = vpop.f32.mrf.mxu3 }
 0x468   :  { %v751_v37 = vpop.f32.mrf.mxu3 }
 0x469   :  { %v14746_v38 = vpack.i.bf16 %v751_v37, %v748_v36  ;;  %v13976_v36 = vld [vmem:[%s15303_s30 + $0x4] sm:$0xf] }
 0x46b   :  { %14747 = vrot.lane.b32.xlu2 %v14746_v38, %s17322_s22  ;;  %v10526_v38 = vor.u32 %v13984_v35, %v10525_v34  ;;  %v10621_v34 = vld [vmem:[%s15303_s30 + $0xa0] sm:$0xf] }
 0x46c   :  { %v14004_v35 = vld [vmem:[%s15303_s30 + $0xdc] sm:$0xf0] }
 0x46d   :  { %1379 = vmatpush.bf16.msra.mxu2 %v10526_v38 }
 0x4ad   :  { %v14738_v41 = vpop.permute.xlu2 %14737 }
 0x4ae   :  { %v14740_v42 = vunpack.i.h.bf16 %v14738_v41  ;;  %v14739_v43 = vunpack.i.l.bf16 %v14738_v41  ;;  %v10530_v41 = vor.u32 %v13976_v36, %v10527_v39  ;;  %v13996_v36 = vld [vmem:[%s15303_s30 + $0xa4] sm:$0xf] }
 0x4b0   :  { %v779_v48 = vsel %vm360_vm4, %v451_v29, %v14740_v42  ;;  %v778_v49 = vsel %vm360_vm4, %v448_v28, %v14739_v43  ;;  %v10594_v28 = vor.u32 %v13992_v22, %v10591_v24  ;;  %v10598_v29 = vor.u32 %v14001_v26, %v10597_v25  ;;  %v13985_v42 = vld [vmem:[%s15303_s30 + $0x44] sm:$0xf0]  ;;  %v13977_v43 = vld [vmem:[%s15303_s30 + $0xc] sm:$0xf]  ;;  %v14829_v26 = vld [vmem:[%s15293_s19] ss:$0 sm:$0xff] }
 0x4b2   :  { %1392 = vmatpush.bf16.msra.mxu0 %v10594_v28  ;;  %1406 = vmatpush.bf16.msra.mxu3 %v10598_v29 }
 0x4b6   :  { %1393 = vmatpush.bf16.msra.mxu0 %v10530_v41  ;;  %v13997_v41 = vld [vmem:[%s15303_s30 + $0xac] sm:$0xf] }
 0x4c5   :  { %v14748_v44 = vpop.permute.xlu2 %14747 }
 0x4c6   :  { %v14750_v50 = vunpack.i.h.bf16 %v14748_v44  ;;  %v14749_v51 = vunpack.i.l.bf16 %v14748_v44  ;;  %v10535_v44 = vld [vmem:[%s15303_s30 + $0x48] sm:$0xf0] }
 0x4cd   :  { %v14743_v45 = vpop.permute.xlu0 %14742 }
 0x4ce   :  { %v14745_v46 = vunpack.i.h.bf16 %v14743_v45  ;;  %v14744_v47 = vunpack.i.l.bf16 %v14743_v45  ;;  %v10534_v45 = vor.u32 %v13985_v42, %v10533_v40  ;;  %v14005_v40 = vld [vmem:[%s15303_s30 + $0xe4] sm:$0xf0] }
 0x4d0   :  { %v781_v52 = vsel %vm396_vm5, %v779_v48, %v14745_v46  ;;  %v780_v53 = vsel %vm396_vm5, %v778_v49, %v14744_v47  ;;  %v10538_v46 = vor.u32 %v13977_v43, %v10535_v44  ;;  %1407 = vmatpush.bf16.msra.mxu3 %v10534_v45  ;;  %v10605_v48 = vld [vmem:[%s15303_s30 + $0x90] sm:$0xf]  ;;  %v10622_v43 = vor.u32 %v14004_v35, %v10621_v34  ;;  %v10557_v45 = vld [vmem:[%s15303_s30 + $0x20] sm:$0xf]  ;;  %v14029_v34 = vld [vmem:[%s17365_s23 + $0xa8] sm:$0xff] }
 0x4d1   :  { %v784_v54 = vsel %vm782_vm6, %v781_v52, %v14750_v50  ;;  %v783_v55 = vsel %vm782_vm6, %v780_v53, %v14749_v51  ;;  %v14002_v49 = vld [vmem:[%s15303_s30 + $0xcc] sm:$0xf0]  ;;  %v13994_v50 = vld [vmem:[%s15303_s30 + $0x94] sm:$0xf]  ;;  %v14020_v35 = vld [vmem:[%s17365_s23 + $0x60] sm:$0xff] }
 0x4d2   :  { %v785_v56 = vpack.c.bf16 %v784_v54, %v783_v55  ;;  %1421 = vmatpush.bf16.msrb.mxu1 %v10538_v46  ;;  %v10606_v52 = vor.u32 %v14002_v49, %v10605_v48  ;;  %v10607_v53 = vld [vmem:[%s15303_s30 + $0xd0] sm:$0xf0]  ;;  %v10613_v54 = vld [vmem:[%s15303_s30 + $0x98] sm:$0xf]  ;;  %v13988_v46 = vld [vmem:[%s15303_s30 + $0x5c] sm:$0xf0] }
 0x4d3   :  { %v14003_v55 = vld [vmem:[%s15303_s30 + $0xd4] sm:$0xf0]  ;;  %v13980_v49 = vld [vmem:[%s15303_s30 + $0x24] sm:$0xf] }
 0x4d4   :  { %10522 = vmatmul.msk.bf16.vlgmr.msra.gmra.mxu1 %vm331_vm3, %v785_v56  ;;  %v10610_v56 = vor.u32 %v13994_v50, %v10607_v53  ;;  %1434 = vmatpush.bf16.msrb.mxu2 %v10606_v52  ;;  %v10559_v50 = vld [vmem:[%s15303_s30 + $0x60] sm:$0xf0]  ;;  %v13989_v52 = vld [vmem:[%s15303_s30 + $0x64] sm:$0xf0]  ;;  %v13981_v53 = vld [vmem:[%s15303_s30 + $0x2c] sm:$0xf] }
 0x4d6   :  { %1448 = vmatpush.bf16.msrb.mxu0 %v10610_v56  ;;  %v10562_v56 = vor.u32 %v13980_v49, %v10559_v50  ;;  %v14009_v49 = vld [vmem:[%s17365_s23 + $0x8] sm:$0xff] }
 0x4d7   :  { %v14025_v50 = vld [vmem:[%s17365_s23 + $0x88] sm:$0xff] }
 0x551   :  { %v813_v58 = vpop.f32.mrf.mxu1 }
 0x552   :  { %v814_v59 = vadd.f32 %v14828_v57, %v813_v58  ;;  %v13995_v58 = vld [vmem:[%s15303_s30 + $0x9c] sm:$0xf] }
 0x554   :  { %v818_v60 = vadd.f32 %v814_v59, %v15517_v17  ;;  %v15656_v17 = vsel %vm833_vm7, %v14904_v4, %v832_v8  ;;  %v10615_v59 = vld [vmem:[%s15303_s30 + $0xd8] sm:$0xf0] }
 0x556   :  { %v822_v61 = vsel %vm331_vm3, %v818_v60, 0.0 }
 0x557   :  { %823 = vadd.xlane.f32.xlu2 %v822_v61 }
 0x559   :  { %v815_v62 = vpop.f32.mrf.mxu1 }
 0x55a   :  { %v816_v63 = vadd.f32 %v14828_v57, %v815_v62  ;;  %v10614_v57 = vor.u32 %v14003_v55, %v10613_v54  ;;  %v10567_v54 = vld [vmem:[%s15303_s30 + $0x68] sm:$0xf0]  ;;  %v10558_v55 = vor.u32 %v13988_v46, %v10557_v45  ;;  %v14034_v45 = vld [vmem:[%s17365_s23 + $0xd0] sm:$0xff] }
 0x55b   :  { %v14010_v46 = vld [vmem:[%s17365_s23 + $0x10] sm:$0xff] }
 0x55c   :  { %v819_v0 = vadd.f32 %v816_v63, %v15519_v18  ;;  %v10618_v63 = vor.u32 %v13995_v58, %v10615_v59  ;;  %1462 = vmatpush.bf16.msrb.mxu3 %v10614_v57  ;;  %v10570_v58 = vor.u32 %v13981_v53, %v10567_v54  ;;  %v10637_v59 = vld [vmem:[%s15303_s30 + $0xb0] sm:$0xf]  ;;  %v14055_v53 = vld [vmem:[%s17365_s23 + $0x178] sm:$0xff] }
 0x55d   :  { %v14071_v54 = vld [vmem:[%s17365_s23 + $0x1f8] sm:$0xff] }
 0x55e   :  { %v825_v1 = vsel %vm331_vm3, %v819_v0, 0.0  ;;  %1476 = vmatpush.bf16.msra.mxu1 %v10618_v63  ;;  %v10645_v63 = vld [vmem:[%s15303_s30 + $0xb8] sm:$0xf] }
 0x55f   :  { %826 = vadd.xlane.f32.xlu0 %v825_v1  ;;  %v13978_v1 = vld [vmem:[%s15303_s30 + $0x14] sm:$0xf] }
 0x560   :  { %v10546_v8 = vor.u32 %v13978_v1, %v10543_v5  ;;  %v13999_v1 = vld [vmem:[%s15303_s30 + $0xbc] sm:$0xf] }
 0x562   :  { %1449 = vmatpush.bf16.msrb.mxu0 %v10546_v8 }
 0x5ca   :  { %v824_v9 = vpop.xlane.xlu2 %823 }
 0x5cb   :  { %v835_v18 = vmul.f32 %v15656_v17, %v824_v9  ;;  %v10550_v9 = vor.u32 %v13987_v7, %v10549_v6  ;;  %v10573_v6 = vld [vmem:[%s15303_s30 + $0x30] sm:$0xf] }
 0x5cc   :  { %v13990_v7 = vld [vmem:[%s15303_s30 + $0x6c] sm:$0xf0] }
 0x5cd   :  { %v15659_v10 = vsub.f32 %v818_v60, %v835_v18  ;;  %v10541_v60 = vld [vmem:[%s15303_s30 + $0x10] sm:$0xf]  ;;  %v13979_v18 = vld [vmem:[%s15303_s30 + $0x1c] sm:$0xf]  ;;  %1463 = vmatpush.bf16.msrb.mxu3 %v10550_v9 }
 0x5cf   :  { %v839_v11 = vmul.f32 %v15659_v10, %v15659_v10 }
 0x5d1   :  { %v841_v12 = vsel %vm331_vm3, %v839_v11, 0.0  ;;  %v10551_v11 = vld [vmem:[%s15303_s30 + $0x58] sm:$0xf0] }
 0x5d2   :  { %v827_v13 = vpop.xlane.xlu0 %826  ;;  %842 = vadd.xlane.f32.xlu1 %v841_v12 }
 0x5d3   :  { %v836_v14 = vmul.f32 %v15656_v17, %v827_v13  ;;  %v10554_v13 = vor.u32 %v13979_v18, %v10551_v11  ;;  %v13982_v18 = vld [vmem:[%s15303_s30 + $0x34] sm:$0xf] }
 0x5d4   :  { %v10575_v11 = vld [vmem:[%s15303_s30 + $0x70] sm:$0xf0] }
 0x5d5   :  { %v15665_v15 = vsub.f32 %v819_v0, %v836_v14  ;;  %v13986_v0 = vld [vmem:[%s15303_s30 + $0x4c] sm:$0xf0]  ;;  %1477 = vmatpush.bf16.msra.mxu1 %v10554_v13  ;;  %v13991_v13 = vld [vmem:[%s15303_s30 + $0x74] sm:$0xf0] }
 0x5d6   :  { %v10542_v4 = vor.u32 %v13986_v0, %v10541_v60  ;;  %v14006_v60 = vld [vmem:[%s15303_s30 + $0xec] sm:$0xf0]  ;;  %v14007_v0 = vld [vmem:[%s15303_s30 + $0xf4] sm:$0xf0] }
 0x5d7   :  { %v840_v16 = vmul.f32 %v15665_v15, %v15665_v15  ;;  %v10646_v8 = vor.u32 %v14007_v0, %v10645_v63  ;;  %v14053_v63 = vld [vmem:[%s17365_s23 + $0x168] sm:$0xff] }
 0x5d8   :  { %1435 = vmatpush.bf16.msrb.mxu2 %v10542_v4  ;;  %v10638_v4 = vor.u32 %v14006_v60, %v10637_v59  ;;  %v14054_v59 = vld [vmem:[%s17365_s23 + $0x170] sm:$0xff]  ;;  %v14069_v0 = vld [vmem:[%s17365_s23 + $0x1e8] sm:$0xff] }
 0x5d9   :  { %v844_v19 = vsel %vm331_vm3, %v840_v16, 0.0  ;;  %v14070_v60 = vld [vmem:[%s17365_s23 + $0x1f0] sm:$0xff] }
 0x5da   :  { %845 = vadd.xlane.f32.xlu1 %v844_v19 }
 0x645   :  { %v843_v27 = vpop.xlane.xlu1 %842 }
 0x646   :  { %v847_v32 = vmul.f32 %v843_v27, %v15656_v17 }
 0x648   :  { %v15682_v37 = vadd.f32 1e-05, %v847_v32 }
 0x64a   :  { %14905 = vrsqrt.f32 %v15682_v37  ;;  %vm857_vm9 = vweird.f32 %v15682_v37 }
 0x64d   :  { %v846_v47 = vpop.xlane.xlu1 %845 }
 0x64e   :  { %v848_v51 = vmul.f32 %v846_v47, %v15656_v17 }
 0x650   :  { %v14906_v61 = vpop.eup %14905  ;;  %v850_v62 = vadd.f32 1e-05, %v848_v51  ;;  %v10565_v51 = vld [vmem:[%s15303_s30 + $0x28] sm:$0xf] }
 0x651   :  { %v852_v3 = vmul.f32 %v14906_v61, %v15682_v37  ;;  %vm858_vm8 = vweird.f32 %v14906_v61  ;;  %v10629_v37 = vld [vmem:[%s15303_s30 + $0xa8] sm:$0xf]  ;;  %v10566_v57 = vor.u32 %v13989_v52, %v10565_v51  ;;  %v14016_v51 = vld [vmem:[%s17365_s23 + $0x40] sm:$0xff] }
 0x652   :  { %14907 = vrsqrt.f32 %v850_v62  ;;  %vm859_vm10 = vmor %vm857_vm9, %vm858_vm8  ;;  %vm867_vm12 = vweird.f32 %v850_v62  ;;  %v10630_v47 = vor.u32 %v14005_v40, %v10629_v37  ;;  %v14028_v37 = vld [vmem:[%s17365_s23 + $0xa0] sm:$0xff]  ;;  %v14019_v40 = vld [vmem:[%s17365_s23 + $0x58] sm:$0xff] }
 0x653   :  { %v853_v12 = vmul.f32 %v14906_v61, %v852_v3  ;;  %v10647_v3 = vld [vmem:[%s15303_s30 + $0xf8] sm:$0xf0]  ;;  %v14032_v52 = vld [vmem:[%s17365_s23 + $0xc0] sm:$0xff] }
 0x654   :  { %v10650_v9 = vor.u32 %v13999_v1, %v10647_v3  ;;  %v14052_v1 = vld [vmem:[%s17365_s23 + $0x160] sm:$0xff] }
 0x655   :  { %v854_v14 = vmul.f32 0.5, %v853_v12  ;;  %v10581_v12 = vld [vmem:[%s15303_s30 + $0x38] sm:$0xf]  ;;  %v14068_v3 = vld [vmem:[%s17365_s23 + $0x1e0] sm:$0xff] }
 0x657   :  { %v855_v16 = vsub.f32 1.5, %v854_v14  ;;  %v13983_v14 = vld [vmem:[%s15303_s30 + $0x3c] sm:$0xf] }
 0x658   :  { %v14908_v19 = vpop.eup %14907 }
 0x659   :  { %v856_v20 = vmul.f32 %v14906_v61, %v855_v16  ;;  %v862_v21 = vmul.f32 %v14908_v19, %v850_v62  ;;  %vm868_vm11 = vweird.f32 %v14908_v19  ;;  %v10639_v62 = vld [vmem:[%s15303_s30 + $0xf0] sm:$0xf0]  ;;  %v10583_v16 = vld [vmem:[%s15303_s30 + $0x78] sm:$0xf0] }
 0x65a   :  { %vm869_vm13 = vmor %vm867_vm12, %vm868_vm11 }
 0x65b   :  { %v863_v22 = vmul.f32 %v14908_v19, %v862_v21  ;;  %v860_v23 = vsel %vm859_vm10, %v14906_v61, %v856_v20  ;;  %v13998_v61 = vld [vmem:[%s15303_s30 + $0xb4] sm:$0xf]  ;;  %v10578_v20 = vor.u32 %v13982_v18, %v10575_v11  ;;  %v10582_v21 = vor.u32 %v13991_v13, %v10581_v12  ;;  %v14043_v12 = vld [vmem:[%s17365_s23 + $0x118] sm:$0xff] }
 0x65c   :  { %v871_v27 = vmul.f32 %v860_v23, %v15659_v10  ;;  %v10623_v10 = vld [vmem:[%s15303_s30 + $0xe0] sm:$0xf0]  ;;  %v10642_v5 = vor.u32 %v13998_v61, %v10639_v62  ;;  %v14023_v23 = vld [vmem:[%s17365_s23 + $0x78] sm:$0xff]  ;;  %v14046_v61 = vld [vmem:[%s17365_s23 + $0x130] sm:$0xff] }
 0x65d   :  { %v864_v24 = vmul.f32 0.5, %v863_v22  ;;  %v10626_v44 = vor.u32 %v13996_v36, %v10623_v10  ;;  %v10586_v22 = vor.u32 %v13983_v14, %v10583_v16  ;;  %v14036_v36 = vld [vmem:[%s17365_s23 + $0xe0] sm:$0xff]  ;;  %v14062_v62 = vld [vmem:[%s17365_s23 + $0x1b0] sm:$0xff]  ;;  %v14059_v13 = vld [vmem:[%s17365_s23 + $0x198] sm:$0xff] }
 0x65e   :  { %v876_v31 = vmul.f32 %v14829_v26, %v871_v27  ;;  %v14022_v27 = vld [vmem:[%s17365_s23 + $0x70] sm:$0xff]  ;;  %v14012_v10 = vld [vmem:[%s17365_s23 + $0x20] sm:$0xff]  ;;  %v14049_v14 = vld [vmem:[%s17365_s23 + $0x148] sm:$0xff] }
 0x65f   :  { %v865_v25 = vsub.f32 1.5, %v864_v24  ;;  %v14039_v24 = vld [vmem:[%s17365_s23 + $0xf8] sm:$0xff]  ;;  %v14050_v18 = vld [vmem:[%s17365_s23 + $0x150] sm:$0xff]  ;;  %v14065_v16 = vld [vmem:[%s17365_s23 + $0x1c8] sm:$0xff] }
 0x660   :  { %v15718_v38 = vadd.f32 %v14830_v30, %v876_v31  ;;  %v14021_v31 = vld [vmem:[%s17365_s23 + $0x68] sm:$0xff]  ;;  %v14066_v11 = vld [vmem:[%s17365_s23 + $0x1d0] sm:$0xff] }
 0x661   :  { %v866_v28 = vmul.f32 %v14908_v19, %v865_v25  ;;  %v14015_v25 = vld [vmem:[%s17365_s23 + $0x38] sm:$0xff] }
 0x663   :  { %v870_v29 = vsel %vm869_vm13, %v14908_v19, %v866_v28  ;;  %v10574_v19 = vor.u32 %v13990_v7, %v10573_v6  ;;  %v14038_v28 = vld [vmem:[%s17365_s23 + $0xf0] sm:$0xff]  ;;  %v14051_v6 = vld [vmem:[%s17365_s23 + $0x158] sm:$0xff] }
 0x664   :  { %v872_v32 = vmul.f32 %v870_v29, %v15665_v15  ;;  %v10631_v15 = vld [vmem:[%s15303_s30 + $0xe8] sm:$0xf0]  ;;  %v14014_v29 = vld [vmem:[%s17365_s23 + $0x30] sm:$0xff]  ;;  %v14067_v7 = vld [vmem:[%s17365_s23 + $0x1d8] sm:$0xff] }
 0x665   :  { %v10634_v48 = vor.u32 %v13997_v41, %v10631_v15  ;;  %v14035_v41 = vld [vmem:[%s17365_s23 + $0xd8] sm:$0xff] }
 0x666   :  { %v877_v33 = vmul.f32 %v14829_v26, %v872_v32  ;;  %v14031_v26 = vld [vmem:[%s17365_s23 + $0xb8] sm:$0xff]  ;;  %v14037_v32 = vld [vmem:[%s17365_s23 + $0xe8] sm:$0xff] }
 0x667   :  { %v14011_v15 = vld [vmem:[%s17365_s23 + $0x18] sm:$0xff] }
 0x668   :  { %v15720_v39 = vadd.f32 %v14830_v30, %v877_v33  ;;  %v14030_v30 = vld [vmem:[%s17365_s23 + $0xb0] sm:$0xff]  ;;  %v14013_v33 = vld [vmem:[%s17365_s23 + $0x28] sm:$0xff] }
 0x66a   :  { %v15727_v42 = vpack.c.bf16 %v15720_v39, %v15718_v38 }
 0x66c   :  { %10651 = vmatmul.msk.bf16.vlgmr.msra.gmra.mxu2 %vm331_vm3, %v15727_v42  ;;  %10652 = vmatmul.msk.bf16.vlgmr.msra.gmra.mxu0 %vm331_vm3, %v15727_v42 }
 0x66d   :  { %10653 = vmatmul.msk.bf16.vlgmr.msra.gmra.mxu3 %vm331_vm3, %v15727_v42  ;;  %10654 = vmatmul.msk.bf16.vlgmr.msrb.gmra.mxu1 %vm331_vm3, %v15727_v42 }
 0x66e   :  { %1490 = vmatpush.bf16.msra.mxu2 %v10622_v43  ;;  %1504 = vmatpush.bf16.msra.mxu0 %v10626_v44  ;;  %v14027_v43 = vld [vmem:[%s17365_s23 + $0x98] sm:$0xff]  ;;  %v14018_v44 = vld [vmem:[%s17365_s23 + $0x50] sm:$0xff] }
 0x66f   :  { %1518 = vmatpush.bf16.msra.mxu3 %v10630_v47  ;;  %1532 = vmatpush.bf16.msrb.mxu1 %v10634_v48  ;;  %v14026_v47 = vld [vmem:[%s17365_s23 + $0x90] sm:$0xff]  ;;  %v14017_v48 = vld [vmem:[%s17365_s23 + $0x48] sm:$0xff] }
 0x672   :  { %1491 = vmatpush.bf16.msra.mxu2 %v10558_v55  ;;  %1505 = vmatpush.bf16.msra.mxu0 %v10562_v56  ;;  %v14008_v55 = vld [vmem:[%s17365_s23] sm:$0xff] }
 0x673   :  { %1519 = vmatpush.bf16.msra.mxu3 %v10566_v57  ;;  %1533 = vmatpush.bf16.msrb.mxu1 %v10570_v58  ;;  %v14024_v56 = vld [vmem:[%s17365_s23 + $0x80] sm:$0xff]  ;;  %v14047_v57 = vld [vmem:[%s17365_s23 + $0x138] sm:$0xff] }
 0x674   :  { %v14063_v58 = vld [vmem:[%s17365_s23 + $0x1b8] sm:$0xff] }
 0x67c   :  { %10655 = vmatmul.msk.bf16.vlgmr.msrb.gmra.mxu2 %vm331_vm3, %v15727_v42  ;;  %10656 = vmatmul.msk.bf16.vlgmr.msrb.gmra.mxu0 %vm331_vm3, %v15727_v42 }
 0x67d   :  { %10657 = vmatmul.msk.bf16.vlgmr.msrb.gmra.mxu3 %vm331_vm3, %v15727_v42  ;;  %10658 = vmatmul.msk.bf16.vlgmr.msra.gmra.mxu1 %vm331_vm3, %v15727_v42 }
 0x67e   :  { %1546 = vmatpush.bf16.msrb.mxu2 %v10638_v4  ;;  %1560 = vmatpush.bf16.msrb.mxu0 %v10642_v5  ;;  %v14045_v4 = vld [vmem:[%s17365_s23 + $0x128] sm:$0xff] }
 0x67f   :  { %1574 = vmatpush.bf16.msrb.mxu3 %v10646_v8  ;;  %1588 = vmatpush.bf16.msra.mxu1 %v10650_v9  ;;  %v14061_v5 = vld [vmem:[%s17365_s23 + $0x1a8] sm:$0xff]  ;;  %v14044_v8 = vld [vmem:[%s17365_s23 + $0x120] sm:$0xff] }
 0x680   :  { %v14060_v9 = vld [vmem:[%s17365_s23 + $0x1a0] sm:$0xff] }
 0x682   :  { %1547 = vmatpush.bf16.msrb.mxu2 %v10574_v19  ;;  %1561 = vmatpush.bf16.msrb.mxu0 %v10578_v20  ;;  %v14042_v19 = vld [vmem:[%s17365_s23 + $0x110] sm:$0xff] }
 0x683   :  { %1575 = vmatpush.bf16.msrb.mxu3 %v10582_v21  ;;  %1589 = vmatpush.bf16.msra.mxu1 %v10586_v22  ;;  %v14058_v20 = vld [vmem:[%s17365_s23 + $0x190] sm:$0xff]  ;;  %v14048_v21 = vld [vmem:[%s17365_s23 + $0x140] sm:$0xff] }
 0x684   :  { %v14064_v22 = vld [vmem:[%s17365_s23 + $0x1c0] sm:$0xff] }
 0x68c   :  { %10659 = vmatmul.msk.bf16.vlgmr.msra.gmra.mxu2 %vm331_vm3, %v15727_v42  ;;  %10660 = vmatmul.msk.bf16.vlgmr.msra.gmra.mxu0 %vm331_vm3, %v15727_v42 }
 0x68d   :  { %10661 = vmatmul.msk.bf16.vlgmr.msra.gmra.mxu3 %vm331_vm3, %v15727_v42  ;;  %10662 = vmatmul.msk.bf16.vlgmr.msrb.gmra.mxu1 %vm331_vm3, %v15727_v42 }
 0x68e   :  { %2429 = vmatpush.bf16.msra.mxu0 %v14023_v23  ;;  %2457 = vmatpush.bf16.msrb.mxu1 %v14039_v24  ;;  %v14041_v23 = vld [vmem:[%s17365_s23 + $0x108] sm:$0xff] }
 0x68f   :  { %2415 = vmatpush.bf16.msra.mxu2 %v14015_v25  ;;  %2443 = vmatpush.bf16.msra.mxu3 %v14031_v26  ;;  %v14057_v24 = vld [vmem:[%s17365_s23 + $0x188] sm:$0xff]  ;;  %v14040_v25 = vld [vmem:[%s17365_s23 + $0x100] sm:$0xff] }
 0x690   :  { %v14056_v26 = vld [vmem:[%s17365_s23 + $0x180] sm:$0xff] }
 0x692   :  { %2430 = vmatpush.bf16.msra.mxu0 %v14022_v27  ;;  %2458 = vmatpush.bf16.msrb.mxu1 %v14038_v28  ;;  %v15850_v27 = vld [vmem:[%s17366_s28] sm:$0xff] }
 0x693   :  { %2416 = vmatpush.bf16.msra.mxu2 %v14014_v29  ;;  %2444 = vmatpush.bf16.msra.mxu3 %v14030_v30  ;;  %v1178_v30 = vperm.slane %v15850_v27, 1 }
 0x696   :  { %2431 = vmatpush.bf16.msra.mxu0 %v14021_v31  ;;  %2459 = vmatpush.bf16.msrb.mxu1 %v14037_v32  ;;  %v1180_v31 = vperm.slane %v15850_v27, 3 }
 0x697   :  { %2417 = vmatpush.bf16.msra.mxu2 %v14013_v33  ;;  %2445 = vmatpush.bf16.msra.mxu3 %v14029_v34 }
 0x69a   :  { %2432 = vmatpush.bf16.msra.mxu0 %v14020_v35  ;;  %2460 = vmatpush.bf16.msrb.mxu1 %v14036_v36 }
 0x69b   :  { %2418 = vmatpush.bf16.msra.mxu2 %v14012_v10  ;;  %2446 = vmatpush.bf16.msra.mxu3 %v14028_v37  ;;  %v1177_v10 = vperm.slane %v15850_v27, 0 }
 0x69c   :  { %10663 = vmatmul.msk.bf16.vlgmr.msrb.gmra.mxu2 %vm331_vm3, %v15727_v42  ;;  %10664 = vmatmul.msk.bf16.vlgmr.msrb.gmra.mxu0 %vm331_vm3, %v15727_v42 }
 0x69d   :  { %10665 = vmatmul.msk.bf16.vlgmr.msrb.gmra.mxu3 %vm331_vm3, %v15727_v42  ;;  %10666 = vmatmul.msk.bf16.vlgmr.msra.gmra.mxu1 %vm331_vm3, %v15727_v42  ;;  %v14033_v42 = vld [vmem:[%s17365_s23 + $0xc8] sm:$0xff] }
 0x69e   :  { %2433 = vmatpush.bf16.msra.mxu0 %v14019_v40  ;;  %2461 = vmatpush.bf16.msrb.mxu1 %v14035_v41  ;;  %v1179_v41 = vperm.slane %v15850_v27, 2 }
 0x69f   :  { %2419 = vmatpush.bf16.msra.mxu2 %v14011_v15  ;;  %2447 = vmatpush.bf16.msra.mxu3 %v14027_v43 }
 0x6a2   :  { %2434 = vmatpush.bf16.msra.mxu0 %v14018_v44  ;;  %2462 = vmatpush.bf16.msrb.mxu1 %v14034_v45 }
 0x6a3   :  { %2420 = vmatpush.bf16.msra.mxu2 %v14010_v46  ;;  %2448 = vmatpush.bf16.msra.mxu3 %v14026_v47  ;;  %v14087_v47 = vld [vmem:[%s17365_s23 + $0x278] sm:$0xff] }
 0x6a6   :  { %2435 = vmatpush.bf16.msra.mxu0 %v14017_v48  ;;  %2463 = vmatpush.bf16.msrb.mxu1 %v14033_v42 }
 0x6a7   :  { %2421 = vmatpush.bf16.msra.mxu2 %v14009_v49  ;;  %2449 = vmatpush.bf16.msra.mxu3 %v14025_v50  ;;  %v14103_v49 = vld [vmem:[%s17365_s23 + $0x2f8] sm:$0xff] }
 0x6aa   :  { %2436 = vmatpush.bf16.msra.mxu0 %v14016_v51  ;;  %2464 = vmatpush.bf16.msrb.mxu1 %v14032_v52 }
 0x6ab   :  { %2422 = vmatpush.bf16.msra.mxu2 %v14008_v55  ;;  %2450 = vmatpush.bf16.msra.mxu3 %v14024_v56 }
 0x6ae   :  { %2485 = vmatpush.bf16.msrb.mxu0 %v14055_v53  ;;  %2513 = vmatpush.bf16.msra.mxu1 %v14071_v54 }
 0x6af   :  { %2471 = vmatpush.bf16.msrb.mxu2 %v14047_v57  ;;  %2499 = vmatpush.bf16.msrb.mxu3 %v14063_v58  ;;  %v14086_v57 = vld [vmem:[%s17365_s23 + $0x270] sm:$0xff] }
 0x6b2   :  { %2486 = vmatpush.bf16.msrb.mxu0 %v14054_v59  ;;  %2514 = vmatpush.bf16.msra.mxu1 %v14070_v60 }
 0x6b3   :  { %2472 = vmatpush.bf16.msrb.mxu2 %v14046_v61  ;;  %2500 = vmatpush.bf16.msrb.mxu3 %v14062_v62  ;;  %v14102_v61 = vld [vmem:[%s17365_s23 + $0x2f0] sm:$0xff] }
 0x6b6   :  { %2487 = vmatpush.bf16.msrb.mxu0 %v14053_v63  ;;  %2515 = vmatpush.bf16.msra.mxu1 %v14069_v0  ;;  %v14079_v0 = vld [vmem:[%s17365_s23 + $0x238] sm:$0xff] }
 0x6b7   :  { %2473 = vmatpush.bf16.msrb.mxu2 %v14045_v4  ;;  %2501 = vmatpush.bf16.msrb.mxu3 %v14061_v5  ;;  %v14095_v4 = vld [vmem:[%s17365_s23 + $0x2b8] sm:$0xff] }
 0x6ba   :  { %2488 = vmatpush.bf16.msrb.mxu0 %v14052_v1  ;;  %2516 = vmatpush.bf16.msra.mxu1 %v14068_v3  ;;  %v1182_v3 = vperm.slane %v15850_v27, 5 }
 0x6bb   :  { %2474 = vmatpush.bf16.msrb.mxu2 %v14044_v8  ;;  %2502 = vmatpush.bf16.msrb.mxu3 %v14060_v9  ;;  %v14101_v8 = vld [vmem:[%s17365_s23 + $0x2e8] sm:$0xff] }
 0x6be   :  { %2489 = vmatpush.bf16.msrb.mxu0 %v14051_v6  ;;  %2517 = vmatpush.bf16.msra.mxu1 %v14067_v7  ;;  %v1184_v6 = vperm.slane %v15850_v27, 7  ;;  %v14085_v7 = vld [vmem:[%s17365_s23 + $0x268] sm:$0xff] }
 0x6bf   :  { %2475 = vmatpush.bf16.msrb.mxu2 %v14043_v12  ;;  %2503 = vmatpush.bf16.msrb.mxu3 %v14059_v13  ;;  %v14094_v13 = vld [vmem:[%s17365_s23 + $0x2b0] sm:$0xff] }
 0x6c2   :  { %2490 = vmatpush.bf16.msrb.mxu0 %v14050_v18  ;;  %2518 = vmatpush.bf16.msra.mxu1 %v14066_v11  ;;  %v14078_v18 = vld [vmem:[%s17365_s23 + $0x230] sm:$0xff] }
 0x6c3   :  { %2476 = vmatpush.bf16.msrb.mxu2 %v14042_v19  ;;  %2504 = vmatpush.bf16.msrb.mxu3 %v14058_v20  ;;  %v14084_v19 = vld [vmem:[%s17365_s23 + $0x260] sm:$0xff]  ;;  %v1181_v20 = vperm.slane %v15850_v27, 4 }
 0x6c6   :  { %2491 = vmatpush.bf16.msrb.mxu0 %v14049_v14  ;;  %2519 = vmatpush.bf16.msra.mxu1 %v14065_v16 }
 0x6c7   :  { %2477 = vmatpush.bf16.msrb.mxu2 %v14041_v23  ;;  %2505 = vmatpush.bf16.msrb.mxu3 %v14057_v24  ;;  %v14100_v23 = vld [vmem:[%s17365_s23 + $0x2e0] sm:$0xff]  ;;  %v1183_v24 = vperm.slane %v15850_v27, 6 }
 0x6ca   :  { %2492 = vmatpush.bf16.msrb.mxu0 %v14048_v21  ;;  %2520 = vmatpush.bf16.msra.mxu1 %v14064_v22 }
 0x6cb   :  { %2478 = vmatpush.bf16.msrb.mxu2 %v14040_v25  ;;  %2506 = vmatpush.bf16.msrb.mxu3 %v14056_v26  ;;  %v14077_v26 = vld [vmem:[%s17365_s23 + $0x228] sm:$0xff] }
 0x6e9   :  { %v1395_v28 = vpop.f32.mrf.mxu0 }
 0x6ea   :  { %v1423_v29 = vpop.f32.mrf.mxu1  ;;  %v1396_v33 = vadd.f32 %v1395_v28, %v1178_v30 }
 0x6eb   :  { %v1424_v35 = vadd.f32 %v1423_v29, %v1180_v31 }
 0x6ec   :  { %v1597_v43 = vmax.f32 %v1396_v33, 0.0  ;;  %v14083_v33 = vld [vmem:[%s17365_s23 + $0x258] sm:$0xff] }
 0x6ed   :  { %v1599_v45 = vmax.f32 %v1424_v35, 0.0 }
 0x6ef   :  { %v1381_v32 = vpop.f32.mrf.mxu2 }
 0x6f0   :  { %v1409_v34 = vpop.f32.mrf.mxu3  ;;  %v1382_v48 = vadd.f32 %v1381_v32, %v1177_v10 }
 0x6f1   :  { %v1397_v36 = vpop.f32.mrf.mxu0  ;;  %v1410_v50 = vadd.f32 %v1409_v34, %v1179_v41 }
 0x6f2   :  { %v1398_v37 = vadd.f32 %v1397_v36, %v1178_v30  ;;  %v1425_v40 = vpop.f32.mrf.mxu1  ;;  %v1596_v58 = vmax.f32 %v1382_v48, 0.0  ;;  %v14093_v30 = vld [vmem:[%s17365_s23 + $0x2a8] sm:$0xff]  ;;  %v14099_v36 = vld [vmem:[%s17365_s23 + $0x2d8] sm:$0xff] }
 0x6f3   :  { %v1426_v15 = vadd.f32 %v1425_v40, %v1180_v31  ;;  %v1598_v62 = vmax.f32 %v1410_v50, 0.0  ;;  %v14076_v40 = vld [vmem:[%s17365_s23 + $0x220] sm:$0xff]  ;;  %v14098_v50 = vld [vmem:[%s17365_s23 + $0x2d0] sm:$0xff] }
 0x6f4   :  { %v1613_v44 = vmax.f32 %v1398_v37, 0.0 }
 0x6f5   :  { %v1615_v46 = vmax.f32 %v1426_v15, 0.0 }
 0x6f6   :  { %v1629_v42 = vpack.c.bf16 %v1613_v44, %v1597_v43  ;;  %v14092_v43 = vld [vmem:[%s17365_s23 + $0x2a0] sm:$0xff] }
 0x6f7   :  { %v1631_v51 = vpack.c.bf16 %v1615_v46, %v1599_v45  ;;  %v1383_v52 = vpop.f32.mrf.mxu2  ;;  %v15879_v45 = vld [vmem:[%s17366_s28 + $0x8] sm:$0xff] }
 0x6f8   :  { %v1384_v53 = vadd.f32 %v1383_v52, %v1177_v10  ;;  %v1411_v54 = vpop.f32.mrf.mxu3  ;;  %2437 = vmatmul.bf16.vlgmr.msra.gmra.mxu0 %v1629_v42 }
 0x6f9   :  { %v1412_v55 = vadd.f32 %v1411_v54, %v1179_v41  ;;  %2465 = vmatmul.bf16.vlgmr.msrb.gmra.mxu1 %v1631_v51  ;;  %2541 = vmatpush.bf16.msra.mxu0 %v14087_v47  ;;  %v1451_v56 = vpop.f32.mrf.mxu0  ;;  %v14082_v47 = vld [vmem:[%s17365_s23 + $0x250] sm:$0xff] }
 0x6fa   :  { %v1612_v59 = vmax.f32 %v1384_v53, 0.0  ;;  %2569 = vmatpush.bf16.msrb.mxu1 %v14103_v49  ;;  %v1479_v60 = vpop.f32.mrf.mxu1  ;;  %v1452_v11 = vadd.f32 %v1451_v56, %v1182_v3  ;;  %v14075_v53 = vld [vmem:[%s17365_s23 + $0x218] sm:$0xff] }
 0x6fb   :  { %v1614_v63 = vmax.f32 %v1412_v55, 0.0  ;;  %v1480_v14 = vadd.f32 %v1479_v60, %v1184_v6  ;;  %v1186_v55 = vperm.slane %v15879_v45, 1  ;;  %v14091_v56 = vld [vmem:[%s17365_s23 + $0x298] sm:$0xff]  ;;  %v14097_v60 = vld [vmem:[%s17365_s23 + $0x2c8] sm:$0xff] }
 0x6fc   :  { %v1628_v1 = vpack.c.bf16 %v1612_v59, %v1596_v58  ;;  %v1601_v28 = vmax.f32 %v1452_v11, 0.0  ;;  %v1188_v58 = vperm.slane %v15879_v45, 3  ;;  %v14081_v59 = vld [vmem:[%s17365_s23 + $0x248] sm:$0xff]  ;;  %v1187_v11 = vperm.slane %v15879_v45, 2 }
 0x6fd   :  { %v1630_v5 = vpack.c.bf16 %v1614_v63, %v1598_v62  ;;  %2542 = vmatpush.bf16.msra.mxu0 %v14086_v57  ;;  %v1603_v31 = vmax.f32 %v1480_v14, 0.0  ;;  %v14074_v62 = vld [vmem:[%s17365_s23 + $0x210] sm:$0xff]  ;;  %v14073_v14 = vld [vmem:[%s17365_s23 + $0x208] sm:$0xff] }
 0x6fe   :  { %2570 = vmatpush.bf16.msrb.mxu1 %v14102_v61  ;;  %2423 = vmatmul.bf16.vlgmr.msra.gmra.mxu2 %v1628_v1  ;;  %v14090_v1 = vld [vmem:[%s17365_s23 + $0x290] sm:$0xff] }
 0x6ff   :  { %2451 = vmatmul.bf16.vlgmr.msra.gmra.mxu3 %v1630_v5  ;;  %2527 = vmatpush.bf16.msra.mxu2 %v14079_v0  ;;  %v1437_v9 = vpop.f32.mrf.mxu2  ;;  %v14080_v5 = vld [vmem:[%s17365_s23 + $0x240] sm:$0xff] }
 0x700   :  { %2555 = vmatpush.bf16.msra.mxu3 %v14095_v4  ;;  %v1465_v12 = vpop.f32.mrf.mxu3  ;;  %v1438_v34 = vadd.f32 %v1437_v9, %v1181_v20  ;;  %v14096_v9 = vld [vmem:[%s17365_s23 + $0x2c0] sm:$0xff] }
 0x701   :  { %2543 = vmatpush.bf16.msra.mxu0 %v14085_v7  ;;  %v1453_v16 = vpop.f32.mrf.mxu0  ;;  %v1466_v27 = vadd.f32 %v1465_v12, %v1183_v24 }
 0x702   :  { %2571 = vmatpush.bf16.msrb.mxu1 %v14101_v8  ;;  %v1454_v21 = vadd.f32 %v1453_v16, %v1182_v3  ;;  %v1481_v22 = vpop.f32.mrf.mxu1  ;;  %v1600_v48 = vmax.f32 %v1438_v34, 0.0  ;;  %v14088_v34 = vld [vmem:[%s17365_s23 + $0x280] sm:$0xff] }
 0x703   :  { %v1482_v25 = vadd.f32 %v1481_v22, %v1184_v6  ;;  %2528 = vmatpush.bf16.msra.mxu2 %v14078_v18  ;;  %v1602_v51 = vmax.f32 %v1466_v27, 0.0  ;;  %v1185_v6 = vperm.slane %v15879_v45, 0  ;;  %v14119_v18 = vld [vmem:[%s17365_s23 + $0x378] sm:$0xff] }
 0x704   :  { %v1617_v29 = vmax.f32 %v1454_v21, 0.0  ;;  %2556 = vmatpush.bf16.msra.mxu3 %v14094_v13  ;;  %v14135_v13 = vld [vmem:[%s17365_s23 + $0x3f8] sm:$0xff] }
 0x705   :  { %v1619_v32 = vmax.f32 %v1482_v25, 0.0  ;;  %2544 = vmatpush.bf16.msra.mxu0 %v14084_v19  ;;  %v14118_v25 = vld [vmem:[%s17365_s23 + $0x370] sm:$0xff]  ;;  %v14127_v27 = vld [vmem:[%s17365_s23 + $0x3b8] sm:$0xff] }
 0x706   :  { %v1633_v35 = vpack.c.bf16 %v1617_v29, %v1601_v28  ;;  %2572 = vmatpush.bf16.msrb.mxu1 %v14100_v23 }
 0x707   :  { %v1635_v10 = vpack.c.bf16 %v1619_v32, %v1603_v31  ;;  %2529 = vmatpush.bf16.msra.mxu2 %v14077_v26  ;;  %v1439_v37 = vpop.f32.mrf.mxu2  ;;  %v14072_v31 = vld [vmem:[%s17365_s23 + $0x200] sm:$0xff] }
 0x708   :  { %2557 = vmatpush.bf16.msra.mxu3 %v14093_v30  ;;  %v1440_v41 = vadd.f32 %v1439_v37, %v1181_v20  ;;  %v1467_v15 = vpop.f32.mrf.mxu3  ;;  %2493 = vmatmul.bf16.vlgmr.msrb.gmra.mxu0 %v1633_v35  ;;  %v14089_v20 = vld [vmem:[%s17365_s23 + $0x288] sm:$0xff]  ;;  %v14134_v30 = vld [vmem:[%s17365_s23 + $0x3f0] sm:$0xff]  ;;  %v14111_v35 = vld [vmem:[%s17365_s23 + $0x338] sm:$0xff] }
 0x709   :  { %v1468_v44 = vadd.f32 %v1467_v15, %v1183_v24  ;;  %2521 = vmatmul.bf16.vlgmr.msra.gmra.mxu1 %v1635_v10  ;;  %2545 = vmatpush.bf16.msra.mxu0 %v14083_v33  ;;  %v1507_v46 = vpop.f32.mrf.mxu0 }
 0x70a   :  { %v1616_v42 = vmax.f32 %v1440_v41, 0.0  ;;  %2573 = vmatpush.bf16.msrb.mxu1 %v14099_v36  ;;  %v1535_v49 = vpop.f32.mrf.mxu1  ;;  %v1508_v63 = vadd.f32 %v1507_v46, %v1186_v55  ;;  %v14110_v46 = vld [vmem:[%s17365_s23 + $0x330] sm:$0xff] }
 0x70b   :  { %v1618_v52 = vmax.f32 %v1468_v44, 0.0  ;;  %2530 = vmatpush.bf16.msra.mxu2 %v14076_v40  ;;  %v1536_v3 = vadd.f32 %v1535_v49, %v1188_v58  ;;  %v14117_v40 = vld [vmem:[%s17365_s23 + $0x368] sm:$0xff]  ;;  %v14116_v49 = vld [vmem:[%s17365_s23 + $0x360] sm:$0xff] }
 0x70c   :  { %v1632_v54 = vpack.c.bf16 %v1616_v42, %v1600_v48  ;;  %2558 = vmatpush.bf16.msra.mxu3 %v14092_v43  ;;  %v1605_v16 = vmax.f32 %v1508_v63, 0.0  ;;  %v14133_v43 = vld [vmem:[%s17365_s23 + $0x3e8] sm:$0xff]  ;;  %v14126_v48 = vld [vmem:[%s17365_s23 + $0x3b0] sm:$0xff]  ;;  %v14107_v63 = vld [vmem:[%s17365_s23 + $0x318] sm:$0xff] }
 0x70d   :  { %v1634_v57 = vpack.c.bf16 %v1618_v52, %v1602_v51  ;;  %2546 = vmatpush.bf16.msra.mxu0 %v14082_v47  ;;  %v1607_v21 = vmax.f32 %v1536_v3, 0.0  ;;  %v14132_v51 = vld [vmem:[%s17365_s23 + $0x3e0] sm:$0xff]  ;;  %v14109_v52 = vld [vmem:[%s17365_s23 + $0x328] sm:$0xff]  ;;  %v14123_v3 = vld [vmem:[%s17365_s23 + $0x398] sm:$0xff] }
 0x70e   :  { %2574 = vmatpush.bf16.msrb.mxu1 %v14098_v50  ;;  %2479 = vmatmul.bf16.vlgmr.msrb.gmra.mxu2 %v1632_v54  ;;  %v14115_v54 = vld [vmem:[%s17365_s23 + $0x358] sm:$0xff] }
 0x70f   :  { %2507 = vmatmul.bf16.vlgmr.msrb.gmra.mxu3 %v1634_v57  ;;  %2531 = vmatpush.bf16.msra.mxu2 %v14075_v53  ;;  %v1493_v61 = vpop.f32.mrf.mxu2  ;;  %v14125_v53 = vld [vmem:[%s17365_s23 + $0x3a8] sm:$0xff]  ;;  %v14108_v57 = vld [vmem:[%s17365_s23 + $0x320] sm:$0xff] }
 0x710   :  { %2559 = vmatpush.bf16.msra.mxu3 %v14091_v56  ;;  %v1521_v0 = vpop.f32.mrf.mxu3  ;;  %v1494_v23 = vadd.f32 %v1493_v61, %v1185_v6  ;;  %v14130_v61 = vld [vmem:[%s17365_s23 + $0x3d0] sm:$0xff] }
 0x711   :  { %2547 = vmatpush.bf16.msra.mxu0 %v14081_v59  ;;  %v1509_v4 = vpop.f32.mrf.mxu0  ;;  %v1522_v26 = vadd.f32 %v1521_v0, %v1187_v11  ;;  %v14124_v59 = vld [vmem:[%s17365_s23 + $0x3a0] sm:$0xff]  ;;  %v1190_v0 = vperm.slane %v15879_v45, 5 }
 0x712   :  { %2575 = vmatpush.bf16.msrb.mxu1 %v14097_v60  ;;  %v1510_v7 = vadd.f32 %v1509_v4, %v1186_v55  ;;  %v1537_v8 = vpop.f32.mrf.mxu1  ;;  %v1604_v10 = vmax.f32 %v1494_v23, 0.0  ;;  %v14131_v55 = vld [vmem:[%s17365_s23 + $0x3d8] sm:$0xff]  ;;  %v14114_v60 = vld [vmem:[%s17365_s23 + $0x350] sm:$0xff]  ;;  %v1192_v4 = vperm.slane %v15879_v45, 7 }
 0x713   :  { %v1538_v12 = vadd.f32 %v1537_v8, %v1188_v58  ;;  %2532 = vmatpush.bf16.msra.mxu2 %v14074_v62  ;;  %v1606_v41 = vmax.f32 %v1522_v26, 0.0 }
 0x714   :  { %v1621_v19 = vmax.f32 %v1510_v7, 0.0  ;;  %2560 = vmatpush.bf16.msra.mxu3 %v14090_v1  ;;  %v14129_v7 = vld [vmem:[%s17365_s23 + $0x3c8] sm:$0xff] }
 0x715   :  { %v1623_v22 = vmax.f32 %v1538_v12, 0.0  ;;  %2548 = vmatpush.bf16.msra.mxu0 %v14080_v5  ;;  %v14113_v5 = vld [vmem:[%s17365_s23 + $0x348] sm:$0xff] }
 0x716   :  { %v1637_v24 = vpack.c.bf16 %v1621_v19, %v1605_v16  ;;  %2576 = vmatpush.bf16.msrb.mxu1 %v14096_v9  ;;  %v14106_v9 = vld [vmem:[%s17365_s23 + $0x310] sm:$0xff]  ;;  %v1189_v16 = vperm.slane %v15879_v45, 4 }
 0x717   :  { %v1639_v28 = vpack.c.bf16 %v1623_v22, %v1607_v21  ;;  %2533 = vmatpush.bf16.msra.mxu2 %v14073_v14  ;;  %v1495_v29 = vpop.f32.mrf.mxu2  ;;  %v14112_v14 = vld [vmem:[%s17365_s23 + $0x340] sm:$0xff]  ;;  %v1191_v22 = vperm.slane %v15879_v45, 6 }
 0x718   :  { %2561 = vmatpush.bf16.msra.mxu3 %v14089_v20  ;;  %v1496_v32 = vadd.f32 %v1495_v29, %v1185_v6  ;;  %v1523_v33 = vpop.f32.mrf.mxu3  ;;  %2549 = vmatmul.bf16.vlgmr.msra.gmra.mxu0 %v1637_v24  ;;  %v14128_v21 = vld [vmem:[%s17365_s23 + $0x3c0] sm:$0xff]  ;;  %v14105_v24 = vld [vmem:[%s17365_s23 + $0x308] sm:$0xff] }
 0x719   :  { %2597 = vmatpush.bf16.msrb.mxu0 %v14119_v18  ;;  %v1524_v36 = vadd.f32 %v1523_v33, %v1187_v11  ;;  %2577 = vmatmul.bf16.vlgmr.msrb.gmra.mxu1 %v1639_v28  ;;  %v1563_v42 = vpop.f32.mrf.mxu0  ;;  %v14122_v11 = vld [vmem:[%s17365_s23 + $0x390] sm:$0xff]  ;;  %v14121_v28 = vld [vmem:[%s17365_s23 + $0x388] sm:$0xff] }
 0x71a   :  { %2625 = vmatpush.bf16.msra.mxu1 %v14135_v13  ;;  %v1620_v37 = vmax.f32 %v1496_v32, 0.0  ;;  %v1591_v50 = vpop.f32.mrf.mxu1  ;;  %v1564_v18 = vadd.f32 %v1563_v42, %v1190_v0 }
 0x71b   :  { %v1622_v15 = vmax.f32 %v1524_v36, 0.0  ;;  %2534 = vmatpush.bf16.msra.mxu2 %v14072_v31  ;;  %v1592_v12 = vadd.f32 %v1591_v50, %v1192_v4  ;;  %v14120_v36 = vld [vmem:[%s17365_s23 + $0x380] sm:$0xff] }
 0x71c   :  { %v1636_v44 = vpack.c.bf16 %v1620_v37, %v1604_v10  ;;  %2562 = vmatpush.bf16.msra.mxu3 %v14088_v34 }
 0x71d   :  { %2598 = vmatpush.bf16.msrb.mxu0 %v14118_v25  ;;  %v1638_v47 = vpack.c.bf16 %v1622_v15, %v1606_v41  ;;  %v1609_v25 = vmax.f32 %v1564_v18, 0.0  ;;  %v1611_v29 = vmax.f32 %v1592_v12, 0.0 }
 0x71e   :  { %2626 = vmatpush.bf16.msra.mxu1 %v14134_v30  ;;  %2535 = vmatmul.bf16.vlgmr.msra.gmra.mxu2 %v1636_v44 }
 0x71f   :  { %2583 = vmatpush.bf16.msrb.mxu2 %v14111_v35  ;;  %2563 = vmatmul.bf16.vlgmr.msra.gmra.mxu3 %v1638_v47  ;;  %v1549_v56 = vpop.f32.mrf.mxu2  ;;  %v14104_v35 = vld [vmem:[%s17365_s23 + $0x300] sm:$0xff] }
 0x720   :  { %2611 = vmatpush.bf16.msrb.mxu3 %v14127_v27  ;;  %v1577_v58 = vpop.f32.mrf.mxu3  ;;  %v1550_v31 = vadd.f32 %v1549_v56, %v1189_v16 }
 0x721   :  { %2599 = vmatpush.bf16.msrb.mxu0 %v14117_v40  ;;  %v1565_v62 = vpop.f32.mrf.mxu0  ;;  %v1578_v33 = vadd.f32 %v1577_v58, %v1191_v22 }
 0x722   :  { %2627 = vmatpush.bf16.msra.mxu1 %v14133_v43  ;;  %v1593_v1 = vpop.f32.mrf.mxu1  ;;  %v1566_v6 = vadd.f32 %v1565_v62, %v1190_v0  ;;  %v1608_v10 = vmax.f32 %v1550_v31, 0.0 }
 0x723   :  { %2584 = vmatpush.bf16.msrb.mxu2 %v14110_v46  ;;  %v1594_v8 = vadd.f32 %v1593_v1, %v1192_v4  ;;  %v1610_v37 = vmax.f32 %v1578_v33, 0.0 }
 0x724   :  { %2612 = vmatpush.bf16.msrb.mxu3 %v14126_v48  ;;  %v1625_v19 = vmax.f32 %v1566_v6, 0.0 }
 0x725   :  { %2600 = vmatpush.bf16.msrb.mxu0 %v14116_v49  ;;  %v1627_v23 = vmax.f32 %v1594_v8, 0.0  ;;  %v14831_v49 = vld [vmem:[%s17367_s20] ss:$0 sm:$0xff] }
 0x726   :  { %2628 = vmatpush.bf16.msra.mxu1 %v14132_v51  ;;  %v1641_v32 = vpack.c.bf16 %v1625_v19, %v1609_v25 }
 0x727   :  { %2585 = vmatpush.bf16.msrb.mxu2 %v14109_v52  ;;  %v1551_v13 = vpop.f32.mrf.mxu2  ;;  %v1643_v34 = vpack.c.bf16 %v1627_v23, %v1611_v29 }
 0x728   :  { %2613 = vmatpush.bf16.msrb.mxu3 %v14125_v53  ;;  %v1579_v20 = vpop.f32.mrf.mxu3  ;;  %v1552_v26 = vadd.f32 %v1551_v13, %v1189_v16 }
 0x729   :  { %2601 = vmatpush.bf16.msrb.mxu0 %v14115_v54  ;;  %v1580_v30 = vadd.f32 %v1579_v20, %v1191_v22 }
 0x72a   :  { %2629 = vmatpush.bf16.msra.mxu1 %v14131_v55  ;;  %v1624_v45 = vmax.f32 %v1552_v26, 0.0 }
 0x72b   :  { %2586 = vmatpush.bf16.msrb.mxu2 %v14108_v57  ;;  %v1626_v27 = vmax.f32 %v1580_v30, 0.0 }
 0x72c   :  { %2614 = vmatpush.bf16.msrb.mxu3 %v14124_v59  ;;  %v1640_v40 = vpack.c.bf16 %v1624_v45, %v1608_v10 }
 0x72d   :  { %2602 = vmatpush.bf16.msrb.mxu0 %v14114_v60  ;;  %v1642_v41 = vpack.c.bf16 %v1626_v27, %v1610_v37 }
 0x72e   :  { %2630 = vmatpush.bf16.msra.mxu1 %v14130_v61 }
 0x72f   :  { %2587 = vmatpush.bf16.msrb.mxu2 %v14107_v63 }
 0x730   :  { %2615 = vmatpush.bf16.msrb.mxu3 %v14123_v3 }
 0x731   :  { %2603 = vmatpush.bf16.msrb.mxu0 %v14113_v5 }
 0x732   :  { %2631 = vmatpush.bf16.msra.mxu1 %v14129_v7 }
 0x733   :  { %2588 = vmatpush.bf16.msrb.mxu2 %v14106_v9 }
 0x734   :  { %2616 = vmatpush.bf16.msrb.mxu3 %v14122_v11 }
 0x735   :  { %2604 = vmatpush.bf16.msrb.mxu0 %v14112_v14 }
 0x736   :  { %2632 = vmatpush.bf16.msra.mxu1 %v14128_v21 }
 0x737   :  { %2589 = vmatpush.bf16.msrb.mxu2 %v14105_v24 }
 0x738   :  { %2617 = vmatpush.bf16.msrb.mxu3 %v14121_v28  ;;  %2605 = vmatmul.bf16.vlgmr.msrb.gmra.mxu0 %v1641_v32 }
 0x739   :  { %2633 = vmatmul.bf16.vlgmr.msra.gmra.mxu1 %v1643_v34 }
 0x73b   :  { %2590 = vmatpush.bf16.msrb.mxu2 %v14104_v35 }
 0x73c   :  { %2618 = vmatpush.bf16.msrb.mxu3 %v14120_v36 }
 0x73e   :  { %2591 = vmatmul.bf16.vlgmr.msrb.gmra.mxu2 %v1640_v40 }
 0x73f   :  { %2619 = vmatmul.bf16.vlgmr.msrb.gmra.mxu3 %v1642_v41 }
 0x775   :  { %v2438_v15 = vpop.f32.mrf.mxu0 }
 0x776   :  { %v2466_v46 = vpop.f32.mrf.mxu1 }
 0x77d   :  { %v2440_v47 = vpop.f32.mrf.mxu0 }
 0x77e   :  { %v2468_v50 = vpop.f32.mrf.mxu1 }
 0x781   :  { %v2424_v43 = vpop.f32.mrf.mxu2 }
 0x782   :  { %v2452_v44 = vpop.f32.mrf.mxu3  ;;  %v2425_v51 = vadd.f32 %v14831_v49, %v2424_v43 }
 0x784   :  { %v2439_v54 = vadd.f32 %v2438_v15, %v2425_v51 }
 0x785   :  { %v2494_v52 = vpop.f32.mrf.mxu0 }
 0x786   :  { %v2522_v56 = vpop.f32.mrf.mxu1  ;;  %v2453_v57 = vadd.f32 %v2452_v44, %v2439_v54 }
 0x788   :  { %v2467_v60 = vadd.f32 %v2466_v46, %v2453_v57 }
 0x789   :  { %v2426_v48 = vpop.f32.mrf.mxu2 }
 0x78a   :  { %v2454_v42 = vpop.f32.mrf.mxu3  ;;  %v2427_v58 = vadd.f32 %v14831_v49, %v2426_v48 }
 0x78c   :  { %v2441_v59 = vadd.f32 %v2440_v47, %v2427_v58 }
 0x78d   :  { %v2496_v61 = vpop.f32.mrf.mxu0 }
 0x78e   :  { %v2455_v1 = vadd.f32 %v2454_v42, %v2441_v59  ;;  %v2524_v3 = vpop.f32.mrf.mxu1 }
 0x790   :  { %v2469_v5 = vadd.f32 %v2468_v50, %v2455_v1 }
 0x791   :  { %v2480_v53 = vpop.f32.mrf.mxu2 }
 0x792   :  { %v2508_v55 = vpop.f32.mrf.mxu3  ;;  %v2481_v63 = vadd.f32 %v2480_v53, %v2467_v60 }
 0x794   :  { %v2495_v4 = vadd.f32 %v2494_v52, %v2481_v63  ;;  %v14136_v63 = vld [vmem:[%s15273_s29 + $0x10] sm:$0xff] }
 0x795   :  { %v2550_v8 = vpop.f32.mrf.mxu0 }
 0x796   :  { %v2509_v6 = vadd.f32 %v2508_v55, %v2495_v4  ;;  %v2578_v13 = vpop.f32.mrf.mxu1 }
 0x798   :  { %v2523_v12 = vadd.f32 %v2522_v56, %v2509_v6 }
 0x799   :  { %v2482_v62 = vpop.f32.mrf.mxu2 }
 0x79a   :  { %v2510_v0 = vpop.f32.mrf.mxu3  ;;  %v2483_v7 = vadd.f32 %v2482_v62, %v2469_v5 }
 0x79c   :  { %v2497_v11 = vadd.f32 %v2496_v61, %v2483_v7 }
 0x79d   :  { %v2552_v20 = vpop.f32.mrf.mxu0 }
 0x79e   :  { %v2511_v16 = vadd.f32 %v2510_v0, %v2497_v11  ;;  %v2580_v26 = vpop.f32.mrf.mxu1 }
 0x7a0   :  { %v2525_v22 = vadd.f32 %v2524_v3, %v2511_v16 }
 0x7a1   :  { %v2536_v9 = vpop.f32.mrf.mxu2 }
 0x7a2   :  { %v2564_v18 = vpop.f32.mrf.mxu3  ;;  %v2537_v14 = vadd.f32 %v2536_v9, %v2523_v12 }
 0x7a4   :  { %v2551_v19 = vadd.f32 %v2550_v8, %v2537_v14 }
 0x7a6   :  { %v2565_v24 = vadd.f32 %v2564_v18, %v2551_v19  ;;  %v14832_v19 = vld [vmem:[%s17368_s26] ss:$0 sm:$0xff] }
 0x7a8   :  { %v2579_v28 = vadd.f32 %v2578_v13, %v2565_v24  ;;  %v14833_v24 = vld [vmem:[%s17369_s1] ss:$0 sm:$0xff] }
 0x7a9   :  { %v2538_v21 = vpop.f32.mrf.mxu2 }
 0x7aa   :  { %v2566_v23 = vpop.f32.mrf.mxu3  ;;  %v2539_v25 = vadd.f32 %v2538_v21, %v2525_v22 }
 0x7ac   :  { %v2553_v29 = vadd.f32 %v2552_v20, %v2539_v25 }
 0x7ae   :  { %v2567_v34 = vadd.f32 %v2566_v23, %v2553_v29 }
 0x7b0   :  { %v2581_v10 = vadd.f32 %v2580_v26, %v2567_v34 }
 0x7b5   :  { %v2606_v30 = vpop.f32.mrf.mxu0 }
 0x7b6   :  { %v2634_v45 = vpop.f32.mrf.mxu1 }
 0x7bd   :  { %v2608_v15 = vpop.f32.mrf.mxu0 }
 0x7be   :  { %v2636_v48 = vpop.f32.mrf.mxu1 }
 0x7c1   :  { %v2592_v31 = vpop.f32.mrf.mxu2 }
 0x7c2   :  { %v2593_v32 = vadd.f32 %v2592_v31, %v2579_v28  ;;  %v2620_v33 = vpop.f32.mrf.mxu3  ;;  %v14834_v31 = vld [vmem:[%s15278_s3 + $0x1] ss:$0 sm:$0xff]  ;;  %s17372_s3 = sld [smem:[#allocation25_spill]] }
 0x7c4   :  { %v2607_v35 = vadd.f32 %v2606_v30, %v2593_v32 }
 0x7c6   :  { %v2621_v36 = vadd.f32 %v2620_v33, %v2607_v35 }
 0x7c8   :  { %v2635_v27 = vadd.f32 %v2634_v45, %v2621_v36 }
 0x7c9   :  { %v2594_v37 = vpop.f32.mrf.mxu2 }
 0x7ca   :  { %v2595_v40 = vadd.f32 %v2594_v37, %v2581_v10  ;;  %v2639_v41 = vadd.f32 %v2635_v27, %v15718_v38  ;;  %v2622_v46 = vpop.f32.mrf.mxu3 }
 0x7cc   :  { %v2609_v43 = vadd.f32 %v2608_v15, %v2595_v40  ;;  %v2643_v44 = vsel %vm331_vm3, %v2639_v41, 0.0 }
 0x7cd   :  { %2644 = vadd.xlane.f32.xlu1 %v2643_v44 }
 0x7ce   :  { %v2623_v47 = vadd.f32 %v2622_v46, %v2609_v43 }
 0x7d0   :  { %v2637_v42 = vadd.f32 %v2636_v48, %v2623_v47 }
 0x7d2   :  { %v2640_v49 = vadd.f32 %v2637_v42, %v15720_v39  ;;  %v14137_v39 = vld [vmem:[%s15273_s29 + $0x18] sm:$0xff]  ;;  %s17371_s29 = sld [smem:[#allocation13_spill]] }
 0x7d3   :  { %2729 = vmatpush.bf16.msra.mxu2 %v14137_v39 }
 0x7d4   :  { %v2646_v50 = vsel %vm331_vm3, %v2640_v49, 0.0 }
 0x7d5   :  { %2647 = vadd.xlane.f32.xlu1 %v2646_v50 }
 0x7d7   :  { %2730 = vmatpush.bf16.msra.mxu2 %v14136_v63 }
 0x840   :  { %v2645_v51 = vpop.xlane.xlu1 %2644 }
 0x841   :  { %v2649_v52 = vmul.f32 %v2645_v51, %v15656_v17  ;;  %v15035_v51 = vld [vmem:[%s15268_s25] sm:$0xff] }
 0x843   :  { %v2651_v38 = vsub.f32 %v2639_v41, %v2649_v52 }
 0x845   :  { %v2653_v53 = vmul.f32 %v2651_v38, %v2651_v38 }
 0x847   :  { %v2655_v54 = vsel %vm331_vm3, %v2653_v53, 0.0 }
 0x848   :  { %2656 = vadd.xlane.f32.xlu2 %v2655_v54  ;;  %v2648_v55 = vpop.xlane.xlu1 %2647 }
 0x849   :  { %v2650_v56 = vmul.f32 %v2648_v55, %v15656_v17 }
 0x84b   :  { %v2652_v57 = vsub.f32 %v2640_v49, %v2650_v56 }
 0x84d   :  { %v2654_v58 = vmul.f32 %v2652_v57, %v2652_v57 }
 0x84f   :  { %v2658_v59 = vsel %vm331_vm3, %v2654_v58, 0.0 }
 0x850   :  { %2659 = vadd.xlane.f32.xlu1 %v2658_v59 }
 0x8bb   :  { %v2657_v60 = vpop.xlane.xlu2 %2656 }
 0x8bc   :  { %v2661_v61 = vmul.f32 %v2657_v60, %v15656_v17  ;;  %v15036_v60 = vld [vmem:[%s15268_s25 + $0x8] sm:$0xff]  ;;  %s17370_s25 = sld [smem:[#allocation21_spill]] }
 0x8be   :  { %v2663_v62 = vadd.f32 1e-05, %v2661_v61 }
 0x8c0   :  { %14909 = vrsqrt.f32 %v2663_v62  ;;  %vm2671_vm15 = vweird.f32 %v2663_v62 }
 0x8c3   :  { %v2660_v0 = vpop.xlane.xlu1 %2659 }
 0x8c4   :  { %v2662_v1 = vmul.f32 %v2660_v0, %v15656_v17 }
 0x8c6   :  { %v14910_v3 = vpop.eup %14909  ;;  %v2664_v4 = vadd.f32 1e-05, %v2662_v1 }
 0x8c7   :  { %v2666_v5 = vmul.f32 %v14910_v3, %v2663_v62  ;;  %vm2672_vm14 = vweird.f32 %v14910_v3 }
 0x8c8   :  { %14911 = vrsqrt.f32 %v2664_v4  ;;  %vm2673_vm0 = vmor %vm2671_vm15, %vm2672_vm14  ;;  %vm2681_vm7 = vweird.f32 %v2664_v4 }
 0x8c9   :  { %v2667_v6 = vmul.f32 %v14910_v3, %v2666_v5 }
 0x8cb   :  { %v2668_v7 = vmul.f32 0.5, %v2667_v6 }
 0x8cd   :  { %v2669_v8 = vsub.f32 1.5, %v2668_v7 }
 0x8ce   :  { %v14912_v9 = vpop.eup %14911 }
 0x8cf   :  { %v2670_v18 = vmul.f32 %v14910_v3, %v2669_v8  ;;  %v2676_v11 = vmul.f32 %v14912_v9, %v2664_v4  ;;  %vm2682_vm1 = vweird.f32 %v14912_v9 }
 0x8d0   :  { %vm2683_vm8 = vmor %vm2681_vm7, %vm2682_vm1 }
 0x8d1   :  { %v2677_v12 = vmul.f32 %v14912_v9, %v2676_v11  ;;  %v2674_v13 = vsel %vm2673_vm0, %v14910_v3, %v2670_v18 }
 0x8d2   :  { %v2685_v20 = vmul.f32 %v2674_v13, %v2651_v38 }
 0x8d3   :  { %v2678_v14 = vmul.f32 0.5, %v2677_v12 }
 0x8d4   :  { %v2690_v23 = vmul.f32 %v14832_v19, %v2685_v20 }
 0x8d5   :  { %v2679_v16 = vsub.f32 1.5, %v2678_v14 }
 0x8d6   :  { %v15952_v29 = vadd.f32 %v14833_v24, %v2690_v23 }
 0x8d7   :  { %v2680_v21 = vmul.f32 %v14912_v9, %v2679_v16 }
 0x8d9   :  { %v2684_v22 = vsel %vm2683_vm8, %v14912_v9, %v2680_v21 }
 0x8da   :  { %v2686_v25 = vmul.f32 %v2684_v22, %v2652_v57 }
 0x8dc   :  { %v2691_v26 = vmul.f32 %v14832_v19, %v2686_v25 }
 0x8de   :  { %v15950_v28 = vadd.f32 %v14833_v24, %v2691_v26 }
 0x8e0   :  { %v2702_v30 = vpack.c.bf16 %v15950_v28, %v15952_v29 }
 0x8e2   :  { %11192 = vmatmul.msk.bf16.vlgmr.msra.gmra.mxu2 %vm331_vm3, %v2702_v30 }
 0x965   :  { %v2732_v32 = vpop.f32.mrf.mxu2 }
 0x966   :  { %v15958_v33 = vadd.f32 %v14834_v31, %v2732_v32 }
 0x968   :  { %2846 = vrot.lane.b32.xlu0 %v15958_v33, %s15221_s13  ;;  %2746 = vrot.lane.b32.xlu1 %v15958_v33, %s15222_s17 }
 0x96d   :  { %v2734_v34 = vpop.f32.mrf.mxu2 }
 0x96e   :  { %v15964_v35 = vadd.f32 %v14834_v31, %v2734_v34 }
 0x970   :  { %2848 = vrot.lane.b32.xlu2 %v15964_v35, %s15221_s13  ;;  %2748 = vrot.lane.b32.xlu0 %v15964_v35, %s15222_s17  ;;  %v14756_v21 = vpack.i.bf16 %v15958_v33, %v15964_v35 }
 0x971   :  { %2948 = vrot.lane.b32.xlu1 %v15964_v35, %s15224_s12 }
 0x978   :  { %2842 = vrot.lane.b32.xlu2 %v15958_v33, %s15220_s5  ;;  %2946 = vrot.lane.b32.xlu0 %v15958_v33, %s15224_s12 }
 0x979   :  { %3046 = vrot.lane.b32.xlu1 %v15958_v33, %s15225_s27 }
 0x980   :  { %3048 = vrot.lane.b32.xlu2 %v15964_v35, %s15225_s27  ;;  %2844 = vrot.lane.b32.xlu0 %v15964_v35, %s15220_s5 }
 0x981   :  { %2944 = vrot.lane.b32.xlu1 %v15964_v35, %s15223_s21 }
 0x988   :  { %2942 = vrot.lane.b32.xlu2 %v15958_v33, %s15223_s21  ;;  %3042 = vrot.lane.b32.xlu0 %v15958_v33, %s15226_s4 }
 0x990   :  { %3044 = vrot.lane.b32.xlu2 %v15964_v35, %s15226_s4 }
 0x9ca   :  { %v2849_v45 = vpop.permute.xlu2 %2848 }
 0x9cb   :  { %11204 = vmatpush.xpose.msk.msrb.mxu1 %vm360_vm4, %v2849_v45 }
 0x9d2   :  { %v2843_v36 = vpop.permute.xlu2 %2842 }
 0x9da   :  { %v3049_v27 = vpop.permute.xlu2 %3048  ;;  %v2847_v10 = vpop.permute.xlu0 %2846 }
 0x9db   :  { %v2747_v37 = vpop.permute.xlu1 %2746  ;;  %11205 = vmatpush.xpose.msk.msrb.mxu1 %vm360_vm4, %v2847_v10 }
 0x9de   :  { %11206 = vmatmul.msk.f32.vlgmr.msrb.gmra.mxu1 %vm360_vm4, %v2843_v36 }
 0x9df   :  { %11216 = vmatpush.xpose.msk.msra.mxu1 %vm360_vm4, %v3049_v27 }
 0x9e2   :  { %v2749_v40 = vpop.permute.xlu0 %2748  ;;  %v2943_v46 = vpop.permute.xlu2 %2942 }
 0x9e3   :  { %v2949_v41 = vpop.permute.xlu1 %2948  ;;  %11198 = vmatpush.xpose.msk.msra.mxu0 %vm360_vm4, %v2749_v40 }
 0x9e7   :  { %11199 = vmatpush.xpose.msk.msra.mxu0 %vm360_vm4, %v2747_v37 }
 0x9ea   :  { %v2947_v15 = vpop.permute.xlu0 %2946  ;;  %11200 = vmatmul.msk.f32.vlgmr.msra.gmra.mxu0 %vm360_vm4, %v15958_v33  ;;  %v3045_v42 = vpop.permute.xlu2 %3044 }
 0x9eb   :  { %11210 = vmatpush.xpose.msk.msrb.mxu0 %vm360_vm4, %v2949_v41  ;;  %v3047_v43 = vpop.permute.xlu1 %3046 }
 0x9ec   :  { %11217 = vmatpush.xpose.msk.msra.mxu1 %vm360_vm4, %v3047_v43 }
 0x9ef   :  { %11211 = vmatpush.xpose.msk.msrb.mxu0 %vm360_vm4, %v2947_v15 }
 0x9f2   :  { %v2845_v44 = vpop.permute.xlu0 %2844  ;;  %11201 = vmatmul.msk.f32.gmra.mxu0 %vm360_vm4, %v15964_v35 }
 0x9f3   :  { %11207 = vmatmul.msk.f32.gmra.mxu1 %vm360_vm4, %v2845_v44  ;;  %v2945_v48 = vpop.permute.xlu1 %2944 }
 0x9fa   :  { %v3043_v47 = vpop.permute.xlu0 %3042  ;;  %11212 = vmatmul.msk.f32.vlgmr.msrb.gmra.mxu0 %vm360_vm4, %v2943_v46 }
 0x9fb   :  { %11218 = vmatmul.msk.f32.vlgmr.msra.gmra.mxu1 %vm360_vm4, %v3043_v47 }
 0xa02   :  { %11213 = vmatmul.msk.f32.gmra.mxu0 %vm360_vm4, %v2945_v48 }
 0xa03   :  { %11219 = vmatmul.msk.f32.gmra.mxu1 %vm360_vm4, %v3045_v42 }
 0xa5b   :  { %v2875_v49 = vpop.f32.mrf.mxu1 }
 0xa5c   :  { %v2881_v50 = vmul.f32 0.35355338, %v2875_v49 }
 0xa5e   :  { %v2883_v52 = vadd.f32 %v15035_v51, %v2881_v50 }
 0xa60   :  { %v2885_v38 = vsel %vm396_vm5, %v2883_v52, -inf }
 0xa61   :  { %2886 = vmax.xlane.f32.xlu1 %v2885_v38 }
 0xa67   :  { %v2775_v53 = vpop.f32.mrf.mxu0 }
 0xa68   :  { %v2781_v54 = vmul.f32 0.35355338, %v2775_v53 }
 0xa6a   :  { %v2783_v55 = vadd.f32 %v15035_v51, %v2781_v54 }
 0xa6c   :  { %v2785_v56 = vsel %vm396_vm5, %v2783_v55, -inf }
 0xa6d   :  { %2786 = vmax.xlane.f32.xlu0 %v2785_v56 }
 0xa6f   :  { %v2778_v57 = vpop.f32.mrf.mxu0 }
 0xa70   :  { %v2782_v58 = vmul.f32 0.35355338, %v2778_v57  ;;  %v2878_v59 = vpop.f32.mrf.mxu1 }
 0xa71   :  { %v2882_v39 = vmul.f32 0.35355338, %v2878_v59 }
 0xa72   :  { %v2784_v61 = vadd.f32 %v15036_v60, %v2782_v58 }
 0xa73   :  { %v2884_v62 = vadd.f32 %v15036_v60, %v2882_v39 }
 0xa74   :  { %v2788_v63 = vsel %vm396_vm5, %v2784_v61, -inf }
 0xa75   :  { %2789 = vmax.xlane.f32.xlu2 %v2788_v63  ;;  %v2888_v0 = vsel %vm396_vm5, %v2884_v62, -inf }
 0xa76   :  { %2889 = vmax.xlane.f32.xlu0 %v2888_v0 }
 0xa77   :  { %v2975_v1 = vpop.f32.mrf.mxu0 }
 0xa78   :  { %v2981_v3 = vmul.f32 0.35355338, %v2975_v1  ;;  %v3075_v4 = vpop.f32.mrf.mxu1 }
 0xa79   :  { %v3081_v5 = vmul.f32 0.35355338, %v3075_v4 }
 0xa7a   :  { %v2983_v6 = vadd.f32 %v15035_v51, %v2981_v3 }
 0xa7b   :  { %v3083_v7 = vadd.f32 %v15035_v51, %v3081_v5 }
 0xa7c   :  { %v2985_v8 = vsel %vm396_vm5, %v2983_v6, -inf }
 0xa7d   :  { %2986 = vmax.xlane.f32.xlu1 %v2985_v8  ;;  %v3085_v9 = vsel %vm396_vm5, %v3083_v7, -inf }
 0xa7e   :  { %3086 = vmax.xlane.f32.xlu2 %v3085_v9 }
 0xa7f   :  { %v2978_v18 = vpop.f32.mrf.mxu0 }
 0xa80   :  { %v2982_v11 = vmul.f32 0.35355338, %v2978_v18  ;;  %v3078_v12 = vpop.f32.mrf.mxu1 }
 0xa81   :  { %v3082_v13 = vmul.f32 0.35355338, %v3078_v12 }
 0xa82   :  { %v2984_v14 = vadd.f32 %v15036_v60, %v2982_v11 }
 0xa83   :  { %v3084_v16 = vadd.f32 %v15036_v60, %v3082_v13 }
 0xa84   :  { %v2988_v19 = vsel %vm396_vm5, %v2984_v14, -inf }
 0xa85   :  { %2989 = vmax.xlane.f32.xlu0 %v2988_v19  ;;  %v3088_v20 = vsel %vm396_vm5, %v3084_v16, -inf }
 0xa86   :  { %3089 = vmax.xlane.f32.xlu1 %v3088_v20 }
 0xa99   :  { %14757 = vrot.lane.b32.xlu0 %v14756_v21, %s17328_s16 }
 0xa9f   :  { %14752 = vrot.lane.b32.xlu1 %v14756_v21, %s17331_s10 }
 0xad4   :  { %v2887_v22 = vpop.xlane.xlu1 %2886 }
 0xad5   :  { %v2891_v23 = vsub.f32 %v2883_v52, %v2887_v22 }
 0xad7   :  { %v2893_v24 = vmul.f32 1.442695, %v2891_v23 }
 0xad9   :  { %14913 = vpow2.f32 %v2893_v24 }
 0xadf   :  { %v16022_v25 = vpop.eup %14913 }
 0xae0   :  { %v2787_v26 = vpop.xlane.xlu0 %2786  ;;  %v2897_v30 = vsel %vm396_vm5, %v16022_v25, 0.0 }
 0xae1   :  { %v2791_v31 = vsub.f32 %v2783_v55, %v2787_v26  ;;  %2898 = vadd.xlane.f32.xlu0 %v2897_v30 }
 0xae3   :  { %v2793_v32 = vmul.f32 1.442695, %v2791_v31 }
 0xae5   :  { %14915 = vpow2.f32 %v2793_v32 }
 0xae8   :  { %v2790_v34 = vpop.xlane.xlu2 %2789 }
 0xae9   :  { %v2792_v33 = vsub.f32 %v2784_v61, %v2790_v34  ;;  %v2890_v35 = vpop.xlane.xlu0 %2889 }
 0xaea   :  { %v2892_v27 = vsub.f32 %v2884_v62, %v2890_v35 }
 0xaeb   :  { %v16026_v45 = vpop.eup %14915  ;;  %v2795_v36 = vmul.f32 1.442695, %v2792_v33 }
 0xaec   :  { %v2797_v10 = vsel %vm396_vm5, %v16026_v45, 0.0  ;;  %v2895_v37 = vmul.f32 1.442695, %v2892_v27 }
 0xaed   :  { %14917 = vpow2.f32 %v2795_v36  ;;  %2798 = vadd.xlane.f32.xlu2 %v2797_v10 }
 0xaee   :  { %14919 = vpow2.f32 %v2895_v37 }
 0xaf0   :  { %v2987_v40 = vpop.xlane.xlu1 %2986 }
 0xaf1   :  { %v3087_v41 = vpop.xlane.xlu2 %3086  ;;  %v2991_v44 = vsub.f32 %v2983_v6, %v2987_v40 }
 0xaf2   :  { %v3091_v15 = vsub.f32 %v3083_v7, %v3087_v41 }
 0xaf3   :  { %v16030_v43 = vpop.eup %14917  ;;  %v2993_v48 = vmul.f32 1.442695, %v2991_v44 }
 0xaf4   :  { %v3093_v46 = vmul.f32 1.442695, %v3091_v15  ;;  %v2800_v47 = vsel %vm396_vm5, %v16030_v43, 0.0  ;;  %v16035_v49 = vpop.eup %14919 }
 0xaf5   :  { %2801 = vadd.xlane.f32.xlu2 %v2800_v47  ;;  %14762 = vrot.lane.b32.xlu0 %v14756_v21, %s17329_s11  ;;  %v2900_v52 = vsel %vm396_vm5, %v16035_v49, 0.0 }
 0xaf6   :  { %14921 = vpow2.f32 %v3093_v46 }
 0xaf7   :  { %14923 = vpow2.f32 %v2993_v48 }
 0xaf8   :  { %v2990_v42 = vpop.xlane.xlu0 %2989 }
 0xaf9   :  { %v2992_v50 = vsub.f32 %v2984_v14, %v2990_v42  ;;  %v3090_v54 = vpop.xlane.xlu1 %3089 }
 0xafa   :  { %v3092_v56 = vsub.f32 %v3084_v16, %v3090_v54 }
 0xafb   :  { %v2995_v53 = vmul.f32 1.442695, %v2992_v50 }
 0xafc   :  { %v16037_v51 = vpop.eup %14921  ;;  %v3095_v58 = vmul.f32 1.442695, %v3092_v56 }
 0xafd   :  { %2901 = vadd.xlane.f32.xlu2 %v2900_v52  ;;  %14767 = vrot.lane.b32.xlu0 %v14756_v21, %s17330_s18  ;;  %v3097_v38 = vsel %vm396_vm5, %v16037_v51, 0.0  ;;  %v14924_v55 = vpop.eup %14923  ;;  %14925 = vpow2.f32 %v2995_v53  ;;  %v14138_v52 = vld [vmem:[%s15283_s8 + $0x10] sm:$0xff] }
 0xafe   :  { %3098 = vadd.xlane.f32.xlu1 %v3097_v38  ;;  %v2997_v57 = vsel %vm396_vm5, %v14924_v55, 0.0  ;;  %14927 = vpow2.f32 %v3095_v58 }
 0xb03   :  { %v14926_v59 = vpop.eup %14925 }
 0xb04   :  { %v3000_v61 = vsel %vm396_vm5, %v14926_v59, 0.0  ;;  %v14928_v63 = vpop.eup %14927 }
 0xb05   :  { %2998 = vadd.xlane.f32.xlu2 %v2997_v57  ;;  %v3100_v4 = vsel %vm396_vm5, %v14928_v63, 0.0 }
 0xb0b   :  { %v14758_v39 = vpop.permute.xlu0 %14757 }
 0xb0c   :  { %v14759_v60 = vunpack.i.l.bf16 %v14758_v39  ;;  %v14760_v62 = vunpack.i.h.bf16 %v14758_v39 }
 0xb0d   :  { %3001 = vadd.xlane.f32.xlu2 %v3000_v61 }
 0xb0e   :  { %2933 = vmatpush.msrb.mxu2 %v14759_v60 }
 0xb10   :  { %2934 = vmatpush.msrb.mxu2 %v14760_v62 }
 0xb11   :  { %v14753_v0 = vpop.permute.xlu1 %14752 }
 0xb12   :  { %v14754_v1 = vunpack.i.l.bf16 %v14753_v0  ;;  %v14755_v3 = vunpack.i.h.bf16 %v14753_v0 }
 0xb14   :  { %2833 = vmatpush.msra.mxu3 %v14754_v1 }
 0xb15   :  { %3101 = vadd.xlane.f32.xlu2 %v3100_v4  ;;  %v14835_v4 = vld [vmem:[%s15288_s14 + $0x1] ss:$0 sm:$0xff]  ;;  %s17374_s14 = sld [smem:[#allocation26_spill]] }
 0xb16   :  { %2834 = vmatpush.msra.mxu3 %v14755_v3 }
 0xb54   :  { %v2899_v5 = vpop.xlane.xlu0 %2898 }
 0xb55   :  { %14929 = vrcp.f32 %v2899_v5 }
 0xb5b   :  { %v14930_v6 = vpop.eup %14929 }
 0xb5c   :  { %v2905_v7 = vmul.f32 %v14930_v6, %v16022_v25 }
 0xb5e   :  { %11208 = vmatmul.msk.f32.vlgmr.msrb.gmra.mxu2 %vm396_vm5, %v2905_v7 }
 0xb60   :  { %v2799_v8 = vpop.xlane.xlu2 %2798 }
 0xb61   :  { %14931 = vrcp.f32 %v2799_v8 }
 0xb67   :  { %v14932_v9 = vpop.eup %14931  ;;  %v14763_v18 = vpop.permute.xlu0 %14762 }
 0xb68   :  { %v2805_v11 = vmul.f32 %v14932_v9, %v16026_v45  ;;  %v14764_v12 = vunpack.i.l.bf16 %v14763_v18  ;;  %v2802_v13 = vpop.xlane.xlu2 %2801  ;;  %v14765_v14 = vunpack.i.h.bf16 %v14763_v18 }
 0xb69   :  { %14933 = vrcp.f32 %v2802_v13 }
 0xb6a   :  { %11202 = vmatmul.msk.f32.vlgmr.msra.gmra.mxu3 %vm396_vm5, %v2805_v11 }
 0xb6b   :  { %3033 = vmatpush.msrb.mxu3 %v14764_v12 }
 0xb6d   :  { %3034 = vmatpush.msrb.mxu3 %v14765_v14 }
 0xb6f   :  { %v14934_v16 = vpop.eup %14933  ;;  %v14768_v19 = vpop.permute.xlu0 %14767 }
 0xb70   :  { %v14769_v20 = vunpack.i.l.bf16 %v14768_v19  ;;  %v2902_v21 = vpop.xlane.xlu2 %2901  ;;  %v2806_v22 = vmul.f32 %v14934_v16, %v16030_v43  ;;  %v14770_v23 = vunpack.i.h.bf16 %v14768_v19 }
 0xb71   :  { %14935 = vrcp.f32 %v2902_v21  ;;  %v3099_v24 = vpop.xlane.xlu1 %3098 }
 0xb72   :  { %11203 = vmatmul.msk.f32.gmra.mxu3 %vm396_vm5, %v2806_v22  ;;  %3133 = vmatpush.msra.mxu2 %v14769_v20  ;;  %14937 = vrcp.f32 %v3099_v24  ;;  %v11590_v24 = vld [vmem:[%s15303_s30 + $0x180] sm:$0xf] }
 0xb74   :  { %3134 = vmatpush.msra.mxu2 %v14770_v23 }
 0xb77   :  { %v14936_v25 = vpop.eup %14935 }
 0xb78   :  { %v2999_v26 = vpop.xlane.xlu2 %2998  ;;  %v2906_v30 = vmul.f32 %v14936_v25, %v16035_v49  ;;  %v14938_v31 = vpop.eup %14937  ;;  %v14164_v25 = vld [vmem:[%s15303_s30 + $0x1bc] sm:$0xf0] }
 0xb79   :  { %14939 = vrcp.f32 %v2999_v26  ;;  %v3105_v34 = vmul.f32 %v14938_v31, %v16037_v51  ;;  %v14139_v51 = vld [vmem:[%s15283_s8 + $0x18] sm:$0xff]  ;;  %v14156_v26 = vld [vmem:[%s15303_s30 + $0x184] sm:$0xf]  ;;  %s17373_s8 = sld [smem:[#allocation22_spill]] }
 0xb7a   :  { %11209 = vmatmul.msk.f32.gmra.mxu2 %vm396_vm5, %v2906_v30  ;;  %3197 = vmatpush.bf16.msra.mxu0 %v14139_v51  ;;  %v11591_v30 = vor.u32 %v14164_v25, %v11590_v24  ;;  %v11592_v31 = vld [vmem:[%s15303_s30 + $0x1c0] sm:$0xf0] }
 0xb7c   :  { %3764 = vmatpush.bf16.msra.mxu3 %v11591_v30 }
 0xb7e   :  { %3198 = vmatpush.bf16.msra.mxu0 %v14138_v52 }
 0xb7f   :  { %v14940_v32 = vpop.eup %14939 }
 0xb80   :  { %v3005_v33 = vmul.f32 %v14940_v32, %v14924_v55  ;;  %v3002_v35 = vpop.xlane.xlu2 %3001  ;;  %v11598_v32 = vld [vmem:[%s15303_s30 + $0x188] sm:$0xf] }
 0xb81   :  { %14941 = vrcp.f32 %v3002_v35  ;;  %v11595_v35 = vor.u32 %v14156_v26, %v11592_v31 }
 0xb82   :  { %11214 = vmatmul.msk.f32.vlgmr.msrb.gmra.mxu3 %vm396_vm5, %v3005_v33  ;;  %11220 = vmatmul.msk.f32.vlgmr.msra.gmra.mxu2 %vm396_vm5, %v3105_v34  ;;  %v14165_v34 = vld [vmem:[%s15303_s30 + $0x1c4] sm:$0xf0] }
 0xb83   :  { %3778 = vmatpush.bf16.msrb.mxu1 %v11595_v35 }
 0xb87   :  { %v14942_v45 = vpop.eup %14941 }
 0xb88   :  { %v3102_v36 = vpop.xlane.xlu2 %3101  ;;  %v3006_v27 = vmul.f32 %v14942_v45, %v14926_v59  ;;  %v11599_v45 = vor.u32 %v14165_v34, %v11598_v32  ;;  %v14836_v34 = vld [vmem:[%s15293_s19 + $0x1] ss:$0 sm:$0xff]  ;;  %s17375_s19 = sld [smem:[#allocation23_spill]] }
 0xb89   :  { %14943 = vrcp.f32 %v3102_v36  ;;  %v14157_v36 = vld [vmem:[%s15303_s30 + $0x18c] sm:$0xf] }
 0xb8a   :  { %11215 = vmatmul.msk.f32.gmra.mxu3 %vm396_vm5, %v3006_v27  ;;  %v11600_v27 = vld [vmem:[%s15303_s30 + $0x1c8] sm:$0xf0]  ;;  %3792 = vmatpush.bf16.msrb.mxu2 %v11599_v45 }
 0xb8f   :  { %v14944_v10 = vpop.eup %14943 }
 0xb90   :  { %v3106_v37 = vmul.f32 %v14944_v10, %v14928_v63 }
 0xb92   :  { %11221 = vmatmul.msk.f32.gmra.mxu2 %vm396_vm5, %v3106_v37  ;;  %v11603_v37 = vor.u32 %v14157_v36, %v11600_v27  ;;  %v14837_v36 = vld [vmem:[%s17364_s0 + $0x1] ss:$0 sm:$0xff]  ;;  %s17379_s0 = sld [smem:[#allocation29_spill]] }
 0xb94   :  { %3806 = vmatpush.bf16.msrb.mxu0 %v11603_v37 }
 0xbe1   :  { %v2936_v41 = vpop.f32.mrf.mxu2 }
 0xbed   :  { %v2836_v40 = vpop.f32.mrf.mxu3 }
 0xbf5   :  { %v2839_v15 = vpop.f32.mrf.mxu3 }
 0xbfd   :  { %v2939_v43 = vpop.f32.mrf.mxu2 }
 0xbfe   :  { %v14771_v44 = vpack.i.bf16 %v2939_v43, %v2936_v41  ;;  %v14148_v41 = vld [vmem:[%s15303_s30 + $0x13c] sm:$0xf0] }
 0xc00   :  { %14772 = vrot.lane.b32.xlu0 %v14771_v44, %s17326_s9 }
 0xc05   :  { %v3036_v46 = vpop.f32.mrf.mxu3  ;;  %v3136_v47 = vpop.f32.mrf.mxu2 }
 0xc0d   :  { %v3039_v48 = vpop.f32.mrf.mxu3 }
 0xc0e   :  { %v14776_v42 = vpack.i.bf16 %v3039_v48, %v3036_v46  ;;  %v11528_v46 = vld [vmem:[%s15303_s30 + $0x140] sm:$0xf0] }
 0xc10   :  { %14777 = vrot.lane.b32.xlu2 %v14776_v42, %s17324_s15  ;;  %v14149_v42 = vld [vmem:[%s15303_s30 + $0x144] sm:$0xf0] }
 0xc15   :  { %v3139_v49 = vpop.f32.mrf.mxu2 }
 0xc16   :  { %v14781_v50 = vpack.i.bf16 %v3139_v49, %v3136_v47  ;;  %v11534_v47 = vld [vmem:[%s15303_s30 + $0x108] sm:$0xf]  ;;  %v14141_v49 = vld [vmem:[%s15303_s30 + $0x10c] sm:$0xf] }
 0xc17   :  { %v11535_v51 = vor.u32 %v14149_v42, %v11534_v47  ;;  %v14169_v47 = vld [vmem:[%s15303_s30 + $0x1e4] sm:$0xf0] }
 0xc18   :  { %14782 = vrot.lane.b32.xlu0 %v14781_v50, %s17322_s22  ;;  %v11536_v50 = vld [vmem:[%s15303_s30 + $0x148] sm:$0xf0] }
 0xc19   :  { %v11539_v52 = vor.u32 %v14141_v49, %v11536_v50  ;;  %3793 = vmatpush.bf16.msrb.mxu2 %v11535_v51  ;;  %v11558_v51 = vld [vmem:[%s15303_s30 + $0x120] sm:$0xf] }
 0xc1b   :  { %3807 = vmatpush.bf16.msrb.mxu0 %v11539_v52  ;;  %v14152_v52 = vld [vmem:[%s15303_s30 + $0x15c] sm:$0xf0] }
 0xc6a   :  { %v14778_v55 = vpop.permute.xlu2 %14777 }
 0xc6b   :  { %v14780_v58 = vunpack.i.h.bf16 %v14778_v55  ;;  %v14779_v59 = vunpack.i.l.bf16 %v14778_v55  ;;  %v14158_v55 = vld [vmem:[%s15303_s30 + $0x194] sm:$0xf] }
 0xc72   :  { %v14773_v38 = vpop.permute.xlu0 %14772 }
 0xc73   :  { %v14775_v53 = vunpack.i.h.bf16 %v14773_v38  ;;  %v14774_v54 = vunpack.i.l.bf16 %v14773_v38 }
 0xc75   :  { %v3166_v56 = vsel %vm360_vm4, %v2836_v40, %v14774_v54  ;;  %v3167_v57 = vsel %vm360_vm4, %v2839_v15, %v14775_v53  ;;  %v11526_v40 = vld [vmem:[%s15303_s30 + $0x100] sm:$0xf]  ;;  %v14140_v15 = vld [vmem:[%s15303_s30 + $0x104] sm:$0xf]  ;;  %v11606_v53 = vld [vmem:[%s15303_s30 + $0x190] sm:$0xf] }
 0xc76   :  { %v3168_v62 = vsel %vm396_vm5, %v3166_v56, %v14779_v59  ;;  %v3169_v63 = vsel %vm396_vm5, %v3167_v57, %v14780_v58  ;;  %v11527_v44 = vor.u32 %v14148_v41, %v11526_v40  ;;  %v11531_v48 = vor.u32 %v14140_v15, %v11528_v46  ;;  %v14166_v54 = vld [vmem:[%s15303_s30 + $0x1cc] sm:$0xf0]  ;;  %v11608_v58 = vld [vmem:[%s15303_s30 + $0x1d0] sm:$0xf0]  ;;  %v11614_v59 = vld [vmem:[%s15303_s30 + $0x198] sm:$0xf] }
 0xc77   :  { %v11607_v57 = vor.u32 %v14166_v54, %v11606_v53  ;;  %v11622_v40 = vld [vmem:[%s15303_s30 + $0x1a0] sm:$0xf]  ;;  %v14160_v15 = vld [vmem:[%s15303_s30 + $0x1a4] sm:$0xf] }
 0xc78   :  { %3765 = vmatpush.bf16.msra.mxu3 %v11527_v44  ;;  %3779 = vmatpush.bf16.msrb.mxu1 %v11531_v48  ;;  %v14168_v41 = vld [vmem:[%s15303_s30 + $0x1dc] sm:$0xf0]  ;;  %v14161_v48 = vld [vmem:[%s15303_s30 + $0x1ac] sm:$0xf]  ;;  %v14144_v54 = vld [vmem:[%s15303_s30 + $0x124] sm:$0xf] }
 0xc79   :  { %v11623_v49 = vor.u32 %v14168_v41, %v11622_v40  ;;  %v14193_v40 = vld [vmem:[%s17365_s23 + $0x4a8] sm:$0xff]  ;;  %v14184_v41 = vld [vmem:[%s17365_s23 + $0x460] sm:$0xff] }
 0xc7c   :  { %3820 = vmatpush.bf16.msrb.mxu3 %v11607_v57  ;;  %v14153_v57 = vld [vmem:[%s15303_s30 + $0x164] sm:$0xf0] }
 0xc8a   :  { %v14783_v39 = vpop.permute.xlu0 %14782 }
 0xc8b   :  { %v14785_v60 = vunpack.i.h.bf16 %v14783_v39  ;;  %v14784_v61 = vunpack.i.l.bf16 %v14783_v39  ;;  %v14167_v39 = vld [vmem:[%s15303_s30 + $0x1d4] sm:$0xf0] }
 0xc8d   :  { %v3170_v0 = vsel %vm782_vm6, %v3168_v62, %v14784_v61  ;;  %v3171_v1 = vsel %vm782_vm6, %v3169_v63, %v14785_v60  ;;  %v11611_v60 = vor.u32 %v14158_v55, %v11608_v58  ;;  %v11615_v61 = vor.u32 %v14167_v39, %v11614_v59  ;;  %v14159_v62 = vld [vmem:[%s15303_s30 + $0x19c] sm:$0xf]  ;;  %v11560_v55 = vld [vmem:[%s15303_s30 + $0x160] sm:$0xf0]  ;;  %v14145_v58 = vld [vmem:[%s15303_s30 + $0x12c] sm:$0xf] }
 0xc8e   :  { %v3172_v3 = vpack.c.bf16 %v3171_v1, %v3170_v0  ;;  %v11616_v63 = vld [vmem:[%s15303_s30 + $0x1d8] sm:$0xf0]  ;;  %v11542_v0 = vld [vmem:[%s15303_s30 + $0x110] sm:$0xf]  ;;  %v11568_v59 = vld [vmem:[%s15303_s30 + $0x168] sm:$0xf0]  ;;  %v11559_v39 = vor.u32 %v14152_v52, %v11558_v51 }
 0xc8f   :  { %3834 = vmatpush.bf16.msra.mxu1 %v11611_v60  ;;  %3848 = vmatpush.bf16.msra.mxu2 %v11615_v61  ;;  %v11563_v60 = vor.u32 %v14144_v54, %v11560_v55  ;;  %v14198_v51 = vld [vmem:[%s17365_s23 + $0x4d0] sm:$0xff]  ;;  %v14173_v54 = vld [vmem:[%s17365_s23 + $0x408] sm:$0xff] }
 0xc90   :  { %11230 = vmatmul.msk.bf16.vlgmr.msra.gmra.mxu0 %vm331_vm3, %v3172_v3  ;;  %v14174_v52 = vld [vmem:[%s17365_s23 + $0x410] sm:$0xff]  ;;  %v14189_v55 = vld [vmem:[%s17365_s23 + $0x488] sm:$0xff] }
 0xd0d   :  { %v3200_v5 = vpop.f32.mrf.mxu0 }
 0xd0e   :  { %v3201_v6 = vadd.f32 %v14835_v4, %v3200_v5  ;;  %v14150_v5 = vld [vmem:[%s15303_s30 + $0x14c] sm:$0xf0] }
 0xd10   :  { %v3205_v7 = vadd.f32 %v3201_v6, %v15952_v29  ;;  %v14142_v6 = vld [vmem:[%s15303_s30 + $0x114] sm:$0xf] }
 0xd12   :  { %v3211_v8 = vsel %vm331_vm3, %v3205_v7, 0.0 }
 0xd13   :  { %3212 = vadd.xlane.f32.xlu0 %v3211_v8  ;;  %v11543_v8 = vor.u32 %v14150_v5, %v11542_v0  ;;  %v14170_v0 = vld [vmem:[%s15303_s30 + $0x1ec] sm:$0xf0]  ;;  %v14171_v5 = vld [vmem:[%s15303_s30 + $0x1f4] sm:$0xf0] }
 0xd15   :  { %v3202_v9 = vpop.f32.mrf.mxu0  ;;  %3821 = vmatpush.bf16.msrb.mxu3 %v11543_v8 }
 0xd16   :  { %v3203_v18 = vadd.f32 %v14835_v4, %v3202_v9  ;;  %v11619_v4 = vor.u32 %v14159_v62, %v11616_v63  ;;  %v11544_v9 = vld [vmem:[%s15303_s30 + $0x150] sm:$0xf0]  ;;  %v11571_v62 = vor.u32 %v14145_v58, %v11568_v59  ;;  %v11638_v63 = vld [vmem:[%s15303_s30 + $0x1b0] sm:$0xf]  ;;  %v14219_v58 = vld [vmem:[%s17365_s23 + $0x578] sm:$0xff] }
 0xd17   :  { %v11639_v8 = vor.u32 %v14170_v0, %v11638_v63  ;;  %v14235_v59 = vld [vmem:[%s17365_s23 + $0x5f8] sm:$0xff]  ;;  %v14218_v63 = vld [vmem:[%s17365_s23 + $0x570] sm:$0xff] }
 0xd18   :  { %v3206_v11 = vadd.f32 %v3203_v18, %v15950_v28  ;;  %v11550_v18 = vld [vmem:[%s15303_s30 + $0x118] sm:$0xf]  ;;  %3862 = vmatpush.bf16.msra.mxu0 %v11619_v4  ;;  %v14234_v0 = vld [vmem:[%s17365_s23 + $0x5f0] sm:$0xff] }
 0xd19   :  { %v11646_v4 = vld [vmem:[%s15303_s30 + $0x1b8] sm:$0xf] }
 0xd1a   :  { %v3214_v12 = vsel %vm331_vm3, %v3206_v11, 0.0 }
 0xd1b   :  { %3215 = vadd.xlane.f32.xlu1 %v3214_v12  ;;  %v11547_v12 = vor.u32 %v14142_v6, %v11544_v9  ;;  %v14163_v6 = vld [vmem:[%s15303_s30 + $0x1bc] sm:$0xf] }
 0xd1d   :  { %3835 = vmatpush.bf16.msra.mxu1 %v11547_v12  ;;  %v11647_v12 = vor.u32 %v14171_v5, %v11646_v4  ;;  %v14217_v4 = vld [vmem:[%s17365_s23 + $0x568] sm:$0xff] }
 0xd1e   :  { %v14233_v5 = vld [vmem:[%s17365_s23 + $0x5e8] sm:$0xff] }
 0xd86   :  { %v3213_v13 = vpop.xlane.xlu0 %3212 }
 0xd87   :  { %v3217_v14 = vmul.f32 %v3213_v13, %v15656_v17 }
 0xd89   :  { %v16078_v16 = vsub.f32 %v3205_v7, %v3217_v14  ;;  %v14143_v14 = vld [vmem:[%s15303_s30 + $0x11c] sm:$0xf] }
 0xd8b   :  { %v3221_v29 = vmul.f32 %v16078_v16, %v16078_v16 }
 0xd8d   :  { %v3223_v19 = vsel %vm331_vm3, %v3221_v29, 0.0  ;;  %v11552_v29 = vld [vmem:[%s15303_s30 + $0x158] sm:$0xf0] }
 0xd8e   :  { %v3216_v20 = vpop.xlane.xlu1 %3215  ;;  %3224 = vadd.xlane.f32.xlu2 %v3223_v19 }
 0xd8f   :  { %v3218_v28 = vmul.f32 %v3216_v20, %v15656_v17  ;;  %v11555_v20 = vor.u32 %v14143_v14, %v11552_v29  ;;  %v14146_v14 = vld [vmem:[%s15303_s30 + $0x134] sm:$0xf] }
 0xd90   :  { %v11576_v29 = vld [vmem:[%s15303_s30 + $0x170] sm:$0xf0] }
 0xd91   :  { %v16084_v21 = vsub.f32 %v3206_v11, %v3218_v28  ;;  %v14151_v11 = vld [vmem:[%s15303_s30 + $0x154] sm:$0xf0]  ;;  %3863 = vmatpush.bf16.msra.mxu0 %v11555_v20 }
 0xd92   :  { %v11551_v13 = vor.u32 %v14151_v11, %v11550_v18  ;;  %v11574_v18 = vld [vmem:[%s15303_s30 + $0x130] sm:$0xf]  ;;  %v14155_v20 = vld [vmem:[%s15303_s30 + $0x174] sm:$0xf0] }
 0xd93   :  { %v3222_v22 = vmul.f32 %v16084_v21, %v16084_v21  ;;  %v14154_v11 = vld [vmem:[%s15303_s30 + $0x16c] sm:$0xf0] }
 0xd94   :  { %3849 = vmatpush.bf16.msra.mxu2 %v11551_v13 }
 0xd95   :  { %v3226_v23 = vsel %vm331_vm3, %v3222_v22, 0.0 }
 0xd96   :  { %3227 = vadd.xlane.f32.xlu1 %v3226_v23 }
 0xe01   :  { %v3225_v33 = vpop.xlane.xlu2 %3224 }
 0xe02   :  { %v3229_v10 = vmul.f32 %v3225_v33, %v15656_v17 }
 0xe04   :  { %v16101_v43 = vadd.f32 1e-05, %v3229_v10 }
 0xe06   :  { %14945 = vrsqrt.f32 %v16101_v43  ;;  %vm3239_vm10 = vweird.f32 %v16101_v43 }
 0xe09   :  { %v3228_v38 = vpop.xlane.xlu1 %3227 }
 0xe0a   :  { %v3230_v56 = vmul.f32 %v3228_v38, %v15656_v17 }
 0xe0c   :  { %v14946_v1 = vpop.eup %14945  ;;  %v3232_v3 = vadd.f32 1e-05, %v3230_v56  ;;  %v11566_v56 = vld [vmem:[%s15303_s30 + $0x128] sm:$0xf] }
 0xe0d   :  { %v3234_v7 = vmul.f32 %v14946_v1, %v16101_v43  ;;  %vm3240_vm9 = vweird.f32 %v14946_v1  ;;  %v11630_v43 = vld [vmem:[%s15303_s30 + $0x1a8] sm:$0xf]  ;;  %v11567_v61 = vor.u32 %v14153_v57, %v11566_v56  ;;  %v14180_v56 = vld [vmem:[%s17365_s23 + $0x440] sm:$0xff] }
 0xe0e   :  { %14947 = vrsqrt.f32 %v3232_v3  ;;  %vm3241_vm11 = vmor %vm3239_vm10, %vm3240_vm9  ;;  %vm3249_vm13 = vweird.f32 %v3232_v3  ;;  %v11631_v38 = vor.u32 %v14169_v47, %v11630_v43  ;;  %v14192_v43 = vld [vmem:[%s17365_s23 + $0x4a0] sm:$0xff]  ;;  %v14183_v47 = vld [vmem:[%s17365_s23 + $0x458] sm:$0xff] }
 0xe0f   :  { %v3235_v19 = vmul.f32 %v14946_v1, %v3234_v7  ;;  %v11648_v7 = vld [vmem:[%s15303_s30 + $0x1f8] sm:$0xf0]  ;;  %v14196_v57 = vld [vmem:[%s17365_s23 + $0x4c0] sm:$0xff] }
 0xe10   :  { %v11651_v13 = vor.u32 %v14163_v6, %v11648_v7  ;;  %v14216_v6 = vld [vmem:[%s17365_s23 + $0x560] sm:$0xff] }
 0xe11   :  { %v3236_v28 = vmul.f32 0.5, %v3235_v19  ;;  %v11582_v19 = vld [vmem:[%s15303_s30 + $0x138] sm:$0xf]  ;;  %v14232_v7 = vld [vmem:[%s17365_s23 + $0x5e0] sm:$0xff] }
 0xe13   :  { %v3237_v22 = vsub.f32 1.5, %v3236_v28  ;;  %v14147_v28 = vld [vmem:[%s15303_s30 + $0x13c] sm:$0xf] }
 0xe14   :  { %v14948_v23 = vpop.eup %14947 }
 0xe15   :  { %v3238_v24 = vmul.f32 %v14946_v1, %v3237_v22  ;;  %v3244_v25 = vmul.f32 %v14948_v23, %v3232_v3  ;;  %vm3250_vm12 = vweird.f32 %v14948_v23  ;;  %v11640_v3 = vld [vmem:[%s15303_s30 + $0x1f0] sm:$0xf0]  ;;  %v11584_v22 = vld [vmem:[%s15303_s30 + $0x178] sm:$0xf0] }
 0xe16   :  { %vm3251_vm14 = vmor %vm3249_vm13, %vm3250_vm12 }
 0xe17   :  { %v3245_v26 = vmul.f32 %v14948_v23, %v3244_v25  ;;  %v3242_v30 = vsel %vm3241_vm11, %v14946_v1, %v3238_v24  ;;  %v14162_v1 = vld [vmem:[%s15303_s30 + $0x1b4] sm:$0xf]  ;;  %v11579_v24 = vor.u32 %v14146_v14, %v11576_v29  ;;  %v11583_v25 = vor.u32 %v14155_v20, %v11582_v19  ;;  %v14207_v19 = vld [vmem:[%s17365_s23 + $0x518] sm:$0xff] }
 0xe18   :  { %v3253_v33 = vmul.f32 %v3242_v30, %v16078_v16  ;;  %v11624_v16 = vld [vmem:[%s15303_s30 + $0x1e0] sm:$0xf0]  ;;  %v11643_v9 = vor.u32 %v14162_v1, %v11640_v3  ;;  %v14187_v30 = vld [vmem:[%s17365_s23 + $0x478] sm:$0xff]  ;;  %v14210_v1 = vld [vmem:[%s17365_s23 + $0x530] sm:$0xff] }
 0xe19   :  { %v3246_v31 = vmul.f32 0.5, %v3245_v26  ;;  %v11627_v50 = vor.u32 %v14160_v15, %v11624_v16  ;;  %v11587_v26 = vor.u32 %v14147_v28, %v11584_v22  ;;  %v14200_v15 = vld [vmem:[%s17365_s23 + $0x4e0] sm:$0xff]  ;;  %v14226_v3 = vld [vmem:[%s17365_s23 + $0x5b0] sm:$0xff]  ;;  %v14223_v20 = vld [vmem:[%s17365_s23 + $0x598] sm:$0xff] }
 0xe1a   :  { %v3258_v27 = vmul.f32 %v14836_v34, %v3253_v33  ;;  %v14186_v33 = vld [vmem:[%s17365_s23 + $0x470] sm:$0xff]  ;;  %v14176_v16 = vld [vmem:[%s17365_s23 + $0x420] sm:$0xff]  ;;  %v14213_v28 = vld [vmem:[%s17365_s23 + $0x548] sm:$0xff] }
 0xe1b   :  { %v3247_v32 = vsub.f32 1.5, %v3246_v31  ;;  %v14203_v31 = vld [vmem:[%s17365_s23 + $0x4f8] sm:$0xff]  ;;  %v14214_v14 = vld [vmem:[%s17365_s23 + $0x550] sm:$0xff]  ;;  %v14229_v22 = vld [vmem:[%s17365_s23 + $0x5c8] sm:$0xff] }
 0xe1c   :  { %v16137_v44 = vadd.f32 %v14837_v36, %v3258_v27  ;;  %v14185_v27 = vld [vmem:[%s17365_s23 + $0x468] sm:$0xff]  ;;  %v14230_v29 = vld [vmem:[%s17365_s23 + $0x5d0] sm:$0xff] }
 0xe1d   :  { %v3248_v35 = vmul.f32 %v14948_v23, %v3247_v32  ;;  %v14179_v32 = vld [vmem:[%s17365_s23 + $0x438] sm:$0xff] }
 0xe1f   :  { %v3252_v45 = vsel %vm3251_vm14, %v14948_v23, %v3248_v35  ;;  %v11575_v23 = vor.u32 %v14154_v11, %v11574_v18  ;;  %v14202_v35 = vld [vmem:[%s17365_s23 + $0x4f0] sm:$0xff]  ;;  %v14215_v18 = vld [vmem:[%s17365_s23 + $0x558] sm:$0xff] }
 0xe20   :  { %v3254_v10 = vmul.f32 %v3252_v45, %v16084_v21  ;;  %v11632_v21 = vld [vmem:[%s15303_s30 + $0x1e8] sm:$0xf0]  ;;  %v14178_v45 = vld [vmem:[%s17365_s23 + $0x430] sm:$0xff]  ;;  %v14231_v11 = vld [vmem:[%s17365_s23 + $0x5d8] sm:$0xff]  ;;  %s17376_s30 = sld [smem:[#allocation27_spill]] }
 0xe21   :  { %v11635_v53 = vor.u32 %v14161_v48, %v11632_v21  ;;  %v14199_v48 = vld [vmem:[%s17365_s23 + $0x4d8] sm:$0xff] }
 0xe22   :  { %v3259_v37 = vmul.f32 %v14836_v34, %v3254_v10  ;;  %v14195_v34 = vld [vmem:[%s17365_s23 + $0x4b8] sm:$0xff]  ;;  %v14201_v10 = vld [vmem:[%s17365_s23 + $0x4e8] sm:$0xff] }
 0xe23   :  { %v14175_v21 = vld [vmem:[%s17365_s23 + $0x418] sm:$0xff] }
 0xe24   :  { %v16139_v46 = vadd.f32 %v14837_v36, %v3259_v37  ;;  %v14194_v36 = vld [vmem:[%s17365_s23 + $0x4b0] sm:$0xff]  ;;  %v14177_v37 = vld [vmem:[%s17365_s23 + $0x428] sm:$0xff] }
 0xe26   :  { %v16146_v42 = vpack.c.bf16 %v16139_v46, %v16137_v44 }
 0xe28   :  { %11652 = vmatmul.msk.bf16.vlgmr.msra.gmra.mxu3 %vm331_vm3, %v16146_v42  ;;  %11653 = vmatmul.msk.bf16.vlgmr.msrb.gmra.mxu1 %vm331_vm3, %v16146_v42 }
 0xe29   :  { %11654 = vmatmul.msk.bf16.vlgmr.msrb.gmra.mxu2 %vm331_vm3, %v16146_v42  ;;  %11655 = vmatmul.msk.bf16.vlgmr.msrb.gmra.mxu0 %vm331_vm3, %v16146_v42 }
 0xe2a   :  { %3876 = vmatpush.bf16.msra.mxu3 %v11623_v49  ;;  %3890 = vmatpush.bf16.msrb.mxu1 %v11627_v50  ;;  %v14191_v49 = vld [vmem:[%s17365_s23 + $0x498] sm:$0xff]  ;;  %v14182_v50 = vld [vmem:[%s17365_s23 + $0x450] sm:$0xff] }
 0xe2b   :  { %3904 = vmatpush.bf16.msrb.mxu2 %v11631_v38  ;;  %3918 = vmatpush.bf16.msrb.mxu0 %v11635_v53  ;;  %v14190_v38 = vld [vmem:[%s17365_s23 + $0x490] sm:$0xff]  ;;  %v14181_v53 = vld [vmem:[%s17365_s23 + $0x448] sm:$0xff] }
 0xe2e   :  { %3877 = vmatpush.bf16.msra.mxu3 %v11559_v39  ;;  %3891 = vmatpush.bf16.msrb.mxu1 %v11563_v60  ;;  %v14172_v39 = vld [vmem:[%s17365_s23 + $0x400] sm:$0xff] }
 0xe2f   :  { %3905 = vmatpush.bf16.msrb.mxu2 %v11567_v61  ;;  %3919 = vmatpush.bf16.msrb.mxu0 %v11571_v62  ;;  %v14188_v60 = vld [vmem:[%s17365_s23 + $0x480] sm:$0xff]  ;;  %v14211_v61 = vld [vmem:[%s17365_s23 + $0x538] sm:$0xff] }
 0xe30   :  { %v14227_v62 = vld [vmem:[%s17365_s23 + $0x5b8] sm:$0xff] }
 0xe38   :  { %11656 = vmatmul.msk.bf16.vlgmr.msrb.gmra.mxu3 %vm331_vm3, %v16146_v42  ;;  %11657 = vmatmul.msk.bf16.vlgmr.msra.gmra.mxu1 %vm331_vm3, %v16146_v42 }
 0xe39   :  { %11658 = vmatmul.msk.bf16.vlgmr.msra.gmra.mxu2 %vm331_vm3, %v16146_v42  ;;  %11659 = vmatmul.msk.bf16.vlgmr.msra.gmra.mxu0 %vm331_vm3, %v16146_v42 }
 0xe3a   :  { %3932 = vmatpush.bf16.msrb.mxu3 %v11639_v8  ;;  %3946 = vmatpush.bf16.msra.mxu1 %v11643_v9  ;;  %v14209_v8 = vld [vmem:[%s17365_s23 + $0x528] sm:$0xff] }
 0xe3b   :  { %3960 = vmatpush.bf16.msra.mxu2 %v11647_v12  ;;  %3974 = vmatpush.bf16.msra.mxu0 %v11651_v13  ;;  %v14225_v9 = vld [vmem:[%s17365_s23 + $0x5a8] sm:$0xff]  ;;  %v14208_v12 = vld [vmem:[%s17365_s23 + $0x520] sm:$0xff] }
 0xe3c   :  { %v14224_v13 = vld [vmem:[%s17365_s23 + $0x5a0] sm:$0xff] }
 0xe3e   :  { %3933 = vmatpush.bf16.msrb.mxu3 %v11575_v23  ;;  %3947 = vmatpush.bf16.msra.mxu1 %v11579_v24  ;;  %v14206_v23 = vld [vmem:[%s17365_s23 + $0x510] sm:$0xff] }
 0xe3f   :  { %3961 = vmatpush.bf16.msra.mxu2 %v11583_v25  ;;  %3975 = vmatpush.bf16.msra.mxu0 %v11587_v26  ;;  %v14222_v24 = vld [vmem:[%s17365_s23 + $0x590] sm:$0xff]  ;;  %v14212_v25 = vld [vmem:[%s17365_s23 + $0x540] sm:$0xff] }
 0xe40   :  { %v14228_v26 = vld [vmem:[%s17365_s23 + $0x5c0] sm:$0xff] }
 0xe48   :  { %11660 = vmatmul.msk.bf16.vlgmr.msra.gmra.mxu3 %vm331_vm3, %v16146_v42  ;;  %11661 = vmatmul.msk.bf16.vlgmr.msrb.gmra.mxu1 %vm331_vm3, %v16146_v42 }
 0xe49   :  { %11662 = vmatmul.msk.bf16.vlgmr.msrb.gmra.mxu2 %vm331_vm3, %v16146_v42  ;;  %11663 = vmatmul.msk.bf16.vlgmr.msrb.gmra.mxu0 %vm331_vm3, %v16146_v42 }
 0xe4a   :  { %4815 = vmatpush.bf16.msrb.mxu1 %v14187_v30  ;;  %4843 = vmatpush.bf16.msrb.mxu0 %v14203_v31  ;;  %v14205_v30 = vld [vmem:[%s17365_s23 + $0x508] sm:$0xff] }
 0xe4b   :  { %4801 = vmatpush.bf16.msra.mxu3 %v14179_v32  ;;  %4829 = vmatpush.bf16.msrb.mxu2 %v14195_v34  ;;  %v14221_v31 = vld [vmem:[%s17365_s23 + $0x588] sm:$0xff]  ;;  %v14204_v32 = vld [vmem:[%s17365_s23 + $0x500] sm:$0xff] }
 0xe4c   :  { %v14220_v34 = vld [vmem:[%s17365_s23 + $0x580] sm:$0xff] }
 0xe4e   :  { %4816 = vmatpush.bf16.msrb.mxu1 %v14186_v33  ;;  %4844 = vmatpush.bf16.msrb.mxu0 %v14202_v35  ;;  %v16269_v33 = vld [vmem:[%s17366_s28 + $0x10] sm:$0xff] }
 0xe4f   :  { %4802 = vmatpush.bf16.msra.mxu3 %v14178_v45  ;;  %4830 = vmatpush.bf16.msrb.mxu2 %v14194_v36  ;;  %v3564_v36 = vperm.slane %v16269_v33, 1 }
 0xe52   :  { %4817 = vmatpush.bf16.msrb.mxu1 %v14185_v27  ;;  %4845 = vmatpush.bf16.msrb.mxu0 %v14201_v10  ;;  %v3566_v27 = vperm.slane %v16269_v33, 3 }
 0xe53   :  { %4803 = vmatpush.bf16.msra.mxu3 %v14177_v37  ;;  %4831 = vmatpush.bf16.msrb.mxu2 %v14193_v40 }
 0xe56   :  { %4818 = vmatpush.bf16.msrb.mxu1 %v14184_v41  ;;  %4846 = vmatpush.bf16.msrb.mxu0 %v14200_v15 }
 0xe57   :  { %4804 = vmatpush.bf16.msra.mxu3 %v14176_v16  ;;  %4832 = vmatpush.bf16.msrb.mxu2 %v14192_v43  ;;  %v3563_v16 = vperm.slane %v16269_v33, 0 }
 0xe58   :  { %11664 = vmatmul.msk.bf16.vlgmr.msrb.gmra.mxu3 %vm331_vm3, %v16146_v42  ;;  %11665 = vmatmul.msk.bf16.vlgmr.msra.gmra.mxu1 %vm331_vm3, %v16146_v42 }
 0xe59   :  { %11666 = vmatmul.msk.bf16.vlgmr.msra.gmra.mxu2 %vm331_vm3, %v16146_v42  ;;  %11667 = vmatmul.msk.bf16.vlgmr.msra.gmra.mxu0 %vm331_vm3, %v16146_v42  ;;  %v14197_v42 = vld [vmem:[%s17365_s23 + $0x4c8] sm:$0xff] }
 0xe5a   :  { %4819 = vmatpush.bf16.msrb.mxu1 %v14183_v47  ;;  %4847 = vmatpush.bf16.msrb.mxu0 %v14199_v48  ;;  %v3565_v48 = vperm.slane %v16269_v33, 2 }
 0xe5b   :  { %4805 = vmatpush.bf16.msra.mxu3 %v14175_v21  ;;  %4833 = vmatpush.bf16.msrb.mxu2 %v14191_v49 }
 0xe5e   :  { %4820 = vmatpush.bf16.msrb.mxu1 %v14182_v50  ;;  %4848 = vmatpush.bf16.msrb.mxu0 %v14198_v51 }
 0xe5f   :  { %4806 = vmatpush.bf16.msra.mxu3 %v14174_v52  ;;  %4834 = vmatpush.bf16.msrb.mxu2 %v14190_v38  ;;  %v14251_v38 = vld [vmem:[%s17365_s23 + $0x678] sm:$0xff] }
 0xe62   :  { %4821 = vmatpush.bf16.msrb.mxu1 %v14181_v53  ;;  %4849 = vmatpush.bf16.msrb.mxu0 %v14197_v42 }
 0xe63   :  { %4807 = vmatpush.bf16.msra.mxu3 %v14173_v54  ;;  %4835 = vmatpush.bf16.msrb.mxu2 %v14189_v55  ;;  %v14267_v54 = vld [vmem:[%s17365_s23 + $0x6f8] sm:$0xff] }
 0xe66   :  { %4822 = vmatpush.bf16.msrb.mxu1 %v14180_v56  ;;  %4850 = vmatpush.bf16.msrb.mxu0 %v14196_v57 }
 0xe67   :  { %4808 = vmatpush.bf16.msra.mxu3 %v14172_v39  ;;  %4836 = vmatpush.bf16.msrb.mxu2 %v14188_v60 }
 0xe6a   :  { %4871 = vmatpush.bf16.msra.mxu1 %v14219_v58  ;;  %4899 = vmatpush.bf16.msra.mxu0 %v14235_v59 }
 0xe6b   :  { %4857 = vmatpush.bf16.msrb.mxu3 %v14211_v61  ;;  %4885 = vmatpush.bf16.msra.mxu2 %v14227_v62  ;;  %v14250_v61 = vld [vmem:[%s17365_s23 + $0x670] sm:$0xff] }
 0xe6e   :  { %4872 = vmatpush.bf16.msra.mxu1 %v14218_v63  ;;  %4900 = vmatpush.bf16.msra.mxu0 %v14234_v0 }
 0xe6f   :  { %4858 = vmatpush.bf16.msrb.mxu3 %v14210_v1  ;;  %4886 = vmatpush.bf16.msra.mxu2 %v14226_v3  ;;  %v14266_v1 = vld [vmem:[%s17365_s23 + $0x6f0] sm:$0xff] }
 0xe72   :  { %4873 = vmatpush.bf16.msra.mxu1 %v14217_v4  ;;  %4901 = vmatpush.bf16.msra.mxu0 %v14233_v5  ;;  %v14243_v5 = vld [vmem:[%s17365_s23 + $0x638] sm:$0xff] }
 0xe73   :  { %4859 = vmatpush.bf16.msrb.mxu3 %v14209_v8  ;;  %4887 = vmatpush.bf16.msra.mxu2 %v14225_v9  ;;  %v14259_v8 = vld [vmem:[%s17365_s23 + $0x6b8] sm:$0xff] }
 0xe76   :  { %4874 = vmatpush.bf16.msra.mxu1 %v14216_v6  ;;  %4902 = vmatpush.bf16.msra.mxu0 %v14232_v7  ;;  %v3568_v7 = vperm.slane %v16269_v33, 5 }
 0xe77   :  { %4860 = vmatpush.bf16.msrb.mxu3 %v14208_v12  ;;  %4888 = vmatpush.bf16.msra.mxu2 %v14224_v13  ;;  %v14265_v12 = vld [vmem:[%s17365_s23 + $0x6e8] sm:$0xff] }
 0xe7a   :  { %4875 = vmatpush.bf16.msra.mxu1 %v14215_v18  ;;  %4903 = vmatpush.bf16.msra.mxu0 %v14231_v11  ;;  %v3570_v18 = vperm.slane %v16269_v33, 7  ;;  %v14249_v11 = vld [vmem:[%s17365_s23 + $0x668] sm:$0xff] }
 0xe7b   :  { %4861 = vmatpush.bf16.msrb.mxu3 %v14207_v19  ;;  %4889 = vmatpush.bf16.msra.mxu2 %v14223_v20  ;;  %v14258_v20 = vld [vmem:[%s17365_s23 + $0x6b0] sm:$0xff] }
 0xe7e   :  { %4876 = vmatpush.bf16.msra.mxu1 %v14214_v14  ;;  %4904 = vmatpush.bf16.msra.mxu0 %v14230_v29  ;;  %v14242_v14 = vld [vmem:[%s17365_s23 + $0x630] sm:$0xff] }
 0xe7f   :  { %4862 = vmatpush.bf16.msrb.mxu3 %v14206_v23  ;;  %4890 = vmatpush.bf16.msra.mxu2 %v14222_v24  ;;  %v14248_v23 = vld [vmem:[%s17365_s23 + $0x660] sm:$0xff]  ;;  %v3567_v24 = vperm.slane %v16269_v33, 4 }
 0xe82   :  { %4877 = vmatpush.bf16.msra.mxu1 %v14213_v28  ;;  %4905 = vmatpush.bf16.msra.mxu0 %v14229_v22 }
 0xe83   :  { %4863 = vmatpush.bf16.msrb.mxu3 %v14205_v30  ;;  %4891 = vmatpush.bf16.msra.mxu2 %v14221_v31  ;;  %v14264_v30 = vld [vmem:[%s17365_s23 + $0x6e0] sm:$0xff]  ;;  %v3569_v31 = vperm.slane %v16269_v33, 6 }
 0xe86   :  { %4878 = vmatpush.bf16.msra.mxu1 %v14212_v25  ;;  %4906 = vmatpush.bf16.msra.mxu0 %v14228_v26 }
 0xe87   :  { %4864 = vmatpush.bf16.msrb.mxu3 %v14204_v32  ;;  %4892 = vmatpush.bf16.msra.mxu2 %v14220_v34  ;;  %v14241_v34 = vld [vmem:[%s17365_s23 + $0x628] sm:$0xff] }
 0xea5   :  { %v3781_v35 = vpop.f32.mrf.mxu1 }
 0xea6   :  { %v3809_v45 = vpop.f32.mrf.mxu0  ;;  %v3782_v37 = vadd.f32 %v3781_v35, %v3564_v36 }
 0xea7   :  { %v3810_v41 = vadd.f32 %v3809_v45, %v3566_v27 }
 0xea8   :  { %v3983_v49 = vmax.f32 %v3782_v37, 0.0  ;;  %v14247_v37 = vld [vmem:[%s17365_s23 + $0x658] sm:$0xff] }
 0xea9   :  { %v3985_v51 = vmax.f32 %v3810_v41, 0.0 }
 0xeab   :  { %v3767_v10 = vpop.f32.mrf.mxu3 }
 0xeac   :  { %v3795_v40 = vpop.f32.mrf.mxu2  ;;  %v3768_v53 = vadd.f32 %v3767_v10, %v3563_v16 }
 0xead   :  { %v3783_v15 = vpop.f32.mrf.mxu1  ;;  %v3796_v55 = vadd.f32 %v3795_v40, %v3565_v48 }
 0xeae   :  { %v3784_v43 = vadd.f32 %v3783_v15, %v3564_v36  ;;  %v3811_v47 = vpop.f32.mrf.mxu0  ;;  %v3982_v62 = vmax.f32 %v3768_v53, 0.0  ;;  %v14257_v36 = vld [vmem:[%s17365_s23 + $0x6a8] sm:$0xff]  ;;  %v14263_v15 = vld [vmem:[%s17365_s23 + $0x6d8] sm:$0xff] }
 0xeaf   :  { %v3812_v21 = vadd.f32 %v3811_v47, %v3566_v27  ;;  %v3984_v3 = vmax.f32 %v3796_v55, 0.0  ;;  %v14240_v47 = vld [vmem:[%s17365_s23 + $0x620] sm:$0xff]  ;;  %v14262_v55 = vld [vmem:[%s17365_s23 + $0x6d0] sm:$0xff] }
 0xeb0   :  { %v3999_v50 = vmax.f32 %v3784_v43, 0.0 }
 0xeb1   :  { %v4001_v52 = vmax.f32 %v3812_v21, 0.0 }
 0xeb2   :  { %v4015_v42 = vpack.c.bf16 %v3999_v50, %v3983_v49  ;;  %v14256_v49 = vld [vmem:[%s17365_s23 + $0x6a0] sm:$0xff] }
 0xeb3   :  { %v4017_v56 = vpack.c.bf16 %v4001_v52, %v3985_v51  ;;  %v3769_v57 = vpop.f32.mrf.mxu3  ;;  %v16298_v51 = vld [vmem:[%s17366_s28 + $0x18] sm:$0xff]  ;;  %s17381_s28 = sld [smem:[#allocation33_spill]] }
 0xeb4   :  { %v3770_v58 = vadd.f32 %v3769_v57, %v3563_v16  ;;  %v3797_v59 = vpop.f32.mrf.mxu2  ;;  %4823 = vmatmul.bf16.vlgmr.msrb.gmra.mxu1 %v4015_v42 }
 0xeb5   :  { %v3798_v39 = vadd.f32 %v3797_v59, %v3565_v48  ;;  %4851 = vmatmul.bf16.vlgmr.msrb.gmra.mxu0 %v4017_v56  ;;  %4927 = vmatpush.bf16.msrb.mxu1 %v14251_v38  ;;  %v3837_v60 = vpop.f32.mrf.mxu1  ;;  %v14246_v38 = vld [vmem:[%s17365_s23 + $0x650] sm:$0xff] }
 0xeb6   :  { %v3998_v63 = vmax.f32 %v3770_v58, 0.0  ;;  %4955 = vmatpush.bf16.msrb.mxu0 %v14267_v54  ;;  %v3865_v0 = vpop.f32.mrf.mxu0  ;;  %v3838_v29 = vadd.f32 %v3837_v60, %v3568_v7  ;;  %v14239_v58 = vld [vmem:[%s17365_s23 + $0x618] sm:$0xff] }
 0xeb7   :  { %v4000_v4 = vmax.f32 %v3798_v39, 0.0  ;;  %v3866_v28 = vadd.f32 %v3865_v0, %v3570_v18  ;;  %v3572_v39 = vperm.slane %v16298_v51, 1  ;;  %v14255_v60 = vld [vmem:[%s17365_s23 + $0x698] sm:$0xff]  ;;  %v14261_v0 = vld [vmem:[%s17365_s23 + $0x6c8] sm:$0xff] }
 0xeb8   :  { %v4014_v6 = vpack.c.bf16 %v3998_v63, %v3982_v62  ;;  %v3987_v35 = vmax.f32 %v3838_v29, 0.0  ;;  %v3574_v62 = vperm.slane %v16298_v51, 3  ;;  %v14245_v63 = vld [vmem:[%s17365_s23 + $0x648] sm:$0xff]  ;;  %v3573_v29 = vperm.slane %v16298_v51, 2 }
 0xeb9   :  { %v4016_v9 = vpack.c.bf16 %v4000_v4, %v3984_v3  ;;  %4928 = vmatpush.bf16.msrb.mxu1 %v14250_v61  ;;  %v3989_v27 = vmax.f32 %v3866_v28, 0.0  ;;  %v14238_v3 = vld [vmem:[%s17365_s23 + $0x610] sm:$0xff]  ;;  %v14237_v28 = vld [vmem:[%s17365_s23 + $0x608] sm:$0xff] }
 0xeba   :  { %4956 = vmatpush.bf16.msrb.mxu0 %v14266_v1  ;;  %4809 = vmatmul.bf16.vlgmr.msra.gmra.mxu3 %v4014_v6  ;;  %v14254_v6 = vld [vmem:[%s17365_s23 + $0x690] sm:$0xff] }
 0xebb   :  { %4837 = vmatmul.bf16.vlgmr.msrb.gmra.mxu2 %v4016_v9  ;;  %4913 = vmatpush.bf16.msra.mxu3 %v14243_v5  ;;  %v3823_v13 = vpop.f32.mrf.mxu3  ;;  %v14244_v9 = vld [vmem:[%s17365_s23 + $0x640] sm:$0xff] }
 0xebc   :  { %4941 = vmatpush.bf16.msrb.mxu2 %v14259_v8  ;;  %v3851_v19 = vpop.f32.mrf.mxu2  ;;  %v3824_v40 = vadd.f32 %v3823_v13, %v3567_v24  ;;  %v14260_v13 = vld [vmem:[%s17365_s23 + $0x6c0] sm:$0xff] }
 0xebd   :  { %4929 = vmatpush.bf16.msrb.mxu1 %v14249_v11  ;;  %v3839_v22 = vpop.f32.mrf.mxu1  ;;  %v3852_v33 = vadd.f32 %v3851_v19, %v3569_v31 }
 0xebe   :  { %4957 = vmatpush.bf16.msrb.mxu0 %v14265_v12  ;;  %v3840_v25 = vadd.f32 %v3839_v22, %v3568_v7  ;;  %v3867_v26 = vpop.f32.mrf.mxu0  ;;  %v3986_v53 = vmax.f32 %v3824_v40, 0.0  ;;  %v14252_v40 = vld [vmem:[%s17365_s23 + $0x680] sm:$0xff] }
 0xebf   :  { %v3868_v32 = vadd.f32 %v3867_v26, %v3570_v18  ;;  %4914 = vmatpush.bf16.msra.mxu3 %v14242_v14  ;;  %v3988_v56 = vmax.f32 %v3852_v33, 0.0  ;;  %v3571_v18 = vperm.slane %v16298_v51, 0  ;;  %v14283_v14 = vld [vmem:[%s17365_s23 + $0x778] sm:$0xff] }
 0xec0   :  { %v4003_v45 = vmax.f32 %v3840_v25, 0.0  ;;  %4942 = vmatpush.bf16.msrb.mxu2 %v14258_v20  ;;  %v14299_v20 = vld [vmem:[%s17365_s23 + $0x7f8] sm:$0xff] }
 0xec1   :  { %v4005_v10 = vmax.f32 %v3868_v32, 0.0  ;;  %4930 = vmatpush.bf16.msrb.mxu1 %v14248_v23  ;;  %v14282_v32 = vld [vmem:[%s17365_s23 + $0x770] sm:$0xff]  ;;  %v14291_v33 = vld [vmem:[%s17365_s23 + $0x7b8] sm:$0xff] }
 0xec2   :  { %v4019_v41 = vpack.c.bf16 %v4003_v45, %v3987_v35  ;;  %4958 = vmatpush.bf16.msrb.mxu0 %v14264_v30 }
 0xec3   :  { %v4021_v16 = vpack.c.bf16 %v4005_v10, %v3989_v27  ;;  %4915 = vmatpush.bf16.msra.mxu3 %v14241_v34  ;;  %v3825_v43 = vpop.f32.mrf.mxu3  ;;  %v14236_v27 = vld [vmem:[%s17365_s23 + $0x600] sm:$0xff] }
 0xec4   :  { %4943 = vmatpush.bf16.msrb.mxu2 %v14257_v36  ;;  %v3826_v48 = vadd.f32 %v3825_v43, %v3567_v24  ;;  %v3853_v21 = vpop.f32.mrf.mxu2  ;;  %4879 = vmatmul.bf16.vlgmr.msra.gmra.mxu1 %v4019_v41  ;;  %v14253_v24 = vld [vmem:[%s17365_s23 + $0x688] sm:$0xff]  ;;  %v14298_v36 = vld [vmem:[%s17365_s23 + $0x7f0] sm:$0xff]  ;;  %v14275_v41 = vld [vmem:[%s17365_s23 + $0x738] sm:$0xff] }
 0xec5   :  { %v3854_v50 = vadd.f32 %v3853_v21, %v3569_v31  ;;  %4907 = vmatmul.bf16.vlgmr.msra.gmra.mxu0 %v4021_v16  ;;  %4931 = vmatpush.bf16.msrb.mxu1 %v14247_v37  ;;  %v3893_v52 = vpop.f32.mrf.mxu1 }
 0xec6   :  { %v4002_v42 = vmax.f32 %v3826_v48, 0.0  ;;  %4959 = vmatpush.bf16.msrb.mxu0 %v14263_v15  ;;  %v3921_v54 = vpop.f32.mrf.mxu0  ;;  %v3894_v4 = vadd.f32 %v3893_v52, %v3572_v39  ;;  %v14274_v52 = vld [vmem:[%s17365_s23 + $0x730] sm:$0xff] }
 0xec7   :  { %v4004_v57 = vmax.f32 %v3854_v50, 0.0  ;;  %4916 = vmatpush.bf16.msra.mxu3 %v14240_v47  ;;  %v3922_v7 = vadd.f32 %v3921_v54, %v3574_v62  ;;  %v14281_v47 = vld [vmem:[%s17365_s23 + $0x768] sm:$0xff]  ;;  %v14280_v54 = vld [vmem:[%s17365_s23 + $0x760] sm:$0xff] }
 0xec8   :  { %v4018_v59 = vpack.c.bf16 %v4002_v42, %v3986_v53  ;;  %4944 = vmatpush.bf16.msrb.mxu2 %v14256_v49  ;;  %v3991_v22 = vmax.f32 %v3894_v4, 0.0  ;;  %v14297_v49 = vld [vmem:[%s17365_s23 + $0x7e8] sm:$0xff]  ;;  %v14290_v53 = vld [vmem:[%s17365_s23 + $0x7b0] sm:$0xff]  ;;  %v14271_v4 = vld [vmem:[%s17365_s23 + $0x718] sm:$0xff] }
 0xec9   :  { %v4020_v61 = vpack.c.bf16 %v4004_v57, %v3988_v56  ;;  %4932 = vmatpush.bf16.msrb.mxu1 %v14246_v38  ;;  %v3993_v25 = vmax.f32 %v3922_v7, 0.0  ;;  %v14296_v56 = vld [vmem:[%s17365_s23 + $0x7e0] sm:$0xff]  ;;  %v14273_v57 = vld [vmem:[%s17365_s23 + $0x728] sm:$0xff]  ;;  %v14287_v7 = vld [vmem:[%s17365_s23 + $0x798] sm:$0xff] }
 0xeca   :  { %4960 = vmatpush.bf16.msrb.mxu0 %v14262_v55  ;;  %4865 = vmatmul.bf16.vlgmr.msrb.gmra.mxu3 %v4018_v59  ;;  %v14279_v59 = vld [vmem:[%s17365_s23 + $0x758] sm:$0xff] }
 0xecb   :  { %4893 = vmatmul.bf16.vlgmr.msra.gmra.mxu2 %v4020_v61  ;;  %4917 = vmatpush.bf16.msra.mxu3 %v14239_v58  ;;  %v3879_v1 = vpop.f32.mrf.mxu3  ;;  %v14289_v58 = vld [vmem:[%s17365_s23 + $0x7a8] sm:$0xff]  ;;  %v14272_v61 = vld [vmem:[%s17365_s23 + $0x720] sm:$0xff] }
 0xecc   :  { %4945 = vmatpush.bf16.msrb.mxu2 %v14255_v60  ;;  %v3907_v5 = vpop.f32.mrf.mxu2  ;;  %v3880_v30 = vadd.f32 %v3879_v1, %v3571_v18  ;;  %v14294_v1 = vld [vmem:[%s17365_s23 + $0x7d0] sm:$0xff] }
 0xecd   :  { %4933 = vmatpush.bf16.msrb.mxu1 %v14245_v63  ;;  %v3895_v8 = vpop.f32.mrf.mxu1  ;;  %v3908_v34 = vadd.f32 %v3907_v5, %v3573_v29  ;;  %v14288_v63 = vld [vmem:[%s17365_s23 + $0x7a0] sm:$0xff]  ;;  %v3576_v5 = vperm.slane %v16298_v51, 5 }
 0xece   :  { %4961 = vmatpush.bf16.msrb.mxu0 %v14261_v0  ;;  %v3896_v11 = vadd.f32 %v3895_v8, %v3572_v39  ;;  %v3923_v12 = vpop.f32.mrf.mxu0  ;;  %v3990_v16 = vmax.f32 %v3880_v30, 0.0  ;;  %v14295_v39 = vld [vmem:[%s17365_s23 + $0x7d8] sm:$0xff]  ;;  %v14278_v0 = vld [vmem:[%s17365_s23 + $0x750] sm:$0xff]  ;;  %v3578_v8 = vperm.slane %v16298_v51, 7 }
 0xecf   :  { %v3924_v19 = vadd.f32 %v3923_v12, %v3574_v62  ;;  %4918 = vmatpush.bf16.msra.mxu3 %v14238_v3  ;;  %v3992_v48 = vmax.f32 %v3908_v34, 0.0 }
 0xed0   :  { %v4007_v23 = vmax.f32 %v3896_v11, 0.0  ;;  %4946 = vmatpush.bf16.msrb.mxu2 %v14254_v6  ;;  %v14293_v11 = vld [vmem:[%s17365_s23 + $0x7c8] sm:$0xff] }
 0xed1   :  { %v4009_v26 = vmax.f32 %v3924_v19, 0.0  ;;  %4934 = vmatpush.bf16.msrb.mxu1 %v14244_v9  ;;  %v14277_v9 = vld [vmem:[%s17365_s23 + $0x748] sm:$0xff] }
 0xed2   :  { %v4023_v31 = vpack.c.bf16 %v4007_v23, %v3991_v22  ;;  %4962 = vmatpush.bf16.msrb.mxu0 %v14260_v13  ;;  %v14270_v13 = vld [vmem:[%s17365_s23 + $0x710] sm:$0xff]  ;;  %v3575_v22 = vperm.slane %v16298_v51, 4 }
 0xed3   :  { %v4025_v35 = vpack.c.bf16 %v4009_v26, %v3993_v25  ;;  %4919 = vmatpush.bf16.msra.mxu3 %v14237_v28  ;;  %v3881_v45 = vpop.f32.mrf.mxu3  ;;  %v14276_v28 = vld [vmem:[%s17365_s23 + $0x740] sm:$0xff]  ;;  %v3577_v26 = vperm.slane %v16298_v51, 6 }
 0xed4   :  { %4947 = vmatpush.bf16.msrb.mxu2 %v14253_v24  ;;  %v3882_v10 = vadd.f32 %v3881_v45, %v3571_v18  ;;  %v3909_v37 = vpop.f32.mrf.mxu2  ;;  %4935 = vmatmul.bf16.vlgmr.msrb.gmra.mxu1 %v4023_v31  ;;  %v14292_v25 = vld [vmem:[%s17365_s23 + $0x7c0] sm:$0xff]  ;;  %v14269_v31 = vld [vmem:[%s17365_s23 + $0x708] sm:$0xff] }
 0xed5   :  { %4983 = vmatpush.bf16.msra.mxu1 %v14283_v14  ;;  %v3910_v15 = vadd.f32 %v3909_v37, %v3573_v29  ;;  %4963 = vmatmul.bf16.vlgmr.msrb.gmra.mxu0 %v4025_v35  ;;  %v3949_v42 = vpop.f32.mrf.mxu1  ;;  %v14286_v29 = vld [vmem:[%s17365_s23 + $0x790] sm:$0xff]  ;;  %v14285_v35 = vld [vmem:[%s17365_s23 + $0x788] sm:$0xff]  ;;  %v5142_v45 = vld [vmem:[%s17370_s25] sm:$0x7]  ;;  %s17385_s25 = sld [smem:[#allocation24_spill]] }
 0xed6   :  { %5011 = vmatpush.bf16.msra.mxu0 %v14299_v20  ;;  %v4006_v43 = vmax.f32 %v3882_v10, 0.0  ;;  %v3977_v55 = vpop.f32.mrf.mxu0  ;;  %v3950_v14 = vadd.f32 %v3949_v42, %v3576_v5  ;;  %v14268_v51 = vld [vmem:[%s17365_s23 + $0x700] sm:$0xff] }
 0xed7   :  { %v4008_v21 = vmax.f32 %v3910_v15, 0.0  ;;  %4920 = vmatpush.bf16.msra.mxu3 %v14236_v27  ;;  %v3978_v19 = vadd.f32 %v3977_v55, %v3578_v8  ;;  %v5152_v15 = vand.u32 %v5142_v45, %v15505_v2 }
 0xed8   :  { %v4022_v50 = vpack.c.bf16 %v4006_v43, %v3990_v16  ;;  %4948 = vmatpush.bf16.msrb.mxu2 %v14252_v40  ;;  %v14284_v16 = vld [vmem:[%s17365_s23 + $0x780] sm:$0xff]  ;;  %s17380_s23 = sld [smem:[#allocation30_spill]] }
 0xed9   :  { %4984 = vmatpush.bf16.msra.mxu1 %v14282_v32  ;;  %v4024_v38 = vpack.c.bf16 %v4008_v21, %v3992_v48  ;;  %v3995_v32 = vmax.f32 %v3950_v14, 0.0 }
 0xeda   :  { %5012 = vmatpush.bf16.msra.mxu0 %v14298_v36  ;;  %4921 = vmatmul.bf16.vlgmr.msra.gmra.mxu3 %v4022_v50  ;;  %v3997_v36 = vmax.f32 %v3978_v19, 0.0  ;;  %v5141_v50 = vld [vmem:[%s17371_s29] sm:$0xff]  ;;  %s17386_s29 = sld [smem:[#allocation35_spill]] }
 0xedb   :  { %4969 = vmatpush.bf16.msrb.mxu3 %v14275_v41  ;;  %4949 = vmatmul.bf16.vlgmr.msrb.gmra.mxu2 %v4024_v38  ;;  %v3935_v60 = vpop.f32.mrf.mxu3 }
 0xedc   :  { %4997 = vmatpush.bf16.msra.mxu2 %v14291_v33  ;;  %v3963_v62 = vpop.f32.mrf.mxu2  ;;  %v3936_v10 = vadd.f32 %v3935_v60, %v3575_v22 }
 0xedd   :  { %4985 = vmatpush.bf16.msra.mxu1 %v14281_v47  ;;  %v3951_v3 = vpop.f32.mrf.mxu1  ;;  %v3964_v40 = vadd.f32 %v3963_v62, %v3577_v26 }
 0xede   :  { %5013 = vmatpush.bf16.msra.mxu0 %v14297_v49  ;;  %v3979_v6 = vpop.f32.mrf.mxu0  ;;  %v3952_v18 = vadd.f32 %v3951_v3, %v3576_v5  ;;  %v3994_v47 = vmax.f32 %v3936_v10, 0.0 }
 0xedf   :  { %4970 = vmatpush.bf16.msrb.mxu3 %v14274_v52  ;;  %v3980_v12 = vadd.f32 %v3979_v6, %v3578_v8  ;;  %v3996_v48 = vmax.f32 %v3964_v40, 0.0  ;;  %v5143_v52 = vpack.c.bf16 %v5141_v50, %v5141_v50 }
 0xee0   :  { %4998 = vmatpush.bf16.msra.mxu2 %v14290_v53  ;;  %v4011_v23 = vmax.f32 %v3952_v18, 0.0 }
 0xee1   :  { %4986 = vmatpush.bf16.msra.mxu1 %v14280_v54  ;;  %v4013_v30 = vmax.f32 %v3980_v12, 0.0 }
 0xee2   :  { %5014 = vmatpush.bf16.msra.mxu0 %v14296_v56  ;;  %v4027_v37 = vpack.c.bf16 %v4011_v23, %v3995_v32  ;;  %v16367_v56 = vld [vmem:[%s17367_s20 + $0x1] ss:$0 sm:$0xff]  ;;  %v14301_v23 = vld [vmem:[%s17372_s3 + $0x8] sm:$0xff]  ;;  %s17382_s20 = sld [smem:[#allocation20_spill]] }
 0xee3   :  { %4971 = vmatpush.bf16.msrb.mxu3 %v14273_v57  ;;  %v3937_v20 = vpop.f32.mrf.mxu3  ;;  %v4029_v41 = vpack.c.bf16 %v4013_v30, %v3997_v36  ;;  %v14300_v30 = vld [vmem:[%s17372_s3] sm:$0xff] }
 0xee4   :  { %4999 = vmatpush.bf16.msra.mxu2 %v14289_v58  ;;  %v3965_v24 = vpop.f32.mrf.mxu2  ;;  %v3938_v34 = vadd.f32 %v3937_v20, %v3575_v22  ;;  %v5167_v36 = vld [vmem:[%s17373_s8] sm:$0xff]  ;;  %s17387_s8 = sld [smem:[#allocation36_spill]] }
 0xee5   :  { %4987 = vmatpush.bf16.msra.mxu1 %v14279_v59  ;;  %v3966_v27 = vadd.f32 %v3965_v24, %v3577_v26 }
 0xee6   :  { %5015 = vmatpush.bf16.msra.mxu0 %v14295_v39  ;;  %v4010_v33 = vmax.f32 %v3938_v34, 0.0 }
 0xee7   :  { %4972 = vmatpush.bf16.msrb.mxu3 %v14272_v61  ;;  %v4012_v43 = vmax.f32 %v3966_v27, 0.0 }
 0xee8   :  { %5000 = vmatpush.bf16.msra.mxu2 %v14288_v63  ;;  %v4026_v21 = vpack.c.bf16 %v4010_v33, %v3994_v47 }
 0xee9   :  { %4988 = vmatpush.bf16.msra.mxu1 %v14278_v0  ;;  %v4028_v49 = vpack.c.bf16 %v4012_v43, %v3996_v48 }
 0xeea   :  { %5016 = vmatpush.bf16.msra.mxu0 %v14294_v1 }
 0xeeb   :  { %4973 = vmatpush.bf16.msrb.mxu3 %v14271_v4 }
 0xeec   :  { %5001 = vmatpush.bf16.msra.mxu2 %v14287_v7 }
 0xeed   :  { %4989 = vmatpush.bf16.msra.mxu1 %v14277_v9 }
 0xeee   :  { %5017 = vmatpush.bf16.msra.mxu0 %v14293_v11 }
 0xeef   :  { %4974 = vmatpush.bf16.msrb.mxu3 %v14270_v13 }
 0xef0   :  { %5002 = vmatpush.bf16.msra.mxu2 %v14286_v29 }
 0xef1   :  { %4990 = vmatpush.bf16.msra.mxu1 %v14276_v28 }
 0xef2   :  { %5018 = vmatpush.bf16.msra.mxu0 %v14292_v25 }
 0xef3   :  { %4975 = vmatpush.bf16.msrb.mxu3 %v14269_v31 }
 0xef4   :  { %5003 = vmatpush.bf16.msra.mxu2 %v14285_v35  ;;  %4991 = vmatmul.bf16.vlgmr.msra.gmra.mxu1 %v4027_v37  ;;  %v14839_v35 = vld [vmem:[#allocation4] ss:$0 sm:$0xff] }
 0xef5   :  { %5019 = vmatmul.bf16.vlgmr.msra.gmra.mxu0 %v4029_v41  ;;  %5201 = vmatpush.bf16.msrb.mxu1 %v14301_v23 }
 0xef7   :  { %4976 = vmatpush.bf16.msrb.mxu3 %v14268_v51 }
 0xef8   :  { %5004 = vmatpush.bf16.msra.mxu2 %v14284_v16 }
 0xef9   :  { %5202 = vmatpush.bf16.msrb.mxu1 %v14300_v30 }
 0xefa   :  { %4977 = vmatmul.bf16.vlgmr.msrb.gmra.mxu3 %v4026_v21 }
 0xefb   :  { %5161 = vmatpush.bf16.msra.mxu3 %v5152_v15  ;;  %5005 = vmatmul.bf16.vlgmr.msra.gmra.mxu2 %v4028_v49  ;;  %v14840_v15 = vld [vmem:[%s17374_s14] ss:$0 sm:$0xff] }
 0xf0a   :  { %12182 = vmatmul.msk.bf16.vlgmr.msra.gmra.mxu3 %vm279_vm2, %v5143_v52 }
 0xf31   :  { %v16358_v2 = vpop.f32.mrf.mxu1 }
 0xf32   :  { %v16360_v38 = vpop.f32.mrf.mxu0 }
 0xf39   :  { %v4826_v54 = vpop.f32.mrf.mxu1 }
 0xf3a   :  { %v4854_v55 = vpop.f32.mrf.mxu0 }
 0xf3d   :  { %v16362_v53 = vpop.f32.mrf.mxu3 }
 0xf3e   :  { %v16364_v42 = vpop.f32.mrf.mxu2 }
 0xf41   :  { %v16370_v60 = vpop.f32.mrf.mxu1 }
 0xf42   :  { %v16372_v63 = vpop.f32.mrf.mxu0 }
 0xf45   :  { %v4812_v57 = vpop.f32.mrf.mxu3 }
 0xf46   :  { %v4813_v58 = vadd.f32 %v16367_v56, %v4812_v57  ;;  %v4840_v59 = vpop.f32.mrf.mxu2 }
 0xf48   :  { %v4827_v39 = vadd.f32 %v4826_v54, %v4813_v58 }
 0xf49   :  { %v4882_v3 = vpop.f32.mrf.mxu1 }
 0xf4a   :  { %v4841_v61 = vadd.f32 %v4840_v59, %v4827_v39  ;;  %v4910_v7 = vpop.f32.mrf.mxu0 }
 0xf4c   :  { %v4855_v62 = vadd.f32 %v4854_v55, %v4841_v61  ;;  %v5169_v61 = vld [vmem:[%s17375_s19] sm:$0xff] }
 0xf4d   :  { %v16374_v0 = vpop.f32.mrf.mxu3 }
 0xf4e   :  { %v16376_v1 = vpop.f32.mrf.mxu2 }
 0xf51   :  { %v16378_v11 = vpop.f32.mrf.mxu1 }
 0xf52   :  { %v16384_v14 = vpop.f32.mrf.mxu0 }
 0xf55   :  { %v4868_v4 = vpop.f32.mrf.mxu3 }
 0xf56   :  { %v4869_v5 = vadd.f32 %v4868_v4, %v4855_v62  ;;  %v4896_v6 = vpop.f32.mrf.mxu2 }
 0xf58   :  { %v4883_v8 = vadd.f32 %v4882_v3, %v4869_v5 }
 0xf59   :  { %v4938_v20 = vpop.f32.mrf.mxu1 }
 0xf5a   :  { %v4897_v9 = vadd.f32 %v4896_v6, %v4883_v8  ;;  %v4966_v25 = vpop.f32.mrf.mxu0 }
 0xf5c   :  { %v4911_v18 = vadd.f32 %v4910_v7, %v4897_v9 }
 0xf5d   :  { %v16380_v12 = vpop.f32.mrf.mxu3 }
 0xf5e   :  { %v16382_v13 = vpop.f32.mrf.mxu2 }
 0xf65   :  { %v4924_v29 = vpop.f32.mrf.mxu3 }
 0xf66   :  { %v4925_v19 = vadd.f32 %v4924_v29, %v4911_v18  ;;  %v4952_v22 = vpop.f32.mrf.mxu2 }
 0xf68   :  { %v4939_v28 = vadd.f32 %v4938_v20, %v4925_v19 }
 0xf6a   :  { %v4953_v24 = vadd.f32 %v4952_v22, %v4939_v28 }
 0xf6c   :  { %v4967_v26 = vadd.f32 %v4966_v25, %v4953_v24 }
 0xf71   :  { %v16398_v41 = vpop.f32.mrf.mxu1 }
 0xf72   :  { %v16428_v55 = vpop.f32.mrf.mxu0 }
 0xf79   :  { %v16400_v51 = vpop.f32.mrf.mxu1 }
 0xf7a   :  { %v16432_v58 = vpop.f32.mrf.mxu0 }
 0xf7d   :  { %v16388_v31 = vpop.f32.mrf.mxu3 }
 0xf7e   :  { %v16430_v57 = vpop.f32.mrf.mxu2 }
 0xf85   :  { %v4980_v32 = vpop.f32.mrf.mxu3 }
 0xf86   :  { %v16390_v34 = vadd.f32 %v4980_v32, %v4967_v26  ;;  %v16434_v59 = vpop.f32.mrf.mxu2 }
 0xf8d   :  { %v5163_v45 = vpop.f32.mrf.mxu3 }
 0xf8e   :  { %v5164_v27 = vadd.f32 %v14839_v35, %v5163_v45 }
 0xf90   :  { %v16393_v10 = vadd.f32 %v5167_v36, %v5164_v27 }
 0xf92   :  { %v5175_v37 = vpack.c.bf16 %v16393_v10, %v16393_v10 }
 0xf94   :  { %12191 = vmatmul.msk.bf16.vlgmr.msrb.gmra.mxu1 %vm331_vm3, %v5175_v37 }
 0xf95   :  { %v5165_v40 = vpop.f32.mrf.mxu3 }
0x1011   :  { %v5204_v33 = vpop.f32.mrf.mxu1 }
0x1012   :  { %v16403_v16 = vadd.f32 %v14840_v15, %v5204_v33 }
0x1014   :  { %5348 = vrot.lane.b32.xlu2 %v16403_v16, %s15224_s12  ;;  %5281 = vrot.lane.b32.xlu0 %v16403_v16, %s15221_s13 }
0x1015   :  { %5214 = vrot.lane.b32.xlu1 %v16403_v16, %s15222_s17 }
0x1019   :  { %v5206_v43 = vpop.f32.mrf.mxu1 }
0x101c   :  { %5346 = vrot.lane.b32.xlu0 %v16403_v16, %s15223_s21 }
0x101d   :  { %5279 = vrot.lane.b32.xlu1 %v16403_v16, %s15220_s5 }
0x1025   :  { %5415 = vrot.lane.b32.xlu1 %v16403_v16, %s15225_s27 }
0x102d   :  { %5413 = vrot.lane.b32.xlu1 %v16403_v16, %s15226_s4 }
0x106e   :  { %v5349_v47 = vpop.permute.xlu2 %5348 }
0x106f   :  { %12198 = vmatpush.xpose.msk.msra.mxu1 %vm360_vm4, %v5349_v47 }
0x1086   :  { %v5282_v48 = vpop.permute.xlu0 %5281 }
0x1087   :  { %v5215_v21 = vpop.permute.xlu1 %5214  ;;  %12195 = vmatpush.xpose.msk.msrb.mxu0 %vm360_vm4, %v5282_v48 }
0x1088   :  { %12192 = vmatpush.xpose.msk.msrb.mxu2 %vm360_vm4, %v5215_v21 }
0x108b   :  { %12193 = vmatmul.msk.f32.vlgmr.msrb.gmra.mxu2 %vm360_vm4, %v16403_v16 }
0x108e   :  { %v5347_v49 = vpop.permute.xlu0 %5346 }
0x108f   :  { %v5280_v50 = vpop.permute.xlu1 %5279  ;;  %12199 = vmatmul.msk.f32.vlgmr.msra.gmra.mxu1 %vm360_vm4, %v5347_v49 }
0x1090   :  { %12196 = vmatmul.msk.f32.vlgmr.msrb.gmra.mxu0 %vm360_vm4, %v5280_v50 }
0x1097   :  { %v5416_v52 = vpop.permute.xlu1 %5415 }
0x1098   :  { %12201 = vmatpush.xpose.msk.msra.mxu0 %vm360_vm4, %v5416_v52 }
0x109f   :  { %v5414_v54 = vpop.permute.xlu1 %5413 }
0x10a0   :  { %12202 = vmatmul.msk.f32.vlgmr.msra.gmra.mxu0 %vm360_vm4, %v5414_v54 }
0x110c   :  { %v5371_v39 = vpop.f32.mrf.mxu1 }
0x110d   :  { %v5304_v62 = vpop.f32.mrf.mxu0  ;;  %v5374_v3 = vmul.f32 0.35355338, %v5371_v39  ;;  %v4811_v39 = vadd.f32 %v16367_v56, %v16362_v53 }
0x110e   :  { %v5307_v4 = vmul.f32 0.35355338, %v5304_v62  ;;  %v5237_v5 = vpop.f32.mrf.mxu2 }
0x110f   :  { %v5240_v6 = vmul.f32 0.35355338, %v5237_v5  ;;  %v5375_v7 = vadd.f32 %v5374_v3, %v5169_v61 }
0x1110   :  { %v5308_v8 = vadd.f32 %v5307_v4, %v5169_v61 }
0x1111   :  { %v5376_v9 = vsel %vm360_vm4, %v5375_v7, -inf  ;;  %v5241_v18 = vadd.f32 %v5240_v6, %v5169_v61 }
0x1112   :  { %5377 = vmax.xlane.f32.xlu2 %v5376_v9  ;;  %v5309_v29 = vsel %vm360_vm4, %v5308_v8, -inf }
0x1113   :  { %5310 = vmax.xlane.f32.xlu1 %v5309_v29  ;;  %v5242_v19 = vsel %vm360_vm4, %v5241_v18, -inf }
0x1114   :  { %5243 = vmax.xlane.f32.xlu0 %v5242_v19 }
0x111d   :  { %v5438_v20 = vpop.f32.mrf.mxu0 }
0x111e   :  { %v5441_v28 = vmul.f32 0.35355338, %v5438_v20 }
0x1120   :  { %v5442_v22 = vadd.f32 %v5441_v28, %v5169_v61  ;;  %v4825_v61 = vadd.f32 %v16358_v2, %v4811_v39 }
0x1122   :  { %v5443_v23 = vsel %vm360_vm4, %v5442_v22, -inf  ;;  %v4839_v62 = vadd.f32 %v16364_v42, %v4825_v61 }
0x1123   :  { %5444 = vmax.xlane.f32.xlu0 %v5443_v23 }
0x1124   :  { %v4853_v3 = vadd.f32 %v16360_v38, %v4839_v62 }
0x1126   :  { %v4867_v4 = vadd.f32 %v16374_v0, %v4853_v3 }
0x1128   :  { %v4881_v5 = vadd.f32 %v16370_v60, %v4867_v4 }
0x112a   :  { %5253 = vrot.lane.b32.xlu2 %v16403_v16, %s17331_s10  ;;  %v4895_v6 = vadd.f32 %v16376_v1, %v4881_v5  ;;  %s17395_s10 = sld [smem:[#allocation44_spill]] }
0x112c   :  { %v4909_v53 = vadd.f32 %v16372_v63, %v4895_v6 }
0x112e   :  { %v4923_v2 = vadd.f32 %v16380_v12, %v4909_v53 }
0x1130   :  { %v4937_v56 = vadd.f32 %v16378_v11, %v4923_v2  ;;  %v14841_v2 = vld [vmem:[%s17368_s26 + $0x1] ss:$0 sm:$0xff]  ;;  %s17383_s26 = sld [smem:[#allocation34_spill]] }
0x1185   :  { %v5378_v24 = vpop.xlane.xlu2 %5377 }
0x1186   :  { %v5379_v25 = vsub.f32 %v5375_v7, %v5378_v24  ;;  %v5311_v26 = vpop.xlane.xlu1 %5310  ;;  %v4951_v7 = vadd.f32 %v16382_v13, %v4937_v56 }
0x1187   :  { %v5312_v30 = vsub.f32 %v5308_v8, %v5311_v26  ;;  %v5244_v32 = vpop.xlane.xlu0 %5243 }
0x1188   :  { %v5380_v35 = vmul.f32 1.442695, %v5379_v25  ;;  %v5245_v45 = vsub.f32 %v5241_v18, %v5244_v32  ;;  %v4965_v42 = vadd.f32 %v16384_v14, %v4951_v7 }
0x1189   :  { %v5313_v36 = vmul.f32 1.442695, %v5312_v30 }
0x118a   :  { %14949 = vpow2.f32 %v5380_v35  ;;  %v5246_v27 = vmul.f32 1.442695, %v5245_v45  ;;  %v4979_v38 = vadd.f32 %v16388_v31, %v4965_v42  ;;  %v4995_v35 = vadd.f32 %v16400_v51, %v16390_v34  ;;  %v14842_v42 = vld [vmem:[%s17369_s1 + $0x1] ss:$0 sm:$0xff]  ;;  %s17384_s1 = sld [smem:[#allocation32_spill]] }
0x118b   :  { %14951 = vpow2.f32 %v5313_v36 }
0x118c   :  { %14953 = vpow2.f32 %v5246_v27  ;;  %v4993_v0 = vadd.f32 %v16398_v41, %v4979_v38  ;;  %v5009_v36 = vadd.f32 %v16434_v59, %v4995_v35 }
0x118d   :  { %v5254_v37 = vpop.permute.xlu2 %5253 }
0x118e   :  { %5274 = vmatpush.msra.mxu2 %v5254_v37  ;;  %v5007_v60 = vadd.f32 %v16430_v57, %v4993_v0  ;;  %v5023_v27 = vadd.f32 %v16432_v58, %v5009_v36 }
0x1190   :  { %v14950_v40 = vpop.eup %14949  ;;  %v5026_v37 = vadd.f32 %v5023_v27, %v16139_v46 }
0x1191   :  { %v14952_v15 = vpop.eup %14951  ;;  %v5382_v33 = vsel %vm360_vm4, %v14950_v40, 0.0 }
0x1192   :  { %v14954_v43 = vpop.eup %14953  ;;  %5383 = vadd.xlane.f32.xlu0 %v5382_v33  ;;  %v5315_v47 = vsel %vm360_vm4, %v14952_v15, 0.0  ;;  %v14302_v33 = vld [vmem:[%s17376_s30] sm:$0xff] }
0x1193   :  { %5316 = vadd.xlane.f32.xlu1 %v5315_v47  ;;  %v5248_v48 = vsel %vm360_vm4, %v14954_v43, 0.0 }
0x1194   :  { %5249 = vadd.xlane.f32.xlu2 %v5248_v48 }
0x1196   :  { %v5445_v21 = vpop.xlane.xlu0 %5444 }
0x1197   :  { %v5446_v49 = vsub.f32 %v5442_v22, %v5445_v21 }
0x1199   :  { %v5447_v50 = vmul.f32 1.442695, %v5446_v49 }
0x119b   :  { %14955 = vpow2.f32 %v5447_v50 }
0x11a1   :  { %v14956_v52 = vpop.eup %14955 }
0x11a2   :  { %v5449_v54 = vsel %vm360_vm4, %v14956_v52, 0.0 }
0x11a3   :  { %5450 = vadd.xlane.f32.xlu1 %v5449_v54 }
0x11a6   :  { %5320 = vrot.lane.b32.xlu0 %v16403_v16, %s17328_s16  ;;  %s17392_s16 = sld [smem:[#allocation40_spill]] }
0x11ac   :  { %5454 = vrot.lane.b32.xlu2 %v16403_v16, %s17330_s18  ;;  %s17394_s18 = sld [smem:[#allocation43_spill]] }
0x11bc   :  { %5387 = vrot.lane.b32.xlu1 %v16403_v16, %s17329_s11  ;;  %v5021_v16 = vadd.f32 %v16428_v55, %v5007_v60  ;;  %s17393_s11 = sld [smem:[#allocation42_spill]] }
0x11be   :  { %v5025_v1 = vadd.f32 %v5021_v16, %v16137_v44  ;;  %v14843_v16 = vld [vmem:[%s17377_s2] ss:$0 sm:$0xff] }
0x11c0   :  { %v5031_v63 = vsel %vm331_vm3, %v5025_v1, 0.0 }
0x11e6   :  { %5032 = vadd.xlane.f32.xlu1 %v5031_v63 }
0x1205   :  { %v5384_v14 = vpop.xlane.xlu0 %5383 }
0x1206   :  { %v5317_v11 = vpop.xlane.xlu1 %5316 }
0x1207   :  { %v5250_v12 = vpop.xlane.xlu2 %5249 }
0x1208   :  { %14957 = vrcp.f32 %v5250_v12 }
0x1209   :  { %14959 = vrcp.f32 %v5317_v11 }
0x120e   :  { %v14958_v8 = vpop.eup %14957 }
0x120f   :  { %v5252_v13 = vmul.f32 %v14958_v8, %v14954_v43  ;;  %v14960_v31 = vpop.eup %14959  ;;  %v5455_v55 = vpop.permute.xlu2 %5454 }
0x1210   :  { %v5319_v57 = vmul.f32 %v14960_v31, %v14952_v15  ;;  %v14303_v15 = vld [vmem:[%s17376_s30 + $0x8] sm:$0xff] }
0x1211   :  { %12194 = vmatmul.msk.f32.vlgmr.msra.gmra.mxu2 %vm360_vm4, %v5252_v13  ;;  %5520 = vmatpush.bf16.msrb.mxu1 %v14303_v15 }
0x1215   :  { %5521 = vmatpush.bf16.msrb.mxu1 %v14302_v33 }
0x1216   :  { %v5451_v41 = vpop.xlane.xlu1 %5450 }
0x1217   :  { %14961 = vrcp.f32 %v5451_v41 }
0x1218   :  { %v5321_v9 = vpop.permute.xlu0 %5320  ;;  %14963 = vrcp.f32 %v5384_v14 }
0x1219   :  { %5341 = vmatpush.msrb.mxu3 %v5321_v9 }
0x121a   :  { %12197 = vmatmul.msk.f32.vlgmr.msrb.gmra.mxu3 %vm360_vm4, %v5319_v57 }
0x121b   :  { %5475 = vmatpush.msra.mxu3 %v5455_v55 }
0x121d   :  { %v14962_v44 = vpop.eup %14961 }
0x121e   :  { %v5453_v18 = vmul.f32 %v14962_v44, %v14956_v52  ;;  %v14964_v29 = vpop.eup %14963 }
0x121f   :  { %v5386_v19 = vmul.f32 %v14964_v29, %v14950_v40  ;;  %v5034_v40 = vsel %vm331_vm3, %v5026_v37, 0.0 }
0x1222   :  { %12203 = vmatmul.msk.f32.vlgmr.msra.gmra.mxu3 %vm360_vm4, %v5453_v18 }
0x122e   :  { %v5388_v20 = vpop.permute.xlu1 %5387 }
0x122f   :  { %5408 = vmatpush.msrb.mxu2 %v5388_v20 }
0x1230   :  { %12200 = vmatmul.msk.f32.vlgmr.msrb.gmra.mxu2 %vm360_vm4, %v5386_v19 }
0x1259   :  { %v5033_v25 = vpop.xlane.xlu1 %5032 }
0x125a   :  { %v5037_v26 = vmul.f32 %v5033_v25, %v15656_v17 }
0x125c   :  { %v5039_v30 = vsub.f32 %v5025_v1, %v5037_v26 }
0x125e   :  { %v5041_v32 = vmul.f32 %v5039_v30, %v5039_v30 }
0x1260   :  { %v5043_v45 = vsel %vm331_vm3, %v5041_v32, 0.0 }
0x1294   :  { %v5276_v23 = vpop.f32.mrf.mxu2 }
0x129d   :  { %v5343_v28 = vpop.f32.mrf.mxu3 }
0x129e   :  { %5481 = vrot.lane.b32.xlu0 %v5343_v28, %s17326_s9 }
0x12a5   :  { %v5477_v22 = vpop.f32.mrf.mxu3 }
0x12a6   :  { %5489 = vrot.lane.b32.xlu0 %v5477_v22, %s17322_s22 }
0x12b3   :  { %v5410_v24 = vpop.f32.mrf.mxu2 }
0x12b4   :  { %5485 = vrot.lane.b32.xlu2 %v5410_v24, %s17324_s15 }
0x12d0   :  { %5044 = vadd.xlane.f32.xlu0 %v5043_v45 }
0x12dd   :  { %5035 = vadd.xlane.f32.xlu2 %v5034_v40 }
0x130e   :  { %v5486_v34 = vpop.permute.xlu2 %5485 }
0x1310   :  { %v5482_v43 = vpop.permute.xlu0 %5481 }
0x1311   :  { %v5492_v47 = vsel %vm360_vm4, %v5276_v23, %v5482_v43  ;;  %v14305_v43 = vld [vmem:[%s17378_s7 + $0x8] sm:$0xff] }
0x1312   :  { %v5493_v48 = vsel %vm396_vm5, %v5492_v47, %v5486_v34  ;;  %5590 = vmatpush.bf16.msra.mxu2 %v14305_v43  ;;  %v14304_v47 = vld [vmem:[%s17378_s7] sm:$0xff] }
0x1316   :  { %5591 = vmatpush.bf16.msra.mxu2 %v14304_v47 }
0x1318   :  { %v5490_v51 = vpop.permute.xlu0 %5489 }
0x1319   :  { %v5494_v59 = vsel %vm782_vm6, %v5493_v48, %v5490_v51 }
0x131a   :  { %v5495_v21 = vpack.c.bf16 %v5494_v59, %v5494_v59 }
0x131c   :  { %12212 = vmatmul.msk.bf16.vlgmr.msrb.gmra.mxu1 %vm331_vm3, %v5495_v21 }
0x1343   :  { %v5045_v46 = vpop.xlane.xlu0 %5044 }
0x1344   :  { %v5049_v58 = vmul.f32 %v5045_v46, %v15656_v17 }
0x1346   :  { %v5051_v49 = vadd.f32 1e-05, %v5049_v58 }
0x1348   :  { %14965 = vrsqrt.f32 %v5051_v49  ;;  %vm5059_vm15 = vweird.f32 %v5051_v49 }
0x134e   :  { %v14966_v50 = vpop.eup %14965 }
0x134f   :  { %v5054_v52 = vmul.f32 %v14966_v50, %v5051_v49  ;;  %vm5060_vm2 = vweird.f32 %v14966_v50 }
0x1350   :  { %v5036_v54 = vpop.xlane.xlu2 %5035  ;;  %vm5061_vm0 = vmor %vm5059_vm15, %vm5060_vm2 }
0x1351   :  { %v5055_v39 = vmul.f32 %v14966_v50, %v5054_v52  ;;  %v5038_v61 = vmul.f32 %v5036_v54, %v15656_v17  ;;  %v14846_v52 = vld [vmem:[%s17379_s0] ss:$0 sm:$0xff] }
0x1353   :  { %v5056_v62 = vmul.f32 0.5, %v5055_v39  ;;  %v5040_v3 = vsub.f32 %v5026_v37, %v5038_v61  ;;  %v14847_v39 = vld [vmem:[%s17380_s23] ss:$0 sm:$0xff] }
0x1355   :  { %v5057_v4 = vsub.f32 1.5, %v5056_v62  ;;  %v5042_v5 = vmul.f32 %v5040_v3, %v5040_v3 }
0x1357   :  { %v5058_v6 = vmul.f32 %v14966_v50, %v5057_v4  ;;  %v5046_v53 = vsel %vm331_vm3, %v5042_v5, 0.0 }
0x1358   :  { %5047 = vadd.xlane.f32.xlu1 %v5046_v53 }
0x1359   :  { %v5062_v56 = vsel %vm5061_vm0, %v14966_v50, %v5058_v6 }
0x135a   :  { %v5073_v7 = vmul.f32 %v5062_v56, %v5039_v30 }
0x135c   :  { %v5078_v38 = vmul.f32 %v14841_v2, %v5073_v7  ;;  %v14306_v7 = vld [vmem:[%s17381_s28] sm:$0xff] }
0x135e   :  { %v5083_v0 = vadd.f32 %v14842_v42, %v5078_v38 }
0x1360   :  { %v5087_v60 = vsel %vm331_vm3, %v5083_v0, 0.0 }
0x1361   :  { %5088 = vadd.xlane.f32.xlu2 %v5087_v60 }
0x1399   :  { %v5523_v1 = vpop.f32.mrf.mxu1 }
0x139a   :  { %v5524_v63 = vadd.f32 %v14843_v16, %v5523_v1 }
0x139c   :  { %v5527_v12 = vadd.f32 %v5524_v63, %v16393_v10 }
0x139e   :  { %v5530_v11 = vsel %vm331_vm3, %v5527_v12, 0.0 }
0x139f   :  { %5531 = vadd.xlane.f32.xlu1 %v5530_v11 }
0x13a1   :  { %v5525_v8 = vpop.f32.mrf.mxu1 }
0x13cb   :  { %v5048_v13 = vpop.xlane.xlu1 %5047 }
0x13cc   :  { %v5050_v14 = vmul.f32 %v5048_v13, %v15656_v17 }
0x13ce   :  { %v5052_v31 = vadd.f32 1e-05, %v5050_v14 }
0x13d0   :  { %14967 = vrsqrt.f32 %v5052_v31  ;;  %vm5069_vm7 = vweird.f32 %v5052_v31 }
0x13d4   :  { %v5089_v41 = vpop.xlane.xlu2 %5088 }
0x13d5   :  { %v5093_v57 = vmul.f32 %v5089_v41, %v15656_v17 }
0x13d6   :  { %v14968_v9 = vpop.eup %14967 }
0x13d7   :  { %v5064_v55 = vmul.f32 %v14968_v9, %v5052_v31  ;;  %v16504_v44 = vsub.f32 %v5083_v0, %v5093_v57  ;;  %vm5070_vm1 = vweird.f32 %v14968_v9  ;;  %v14844_v57 = vld [vmem:[%s17382_s20] ss:$0 sm:$0xff]  ;;  %s17388_s20 = sld [smem:[#allocation39_spill]] }
0x13d8   :  { %vm5071_vm8 = vmor %vm5069_vm7, %vm5070_vm1 }
0x13d9   :  { %v5065_v18 = vmul.f32 %v14968_v9, %v5064_v55  ;;  %v5097_v10 = vmul.f32 %v16504_v44, %v16504_v44 }
0x13db   :  { %v5066_v29 = vmul.f32 0.5, %v5065_v18  ;;  %v5099_v19 = vsel %vm331_vm3, %v5097_v10, 0.0  ;;  %v14845_v10 = vld [vmem:[#allocation2] ss:$0 sm:$0xff] }
0x13dc   :  { %5100 = vadd.xlane.f32.xlu2 %v5099_v19 }
0x13dd   :  { %v5067_v20 = vsub.f32 1.5, %v5066_v29 }
0x13df   :  { %v5068_v28 = vmul.f32 %v14968_v9, %v5067_v20 }
0x13e1   :  { %v5072_v22 = vsel %vm5071_vm8, %v14968_v9, %v5068_v28 }
0x13e2   :  { %v5074_v23 = vmul.f32 %v5072_v22, %v5040_v3 }
0x13e4   :  { %v5079_v24 = vmul.f32 %v14841_v2, %v5074_v23  ;;  %v14307_v2 = vld [vmem:[%s17381_s28 + $0x8] sm:$0xff] }
0x13e5   :  { %5627 = vmatpush.bf16.msrb.mxu0 %v14307_v2 }
0x13e6   :  { %v5084_v25 = vadd.f32 %v14842_v42, %v5079_v24 }
0x13e8   :  { %v5090_v26 = vsel %vm331_vm3, %v5084_v25, 0.0 }
0x13e9   :  { %5091 = vadd.xlane.f32.xlu0 %v5090_v26  ;;  %5628 = vmatpush.bf16.msrb.mxu0 %v14306_v7 }
0x1412   :  { %v5532_v30 = vpop.xlane.xlu1 %5531 }
0x1413   :  { %v5533_v32 = vmul.f32 %v5532_v30, %v15656_v17 }
0x1415   :  { %v5534_v35 = vsub.f32 %v5527_v12, %v5533_v32  ;;  %v14848_v32 = vld [vmem:[%s17384_s1] ss:$0 sm:$0xff] }
0x1417   :  { %v5535_v45 = vmul.f32 %v5534_v35, %v5534_v35 }
0x1419   :  { %v5536_v36 = vsel %vm331_vm3, %v5535_v45, 0.0 }
0x141a   :  { %5537 = vadd.xlane.f32.xlu1 %v5536_v36 }
0x144f   :  { %v5101_v5 = vpop.xlane.xlu2 %5100 }
0x1450   :  { %v5105_v6 = vmul.f32 %v5101_v5, %v15656_v17 }
0x1452   :  { %v5107_v53 = vadd.f32 1e-05, %v5105_v6 }
0x1454   :  { %vm5115_vm13 = vweird.f32 %v5107_v53 }
0x145c   :  { %v5092_v27 = vpop.xlane.xlu0 %5091 }
0x145d   :  { %v5094_v37 = vmul.f32 %v5092_v27, %v15656_v17 }
0x145f   :  { %v16513_v40 = vsub.f32 %v5084_v25, %v5094_v37 }
0x1461   :  { %v5098_v15 = vmul.f32 %v16513_v40, %v16513_v40 }
0x1463   :  { %v5102_v33 = vsel %vm331_vm3, %v5098_v15, 0.0 }
0x1464   :  { %5103 = vadd.xlane.f32.xlu0 %v5102_v33 }
0x148d   :  { %v5538_v34 = vpop.xlane.xlu1 %5537 }
0x148e   :  { %v5539_v51 = vmul.f32 %v5538_v34, %v15656_v17 }
0x1490   :  { %v5540_v48 = vadd.f32 1e-05, %v5539_v51 }
0x1492   :  { %14969 = vrsqrt.f32 %v5540_v48  ;;  %vm5547_vm10 = vweird.f32 %v5540_v48 }
0x1493   :  { %14971 = vrsqrt.f32 %v5107_v53 }
0x1498   :  { %v14970_v59 = vpop.eup %14969 }
0x1499   :  { %v5542_v21 = vmul.f32 %v14970_v59, %v5540_v48  ;;  %vm5548_vm9 = vweird.f32 %v14970_v59  ;;  %v14972_v56 = vpop.eup %14971 }
0x149a   :  { %vm5549_vm11 = vmor %vm5547_vm10, %vm5548_vm9  ;;  %v5110_v42 = vmul.f32 %v14972_v56, %v5107_v53  ;;  %vm5116_vm12 = vweird.f32 %v14972_v56 }
0x149b   :  { %v5543_v46 = vmul.f32 %v14970_v59, %v5542_v21  ;;  %vm5117_vm14 = vmor %vm5115_vm13, %vm5116_vm12  ;;  %v5170_v21 = vld [vmem:[%s17385_s25] sm:$0xff] }
0x149c   :  { %v5111_v38 = vmul.f32 %v14972_v56, %v5110_v42 }
0x149d   :  { %v5544_v58 = vmul.f32 0.5, %v5543_v46 }
0x149e   :  { %v5112_v1 = vmul.f32 0.5, %v5111_v38 }
0x149f   :  { %v5545_v49 = vsub.f32 1.5, %v5544_v58 }
0x14a0   :  { %v5113_v63 = vsub.f32 1.5, %v5112_v1 }
0x14a1   :  { %v5546_v50 = vmul.f32 %v14970_v59, %v5545_v49 }
0x14a2   :  { %v5114_v11 = vmul.f32 %v14972_v56, %v5113_v63 }
0x14a3   :  { %v5550_v54 = vsel %vm5549_vm11, %v14970_v59, %v5546_v50 }
0x14a4   :  { %v5551_v61 = vmul.f32 %v5550_v54, %v5534_v35  ;;  %v5118_v14 = vsel %vm5117_vm14, %v14972_v56, %v5114_v11 }
0x14a5   :  { %v5129_v9 = vmul.f32 %v5118_v14, %v16504_v44  ;;  %v14849_v44 = vld [vmem:[%s17383_s26] ss:$0 sm:$0xff] }
0x14a6   :  { %v5555_v62 = vmul.f32 %v14846_v52, %v5551_v61 }
0x14a7   :  { %v5134_v29 = vmul.f32 %v14844_v57, %v5129_v9 }
0x14a8   :  { %v16523_v3 = vadd.f32 %v14847_v39, %v5555_v62 }
0x14a9   :  { %v5139_v28 = vadd.f32 %v14845_v10, %v5134_v29 }
0x14aa   :  { %v5564_v4 = vpack.c.bf16 %v16523_v3, %v16523_v3 }
0x14ac   :  { %12221 = vmatmul.msk.bf16.vlgmr.msra.gmra.mxu2 %vm331_vm3, %v5564_v4 }
0x14d7   :  { %v5104_v0 = vpop.xlane.xlu0 %5103 }
0x14d8   :  { %v5106_v60 = vmul.f32 %v5104_v0, %v15656_v17 }
0x14da   :  { %v5108_v16 = vadd.f32 1e-05, %v5106_v60 }
0x14dc   :  { %14973 = vrsqrt.f32 %v5108_v16  ;;  %vm5125_vm15 = vweird.f32 %v5108_v16 }
0x14e2   :  { %v14974_v12 = vpop.eup %14973 }
0x14e3   :  { %v5120_v8 = vmul.f32 %v14974_v12, %v5108_v16  ;;  %vm5126_vm2 = vweird.f32 %v14974_v12 }
0x14e4   :  { %vm5127_vm0 = vmor %vm5125_vm15, %vm5126_vm2 }
0x14e5   :  { %v5121_v13 = vmul.f32 %v14974_v12, %v5120_v8 }
0x14e7   :  { %v5122_v31 = vmul.f32 0.5, %v5121_v13 }
0x14e9   :  { %v5123_v41 = vsub.f32 1.5, %v5122_v31 }
0x14eb   :  { %v5124_v55 = vmul.f32 %v14974_v12, %v5123_v41 }
0x14ed   :  { %v5128_v18 = vsel %vm5127_vm0, %v14974_v12, %v5124_v55 }
0x14ee   :  { %v5130_v19 = vmul.f32 %v5128_v18, %v16513_v40 }
0x14f0   :  { %v5135_v20 = vmul.f32 %v14844_v57, %v5130_v19 }
0x14f2   :  { %v5140_v22 = vadd.f32 %v14845_v10, %v5135_v20 }
0x14f4   :  { %v16535_v23 = vpack.c.bf16 %v5140_v22, %v5139_v28 }
0x14f6   :  { %12230 = vmatmul.msk.bf16.vlgmr.msrb.gmra.mxu0 %vm331_vm3, %v16535_v23 }
0x152f   :  { %v5593_v24 = vpop.f32.mrf.mxu2 }
0x1530   :  { %v5594_v36 = vadd.f32 %v14848_v32, %v5593_v24 }
0x1537   :  { %v5595_v25 = vpop.f32.mrf.mxu2 }
0x1573   :  { %v5630_v26 = vpop.f32.mrf.mxu0 }
0x1574   :  { %v5631_v30 = vadd.f32 %v14849_v44, %v5630_v26 }
0x1576   :  { %5713 = vrot.lane.b32.xlu0 %v5631_v30, %s15220_s5  ;;  %5787 = vrot.lane.b32.xlu1 %v5631_v30, %s15223_s21 }
0x157b   :  { %v5632_v35 = vpop.f32.mrf.mxu0 }
0x157c   :  { %v5633_v45 = vadd.f32 %v14849_v44, %v5632_v35 }
0x157e   :  { %5715 = vrot.lane.b32.xlu2 %v5633_v45, %s15220_s5  ;;  %12231 = vmatpush.xpose.msk.msrb.mxu3 %vm360_vm4, %v5633_v45  ;;  %v16545_v27 = vpack.i.bf16 %v5631_v30, %v5633_v45 }
0x157f   :  { %5789 = vrot.lane.b32.xlu0 %v5633_v45, %s15223_s21  ;;  %5711 = vrot.lane.b32.xlu1 %v5594_v36, %s15220_s5 }
0x1582   :  { %12232 = vmatpush.xpose.msk.msrb.mxu3 %vm360_vm4, %v5631_v30 }
0x1585   :  { %12233 = vmatmul.msk.f32.vlgmr.msrb.gmra.mxu3 %vm360_vm4, %v5594_v36 }
0x1586   :  { %5863 = vrot.lane.b32.xlu2 %v5633_v45, %s15226_s4 }
0x1587   :  { %5861 = vrot.lane.b32.xlu0 %v5631_v30, %s15226_s4  ;;  %5859 = vrot.lane.b32.xlu1 %v5594_v36, %s15226_s4 }
0x158e   :  { %5785 = vrot.lane.b32.xlu2 %v5594_v36, %s15223_s21 }
0x15d8   :  { %v5716_v37 = vpop.permute.xlu2 %5715 }
0x15d9   :  { %12235 = vmatpush.xpose.msk.msra.mxu1 %vm360_vm4, %v5716_v37 }
0x15e0   :  { %v5864_v15 = vpop.permute.xlu2 %5863 }
0x15e8   :  { %v5714_v40 = vpop.permute.xlu0 %5713  ;;  %v5788_v33 = vpop.permute.xlu1 %5787 }
0x15e9   :  { %12236 = vmatpush.xpose.msk.msra.mxu1 %vm360_vm4, %v5714_v40  ;;  %v5786_v34 = vpop.permute.xlu2 %5785 }
0x15ed   :  { %12243 = vmatpush.xpose.msk.msrb.mxu1 %vm360_vm4, %v5864_v15 }
0x15f1   :  { %v5790_v43 = vpop.permute.xlu0 %5789  ;;  %v5712_v47 = vpop.permute.xlu1 %5711 }
0x15f2   :  { %12237 = vmatmul.msk.f32.vlgmr.msra.gmra.mxu1 %vm360_vm4, %v5712_v47  ;;  %12239 = vmatpush.xpose.msk.msra.mxu0 %vm360_vm4, %v5790_v43 }
0x15f6   :  { %12240 = vmatpush.xpose.msk.msra.mxu0 %vm360_vm4, %v5788_v33 }
0x15f9   :  { %v5862_v51 = vpop.permute.xlu0 %5861  ;;  %12241 = vmatmul.msk.f32.vlgmr.msra.gmra.mxu0 %vm360_vm4, %v5786_v34  ;;  %v5860_v48 = vpop.permute.xlu1 %5859 }
0x15fa   :  { %12244 = vmatpush.xpose.msk.msrb.mxu1 %vm360_vm4, %v5862_v51 }
0x15fd   :  { %12245 = vmatmul.msk.f32.vlgmr.msrb.gmra.mxu1 %vm360_vm4, %v5860_v48 }
0x1608   :  { %v5666_v59 = vpop.f32.mrf.mxu3 }
0x1609   :  { %v5669_v46 = vmul.f32 0.35355338, %v5666_v59 }
0x160b   :  { %v5670_v58 = vadd.f32 %v5669_v46, %v5170_v21 }
0x160d   :  { %v5671_v49 = vsel %vm396_vm5, %v5670_v58, -inf }
0x160e   :  { %5672 = vmax.xlane.f32.xlu0 %v5671_v49  ;;  %v14309_v49 = vld [vmem:[%s17386_s29 + $0x8] sm:$0xff] }
0x160f   :  { %5973 = vmatpush.bf16.msrb.mxu0 %v14309_v49 }
0x166f   :  { %v5740_v50 = vpop.f32.mrf.mxu1 }
0x1670   :  { %v5743_v52 = vmul.f32 0.35355338, %v5740_v50  ;;  %v14308_v50 = vld [vmem:[%s17386_s29] sm:$0xff] }
0x1671   :  { %5974 = vmatpush.bf16.msrb.mxu0 %v14308_v50  ;;  %v12276_v50 = vld [vmem:[%s17388_s20 + $0x50] sm:$0xf0] }
0x1672   :  { %v5744_v54 = vadd.f32 %v5743_v52, %v5170_v21 }
0x1674   :  { %v5745_v39 = vsel %vm396_vm5, %v5744_v54, -inf }
0x1675   :  { %5746 = vmax.xlane.f32.xlu2 %v5745_v39 }
0x1676   :  { %v5814_v61 = vpop.f32.mrf.mxu0 }
0x1677   :  { %v5817_v62 = vmul.f32 0.35355338, %v5814_v61 }
0x1679   :  { %v5818_v4 = vadd.f32 %v5817_v62, %v5170_v21 }
0x167a   :  { %v5888_v5 = vpop.f32.mrf.mxu1 }
0x167b   :  { %v5891_v6 = vmul.f32 0.35355338, %v5888_v5  ;;  %v5819_v53 = vsel %vm396_vm5, %v5818_v4, -inf }
0x167c   :  { %5820 = vmax.xlane.f32.xlu1 %v5819_v53 }
0x167d   :  { %v5892_v2 = vadd.f32 %v5891_v6, %v5170_v21  ;;  %v14850_v6 = vld [vmem:[%s17387_s8] ss:$0 sm:$0xff] }
0x167f   :  { %v5893_v56 = vsel %vm396_vm5, %v5892_v2, -inf }
0x1680   :  { %5894 = vmax.xlane.f32.xlu0 %v5893_v56 }
0x1681   :  { %v5673_v7 = vpop.xlane.xlu0 %5672 }
0x1682   :  { %v5674_v42 = vsub.f32 %v5670_v58, %v5673_v7 }
0x1684   :  { %v5675_v38 = vmul.f32 1.442695, %v5674_v42 }
0x1686   :  { %14975 = vpow2.f32 %v5675_v38 }
0x168c   :  { %v14976_v0 = vpop.eup %14975 }
0x168d   :  { %v5677_v60 = vsel %vm396_vm5, %v14976_v0, 0.0 }
0x168e   :  { %5678 = vadd.xlane.f32.xlu2 %v5677_v60 }
0x1694   :  { %14787 = vrot.lane.b32.xlu0 %v16545_v27, %s15222_s17 }
0x169c   :  { %14797 = vrot.lane.b32.xlu0 %v16545_v27, %s15224_s12 }
0x16a6   :  { %14792 = vrot.lane.b32.xlu2 %v16545_v27, %s15221_s13 }
0x16e8   :  { %v5747_v16 = vpop.xlane.xlu2 %5746 }
0x16e9   :  { %v5748_v1 = vsub.f32 %v5744_v54, %v5747_v16 }
0x16eb   :  { %v5749_v63 = vmul.f32 1.442695, %v5748_v1 }
0x16ed   :  { %14977 = vpow2.f32 %v5749_v63  ;;  %v14334_v63 = vld [vmem:[%s17388_s20 + $0xbc] sm:$0xf0] }
0x16ef   :  { %v5821_v12 = vpop.xlane.xlu1 %5820 }
0x16f0   :  { %v5822_v11 = vsub.f32 %v5818_v4, %v5821_v12  ;;  %v14326_v12 = vld [vmem:[%s17388_s20 + $0x84] sm:$0xf] }
0x16f2   :  { %v5823_v8 = vmul.f32 1.442695, %v5822_v11 }
0x16f3   :  { %v14978_v13 = vpop.eup %14977  ;;  %v5895_v14 = vpop.xlane.xlu0 %5894 }
0x16f4   :  { %14979 = vpow2.f32 %v5823_v8  ;;  %v5896_v31 = vsub.f32 %v5892_v2, %v5895_v14  ;;  %v5751_v41 = vsel %vm396_vm5, %v14978_v13, 0.0  ;;  %v12324_v8 = vld [vmem:[%s17388_s20 + $0xc0] sm:$0xf0]  ;;  %v14335_v14 = vld [vmem:[%s17388_s20 + $0xc4] sm:$0xf0] }
0x16f5   :  { %5752 = vadd.xlane.f32.xlu1 %v5751_v41 }
0x16f6   :  { %v5897_v57 = vmul.f32 1.442695, %v5896_v31  ;;  %v12327_v31 = vor.u32 %v14326_v12, %v12324_v8  ;;  %v14338_v12 = vld [vmem:[%s17388_s20 + $0xdc] sm:$0xf0]  ;;  %v12356_v8 = vld [vmem:[%s17388_s20 + $0xe0] sm:$0xf0] }
0x16f8   :  { %14981 = vpow2.f32 %v5897_v57  ;;  %v14327_v57 = vld [vmem:[%s17388_s20 + $0x8c] sm:$0xf]  ;;  %6521 = vmatpush.bf16.msra.mxu1 %v12327_v31  ;;  %v14339_v31 = vld [vmem:[%s17388_s20 + $0xe4] sm:$0xf0] }
0x16fa   :  { %v14980_v9 = vpop.eup %14979 }
0x16fb   :  { %v5825_v55 = vsel %vm396_vm5, %v14980_v9, 0.0 }
0x16fd   :  { %5826 = vadd.xlane.f32.xlu1 %v5825_v55 }
0x16fe   :  { %v14982_v18 = vpop.eup %14981 }
0x16ff   :  { %v5899_v29 = vsel %vm396_vm5, %v14982_v18, 0.0 }
0x1701   :  { %v5679_v10 = vpop.xlane.xlu2 %5678 }
0x1702   :  { %14983 = vrcp.f32 %v5679_v10  ;;  %v14318_v10 = vld [vmem:[%s17388_s20 + $0x3c] sm:$0xf0] }
0x1705   :  { %5900 = vadd.xlane.f32.xlu1 %v5899_v29  ;;  %v14310_v29 = vld [vmem:[%s17388_s20 + $0x4] sm:$0xf] }
0x1706   :  { %v14788_v19 = vpop.permute.xlu0 %14787 }
0x1707   :  { %v14789_v20 = vunpack.i.l.bf16 %v14788_v19  ;;  %v14790_v24 = vunpack.i.h.bf16 %v14788_v19 }
0x1708   :  { %v14984_v28 = vpop.eup %14983 }
0x1709   :  { %v5681_v22 = vmul.f32 %v14984_v28, %v14976_v0  ;;  %5705 = vmatpush.msra.mxu3 %v14789_v20  ;;  %v14793_v25 = vpop.permute.xlu2 %14792  ;;  %v12260_v20 = vld [vmem:[%s17388_s20 + $0x40] sm:$0xf0]  ;;  %v12266_v28 = vld [vmem:[%s17388_s20 + $0x8] sm:$0xf] }
0x170a   :  { %v14794_v44 = vunpack.i.l.bf16 %v14793_v25  ;;  %v14795_v26 = vunpack.i.h.bf16 %v14793_v25 }
0x170b   :  { %5706 = vmatpush.msra.mxu3 %v14790_v24  ;;  %v12263_v24 = vor.u32 %v14310_v29, %v12260_v20  ;;  %v14314_v20 = vld [vmem:[%s17388_s20 + $0x24] sm:$0xf] }
0x170c   :  { %12234 = vmatmul.msk.f32.vlgmr.msra.gmra.mxu3 %vm396_vm5, %v5681_v22  ;;  %5779 = vmatpush.msrb.mxu2 %v14794_v44  ;;  %v14319_v22 = vld [vmem:[%s17388_s20 + $0x44] sm:$0xf0]  ;;  %v14311_v44 = vld [vmem:[%s17388_s20 + $0xc] sm:$0xf] }
0x170d   :  { %v12267_v25 = vor.u32 %v14319_v22, %v12266_v28  ;;  %6522 = vmatpush.bf16.msra.mxu1 %v12263_v24  ;;  %v12292_v28 = vld [vmem:[%s17388_s20 + $0x60] sm:$0xf0]  ;;  %v12298_v22 = vld [vmem:[%s17388_s20 + $0x28] sm:$0xf] }
0x170e   :  { %v14798_v30 = vpop.permute.xlu0 %14797  ;;  %5780 = vmatpush.msrb.mxu2 %v14795_v26  ;;  %v12268_v26 = vld [vmem:[%s17388_s20 + $0x48] sm:$0xf0]  ;;  %v14323_v24 = vld [vmem:[%s17388_s20 + $0x64] sm:$0xf0] }
0x170f   :  { %v14799_v32 = vunpack.i.l.bf16 %v14798_v30  ;;  %v14800_v35 = vunpack.i.h.bf16 %v14798_v30  ;;  %v12271_v30 = vor.u32 %v14311_v44, %v12268_v26  ;;  %v12300_v44 = vld [vmem:[%s17388_s20 + $0x68] sm:$0xf0] }
0x1711   :  { %5853 = vmatpush.msrb.mxu3 %v14799_v32 }
0x1713   :  { %5854 = vmatpush.msrb.mxu3 %v14800_v35  ;;  %v12338_v35 = vld [vmem:[%s17388_s20 + $0x90] sm:$0xf] }
0x171e   :  { %14802 = vrot.lane.b32.xlu1 %v16545_v27, %s15225_s27 }
0x1768   :  { %v5753_v45 = vpop.xlane.xlu1 %5752 }
0x1769   :  { %14985 = vrcp.f32 %v5753_v45  ;;  %v14336_v45 = vld [vmem:[%s17388_s20 + $0xcc] sm:$0xf0] }
0x176f   :  { %v14986_v36 = vpop.eup %14985 }
0x1770   :  { %v5755_v37 = vmul.f32 %v14986_v36, %v14978_v13  ;;  %v5827_v40 = vpop.xlane.xlu1 %5826  ;;  %v12330_v13 = vld [vmem:[%s17388_s20 + $0x88] sm:$0xf]  ;;  %v14328_v36 = vld [vmem:[%s17388_s20 + $0x94] sm:$0xf] }
0x1771   :  { %14987 = vrcp.f32 %v5827_v40  ;;  %v12331_v41 = vor.u32 %v14335_v14, %v12330_v13  ;;  %v12339_v40 = vor.u32 %v14336_v45, %v12338_v35  ;;  %v12362_v13 = vld [vmem:[%s17388_s20 + $0xa8] sm:$0xf]  ;;  %v12370_v45 = vld [vmem:[%s17388_s20 + $0xb0] sm:$0xf] }
0x1772   :  { %12238 = vmatmul.msk.f32.vlgmr.msrb.gmra.mxu2 %vm396_vm5, %v5755_v37  ;;  %v12363_v29 = vor.u32 %v14339_v31, %v12362_v13 }
0x1777   :  { %v14988_v15 = vpop.eup %14987 }
0x1778   :  { %v5829_v33 = vmul.f32 %v14988_v15, %v14980_v9  ;;  %v5901_v43 = vpop.xlane.xlu1 %5900  ;;  %v12332_v9 = vld [vmem:[%s17388_s20 + $0xc8] sm:$0xf0]  ;;  %v12340_v15 = vld [vmem:[%s17388_s20 + $0xd0] sm:$0xf0] }
0x1779   :  { %14989 = vrcp.f32 %v5901_v43  ;;  %v12335_v55 = vor.u32 %v14327_v57, %v12332_v9  ;;  %v14337_v43 = vld [vmem:[%s17388_s20 + $0xd4] sm:$0xf0]  ;;  %v12364_v57 = vld [vmem:[%s17388_s20 + $0xe8] sm:$0xf0] }
0x177a   :  { %12242 = vmatmul.msk.f32.vlgmr.msrb.gmra.mxu3 %vm396_vm5, %v5829_v33  ;;  %v12346_v33 = vld [vmem:[%s17388_s20 + $0x98] sm:$0xf] }
0x177b   :  { %6547 = vmatpush.bf16.msra.mxu0 %v12335_v55 }
0x177f   :  { %v14990_v34 = vpop.eup %14989  ;;  %6548 = vmatpush.bf16.msra.mxu0 %v12271_v30  ;;  %v12295_v30 = vor.u32 %v14314_v20, %v12292_v28 }
0x1780   :  { %v5903_v48 = vmul.f32 %v14990_v34, %v14982_v18  ;;  %v12258_v18 = vld [vmem:[%s17388_s20] sm:$0xf]  ;;  %v12347_v34 = vor.u32 %v14337_v43, %v12346_v33  ;;  %v14341_v33 = vld [vmem:[%s17388_s20 + $0xf4] sm:$0xf0]  ;;  %v14333_v43 = vld [vmem:[%s17388_s20 + $0xbc] sm:$0xf] }
0x1781   :  { %v12259_v19 = vor.u32 %v14318_v10, %v12258_v18  ;;  %v12290_v18 = vld [vmem:[%s17388_s20 + $0x20] sm:$0xf] }
0x1782   :  { %v14322_v10 = vld [vmem:[%s17388_s20 + $0x5c] sm:$0xf0] }
0x1783   :  { %v12291_v26 = vor.u32 %v14322_v10, %v12290_v18 }
0x178f   :  { %v5708_v59 = vpop.f32.mrf.mxu3 }
0x1790   :  { %v14803_v47 = vpop.permute.xlu1 %14802 }
0x1791   :  { %v14804_v51 = vunpack.i.l.bf16 %v14803_v47  ;;  %v14805_v27 = vunpack.i.h.bf16 %v14803_v47  ;;  %v12343_v47 = vor.u32 %v14328_v36, %v12340_v15  ;;  %v14340_v36 = vld [vmem:[%s17388_s20 + $0xec] sm:$0xf0]  ;;  %v12378_v15 = vld [vmem:[%s17388_s20 + $0xb8] sm:$0xf] }
0x1793   :  { %5927 = vmatpush.msra.mxu2 %v14804_v51  ;;  %v14329_v51 = vld [vmem:[%s17388_s20 + $0x9c] sm:$0xf]  ;;  %6573 = vmatpush.bf16.msrb.mxu1 %v12343_v47 }
0x1794   :  { %v12380_v47 = vld [vmem:[%s17388_s20 + $0xf8] sm:$0xf0] }
0x1795   :  { %5928 = vmatpush.msra.mxu2 %v14805_v27  ;;  %v12348_v27 = vld [vmem:[%s17388_s20 + $0xd8] sm:$0xf0] }
0x1796   :  { %12246 = vmatmul.msk.f32.vlgmr.msra.gmra.mxu2 %vm396_vm5, %v5903_v48  ;;  %v12274_v48 = vld [vmem:[%s17388_s20 + $0x10] sm:$0xf] }
0x1797   :  { %6534 = vmatpush.bf16.msrb.mxu2 %v12331_v41  ;;  %v14331_v41 = vld [vmem:[%s17388_s20 + $0xac] sm:$0xf] }
0x179b   :  { %6535 = vmatpush.bf16.msrb.mxu2 %v12267_v25  ;;  %v14315_v25 = vld [vmem:[%s17388_s20 + $0x2c] sm:$0xf] }
0x179c   :  { %v12303_v35 = vor.u32 %v14315_v25, %v12300_v44 }
0x179f   :  { %6586 = vmatpush.bf16.msra.mxu2 %v12347_v34  ;;  %v12371_v34 = vor.u32 %v14340_v36, %v12370_v45 }
0x17f5   :  { %v5782_v21 = vpop.f32.mrf.mxu2 }
0x17f6   :  { %5934 = vrot.lane.b32.xlu2 %v5782_v21, %s17326_s9  ;;  %v12351_v21 = vor.u32 %v14329_v51, %v12348_v27  ;;  %v12306_v27 = vld [vmem:[%s17388_s20 + $0x30] sm:$0xf]  ;;  %s17391_s9 = sld [smem:[#allocation41_spill]] }
0x17fc   :  { %v14353_v13 = vld [vmem:[%s17391_s9 + $0x58] sm:$0xff]  ;;  %v14344_v18 = vld [vmem:[%s17391_s9 + $0x10] sm:$0xff]  ;;  %v14359_v20 = vld [vmem:[%s17391_s9 + $0x88] sm:$0xff] }
0x17fd   :  { %v5856_v46 = vpop.f32.mrf.mxu3  ;;  %v14369_v31 = vld [vmem:[%s17391_s9 + $0xd8] sm:$0xff]  ;;  %v14360_v10 = vld [vmem:[%s17391_s9 + $0x90] sm:$0xff]  ;;  %v14350_v28 = vld [vmem:[%s17391_s9 + $0x40] sm:$0xff] }
0x17fe   :  { %5938 = vrot.lane.b32.xlu0 %v5856_v46, %s17324_s15  ;;  %v14320_v46 = vld [vmem:[%s17388_s20 + $0x4c] sm:$0xf0]  ;;  %s17390_s15 = sld [smem:[#allocation38_spill]]  ;;  %v14405_v25 = vld [vmem:[%s17391_s9 + $0x1f8] sm:$0xff]  ;;  %v14342_v44 = vld [vmem:[%s17391_s9] sm:$0xff] }
0x17ff   :  { %v12275_v49 = vor.u32 %v14320_v46, %v12274_v48  ;;  %v14324_v48 = vld [vmem:[%s17388_s20 + $0x6c] sm:$0xf0]  ;;  %v14316_v46 = vld [vmem:[%s17388_s20 + $0x34] sm:$0xf] }
0x1800   :  { %v14404_v45 = vld [vmem:[%s17391_s9 + $0x1f0] sm:$0xff] }
0x1801   :  { %v14380_v36 = vld [vmem:[%s17391_s9 + $0x130] sm:$0xff] }
0x1819   :  { %v5930_v58 = vpop.f32.mrf.mxu2 }
0x181a   :  { %5942 = vrot.lane.b32.xlu2 %v5930_v58, %s17322_s22  ;;  %v14312_v58 = vld [vmem:[%s17388_s20 + $0x14] sm:$0xf]  ;;  %s17389_s22 = sld [smem:[#allocation37_spill]] }
0x1850   :  { %v5935_v52 = vpop.permute.xlu2 %5934 }
0x1851   :  { %v5945_v39 = vsel %vm360_vm4, %v5708_v59, %v5935_v52  ;;  %v12282_v52 = vld [vmem:[%s17388_s20 + $0x18] sm:$0xf] }
0x1870   :  { %v5939_v54 = vpop.permute.xlu0 %5938 }
0x1871   :  { %v5946_v61 = vsel %vm396_vm5, %v5945_v39, %v5939_v54  ;;  %v14321_v54 = vld [vmem:[%s17388_s20 + $0x54] sm:$0xf0]  ;;  %v12279_v39 = vor.u32 %v14312_v58, %v12276_v50  ;;  %v12308_v58 = vld [vmem:[%s17388_s20 + $0x70] sm:$0xf0] }
0x1872   :  { %v14325_v50 = vld [vmem:[%s17388_s20 + $0x74] sm:$0xf0] }
0x1873   :  { %6574 = vmatpush.bf16.msrb.mxu1 %v12279_v39  ;;  %v12307_v39 = vor.u32 %v14324_v48, %v12306_v27  ;;  %v14394_v27 = vld [vmem:[%s17391_s9 + $0x1a0] sm:$0xff]  ;;  %v14385_v48 = vld [vmem:[%s17391_s9 + $0x158] sm:$0xff] }
0x1874   :  { %v5943_v62 = vpop.permute.xlu2 %5942 }
0x1875   :  { %v5947_v4 = vsel %vm782_vm6, %v5946_v61, %v5943_v62  ;;  %v12283_v61 = vor.u32 %v14321_v54, %v12282_v52  ;;  %v14313_v62 = vld [vmem:[%s17388_s20 + $0x1c] sm:$0xf] }
0x1876   :  { %v5948_v5 = vpack.c.bf16 %v5947_v4, %v5947_v4  ;;  %v12284_v4 = vld [vmem:[%s17388_s20 + $0x58] sm:$0xf0] }
0x1877   :  { %6587 = vmatpush.bf16.msra.mxu2 %v12283_v61  ;;  %v14317_v52 = vld [vmem:[%s17388_s20 + $0x3c] sm:$0xf]  ;;  %v12311_v61 = vor.u32 %v14316_v46, %v12308_v58  ;;  %v14400_v46 = vld [vmem:[%s17391_s9 + $0x1d0] sm:$0xff] }
0x1878   :  { %12255 = vmatmul.msk.bf16.vlgmr.msrb.gmra.mxu0 %vm331_vm3, %v5948_v5  ;;  %v12287_v5 = vor.u32 %v14313_v62, %v12284_v4  ;;  %v12316_v54 = vld [vmem:[%s17388_s20 + $0x78] sm:$0xf0] }
0x1879   :  { %6599 = vmatpush.bf16.msrb.mxu0 %v12351_v21  ;;  %v12383_v21 = vor.u32 %v14333_v43, %v12380_v47  ;;  %v12319_v4 = vor.u32 %v14317_v52, %v12316_v54  ;;  %v14395_v43 = vld [vmem:[%s17391_s9 + $0x1a8] sm:$0xff]  ;;  %v14386_v47 = vld [vmem:[%s17391_s9 + $0x160] sm:$0xff]  ;;  %v14377_v58 = vld [vmem:[%s17391_s9 + $0x118] sm:$0xff] }
0x187a   :  { %v14399_v52 = vld [vmem:[%s17391_s9 + $0x1c8] sm:$0xff]  ;;  %v14376_v54 = vld [vmem:[%s17391_s9 + $0x110] sm:$0xff] }
0x187d   :  { %6600 = vmatpush.bf16.msrb.mxu0 %v12287_v5  ;;  %v14357_v5 = vld [vmem:[%s17391_s9 + $0x78] sm:$0xff] }
0x18f5   :  { %v5976_v53 = vpop.f32.mrf.mxu0 }
0x18f6   :  { %v5977_v2 = vadd.f32 %v14850_v6, %v5976_v53 }
0x18f8   :  { %v5980_v56 = vadd.f32 %v5977_v2, %v16523_v3  ;;  %v12322_v3 = vld [vmem:[%s17388_s20 + $0x80] sm:$0xf] }
0x18f9   :  { %v12323_v11 = vor.u32 %v14334_v63, %v12322_v3  ;;  %v12354_v63 = vld [vmem:[%s17388_s20 + $0xa0] sm:$0xf] }
0x18fa   :  { %v5983_v7 = vsel %vm331_vm3, %v5980_v56, 0.0  ;;  %v12355_v9 = vor.u32 %v14338_v12, %v12354_v63  ;;  %v14354_v63 = vld [vmem:[%s17391_s9 + $0x60] sm:$0xff] }
0x18fb   :  { %5984 = vadd.xlane.f32.xlu0 %v5983_v7  ;;  %6508 = vmatpush.bf16.msra.mxu3 %v12323_v11  ;;  %v14330_v11 = vld [vmem:[%s17388_s20 + $0xa4] sm:$0xf] }
0x18fc   :  { %v12359_v55 = vor.u32 %v14330_v11, %v12356_v8  ;;  %v14370_v12 = vld [vmem:[%s17391_s9 + $0xe0] sm:$0xff] }
0x18fd   :  { %v5978_v42 = vpop.f32.mrf.mxu0  ;;  %v14346_v11 = vld [vmem:[%s17391_s9 + $0x20] sm:$0xff] }
0x18fe   :  { %v14362_v8 = vld [vmem:[%s17391_s9 + $0xa0] sm:$0xff] }
0x18ff   :  { %6509 = vmatpush.bf16.msra.mxu3 %v12259_v19  ;;  %v12367_v19 = vor.u32 %v14331_v41, %v12364_v57  ;;  %v14345_v41 = vld [vmem:[%s17391_s9 + $0x18] sm:$0xff] }
0x1900   :  { %v14361_v57 = vld [vmem:[%s17391_s9 + $0x98] sm:$0xff] }
0x1903   :  { %6560 = vmatpush.bf16.msrb.mxu3 %v12339_v40  ;;  %v12372_v40 = vld [vmem:[%s17388_s20 + $0xf0] sm:$0xf0] }
0x1907   :  { %6561 = vmatpush.bf16.msrb.mxu3 %v12275_v49  ;;  %v12314_v49 = vld [vmem:[%s17388_s20 + $0x38] sm:$0xf] }
0x1908   :  { %v12315_v62 = vor.u32 %v14325_v50, %v12314_v49  ;;  %v14393_v49 = vld [vmem:[%s17391_s9 + $0x198] sm:$0xff]  ;;  %v14383_v50 = vld [vmem:[%s17391_s9 + $0x148] sm:$0xff] }
0x196e   :  { %v5985_v38 = vpop.xlane.xlu0 %5984 }
0x196f   :  { %v5986_v0 = vmul.f32 %v5985_v38, %v15656_v17  ;;  %v14851_v38 = vld [vmem:[%s17389_s22] ss:$0 sm:$0xff] }
0x1971   :  { %v16598_v60 = vsub.f32 %v5980_v56, %v5986_v0 }
0x1973   :  { %v5988_v16 = vmul.f32 %v16598_v60, %v16598_v60 }
0x1975   :  { %v5989_v1 = vsel %vm331_vm3, %v5988_v16, 0.0  ;;  %v14852_v16 = vld [vmem:[%s17390_s15] ss:$0 sm:$0xff] }
0x1976   :  { %5990 = vadd.xlane.f32.xlu2 %v5989_v1 }
0x19e9   :  { %v5991_v32 = vpop.xlane.xlu2 %5990 }
0x19ea   :  { %v5992_v37 = vmul.f32 %v5991_v32, %v15656_v17  ;;  %v12299_v32 = vor.u32 %v14323_v24, %v12298_v22  ;;  %v14366_v22 = vld [vmem:[%s17391_s9 + $0xc0] sm:$0xff]  ;;  %v14389_v24 = vld [vmem:[%s17391_s9 + $0x178] sm:$0xff] }
0x19ec   :  { %v5993_v59 = vadd.f32 1e-05, %v5992_v37  ;;  %v14332_v37 = vld [vmem:[%s17388_s20 + $0xb4] sm:$0xf] }
0x19ed   :  { %v12375_v51 = vor.u32 %v14332_v37, %v12372_v40  ;;  %v14396_v37 = vld [vmem:[%s17391_s9 + $0x1b0] sm:$0xff]  ;;  %v14387_v40 = vld [vmem:[%s17391_s9 + $0x168] sm:$0xff] }
0x19ee   :  { %14991 = vrsqrt.f32 %v5993_v59  ;;  %vm6000_vm7 = vweird.f32 %v5993_v59 }
0x19f4   :  { %v14992_v6 = vpop.eup %14991 }
0x19f5   :  { %v5995_v53 = vmul.f32 %v14992_v6, %v5993_v59  ;;  %vm6001_vm1 = vweird.f32 %v14992_v6  ;;  %v12379_v59 = vor.u32 %v14341_v33, %v12378_v15  ;;  %v14403_v15 = vld [vmem:[%s17391_s9 + $0x1e8] sm:$0xff] }
0x19f6   :  { %vm6002_vm8 = vmor %vm6000_vm7, %vm6001_vm1  ;;  %v14379_v33 = vld [vmem:[%s17391_s9 + $0x128] sm:$0xff] }
0x19f7   :  { %v5996_v2 = vmul.f32 %v14992_v6, %v5995_v53  ;;  %v14349_v53 = vld [vmem:[%s17391_s9 + $0x38] sm:$0xff] }
0x19f9   :  { %v5997_v56 = vmul.f32 0.5, %v5996_v2  ;;  %v14365_v2 = vld [vmem:[%s17391_s9 + $0xb8] sm:$0xff] }
0x19fb   :  { %v5998_v7 = vsub.f32 1.5, %v5997_v56  ;;  %v14356_v56 = vld [vmem:[%s17391_s9 + $0x70] sm:$0xff] }
0x19fd   :  { %v5999_v42 = vmul.f32 %v14992_v6, %v5998_v7  ;;  %v14372_v7 = vld [vmem:[%s17391_s9 + $0xf0] sm:$0xff] }
0x19ff   :  { %v6003_v0 = vsel %vm6002_vm8, %v14992_v6, %v5999_v42  ;;  %v14373_v6 = vld [vmem:[%s17391_s9 + $0xf8] sm:$0xff]  ;;  %v14348_v42 = vld [vmem:[%s17391_s9 + $0x30] sm:$0xff] }
0x1a00   :  { %v6004_v1 = vmul.f32 %v6003_v0, %v16598_v60  ;;  %v14355_v0 = vld [vmem:[%s17391_s9 + $0x68] sm:$0xff] }
0x1a02   :  { %v6008_v3 = vmul.f32 %v14851_v38, %v6004_v1  ;;  %v14364_v38 = vld [vmem:[%s17391_s9 + $0xb0] sm:$0xff]  ;;  %v14347_v1 = vld [vmem:[%s17391_s9 + $0x28] sm:$0xff] }
0x1a04   :  { %v16644_v14 = vadd.f32 %v14852_v16, %v6008_v3  ;;  %v14371_v16 = vld [vmem:[%s17391_s9 + $0xe8] sm:$0xff] }
0x1a05   :  { %v14363_v3 = vld [vmem:[%s17391_s9 + $0xa8] sm:$0xff] }
0x1a06   :  { %v16651_v60 = vpack.c.bf16 %v16644_v14, %v16644_v14 }
0x1a08   :  { %12384 = vmatmul.msk.bf16.vlgmr.msra.gmra.mxu3 %vm331_vm3, %v16651_v60  ;;  %12385 = vmatmul.msk.bf16.vlgmr.msra.gmra.mxu1 %vm331_vm3, %v16651_v60 }
0x1a09   :  { %12386 = vmatmul.msk.bf16.vlgmr.msrb.gmra.mxu2 %vm331_vm3, %v16651_v60  ;;  %12387 = vmatmul.msk.bf16.vlgmr.msra.gmra.mxu0 %vm331_vm3, %v16651_v60 }
0x1a0a   :  { %6612 = vmatpush.bf16.msra.mxu3 %v12355_v9  ;;  %6625 = vmatpush.bf16.msra.mxu1 %v12359_v55  ;;  %v14352_v9 = vld [vmem:[%s17391_s9 + $0x50] sm:$0xff] }
0x1a0b   :  { %6638 = vmatpush.bf16.msrb.mxu2 %v12363_v29  ;;  %6651 = vmatpush.bf16.msra.mxu0 %v12367_v19  ;;  %v14368_v55 = vld [vmem:[%s17391_s9 + $0xd0] sm:$0xff]  ;;  %v14351_v29 = vld [vmem:[%s17391_s9 + $0x48] sm:$0xff] }
0x1a0c   :  { %v14343_v19 = vld [vmem:[%s17391_s9 + $0x8] sm:$0xff] }
0x1a0e   :  { %6613 = vmatpush.bf16.msra.mxu3 %v12291_v26  ;;  %6626 = vmatpush.bf16.msra.mxu1 %v12295_v30  ;;  %v14358_v26 = vld [vmem:[%s17391_s9 + $0x80] sm:$0xff]  ;;  %v14381_v30 = vld [vmem:[%s17391_s9 + $0x138] sm:$0xff] }
0x1a0f   :  { %6639 = vmatpush.bf16.msrb.mxu2 %v12299_v32  ;;  %6652 = vmatpush.bf16.msra.mxu0 %v12303_v35  ;;  %v14397_v32 = vld [vmem:[%s17391_s9 + $0x1b8] sm:$0xff]  ;;  %v14388_v35 = vld [vmem:[%s17391_s9 + $0x170] sm:$0xff] }
0x1a18   :  { %12388 = vmatmul.msk.bf16.vlgmr.msrb.gmra.mxu3 %vm331_vm3, %v16651_v60  ;;  %12389 = vmatmul.msk.bf16.vlgmr.msrb.gmra.mxu1 %vm331_vm3, %v16651_v60 }
0x1a19   :  { %12390 = vmatmul.msk.bf16.vlgmr.msra.gmra.mxu2 %vm331_vm3, %v16651_v60  ;;  %12391 = vmatmul.msk.bf16.vlgmr.msrb.gmra.mxu0 %vm331_vm3, %v16651_v60 }
0x1a1a   :  { %6664 = vmatpush.bf16.msrb.mxu3 %v12371_v34  ;;  %6677 = vmatpush.bf16.msrb.mxu1 %v12375_v51  ;;  %v14402_v34 = vld [vmem:[%s17391_s9 + $0x1e0] sm:$0xff] }
0x1a1b   :  { %6690 = vmatpush.bf16.msra.mxu2 %v12379_v59  ;;  %6703 = vmatpush.bf16.msrb.mxu0 %v12383_v21  ;;  %v14378_v51 = vld [vmem:[%s17391_s9 + $0x120] sm:$0xff]  ;;  %v14401_v59 = vld [vmem:[%s17391_s9 + $0x1d8] sm:$0xff]  ;;  %v14384_v21 = vld [vmem:[%s17391_s9 + $0x150] sm:$0xff] }
0x1a1e   :  { %6665 = vmatpush.bf16.msrb.mxu3 %v12307_v39  ;;  %6678 = vmatpush.bf16.msrb.mxu1 %v12311_v61  ;;  %v14392_v39 = vld [vmem:[%s17391_s9 + $0x190] sm:$0xff]  ;;  %v14382_v61 = vld [vmem:[%s17391_s9 + $0x140] sm:$0xff] }
0x1a1f   :  { %6691 = vmatpush.bf16.msra.mxu2 %v12315_v62  ;;  %6704 = vmatpush.bf16.msrb.mxu0 %v12319_v4  ;;  %v14398_v62 = vld [vmem:[%s17391_s9 + $0x1c0] sm:$0xff]  ;;  %v14375_v4 = vld [vmem:[%s17391_s9 + $0x108] sm:$0xff] }
0x1a28   :  { %12392 = vmatmul.msk.bf16.vlgmr.msra.gmra.mxu3 %vm331_vm3, %v16651_v60  ;;  %12393 = vmatmul.msk.bf16.vlgmr.msra.gmra.mxu1 %vm331_vm3, %v16651_v60 }
0x1a29   :  { %12394 = vmatmul.msk.bf16.vlgmr.msrb.gmra.mxu2 %vm331_vm3, %v16651_v60  ;;  %12395 = vmatmul.msk.bf16.vlgmr.msra.gmra.mxu0 %vm331_vm3, %v16651_v60 }
0x1a2a   :  { %7526 = vmatpush.bf16.msra.mxu1 %v14357_v5  ;;  %7552 = vmatpush.bf16.msra.mxu0 %v14373_v6  ;;  %v14391_v5 = vld [vmem:[%s17391_s9 + $0x188] sm:$0xff]  ;;  %v14374_v6 = vld [vmem:[%s17391_s9 + $0x100] sm:$0xff] }
0x1a2b   :  { %7513 = vmatpush.bf16.msra.mxu3 %v14349_v53  ;;  %7539 = vmatpush.bf16.msrb.mxu2 %v14365_v2  ;;  %v14390_v53 = vld [vmem:[%s17391_s9 + $0x180] sm:$0xff] }
0x1a2c   :  { %v16774_v2 = vld [vmem:[%s17392_s16] sm:$0xff] }
0x1a2e   :  { %7527 = vmatpush.bf16.msra.mxu1 %v14356_v56  ;;  %7553 = vmatpush.bf16.msra.mxu0 %v14372_v7  ;;  %v6308_v56 = vperm.slane %v16774_v2, 1  ;;  %v6310_v7 = vperm.slane %v16774_v2, 3 }
0x1a2f   :  { %7514 = vmatpush.bf16.msra.mxu3 %v14348_v42  ;;  %7540 = vmatpush.bf16.msrb.mxu2 %v14364_v38 }
0x1a32   :  { %7528 = vmatpush.bf16.msra.mxu1 %v14355_v0  ;;  %7554 = vmatpush.bf16.msra.mxu0 %v14371_v16 }
0x1a33   :  { %7515 = vmatpush.bf16.msra.mxu3 %v14347_v1  ;;  %7541 = vmatpush.bf16.msrb.mxu2 %v14363_v3  ;;  %v6307_v3 = vperm.slane %v16774_v2, 0 }
0x1a36   :  { %7529 = vmatpush.bf16.msra.mxu1 %v14354_v63  ;;  %7555 = vmatpush.bf16.msra.mxu0 %v14370_v12  ;;  %v6309_v12 = vperm.slane %v16774_v2, 2 }
0x1a37   :  { %7516 = vmatpush.bf16.msra.mxu3 %v14346_v11  ;;  %7542 = vmatpush.bf16.msrb.mxu2 %v14362_v8  ;;  %v14421_v11 = vld [vmem:[%s17391_s9 + $0x278] sm:$0xff] }
0x1a38   :  { %12396 = vmatmul.msk.bf16.vlgmr.msrb.gmra.mxu3 %vm331_vm3, %v16651_v60  ;;  %12397 = vmatmul.msk.bf16.vlgmr.msrb.gmra.mxu1 %vm331_vm3, %v16651_v60 }
0x1a39   :  { %12398 = vmatmul.msk.bf16.vlgmr.msra.gmra.mxu2 %vm331_vm3, %v16651_v60  ;;  %12399 = vmatmul.msk.bf16.vlgmr.msrb.gmra.mxu0 %vm331_vm3, %v16651_v60  ;;  %v14367_v60 = vld [vmem:[%s17391_s9 + $0xc8] sm:$0xff] }
0x1a3a   :  { %7530 = vmatpush.bf16.msra.mxu1 %v14353_v13  ;;  %7556 = vmatpush.bf16.msra.mxu0 %v14369_v31  ;;  %v14437_v13 = vld [vmem:[%s17391_s9 + $0x2f8] sm:$0xff] }
0x1a3b   :  { %7517 = vmatpush.bf16.msra.mxu3 %v14345_v41  ;;  %7543 = vmatpush.bf16.msrb.mxu2 %v14361_v57 }
0x1a3e   :  { %7531 = vmatpush.bf16.msra.mxu1 %v14352_v9  ;;  %7557 = vmatpush.bf16.msra.mxu0 %v14368_v55 }
0x1a3f   :  { %7518 = vmatpush.bf16.msra.mxu3 %v14344_v18  ;;  %7544 = vmatpush.bf16.msrb.mxu2 %v14360_v10  ;;  %v14420_v10 = vld [vmem:[%s17391_s9 + $0x270] sm:$0xff] }
0x1a42   :  { %7532 = vmatpush.bf16.msra.mxu1 %v14351_v29  ;;  %7558 = vmatpush.bf16.msra.mxu0 %v14367_v60 }
0x1a43   :  { %7519 = vmatpush.bf16.msra.mxu3 %v14343_v19  ;;  %7545 = vmatpush.bf16.msrb.mxu2 %v14359_v20  ;;  %v14436_v19 = vld [vmem:[%s17391_s9 + $0x2f0] sm:$0xff] }
0x1a46   :  { %7533 = vmatpush.bf16.msra.mxu1 %v14350_v28  ;;  %7559 = vmatpush.bf16.msra.mxu0 %v14366_v22  ;;  %v14413_v28 = vld [vmem:[%s17391_s9 + $0x238] sm:$0xff] }
0x1a47   :  { %7520 = vmatpush.bf16.msra.mxu3 %v14342_v44  ;;  %7546 = vmatpush.bf16.msrb.mxu2 %v14358_v26  ;;  %v14419_v44 = vld [vmem:[%s17391_s9 + $0x268] sm:$0xff] }
0x1a48   :  { %v14435_v26 = vld [vmem:[%s17391_s9 + $0x2e8] sm:$0xff] }
0x1a4a   :  { %7578 = vmatpush.bf16.msrb.mxu1 %v14389_v24  ;;  %7604 = vmatpush.bf16.msrb.mxu0 %v14405_v25  ;;  %v14429_v24 = vld [vmem:[%s17391_s9 + $0x2b8] sm:$0xff] }
0x1a4b   :  { %7565 = vmatpush.bf16.msrb.mxu3 %v14381_v30  ;;  %7591 = vmatpush.bf16.msra.mxu2 %v14397_v32  ;;  %v6312_v30 = vperm.slane %v16774_v2, 5 }
0x1a4e   :  { %7579 = vmatpush.bf16.msrb.mxu1 %v14388_v35  ;;  %7605 = vmatpush.bf16.msrb.mxu0 %v14404_v45  ;;  %v6314_v35 = vperm.slane %v16774_v2, 7  ;;  %v14412_v45 = vld [vmem:[%s17391_s9 + $0x230] sm:$0xff] }
0x1a4f   :  { %7566 = vmatpush.bf16.msrb.mxu3 %v14380_v36  ;;  %7592 = vmatpush.bf16.msra.mxu2 %v14396_v37  ;;  %v14428_v37 = vld [vmem:[%s17391_s9 + $0x2b0] sm:$0xff] }
0x1a52   :  { %7580 = vmatpush.bf16.msrb.mxu1 %v14387_v40  ;;  %7606 = vmatpush.bf16.msrb.mxu0 %v14403_v15  ;;  %v14418_v15 = vld [vmem:[%s17391_s9 + $0x260] sm:$0xff] }
0x1a53   :  { %7567 = vmatpush.bf16.msrb.mxu3 %v14379_v33  ;;  %7593 = vmatpush.bf16.msra.mxu2 %v14395_v43 }
0x1a56   :  { %7581 = vmatpush.bf16.msrb.mxu1 %v14386_v47  ;;  %7607 = vmatpush.bf16.msrb.mxu0 %v14402_v34  ;;  %v14434_v47 = vld [vmem:[%s17391_s9 + $0x2e0] sm:$0xff] }
0x1a57   :  { %7568 = vmatpush.bf16.msrb.mxu3 %v14378_v51  ;;  %7594 = vmatpush.bf16.msra.mxu2 %v14394_v27  ;;  %v14411_v51 = vld [vmem:[%s17391_s9 + $0x228] sm:$0xff] }
0x1a5a   :  { %7582 = vmatpush.bf16.msrb.mxu1 %v14385_v48  ;;  %7608 = vmatpush.bf16.msrb.mxu0 %v14401_v59  ;;  %v14427_v48 = vld [vmem:[%s17391_s9 + $0x2a8] sm:$0xff]  ;;  %v6311_v59 = vperm.slane %v16774_v2, 4 }
0x1a5b   :  { %7569 = vmatpush.bf16.msrb.mxu3 %v14377_v58  ;;  %7595 = vmatpush.bf16.msra.mxu2 %v14393_v49  ;;  %v14417_v58 = vld [vmem:[%s17391_s9 + $0x258] sm:$0xff] }
0x1a5e   :  { %7583 = vmatpush.bf16.msrb.mxu1 %v14384_v21  ;;  %7609 = vmatpush.bf16.msrb.mxu0 %v14400_v46  ;;  %v6313_v46 = vperm.slane %v16774_v2, 6 }
0x1a5f   :  { %7570 = vmatpush.bf16.msrb.mxu3 %v14376_v54  ;;  %7596 = vmatpush.bf16.msra.mxu2 %v14392_v39  ;;  %v14410_v39 = vld [vmem:[%s17391_s9 + $0x220] sm:$0xff] }
0x1a62   :  { %7584 = vmatpush.bf16.msrb.mxu1 %v14383_v50  ;;  %7610 = vmatpush.bf16.msrb.mxu0 %v14399_v52  ;;  %v14433_v50 = vld [vmem:[%s17391_s9 + $0x2d8] sm:$0xff] }
0x1a63   :  { %7571 = vmatpush.bf16.msrb.mxu3 %v14375_v4  ;;  %7597 = vmatpush.bf16.msra.mxu2 %v14391_v5  ;;  %v14426_v4 = vld [vmem:[%s17391_s9 + $0x2a0] sm:$0xff] }
0x1a66   :  { %7585 = vmatpush.bf16.msrb.mxu1 %v14382_v61  ;;  %7611 = vmatpush.bf16.msrb.mxu0 %v14398_v62 }
0x1a67   :  { %7572 = vmatpush.bf16.msrb.mxu3 %v14374_v6  ;;  %7598 = vmatpush.bf16.msra.mxu2 %v14390_v53  ;;  %v14416_v53 = vld [vmem:[%s17391_s9 + $0x250] sm:$0xff] }
0x1a85   :  { %v6524_v42 = vpop.f32.mrf.mxu1 }
0x1a86   :  { %v6525_v38 = vadd.f32 %v6524_v42, %v6308_v56  ;;  %v6550_v0 = vpop.f32.mrf.mxu0 }
0x1a87   :  { %v6551_v16 = vadd.f32 %v6550_v0, %v6310_v7  ;;  %v14432_v7 = vld [vmem:[%s17391_s9 + $0x2d0] sm:$0xff]  ;;  %v16806_v0 = vld [vmem:[%s17392_s16 + $0x8] sm:$0xff] }
0x1a88   :  { %v6711_v1 = vmax.f32 %v6525_v38, 0.0  ;;  %v14409_v38 = vld [vmem:[%s17391_s9 + $0x218] sm:$0xff] }
0x1a89   :  { %v6713_v63 = vmax.f32 %v6551_v16, 0.0 }
0x1a8a   :  { %v6727_v8 = vpack.c.bf16 %v6711_v1, %v6711_v1  ;;  %v14425_v1 = vld [vmem:[%s17391_s9 + $0x298] sm:$0xff] }
0x1a8b   :  { %v6729_v31 = vpack.c.bf16 %v6713_v63, %v6713_v63  ;;  %v6511_v41 = vpop.f32.mrf.mxu3  ;;  %v14415_v63 = vld [vmem:[%s17391_s9 + $0x248] sm:$0xff] }
0x1a8c   :  { %v6512_v57 = vadd.f32 %v6511_v41, %v6307_v3  ;;  %v6537_v9 = vpop.f32.mrf.mxu2  ;;  %7534 = vmatmul.bf16.vlgmr.msra.gmra.mxu1 %v6727_v8 }
0x1a8d   :  { %v6538_v55 = vadd.f32 %v6537_v9, %v6309_v12  ;;  %7560 = vmatmul.bf16.vlgmr.msra.gmra.mxu0 %v6729_v31  ;;  %7630 = vmatpush.bf16.msra.mxu1 %v14421_v11  ;;  %v6526_v18 = vpop.f32.mrf.mxu1  ;;  %v14431_v12 = vld [vmem:[%s17391_s9 + $0x2c8] sm:$0xff]  ;;  %v6316_v11 = vperm.slane %v16806_v0, 1  ;;  %v14408_v31 = vld [vmem:[%s17391_s9 + $0x210] sm:$0xff] }
0x1a8e   :  { %v6710_v29 = vmax.f32 %v6512_v57, 0.0  ;;  %7656 = vmatpush.bf16.msra.mxu0 %v14437_v13  ;;  %v6552_v60 = vpop.f32.mrf.mxu0  ;;  %v6318_v13 = vperm.slane %v16806_v0, 3  ;;  %v14424_v57 = vld [vmem:[%s17391_s9 + $0x290] sm:$0xff] }
0x1a8f   :  { %v6712_v20 = vmax.f32 %v6538_v55, 0.0  ;;  %v14414_v55 = vld [vmem:[%s17391_s9 + $0x240] sm:$0xff]  ;;  %v14453_v60 = vld [vmem:[%s17391_s9 + $0x378] sm:$0xff] }
0x1a90   :  { %v6726_v22 = vpack.c.bf16 %v6710_v29, %v6710_v29  ;;  %v14430_v29 = vld [vmem:[%s17391_s9 + $0x2c0] sm:$0xff] }
0x1a91   :  { %v6728_v25 = vpack.c.bf16 %v6712_v20, %v6712_v20  ;;  %7631 = vmatpush.bf16.msra.mxu1 %v14420_v10  ;;  %v14469_v20 = vld [vmem:[%s17391_s9 + $0x3f8] sm:$0xff] }
0x1a92   :  { %7657 = vmatpush.bf16.msra.mxu0 %v14436_v19  ;;  %7521 = vmatmul.bf16.vlgmr.msra.gmra.mxu3 %v6726_v22 }
0x1a93   :  { %7547 = vmatmul.bf16.vlgmr.msrb.gmra.mxu2 %v6728_v25  ;;  %7617 = vmatpush.bf16.msra.mxu3 %v14413_v28  ;;  %v6513_v32 = vpop.f32.mrf.mxu3  ;;  %v14407_v28 = vld [vmem:[%s17391_s9 + $0x208] sm:$0xff]  ;;  %v6315_v25 = vperm.slane %v16806_v0, 0 }
0x1a94   :  { %7643 = vmatpush.bf16.msrb.mxu2 %v14429_v24  ;;  %v6539_v36 = vpop.f32.mrf.mxu2  ;;  %v14423_v24 = vld [vmem:[%s17391_s9 + $0x288] sm:$0xff]  ;;  %v14452_v32 = vld [vmem:[%s17391_s9 + $0x370] sm:$0xff] }
0x1a95   :  { %7632 = vmatpush.bf16.msra.mxu1 %v14419_v44  ;;  %v6576_v40 = vpop.f32.mrf.mxu1  ;;  %v14468_v36 = vld [vmem:[%s17391_s9 + $0x3f0] sm:$0xff] }
0x1a96   :  { %7658 = vmatpush.bf16.msra.mxu0 %v14435_v26  ;;  %v6577_v33 = vadd.f32 %v6576_v40, %v6312_v30  ;;  %v6602_v43 = vpop.f32.mrf.mxu0  ;;  %v6317_v26 = vperm.slane %v16806_v0, 2 }
0x1a97   :  { %v6603_v34 = vadd.f32 %v6602_v43, %v6314_v35  ;;  %7618 = vmatpush.bf16.msra.mxu3 %v14412_v45  ;;  %v14445_v43 = vld [vmem:[%s17391_s9 + $0x338] sm:$0xff] }
0x1a98   :  { %v6715_v27 = vmax.f32 %v6577_v33, 0.0  ;;  %7644 = vmatpush.bf16.msrb.mxu2 %v14428_v37  ;;  %v14406_v37 = vld [vmem:[%s17391_s9 + $0x200] sm:$0xff] }
0x1a99   :  { %v6717_v21 = vmax.f32 %v6603_v34, 0.0  ;;  %7633 = vmatpush.bf16.msra.mxu1 %v14418_v15  ;;  %v14422_v33 = vld [vmem:[%s17391_s9 + $0x280] sm:$0xff] }
0x1a9a   :  { %v6731_v49 = vpack.c.bf16 %v6715_v27, %v6715_v27  ;;  %7659 = vmatpush.bf16.msra.mxu0 %v14434_v47 }
0x1a9b   :  { %v6733_v52 = vpack.c.bf16 %v6717_v21, %v6717_v21  ;;  %7619 = vmatpush.bf16.msra.mxu3 %v14411_v51  ;;  %v6563_v54 = vpop.f32.mrf.mxu3  ;;  %v14461_v51 = vld [vmem:[%s17391_s9 + $0x3b8] sm:$0xff] }
0x1a9c   :  { %7645 = vmatpush.bf16.msrb.mxu2 %v14427_v48  ;;  %v6564_v61 = vadd.f32 %v6563_v54, %v6311_v59  ;;  %v6589_v62 = vpop.f32.mrf.mxu2  ;;  %7586 = vmatmul.bf16.vlgmr.msrb.gmra.mxu1 %v6731_v49  ;;  %v14451_v59 = vld [vmem:[%s17391_s9 + $0x368] sm:$0xff]  ;;  %v14444_v49 = vld [vmem:[%s17391_s9 + $0x330] sm:$0xff]  ;;  %v14450_v54 = vld [vmem:[%s17391_s9 + $0x360] sm:$0xff] }
0x1a9d   :  { %v6590_v5 = vadd.f32 %v6589_v62, %v6313_v46  ;;  %7612 = vmatmul.bf16.vlgmr.msrb.gmra.mxu0 %v6733_v52  ;;  %7634 = vmatpush.bf16.msra.mxu1 %v14417_v58  ;;  %v6578_v6 = vpop.f32.mrf.mxu1  ;;  %v14467_v46 = vld [vmem:[%s17391_s9 + $0x3e8] sm:$0xff]  ;;  %v14460_v52 = vld [vmem:[%s17391_s9 + $0x3b0] sm:$0xff] }
0x1a9e   :  { %v6714_v2 = vmax.f32 %v6564_v61, 0.0  ;;  %7660 = vmatpush.bf16.msra.mxu0 %v14433_v50  ;;  %v6604_v56 = vpop.f32.mrf.mxu0  ;;  %v14466_v61 = vld [vmem:[%s17391_s9 + $0x3e0] sm:$0xff]  ;;  %v14459_v6 = vld [vmem:[%s17391_s9 + $0x3a8] sm:$0xff] }
0x1a9f   :  { %v6716_v42 = vmax.f32 %v6590_v5, 0.0  ;;  %7620 = vmatpush.bf16.msra.mxu3 %v14410_v39  ;;  %v14465_v56 = vld [vmem:[%s17391_s9 + $0x3d8] sm:$0xff] }
0x1aa0   :  { %v6730_v16 = vpack.c.bf16 %v6714_v2, %v6714_v2  ;;  %7646 = vmatpush.bf16.msrb.mxu2 %v14426_v4  ;;  %v14443_v4 = vld [vmem:[%s17391_s9 + $0x328] sm:$0xff]  ;;  %v14449_v2 = vld [vmem:[%s17391_s9 + $0x358] sm:$0xff] }
0x1aa1   :  { %v6732_v3 = vpack.c.bf16 %v6716_v42, %v6716_v42  ;;  %7635 = vmatpush.bf16.msra.mxu1 %v14416_v53  ;;  %v14458_v42 = vld [vmem:[%s17391_s9 + $0x3a0] sm:$0xff] }
0x1aa2   :  { %7661 = vmatpush.bf16.msra.mxu0 %v14432_v7  ;;  %7573 = vmatmul.bf16.vlgmr.msrb.gmra.mxu3 %v6730_v16  ;;  %v14442_v7 = vld [vmem:[%s17391_s9 + $0x320] sm:$0xff]  ;;  %v6320_v16 = vperm.slane %v16806_v0, 5 }
0x1aa3   :  { %7599 = vmatmul.bf16.vlgmr.msra.gmra.mxu2 %v6732_v3  ;;  %7621 = vmatpush.bf16.msra.mxu3 %v14409_v38  ;;  %v6565_v8 = vpop.f32.mrf.mxu3  ;;  %v14448_v38 = vld [vmem:[%s17391_s9 + $0x350] sm:$0xff] }
0x1aa4   :  { %7647 = vmatpush.bf16.msrb.mxu2 %v14425_v1  ;;  %v6591_v41 = vpop.f32.mrf.mxu2  ;;  %v14464_v3 = vld [vmem:[%s17391_s9 + $0x3d0] sm:$0xff] }
0x1aa5   :  { %7636 = vmatpush.bf16.msra.mxu1 %v14415_v63  ;;  %v6628_v9 = vpop.f32.mrf.mxu1  ;;  %v6322_v63 = vperm.slane %v16806_v0, 7  ;;  %v14447_v41 = vld [vmem:[%s17391_s9 + $0x348] sm:$0xff] }
0x1aa6   :  { %7662 = vmatpush.bf16.msra.mxu0 %v14431_v12  ;;  %v6629_v18 = vadd.f32 %v6628_v9, %v6316_v11  ;;  %v6654_v10 = vpop.f32.mrf.mxu0  ;;  %v14441_v11 = vld [vmem:[%s17391_s9 + $0x318] sm:$0xff]  ;;  %v14463_v9 = vld [vmem:[%s17391_s9 + $0x3c8] sm:$0xff] }
0x1aa7   :  { %v6655_v19 = vadd.f32 %v6654_v10, %v6318_v13  ;;  %7622 = vmatpush.bf16.msra.mxu3 %v14408_v31  ;;  %v14457_v13 = vld [vmem:[%s17391_s9 + $0x398] sm:$0xff]  ;;  %v6319_v10 = vperm.slane %v16806_v0, 4 }
0x1aa8   :  { %v6719_v22 = vmax.f32 %v6629_v18, 0.0  ;;  %7648 = vmatpush.bf16.msrb.mxu2 %v14424_v57  ;;  %v14440_v18 = vld [vmem:[%s17391_s9 + $0x310] sm:$0xff] }
0x1aa9   :  { %v6721_v44 = vmax.f32 %v6655_v19, 0.0  ;;  %7637 = vmatpush.bf16.msra.mxu1 %v14414_v55  ;;  %v14446_v19 = vld [vmem:[%s17391_s9 + $0x340] sm:$0xff] }
0x1aaa   :  { %v6735_v30 = vpack.c.bf16 %v6719_v22, %v6719_v22  ;;  %7663 = vmatpush.bf16.msra.mxu0 %v14430_v29  ;;  %v14456_v29 = vld [vmem:[%s17391_s9 + $0x390] sm:$0xff]  ;;  %v14462_v22 = vld [vmem:[%s17391_s9 + $0x3c0] sm:$0xff] }
0x1aab   :  { %v6737_v35 = vpack.c.bf16 %v6721_v44, %v6721_v44  ;;  %7623 = vmatpush.bf16.msra.mxu3 %v14407_v28  ;;  %v6615_v45 = vpop.f32.mrf.mxu3  ;;  %v14439_v44 = vld [vmem:[%s17391_s9 + $0x308] sm:$0xff] }
0x1aac   :  { %7649 = vmatpush.bf16.msrb.mxu2 %v14423_v24  ;;  %v6616_v40 = vadd.f32 %v6615_v45, %v6315_v25  ;;  %v6641_v15 = vpop.f32.mrf.mxu2  ;;  %7638 = vmatmul.bf16.vlgmr.msra.gmra.mxu1 %v6735_v30  ;;  %v14455_v30 = vld [vmem:[%s17391_s9 + $0x388] sm:$0xff]  ;;  %v14438_v45 = vld [vmem:[%s17391_s9 + $0x300] sm:$0xff] }
0x1aad   :  { %7682 = vmatpush.bf16.msrb.mxu1 %v14453_v60  ;;  %v6642_v47 = vadd.f32 %v6641_v15, %v6317_v26  ;;  %7664 = vmatmul.bf16.vlgmr.msra.gmra.mxu0 %v6737_v35  ;;  %v6630_v34 = vpop.f32.mrf.mxu1  ;;  %v6321_v60 = vperm.slane %v16806_v0, 6 }
0x1aae   :  { %7708 = vmatpush.bf16.msrb.mxu0 %v14469_v20  ;;  %v6718_v27 = vmax.f32 %v6616_v40, 0.0  ;;  %v6656_v48 = vpop.f32.mrf.mxu0 }
0x1aaf   :  { %v6720_v21 = vmax.f32 %v6642_v47, 0.0  ;;  %7624 = vmatpush.bf16.msra.mxu3 %v14406_v37  ;;  %v14454_v37 = vld [vmem:[%s17391_s9 + $0x380] sm:$0xff] }
0x1ab0   :  { %v6734_v58 = vpack.c.bf16 %v6718_v27, %v6718_v27  ;;  %7650 = vmatpush.bf16.msrb.mxu2 %v14422_v33 }
0x1ab1   :  { %7683 = vmatpush.bf16.msrb.mxu1 %v14452_v32  ;;  %v6736_v50 = vpack.c.bf16 %v6720_v21, %v6720_v21 }
0x1ab2   :  { %7709 = vmatpush.bf16.msrb.mxu0 %v14468_v36  ;;  %7625 = vmatmul.bf16.vlgmr.msra.gmra.mxu3 %v6734_v58 }
0x1ab3   :  { %7669 = vmatpush.bf16.msrb.mxu3 %v14445_v43  ;;  %7651 = vmatmul.bf16.vlgmr.msrb.gmra.mxu2 %v6736_v50  ;;  %v6617_v39 = vpop.f32.mrf.mxu3 }
0x1ab4   :  { %7695 = vmatpush.bf16.msra.mxu2 %v14461_v51  ;;  %v6643_v62 = vpop.f32.mrf.mxu2 }
0x1ab5   :  { %7684 = vmatpush.bf16.msrb.mxu1 %v14451_v59  ;;  %v6680_v5 = vpop.f32.mrf.mxu1 }
0x1ab6   :  { %7710 = vmatpush.bf16.msrb.mxu0 %v14467_v46  ;;  %v6706_v53 = vpop.f32.mrf.mxu0  ;;  %v6681_v57 = vadd.f32 %v6680_v5, %v6320_v16 }
0x1ab7   :  { %7670 = vmatpush.bf16.msrb.mxu3 %v14444_v49  ;;  %v6707_v55 = vadd.f32 %v6706_v53, %v6322_v63 }
0x1ab8   :  { %7696 = vmatpush.bf16.msra.mxu2 %v14460_v52  ;;  %v6723_v20 = vmax.f32 %v6681_v57, 0.0  ;;  %v14853_v52 = vld [vmem:[%s17393_s11] ss:$0 sm:$0xff] }
0x1ab9   :  { %7685 = vmatpush.bf16.msrb.mxu1 %v14450_v54  ;;  %v6725_v24 = vmax.f32 %v6707_v55, 0.0 }
0x1aba   :  { %7711 = vmatpush.bf16.msrb.mxu0 %v14466_v61  ;;  %v6739_v35 = vpack.c.bf16 %v6723_v20, %v6723_v20 }
0x1abb   :  { %7671 = vmatpush.bf16.msrb.mxu3 %v14443_v4  ;;  %v6667_v1 = vpop.f32.mrf.mxu3  ;;  %v6741_v0 = vpack.c.bf16 %v6725_v24, %v6725_v24 }
0x1abc   :  { %7697 = vmatpush.bf16.msra.mxu2 %v14459_v6  ;;  %v6693_v12 = vpop.f32.mrf.mxu2  ;;  %v6668_v26 = vadd.f32 %v6667_v1, %v6319_v10 }
0x1abd   :  { %7686 = vmatpush.bf16.msrb.mxu1 %v14449_v2  ;;  %v6682_v8 = vpop.f32.mrf.mxu1  ;;  %v6694_v32 = vadd.f32 %v6693_v12, %v6321_v60 }
0x1abe   :  { %7712 = vmatpush.bf16.msrb.mxu0 %v14465_v56  ;;  %v6708_v31 = vpop.f32.mrf.mxu0  ;;  %v6722_v36 = vmax.f32 %v6668_v26, 0.0 }
0x1abf   :  { %7672 = vmatpush.bf16.msrb.mxu3 %v14442_v7  ;;  %v6724_v40 = vmax.f32 %v6694_v32, 0.0 }
0x1ac0   :  { %7698 = vmatpush.bf16.msra.mxu2 %v14458_v42  ;;  %v6738_v15 = vpack.c.bf16 %v6722_v36, %v6722_v36  ;;  %v14471_v36 = vld [vmem:[%s17372_s3 + $0x18] sm:$0xff] }
0x1ac1   :  { %7687 = vmatpush.bf16.msrb.mxu1 %v14448_v38  ;;  %v6740_v33 = vpack.c.bf16 %v6724_v40, %v6724_v40 }
0x1ac2   :  { %7713 = vmatpush.bf16.msrb.mxu0 %v14464_v3 }
0x1ac3   :  { %7673 = vmatpush.bf16.msrb.mxu3 %v14441_v11  ;;  %v6669_v28 = vpop.f32.mrf.mxu3 }
0x1ac4   :  { %7699 = vmatpush.bf16.msra.mxu2 %v14457_v13  ;;  %v6695_v25 = vpop.f32.mrf.mxu2 }
0x1ac5   :  { %7688 = vmatpush.bf16.msrb.mxu1 %v14447_v41 }
0x1ac6   :  { %7714 = vmatpush.bf16.msrb.mxu0 %v14463_v9 }
0x1ac7   :  { %7674 = vmatpush.bf16.msrb.mxu3 %v14440_v18 }
0x1ac8   :  { %7700 = vmatpush.bf16.msra.mxu2 %v14456_v29 }
0x1ac9   :  { %7689 = vmatpush.bf16.msrb.mxu1 %v14446_v19 }
0x1aca   :  { %7715 = vmatpush.bf16.msrb.mxu0 %v14462_v22 }
0x1acb   :  { %7675 = vmatpush.bf16.msrb.mxu3 %v14439_v44 }
0x1acc   :  { %7701 = vmatpush.bf16.msra.mxu2 %v14455_v30  ;;  %7690 = vmatmul.bf16.vlgmr.msrb.gmra.mxu1 %v6739_v35 }
0x1acd   :  { %7716 = vmatmul.bf16.vlgmr.msrb.gmra.mxu0 %v6741_v0 }
0x1acf   :  { %7676 = vmatpush.bf16.msrb.mxu3 %v14438_v45 }
0x1ad0   :  { %7702 = vmatpush.bf16.msra.mxu2 %v14454_v37  ;;  %v14470_v37 = vld [vmem:[%s17372_s3 + $0x10] sm:$0xff]  ;;  %s17396_s3 = smov 64  }
0x1ad2   :  { %7677 = vmatmul.bf16.vlgmr.msrb.gmra.mxu3 %v6738_v15 }
0x1ad3   :  { %7703 = vmatmul.bf16.vlgmr.msra.gmra.mxu2 %v6740_v33  ;;  %7786 = vmatpush.bf16.msra.mxu3 %v14471_v36 }
0x1ad7   :  { %7787 = vmatpush.bf16.msra.mxu3 %v14470_v37 }
0x1b09   :  { %v7535_v43 = vpop.f32.mrf.mxu1 }
0x1b0a   :  { %v7561_v47 = vpop.f32.mrf.mxu0 }
0x1b11   :  { %v7537_v34 = vpop.f32.mrf.mxu1 }
0x1b12   :  { %v7563_v51 = vpop.f32.mrf.mxu0 }
0x1b15   :  { %v7522_v27 = vpop.f32.mrf.mxu3 }
0x1b16   :  { %v7548_v48 = vpop.f32.mrf.mxu2  ;;  %v7523_v61 = vadd.f32 %v14853_v52, %v7522_v27  ;;  %v14856_v52 = vld [vmem:[%s17374_s14 + $0x1] ss:$0 sm:$0xff]  ;;  %s17397_s14 = smov 40  }
0x1b18   :  { %v7536_v5 = vadd.f32 %v7535_v43, %v7523_v61 }
0x1b19   :  { %v7587_v59 = vpop.f32.mrf.mxu1 }
0x1b1a   :  { %v7613_v21 = vpop.f32.mrf.mxu0  ;;  %v7549_v2 = vadd.f32 %v7548_v48, %v7536_v5  ;;  %v14854_v48 = vld [vmem:[%s17394_s18] ss:$0 sm:$0xff] }
0x1b1c   :  { %v7562_v42 = vadd.f32 %v7561_v47, %v7549_v2  ;;  %v14476_v2 = vld [vmem:[%s17381_s28 + $0x10] sm:$0xff] }
0x1b1d   :  { %v7524_v46 = vpop.f32.mrf.mxu3 }
0x1b1e   :  { %v7550_v58 = vpop.f32.mrf.mxu2 }
0x1b21   :  { %v7589_v49 = vpop.f32.mrf.mxu1 }
0x1b22   :  { %v7615_v50 = vpop.f32.mrf.mxu0 }
0x1b25   :  { %v7574_v54 = vpop.f32.mrf.mxu3 }
0x1b26   :  { %v7600_v39 = vpop.f32.mrf.mxu2  ;;  %v7575_v1 = vadd.f32 %v7574_v54, %v7562_v42 }
0x1b28   :  { %v7588_v3 = vadd.f32 %v7587_v59, %v7575_v1  ;;  %v15037_v1 = vld [vmem:[%s17375_s19] sm:$0xff]  ;;  %s17398_s19 = smov 48  }
0x1b29   :  { %v7639_v62 = vpop.f32.mrf.mxu1 }
0x1b2a   :  { %v7665_v4 = vpop.f32.mrf.mxu0  ;;  %v7601_v11 = vadd.f32 %v7600_v39, %v7588_v3 }
0x1b2c   :  { %v7614_v8 = vadd.f32 %v7613_v21, %v7601_v11  ;;  %v14855_v21 = vld [vmem:[%s17395_s10] ss:$0 sm:$0xff] }
0x1b2d   :  { %v7576_v6 = vpop.f32.mrf.mxu3 }
0x1b2e   :  { %v7602_v53 = vpop.f32.mrf.mxu2 }
0x1b2f   :  { %v14477_v53 = vld [vmem:[%s17381_s28 + $0x18] sm:$0xff]  ;;  %s17399_s28 = smov 56  }
0x1b31   :  { %v7641_v56 = vpop.f32.mrf.mxu1 }
0x1b32   :  { %v7667_v7 = vpop.f32.mrf.mxu0 }
0x1b35   :  { %v7626_v38 = vpop.f32.mrf.mxu3 }
0x1b36   :  { %v7652_v16 = vpop.f32.mrf.mxu2  ;;  %v7627_v13 = vadd.f32 %v7626_v38, %v7614_v8 }
0x1b38   :  { %v7640_v57 = vadd.f32 %v7639_v62, %v7627_v13 }
0x1b3a   :  { %v7653_v9 = vadd.f32 %v7652_v16, %v7640_v57 }
0x1b3c   :  { %v7666_v10 = vadd.f32 %v7665_v4, %v7653_v9 }
0x1b3d   :  { %v7628_v63 = vpop.f32.mrf.mxu3 }
0x1b3e   :  { %v7654_v12 = vpop.f32.mrf.mxu2 }
0x1b49   :  { %v7691_v31 = vpop.f32.mrf.mxu1 }
0x1b4a   :  { %v7717_v41 = vpop.f32.mrf.mxu0 }
0x1b51   :  { %v7693_v55 = vpop.f32.mrf.mxu1 }
0x1b52   :  { %v7719_v18 = vpop.f32.mrf.mxu0 }
0x1b55   :  { %v7678_v29 = vpop.f32.mrf.mxu3 }
0x1b56   :  { %v7679_v60 = vadd.f32 %v7678_v29, %v7666_v10  ;;  %v7704_v19 = vpop.f32.mrf.mxu2 }
0x1b58   :  { %v7692_v20 = vadd.f32 %v7691_v31, %v7679_v60 }
0x1b5a   :  { %v7705_v28 = vadd.f32 %v7704_v19, %v7692_v20 }
0x1b5c   :  { %v7718_v22 = vadd.f32 %v7717_v41, %v7705_v28 }
0x1b5d   :  { %v7680_v24 = vpop.f32.mrf.mxu3 }
0x1b5e   :  { %v7706_v25 = vpop.f32.mrf.mxu2  ;;  %v7721_v44 = vadd.f32 %v7718_v22, %v16644_v14 }
0x1b60   :  { %v7724_v26 = vsel %vm331_vm3, %v7721_v44, 0.0 }
0x1b61   :  { %7725 = vadd.xlane.f32.xlu1 %v7724_v26 }
0x1bd4   :  { %v7726_v30 = vpop.xlane.xlu1 %7725 }
0x1bd5   :  { %v7727_v32 = vmul.f32 %v7726_v30, %v15656_v17 }
0x1bd7   :  { %v7728_v35 = vsub.f32 %v7721_v44, %v7727_v32 }
0x1bd9   :  { %v7729_v0 = vmul.f32 %v7728_v35, %v7728_v35 }
0x1bdb   :  { %v7730_v45 = vsel %vm331_vm3, %v7729_v0, 0.0 }
0x1bdc   :  { %7731 = vadd.xlane.f32.xlu0 %v7730_v45 }
0x1c4f   :  { %v7732_v40 = vpop.xlane.xlu0 %7731 }
0x1c50   :  { %v7733_v14 = vmul.f32 %v7732_v40, %v15656_v17 }
0x1c52   :  { %v7734_v15 = vadd.f32 1e-05, %v7733_v14 }
0x1c54   :  { %14993 = vrsqrt.f32 %v7734_v15  ;;  %vm7741_vm10 = vweird.f32 %v7734_v15 }
0x1c5a   :  { %v14994_v33 = vpop.eup %14993 }
0x1c5b   :  { %v7736_v43 = vmul.f32 %v14994_v33, %v7734_v15  ;;  %vm7742_vm9 = vweird.f32 %v14994_v33 }
0x1c5c   :  { %vm7743_vm11 = vmor %vm7741_vm10, %vm7742_vm9  ;;  %vm10422_vm9 = vcmask 15360  }
0x1c5d   :  { %v7737_v47 = vmul.f32 %v14994_v33, %v7736_v43 }
0x1c5f   :  { %v7738_v34 = vmul.f32 0.5, %v7737_v47 }
0x1c61   :  { %v7739_v51 = vsub.f32 1.5, %v7738_v34 }
0x1c63   :  { %v7740_v27 = vmul.f32 %v14994_v33, %v7739_v51 }
0x1c65   :  { %v7744_v59 = vsel %vm7743_vm11, %v14994_v33, %v7740_v27 }
0x1c66   :  { %v7745_v46 = vmul.f32 %v7744_v59, %v7728_v35 }
0x1c68   :  { %v7749_v58 = vmul.f32 %v14854_v48, %v7745_v46 }
0x1c6a   :  { %v16869_v49 = vadd.f32 %v14855_v21, %v7749_v58  ;;  %v14857_v58 = vld [vmem:[%s17383_s26 + $0x1] ss:$0 sm:$0xff]  ;;  %s17400_s26 = smov 8  }
0x1c6c   :  { %v7759_v50 = vpack.c.bf16 %v16869_v49, %v16869_v49 }
0x1c6e   :  { %12925 = vmatmul.msk.bf16.vlgmr.msra.gmra.mxu3 %vm331_vm3, %v7759_v50 }
0x1cf1   :  { %v7789_v54 = vpop.f32.mrf.mxu3 }
0x1cf2   :  { %v16875_v39 = vadd.f32 %v14856_v52, %v7789_v54 }
0x1cf4   :  { %7866 = vrot.lane.b32.xlu1 %v16875_v39, %s15220_s5  ;;  %7868 = vrot.lane.b32.xlu0 %v16875_v39, %s15221_s13 }
0x1cf5   :  { %7801 = vrot.lane.b32.xlu2 %v16875_v39, %s15222_s17 }
0x1cf9   :  { %v7791_v61 = vpop.f32.mrf.mxu3 }
0x1cfc   :  { %8000 = vrot.lane.b32.xlu1 %v16875_v39, %s15226_s4  ;;  %7935 = vrot.lane.b32.xlu0 %v16875_v39, %s15224_s12 }
0x1cfd   :  { %8002 = vrot.lane.b32.xlu2 %v16875_v39, %s15225_s27 }
0x1d04   :  { %7933 = vrot.lane.b32.xlu0 %v16875_v39, %s15223_s21 }
0x1d4f   :  { %v7802_v62 = vpop.permute.xlu2 %7801 }
0x1d50   :  { %12931 = vmatpush.xpose.msk.msra.mxu1 %vm360_vm4, %v7802_v62 }
0x1d53   :  { %12932 = vmatmul.msk.f32.vlgmr.msra.gmra.mxu1 %vm360_vm4, %v16875_v39 }
0x1d57   :  { %v8003_v5 = vpop.permute.xlu2 %8002 }
0x1d66   :  { %v7869_v4 = vpop.permute.xlu0 %7868  ;;  %v7867_v6 = vpop.permute.xlu1 %7866 }
0x1d67   :  { %12934 = vmatpush.xpose.msk.msrb.mxu1 %vm360_vm4, %v7869_v4 }
0x1d6a   :  { %12935 = vmatmul.msk.f32.vlgmr.msrb.gmra.mxu1 %vm360_vm4, %v7867_v6 }
0x1d6b   :  { %12940 = vmatpush.xpose.msk.msra.mxu1 %vm360_vm4, %v8003_v5 }
0x1d6e   :  { %v7936_v56 = vpop.permute.xlu0 %7935  ;;  %v8001_v7 = vpop.permute.xlu1 %8000 }
0x1d6f   :  { %8216 = vmatpush.bf16.msrb.mxu1 %v14477_v53  ;;  %12937 = vmatpush.xpose.msk.msra.mxu0 %vm360_vm4, %v7936_v56 }
0x1d72   :  { %12941 = vmatmul.msk.f32.vlgmr.msra.gmra.mxu1 %vm360_vm4, %v8001_v7 }
0x1d73   :  { %8217 = vmatpush.bf16.msrb.mxu1 %v14476_v2 }
0x1d76   :  { %v7934_v42 = vpop.permute.xlu0 %7933 }
0x1d77   :  { %12938 = vmatmul.msk.f32.vlgmr.msra.gmra.mxu0 %vm360_vm4, %v7934_v42 }
0x1d7a   :  { %12981 = vmatmul.msk.bf16.vlgmr.msrb.gmra.mxu1 %vm331_vm3, %v16535_v23 }
0x1dd0   :  { %v7824_v38 = vpop.f32.mrf.mxu1 }
0x1dd1   :  { %v7827_v16 = vmul.f32 0.35355338, %v7824_v38  ;;  %v14473_v38 = vld [vmem:[%s17376_s30 + $0x18] sm:$0xff] }
0x1dd2   :  { %8107 = vmatpush.bf16.msrb.mxu0 %v14473_v38 }
0x1dd3   :  { %v7828_v3 = vadd.f32 %v15037_v1, %v7827_v16  ;;  %v14472_v16 = vld [vmem:[%s17376_s30 + $0x10] sm:$0xff] }
0x1dd5   :  { %v7829_v63 = vsel %vm360_vm4, %v7828_v3, -inf }
0x1dd6   :  { %7830 = vmax.xlane.f32.xlu2 %v7829_v63  ;;  %8108 = vmatpush.bf16.msrb.mxu0 %v14472_v16 }
0x1de7   :  { %v7891_v12 = vpop.f32.mrf.mxu1 }
0x1de8   :  { %v7894_v11 = vmul.f32 0.35355338, %v7891_v12 }
0x1dea   :  { %v7895_v8 = vadd.f32 %v15037_v1, %v7894_v11 }
0x1dec   :  { %v7896_v13 = vsel %vm360_vm4, %v7895_v8, -inf }
0x1ded   :  { %7897 = vmax.xlane.f32.xlu0 %v7896_v13 }
0x1def   :  { %v8025_v31 = vpop.f32.mrf.mxu1 }
0x1df0   :  { %v8028_v41 = vmul.f32 0.35355338, %v8025_v31 }
0x1df2   :  { %v8029_v57 = vadd.f32 %v15037_v1, %v8028_v41 }
0x1df4   :  { %v7958_v9 = vpop.f32.mrf.mxu0  ;;  %v8030_v55 = vsel %vm360_vm4, %v8029_v57, -inf }
0x1df5   :  { %v7961_v23 = vmul.f32 0.35355338, %v7958_v9  ;;  %8031 = vmax.xlane.f32.xlu2 %v8030_v55  ;;  %v14858_v55 = vld [vmem:[%s17377_s2 + $0x1] ss:$0 sm:$0xff] }
0x1df7   :  { %v7962_v18 = vadd.f32 %v15037_v1, %v7961_v23  ;;  %v8219_v27 = vpop.f32.mrf.mxu1 }
0x1df8   :  { %v16928_v4 = vadd.f32 %v14857_v58, %v8219_v27 }
0x1df9   :  { %v7963_v10 = vsel %vm360_vm4, %v7962_v18, -inf }
0x1dfa   :  { %7964 = vmax.xlane.f32.xlu1 %v7963_v10 }
0x1dff   :  { %v8221_v46 = vpop.f32.mrf.mxu1 }
0x1e00   :  { %v16923_v54 = vadd.f32 %v14857_v58, %v8221_v46 }
0x1e13   :  { %7840 = vrot.lane.b32.xlu1 %v16875_v39, %s17396_s3  ;;  %s17401_s3 = smov 16  }
0x1e1b   :  { %8041 = vrot.lane.b32.xlu1 %v16875_v39, %s17397_s14  ;;  %s17402_s14 = smov 24  }
0x1e49   :  { %v7831_v29 = vpop.xlane.xlu2 %7830 }
0x1e4a   :  { %v7832_v60 = vsub.f32 %v7828_v3, %v7831_v29 }
0x1e4c   :  { %v7833_v19 = vmul.f32 1.442695, %v7832_v60 }
0x1e4e   :  { %14995 = vpow2.f32 %v7833_v19 }
0x1e54   :  { %v14996_v20 = vpop.eup %14995 }
0x1e55   :  { %v7835_v28 = vsel %vm360_vm4, %v14996_v20, 0.0 }
0x1e56   :  { %7836 = vadd.xlane.f32.xlu2 %v7835_v28 }
0x1e60   :  { %v7898_v22 = vpop.xlane.xlu0 %7897 }
0x1e61   :  { %v7899_v24 = vsub.f32 %v7895_v8, %v7898_v22 }
0x1e63   :  { %v7900_v25 = vmul.f32 1.442695, %v7899_v24 }
0x1e65   :  { %14997 = vpow2.f32 %v7900_v25 }
0x1e68   :  { %v8032_v44 = vpop.xlane.xlu2 %8031 }
0x1e69   :  { %v8033_v26 = vsub.f32 %v8029_v57, %v8032_v44  ;;  %v14474_v44 = vld [vmem:[%s17378_s7 + $0x10] sm:$0xff] }
0x1e6b   :  { %v14998_v30 = vpop.eup %14997  ;;  %v8034_v32 = vmul.f32 1.442695, %v8033_v26 }
0x1e6c   :  { %v7902_v35 = vsel %vm360_vm4, %v14998_v30, 0.0 }
0x1e6d   :  { %14999 = vpow2.f32 %v8034_v32  ;;  %v7965_v0 = vpop.xlane.xlu1 %7964  ;;  %7903 = vadd.xlane.f32.xlu0 %v7902_v35 }
0x1e6e   :  { %v7966_v45 = vsub.f32 %v7962_v18, %v7965_v0 }
0x1e70   :  { %v7967_v36 = vmul.f32 1.442695, %v7966_v45 }
0x1e72   :  { %15001 = vpow2.f32 %v7967_v36 }
0x1e73   :  { %v15000_v37 = vpop.eup %14999 }
0x1e74   :  { %v8036_v40 = vsel %vm360_vm4, %v15000_v37, 0.0 }
0x1e75   :  { %8037 = vadd.xlane.f32.xlu0 %v8036_v40 }
0x1e78   :  { %v15002_v14 = vpop.eup %15001 }
0x1e79   :  { %v7969_v15 = vsel %vm360_vm4, %v15002_v14, 0.0 }
0x1e7a   :  { %7970 = vadd.xlane.f32.xlu2 %v7969_v15  ;;  %v14859_v15 = vld [vmem:[%s17379_s0 + $0x1] ss:$0 sm:$0xff] }
0x1e85   :  { %v7841_v33 = vpop.permute.xlu1 %7840 }
0x1e86   :  { %7861 = vmatpush.msrb.mxu2 %v7841_v33 }
0x1e89   :  { %7974 = vrot.lane.b32.xlu0 %v16875_v39, %s17398_s19 }
0x1e92   :  { %7907 = vrot.lane.b32.xlu2 %v16875_v39, %s17399_s28  ;;  %v8042_v39 = vpop.permute.xlu1 %8041 }
0x1ec9   :  { %v7837_v43 = vpop.xlane.xlu2 %7836 }
0x1eca   :  { %15003 = vrcp.f32 %v7837_v43  ;;  %v14860_v43 = vld [vmem:[%s17380_s23 + $0x1] ss:$0 sm:$0xff] }
0x1ed0   :  { %v15004_v47 = vpop.eup %15003 }
0x1ed1   :  { %v7839_v34 = vmul.f32 %v15004_v47, %v14996_v20 }
0x1ed3   :  { %12933 = vmatmul.msk.f32.vlgmr.msrb.gmra.mxu2 %vm360_vm4, %v7839_v34 }
0x1ee0   :  { %v7904_v51 = vpop.xlane.xlu0 %7903 }
0x1ee1   :  { %15005 = vrcp.f32 %v7904_v51 }
0x1ee7   :  { %v15006_v21 = vpop.eup %15005 }
0x1ee8   :  { %v8038_v59 = vpop.xlane.xlu0 %8037  ;;  %v7906_v50 = vmul.f32 %v15006_v21, %v14998_v30 }
0x1eed   :  { %v7971_v48 = vpop.xlane.xlu2 %7970 }
0x1eee   :  { %15007 = vrcp.f32 %v7971_v48  ;;  %v14861_v48 = vld [vmem:[%s17384_s1 + $0x1] ss:$0 sm:$0xff] }
0x1eef   :  { %15009 = vrcp.f32 %v8038_v59 }
0x1ef4   :  { %v15008_v61 = vpop.eup %15007 }
0x1ef5   :  { %v7908_v52 = vpop.permute.xlu2 %7907  ;;  %v15010_v62 = vpop.eup %15009  ;;  %v7973_v5 = vmul.f32 %v15008_v61, %v15002_v14 }
0x1ef6   :  { %7928 = vmatpush.msra.mxu2 %v7908_v52  ;;  %v8040_v53 = vmul.f32 %v15010_v62, %v15000_v37  ;;  %v15038_v62 = vld [vmem:[%s17385_s25] sm:$0xff] }
0x1ef7   :  { %12936 = vmatmul.msk.f32.vlgmr.msra.gmra.mxu2 %vm360_vm4, %v7906_v50 }
0x1ef8   :  { %8062 = vmatpush.msrb.mxu2 %v8042_v39 }
0x1efa   :  { %12987 = vmatpush.xpose.msk.msra.mxu2 %vm360_vm4, %v16923_v54 }
0x1efb   :  { %v7975_v6 = vpop.permute.xlu0 %7974 }
0x1efc   :  { %7995 = vmatpush.msrb.mxu3 %v7975_v6 }
0x1efd   :  { %12939 = vmatmul.msk.f32.vlgmr.msrb.gmra.mxu3 %vm360_vm4, %v7973_v5 }
0x1efe   :  { %12988 = vmatpush.xpose.msk.msra.mxu2 %vm360_vm4, %v16928_v4 }
0x1eff   :  { %12942 = vmatmul.msk.f32.vlgmr.msrb.gmra.mxu2 %vm360_vm4, %v8040_v53 }
0x1f56   :  { %v7863_v2 = vpop.f32.mrf.mxu2 }
0x1f7a   :  { %v7930_v56 = vpop.f32.mrf.mxu2 }
0x1f7b   :  { %8068 = vrot.lane.b32.xlu1 %v7930_v56, %s17400_s26 }
0x1f80   :  { %v7997_v7 = vpop.f32.mrf.mxu3 }
0x1f81   :  { %8072 = vrot.lane.b32.xlu0 %v7997_v7, %s17401_s3 }
0x1f82   :  { %v8064_v42 = vpop.f32.mrf.mxu2 }
0x1f83   :  { %8076 = vrot.lane.b32.xlu2 %v8064_v42, %s17402_s14 }
0x1f8b   :  { %8306 = vrot.lane.b32.xlu2 %v16923_v54, %s15220_s5 }
0x1f93   :  { %8304 = vrot.lane.b32.xlu2 %v16928_v4, %s15220_s5 }
0x1f9b   :  { %8380 = vrot.lane.b32.xlu2 %v16923_v54, %s15223_s21 }
0x1fa3   :  { %8454 = vrot.lane.b32.xlu2 %v16923_v54, %s15226_s4 }
0x1fdd   :  { %v8077_v1 = vpop.permute.xlu2 %8076 }
0x1fe5   :  { %v8307_v3 = vpop.permute.xlu2 %8306 }
0x1fe6   :  { %12991 = vmatpush.xpose.msk.msra.mxu0 %vm360_vm4, %v8307_v3 }
0x1fed   :  { %v8305_v63 = vpop.permute.xlu2 %8304  ;;  %v8069_v12 = vpop.permute.xlu1 %8068 }
0x1fee   :  { %12992 = vmatpush.xpose.msk.msra.mxu0 %vm360_vm4, %v8305_v63  ;;  %v8079_v11 = vsel %vm360_vm4, %v7863_v2, %v8069_v12 }
0x1ff3   :  { %v8073_v8 = vpop.permute.xlu0 %8072 }
0x1ff4   :  { %v8080_v13 = vsel %vm396_vm5, %v8079_v11, %v8073_v8  ;;  %v14811_v8 = vpack.i.bf16 %v16928_v4, %v16923_v54 }
0x1ff5   :  { %v8081_v31 = vsel %vm782_vm6, %v8080_v13, %v8077_v1  ;;  %v8381_v41 = vpop.permute.xlu2 %8380 }
0x1ff6   :  { %v8082_v57 = vpack.c.bf16 %v8081_v31, %v8081_v31  ;;  %12995 = vmatpush.xpose.msk.msra.mxu1 %vm360_vm4, %v8381_v41 }
0x1ff8   :  { %12951 = vmatmul.msk.bf16.vlgmr.msrb.gmra.mxu0 %vm331_vm3, %v8082_v57 }
0x1ffd   :  { %v8455_v9 = vpop.permute.xlu2 %8454 }
0x1ffe   :  { %12999 = vmatpush.xpose.msk.msrb.mxu0 %vm360_vm4, %v8455_v9 }
0x2075   :  { %v8110_v23 = vpop.f32.mrf.mxu0 }
0x2076   :  { %v8111_v18 = vadd.f32 %v14858_v55, %v8110_v23 }
0x2078   :  { %v8114_v10 = vadd.f32 %v8111_v18, %v16869_v49  ;;  %v14475_v49 = vld [vmem:[%s17378_s7 + $0x18] sm:$0xff] }
0x2079   :  { %8181 = vmatpush.bf16.msra.mxu3 %v14475_v49 }
0x207a   :  { %v8119_v29 = vsel %vm331_vm3, %v8114_v10, 0.0 }
0x207b   :  { %8120 = vadd.xlane.f32.xlu1 %v8119_v29 }
0x207d   :  { %v8112_v60 = vpop.f32.mrf.mxu0  ;;  %8182 = vmatpush.bf16.msra.mxu3 %v14474_v44 }
0x2094   :  { %8378 = vrot.lane.b32.xlu1 %v16928_v4, %s15223_s21 }
0x20ee   :  { %v8121_v19 = vpop.xlane.xlu1 %8120 }
0x20ef   :  { %v8122_v20 = vmul.f32 %v8121_v19, %v15656_v17 }
0x20f1   :  { %v8123_v28 = vsub.f32 %v8114_v10, %v8122_v20 }
0x20f3   :  { %v8124_v22 = vmul.f32 %v8123_v28, %v8123_v28 }
0x20f5   :  { %v8125_v24 = vsel %vm331_vm3, %v8124_v22, 0.0 }
0x20f6   :  { %8126 = vadd.xlane.f32.xlu0 %v8125_v24 }
0x2106   :  { %v8379_v25 = vpop.permute.xlu1 %8378 }
0x2107   :  { %12996 = vmatpush.xpose.msk.msra.mxu1 %vm360_vm4, %v8379_v25 }
0x210a   :  { %8452 = vrot.lane.b32.xlu0 %v16928_v4, %s15226_s4 }
0x2169   :  { %v8127_v26 = vpop.xlane.xlu0 %8126 }
0x216a   :  { %v8128_v30 = vmul.f32 %v8127_v26, %v15656_v17 }
0x216c   :  { %v8129_v32 = vadd.f32 1e-05, %v8128_v30 }
0x216e   :  { %15011 = vrsqrt.f32 %v8129_v32  ;;  %vm8136_vm13 = vweird.f32 %v8129_v32 }
0x2174   :  { %v15012_v35 = vpop.eup %15011 }
0x2175   :  { %v8131_v0 = vmul.f32 %v15012_v35, %v8129_v32  ;;  %vm8137_vm12 = vweird.f32 %v15012_v35 }
0x2176   :  { %vm8138_vm14 = vmor %vm8136_vm13, %vm8137_vm12 }
0x2177   :  { %v8132_v45 = vmul.f32 %v15012_v35, %v8131_v0 }
0x2179   :  { %v8133_v36 = vmul.f32 0.5, %v8132_v45 }
0x217b   :  { %v8134_v37 = vsub.f32 1.5, %v8133_v36 }
0x217c   :  { %v8453_v40 = vpop.permute.xlu0 %8452 }
0x217d   :  { %v8135_v14 = vmul.f32 %v15012_v35, %v8134_v37  ;;  %13000 = vmatpush.xpose.msk.msrb.mxu0 %vm360_vm4, %v8453_v40 }
0x217f   :  { %v8139_v33 = vsel %vm8138_vm14, %v15012_v35, %v8135_v14 }
0x2180   :  { %v8140_v47 = vmul.f32 %v8139_v33, %v8123_v28 }
0x2182   :  { %v8144_v34 = vmul.f32 %v14859_v15, %v8140_v47 }
0x2184   :  { %v16971_v51 = vadd.f32 %v14860_v43, %v8144_v34 }
0x2186   :  { %v8154_v27 = vpack.c.bf16 %v16971_v51, %v16971_v51 }
0x2188   :  { %12967 = vmatmul.msk.bf16.vlgmr.msra.gmra.mxu3 %vm331_vm3, %v8154_v27 }
0x220b   :  { %v8184_v59 = vpop.f32.mrf.mxu3 }
0x220c   :  { %v8185_v21 = vadd.f32 %v14861_v48, %v8184_v59 }
0x220e   :  { %8302 = vrot.lane.b32.xlu2 %v8185_v21, %s15220_s5  ;;  %12989 = vmatmul.msk.f32.vlgmr.msra.gmra.mxu2 %vm360_vm4, %v8185_v21 }
0x2213   :  { %v8186_v46 = vpop.f32.mrf.mxu3 }
0x2216   :  { %8376 = vrot.lane.b32.xlu2 %v8185_v21, %s15223_s21 }
0x221e   :  { %8450 = vrot.lane.b32.xlu2 %v8185_v21, %s15226_s4 }
0x2268   :  { %v8303_v58 = vpop.permute.xlu2 %8302 }
0x2269   :  { %12993 = vmatmul.msk.f32.vlgmr.msra.gmra.mxu0 %vm360_vm4, %v8303_v58 }
0x2270   :  { %v8377_v50 = vpop.permute.xlu2 %8376 }
0x2271   :  { %12997 = vmatmul.msk.f32.vlgmr.msra.gmra.mxu1 %vm360_vm4, %v8377_v50 }
0x2278   :  { %v8451_v52 = vpop.permute.xlu2 %8450 }
0x2279   :  { %13001 = vmatmul.msk.f32.vlgmr.msrb.gmra.mxu0 %vm360_vm4, %v8451_v52 }
0x2291   :  { %v8257_v39 = vpop.f32.mrf.mxu2 }
0x2292   :  { %v8260_v61 = vmul.f32 0.35355338, %v8257_v39 }
0x2294   :  { %v8261_v5 = vadd.f32 %v15038_v62, %v8260_v61 }
0x2296   :  { %v8262_v6 = vsel %vm396_vm5, %v8261_v5, -inf }
0x2297   :  { %8263 = vmax.xlane.f32.xlu2 %v8262_v6  ;;  %v14479_v6 = vld [vmem:[%s17386_s29 + $0x18] sm:$0xff] }
0x2298   :  { %8564 = vmatpush.bf16.msrb.mxu1 %v14479_v6  ;;  %v13325_v6 = vld [vmem:[%s17388_s20 + $0x150] sm:$0xf0] }
0x22e6   :  { %v8331_v53 = vpop.f32.mrf.mxu0 }
0x22e7   :  { %v8334_v2 = vmul.f32 0.35355338, %v8331_v53  ;;  %v14478_v53 = vld [vmem:[%s17386_s29 + $0x10] sm:$0xff] }
0x22e8   :  { %8565 = vmatpush.bf16.msrb.mxu1 %v14478_v53  ;;  %v13331_v53 = vld [vmem:[%s17388_s20 + $0x118] sm:$0xf] }
0x22e9   :  { %v8335_v56 = vadd.f32 %v15038_v62, %v8334_v2 }
0x22eb   :  { %v8336_v7 = vsel %vm396_vm5, %v8335_v56, -inf }
0x22ec   :  { %8337 = vmax.xlane.f32.xlu0 %v8336_v7 }
0x22ee   :  { %v8405_v42 = vpop.f32.mrf.mxu1 }
0x22ef   :  { %v8408_v38 = vmul.f32 0.35355338, %v8405_v42 }
0x22f1   :  { %v8409_v16 = vadd.f32 %v15038_v62, %v8408_v38 }
0x22f3   :  { %v8410_v1 = vsel %vm396_vm5, %v8409_v16, -inf }
0x22f4   :  { %8411 = vmax.xlane.f32.xlu1 %v8410_v1 }
0x22f6   :  { %v8479_v3 = vpop.f32.mrf.mxu0 }
0x22f7   :  { %v8482_v63 = vmul.f32 0.35355338, %v8479_v3  ;;  %v14862_v3 = vld [vmem:[%s17387_s8 + $0x1] ss:$0 sm:$0xff] }
0x22f9   :  { %v8483_v12 = vadd.f32 %v15038_v62, %v8482_v63 }
0x22fb   :  { %v8484_v11 = vsel %vm396_vm5, %v8483_v12, -inf }
0x22fc   :  { %8485 = vmax.xlane.f32.xlu2 %v8484_v11 }
0x2300   :  { %14812 = vrot.lane.b32.xlu0 %v14811_v8, %s15221_s13 }
0x230a   :  { %v8264_v13 = vpop.xlane.xlu2 %8263 }
0x230b   :  { %v8265_v31 = vsub.f32 %v8261_v5, %v8264_v13 }
0x230d   :  { %v8266_v41 = vmul.f32 1.442695, %v8265_v31 }
0x230f   :  { %15013 = vpow2.f32 %v8266_v41 }
0x2314   :  { %14807 = vrot.lane.b32.xlu2 %v14811_v8, %s15222_s17 }
0x2315   :  { %v15014_v57 = vpop.eup %15013 }
0x2316   :  { %v8268_v9 = vsel %vm396_vm5, %v15014_v57, 0.0 }
0x232a   :  { %8269 = vadd.xlane.f32.xlu0 %v8268_v9 }
0x233e   :  { %14822 = vrot.lane.b32.xlu0 %v14811_v8, %s15225_s27 }
0x235f   :  { %v8338_v55 = vpop.xlane.xlu0 %8337 }
0x2360   :  { %v8339_v23 = vsub.f32 %v8335_v56, %v8338_v55 }
0x2362   :  { %v8340_v18 = vmul.f32 1.442695, %v8339_v23  ;;  %v14504_v23 = vld [vmem:[%s17388_s20 + $0x1bc] sm:$0xf0] }
0x2364   :  { %15015 = vpow2.f32 %v8340_v18  ;;  %v14496_v18 = vld [vmem:[%s17388_s20 + $0x184] sm:$0xf] }
0x2367   :  { %v8412_v10 = vpop.xlane.xlu1 %8411 }
0x2368   :  { %v8413_v54 = vsub.f32 %v8409_v16, %v8412_v10 }
0x236a   :  { %v15016_v4 = vpop.eup %15015  ;;  %v8414_v29 = vmul.f32 1.442695, %v8413_v54  ;;  %v13373_v54 = vld [vmem:[%s17388_s20 + $0x1c0] sm:$0xf0] }
0x236b   :  { %v8342_v60 = vsel %vm396_vm5, %v15016_v4, 0.0 }
0x236c   :  { %15017 = vpow2.f32 %v8414_v29  ;;  %8343 = vadd.xlane.f32.xlu1 %v8342_v60  ;;  %v14505_v29 = vld [vmem:[%s17388_s20 + $0x1c4] sm:$0xf0]  ;;  %v13376_v60 = vor.u32 %v14496_v18, %v13373_v54  ;;  %v14500_v18 = vld [vmem:[%s17388_s20 + $0x1a4] sm:$0xf] }
0x236d   :  { %v13411_v54 = vld [vmem:[%s17388_s20 + $0x1a8] sm:$0xf] }
0x236e   :  { %9118 = vmatpush.bf16.msra.mxu0 %v13376_v60  ;;  %v14501_v60 = vld [vmem:[%s17388_s20 + $0x1ac] sm:$0xf] }
0x236f   :  { %v8486_v19 = vpop.xlane.xlu2 %8485 }
0x2370   :  { %v8487_v20 = vsub.f32 %v8483_v12, %v8486_v19 }
0x2372   :  { %v15018_v28 = vpop.eup %15017  ;;  %v8488_v22 = vmul.f32 1.442695, %v8487_v20  ;;  %v14813_v24 = vpop.permute.xlu0 %14812  ;;  %v14497_v20 = vld [vmem:[%s17388_s20 + $0x18c] sm:$0xf] }
0x2373   :  { %v14814_v25 = vunpack.i.l.bf16 %v14813_v24  ;;  %v8416_v49 = vsel %vm396_vm5, %v15018_v28, 0.0  ;;  %v14815_v44 = vunpack.i.h.bf16 %v14813_v24  ;;  %v13307_v24 = vld [vmem:[%s17388_s20 + $0x100] sm:$0xf] }
0x2374   :  { %15019 = vpow2.f32 %v8488_v22  ;;  %8417 = vadd.xlane.f32.xlu1 %v8416_v49  ;;  %v14480_v49 = vld [vmem:[%s17388_s20 + $0x104] sm:$0xf] }
0x2375   :  { %8370 = vmatpush.msrb.mxu3 %v14814_v25  ;;  %v14488_v25 = vld [vmem:[%s17388_s20 + $0x13c] sm:$0xf0] }
0x2377   :  { %8371 = vmatpush.msrb.mxu3 %v14815_v44  ;;  %v14808_v26 = vpop.permute.xlu2 %14807  ;;  %v13308_v44 = vor.u32 %v14488_v25, %v13307_v24  ;;  %v14492_v24 = vld [vmem:[%s17388_s20 + $0x15c] sm:$0xf0] }
0x2378   :  { %v14809_v30 = vunpack.i.l.bf16 %v14808_v26  ;;  %v14810_v35 = vunpack.i.h.bf16 %v14808_v26  ;;  %v13309_v26 = vld [vmem:[%s17388_s20 + $0x140] sm:$0xf0] }
0x237a   :  { %v15020_v32 = vpop.eup %15019  ;;  %8296 = vmatpush.msrb.mxu2 %v14809_v30  ;;  %v13315_v30 = vld [vmem:[%s17388_s20 + $0x108] sm:$0xf] }
0x237b   :  { %v8490_v0 = vsel %vm396_vm5, %v15020_v32, 0.0 }
0x237c   :  { %8491 = vadd.xlane.f32.xlu1 %v8490_v0  ;;  %8297 = vmatpush.msrb.mxu2 %v14810_v35  ;;  %v13312_v35 = vor.u32 %v14480_v49, %v13309_v26  ;;  %v13341_v26 = vld [vmem:[%s17388_s20 + $0x160] sm:$0xf0] }
0x237e   :  { %9119 = vmatpush.bf16.msra.mxu0 %v13312_v35  ;;  %v14485_v35 = vld [vmem:[%s17388_s20 + $0x12c] sm:$0xf] }
0x2395   :  { %14817 = vrot.lane.b32.xlu1 %v14811_v8, %s15224_s12 }
0x239d   :  { %v8270_v45 = vpop.xlane.xlu0 %8269 }
0x239e   :  { %15021 = vrcp.f32 %v8270_v45  ;;  %v14481_v45 = vld [vmem:[%s17388_s20 + $0x10c] sm:$0xf] }
0x23a4   :  { %v15022_v36 = vpop.eup %15021 }
0x23a5   :  { %v8272_v37 = vmul.f32 %v15022_v36, %v15014_v57  ;;  %v13317_v36 = vld [vmem:[%s17388_s20 + $0x148] sm:$0xf0] }
0x23a7   :  { %12990 = vmatmul.msk.f32.vlgmr.msrb.gmra.mxu2 %vm396_vm5, %v8272_v37  ;;  %v13320_v37 = vor.u32 %v14481_v45, %v13317_v36 }
0x23b0   :  { %v14823_v40 = vpop.permute.xlu0 %14822 }
0x23b1   :  { %v14824_v14 = vunpack.i.l.bf16 %v14823_v40  ;;  %v14825_v15 = vunpack.i.h.bf16 %v14823_v40 }
0x23b3   :  { %8518 = vmatpush.msra.mxu3 %v14824_v14  ;;  %v13387_v14 = vld [vmem:[%s17388_s20 + $0x190] sm:$0xf] }
0x23b5   :  { %8519 = vmatpush.msra.mxu3 %v14825_v15  ;;  %v14506_v15 = vld [vmem:[%s17388_s20 + $0x1cc] sm:$0xf0] }
0x23df   :  { %v8344_v33 = vpop.xlane.xlu1 %8343 }
0x23e0   :  { %15023 = vrcp.f32 %v8344_v33  ;;  %v14498_v33 = vld [vmem:[%s17388_s20 + $0x194] sm:$0xf] }
0x23e6   :  { %v15024_v43 = vpop.eup %15023 }
0x23e7   :  { %v8346_v47 = vmul.f32 %v15024_v43, %v15016_v4  ;;  %v8418_v34 = vpop.xlane.xlu1 %8417  ;;  %v13379_v4 = vld [vmem:[%s17388_s20 + $0x188] sm:$0xf] }
0x23e8   :  { %v13380_v19 = vor.u32 %v14505_v29, %v13379_v4  ;;  %v14509_v29 = vld [vmem:[%s17388_s20 + $0x1e4] sm:$0xf0] }
0x23e9   :  { %12994 = vmatmul.msk.f32.vlgmr.msrb.gmra.mxu3 %vm396_vm5, %v8346_v47  ;;  %v13388_v47 = vor.u32 %v14506_v15, %v13387_v14  ;;  %v13412_v25 = vor.u32 %v14509_v29, %v13411_v54  ;;  %v13419_v14 = vld [vmem:[%s17388_s20 + $0x1b0] sm:$0xf]  ;;  %v14539_v54 = vld [vmem:[%s17391_s9 + $0x4d8] sm:$0xff] }
0x23ea   :  { %9131 = vmatpush.bf16.msrb.mxu3 %v13380_v19  ;;  %v13413_v19 = vld [vmem:[%s17388_s20 + $0x1e8] sm:$0xf0]  ;;  %v14510_v15 = vld [vmem:[%s17388_s20 + $0x1ec] sm:$0xf0]  ;;  %v14515_v29 = vld [vmem:[%s17391_s9 + $0x418] sm:$0xff] }
0x23eb   :  { %v13416_v49 = vor.u32 %v14501_v60, %v13413_v19  ;;  %v14531_v60 = vld [vmem:[%s17391_s9 + $0x498] sm:$0xff]  ;;  %v14522_v19 = vld [vmem:[%s17391_s9 + $0x450] sm:$0xff] }
0x23ef   :  { %v8492_v27 = vpop.xlane.xlu1 %8491 }
0x23f0   :  { %15025 = vrcp.f32 %v8492_v27  ;;  %v13395_v27 = vld [vmem:[%s17388_s20 + $0x198] sm:$0xf] }
0x23f1   :  { %15027 = vrcp.f32 %v8418_v34  ;;  %v13389_v34 = vld [vmem:[%s17388_s20 + $0x1d0] sm:$0xf0] }
0x23f6   :  { %v15026_v48 = vpop.eup %15025 }
0x23f7   :  { %v8494_v59 = vmul.f32 %v15026_v48, %v15020_v32  ;;  %v15028_v46 = vpop.eup %15027  ;;  %v14489_v32 = vld [vmem:[%s17388_s20 + $0x144] sm:$0xf0]  ;;  %v14507_v48 = vld [vmem:[%s17388_s20 + $0x1d4] sm:$0xf0] }
0x23f8   :  { %v8420_v52 = vmul.f32 %v15028_v46, %v15018_v28  ;;  %v13381_v28 = vld [vmem:[%s17388_s20 + $0x1c8] sm:$0xf0]  ;;  %v13316_v0 = vor.u32 %v14489_v32, %v13315_v30  ;;  %v14499_v46 = vld [vmem:[%s17388_s20 + $0x19c] sm:$0xf]  ;;  %v13347_v30 = vld [vmem:[%s17388_s20 + $0x128] sm:$0xf] }
0x23f9   :  { %13002 = vmatmul.msk.f32.vlgmr.msra.gmra.mxu3 %vm396_vm5, %v8494_v59  ;;  %v13384_v22 = vor.u32 %v14497_v20, %v13381_v28  ;;  %v13392_v59 = vor.u32 %v14498_v33, %v13389_v34  ;;  %v14493_v32 = vld [vmem:[%s17388_s20 + $0x164] sm:$0xf0]  ;;  %v14502_v33 = vld [vmem:[%s17388_s20 + $0x1b4] sm:$0xf]  ;;  %v14511_v34 = vld [vmem:[%s17388_s20 + $0x1f4] sm:$0xf0] }
0x23fa   :  { %9132 = vmatpush.bf16.msrb.mxu3 %v13316_v0  ;;  %v13349_v0 = vld [vmem:[%s17388_s20 + $0x168] sm:$0xf0] }
0x23fb   :  { %9144 = vmatpush.bf16.msra.mxu1 %v13384_v22  ;;  %9170 = vmatpush.bf16.msrb.mxu0 %v13392_v59  ;;  %v13339_v22 = vld [vmem:[%s17388_s20 + $0x120] sm:$0xf]  ;;  %v13420_v59 = vor.u32 %v14510_v15, %v13419_v14  ;;  %v14550_v14 = vld [vmem:[%s17391_s9 + $0x530] sm:$0xff] }
0x23fc   :  { %v13340_v45 = vor.u32 %v14492_v24, %v13339_v22  ;;  %v14530_v22 = vld [vmem:[%s17391_s9 + $0x490] sm:$0xff]  ;;  %v14521_v24 = vld [vmem:[%s17391_s9 + $0x448] sm:$0xff] }
0x23fd   :  { %v14566_v15 = vld [vmem:[%s17391_s9 + $0x5b0] sm:$0xff] }
0x23ff   :  { %9145 = vmatpush.bf16.msra.mxu1 %v13320_v37  ;;  %v13348_v37 = vor.u32 %v14493_v32, %v13347_v30  ;;  %v14559_v30 = vld [vmem:[%s17391_s9 + $0x578] sm:$0xff] }
0x2400   :  { %v14575_v32 = vld [vmem:[%s17391_s9 + $0x5f8] sm:$0xff] }
0x2407   :  { %v14818_v21 = vpop.permute.xlu1 %14817 }
0x2408   :  { %v14819_v58 = vunpack.i.l.bf16 %v14818_v21  ;;  %v14820_v50 = vunpack.i.h.bf16 %v14818_v21  ;;  %v13396_v21 = vor.u32 %v14507_v48, %v13395_v27  ;;  %v14503_v27 = vld [vmem:[%s17388_s20 + $0x1bc] sm:$0xf] }
0x2409   :  { %v13429_v48 = vld [vmem:[%s17388_s20 + $0x1f8] sm:$0xf0] }
0x240a   :  { %8444 = vmatpush.msra.mxu2 %v14819_v58  ;;  %v13397_v58 = vld [vmem:[%s17388_s20 + $0x1d8] sm:$0xf0]  ;;  %9183 = vmatpush.bf16.msra.mxu3 %v13396_v21 }
0x240c   :  { %8445 = vmatpush.msra.mxu2 %v14820_v50  ;;  %v13323_v50 = vld [vmem:[%s17388_s20 + $0x110] sm:$0xf] }
0x240d   :  { %12998 = vmatmul.msk.f32.vlgmr.msra.gmra.mxu2 %vm396_vm5, %v8420_v52 }
0x242a   :  { %v8299_v62 = vpop.f32.mrf.mxu2 }
0x246c   :  { %v8373_v39 = vpop.f32.mrf.mxu3 }
0x246d   :  { %8525 = vrot.lane.b32.xlu2 %v8373_v39, %s17400_s26  ;;  %v13400_v39 = vor.u32 %v14499_v46, %v13397_v58  ;;  %v13355_v46 = vld [vmem:[%s17388_s20 + $0x130] sm:$0xf] }
0x246e   :  { %v14494_v58 = vld [vmem:[%s17388_s20 + $0x16c] sm:$0xf0] }
0x247c   :  { %v8521_v61 = vpop.f32.mrf.mxu3 }
0x247d   :  { %8533 = vrot.lane.b32.xlu2 %v8521_v61, %s17402_s14  ;;  %v14490_v61 = vld [vmem:[%s17388_s20 + $0x14c] sm:$0xf0] }
0x2490   :  { %v8447_v5 = vpop.f32.mrf.mxu2 }
0x2491   :  { %8529 = vrot.lane.b32.xlu0 %v8447_v5, %s17401_s3  ;;  %v13324_v5 = vor.u32 %v14490_v61, %v13323_v50  ;;  %v13357_v61 = vld [vmem:[%s17388_s20 + $0x170] sm:$0xf0] }
0x24c7   :  { %v8526_v2 = vpop.permute.xlu2 %8525 }
0x24c8   :  { %v8536_v56 = vsel %vm360_vm4, %v8299_v62, %v8526_v2  ;;  %v14482_v62 = vld [vmem:[%s17388_s20 + $0x114] sm:$0xf]  ;;  %v14491_v2 = vld [vmem:[%s17388_s20 + $0x154] sm:$0xf0] }
0x24d7   :  { %v8534_v42 = vpop.permute.xlu2 %8533 }
0x2503   :  { %v8530_v7 = vpop.permute.xlu0 %8529 }
0x2504   :  { %v8537_v38 = vsel %vm396_vm5, %v8536_v56, %v8530_v7  ;;  %v13328_v56 = vor.u32 %v14482_v62, %v13325_v6  ;;  %v13332_v7 = vor.u32 %v14491_v2, %v13331_v53  ;;  %v13363_v62 = vld [vmem:[%s17388_s20 + $0x138] sm:$0xf]  ;;  %v14487_v6 = vld [vmem:[%s17388_s20 + $0x13c] sm:$0xf]  ;;  %v13356_v2 = vor.u32 %v14494_v58, %v13355_v46 }
0x2505   :  { %v8538_v16 = vsel %vm782_vm6, %v8537_v38, %v8534_v42  ;;  %v14483_v42 = vld [vmem:[%s17388_s20 + $0x11c] sm:$0xf] }
0x2506   :  { %v8539_v1 = vpack.c.bf16 %v8538_v16, %v8538_v16  ;;  %v13333_v38 = vld [vmem:[%s17388_s20 + $0x158] sm:$0xf0]  ;;  %9171 = vmatpush.bf16.msrb.mxu0 %v13328_v56  ;;  %9184 = vmatpush.bf16.msra.mxu3 %v13332_v7 }
0x2507   :  { %v13336_v16 = vor.u32 %v14483_v42, %v13333_v38  ;;  %v13365_v53 = vld [vmem:[%s17388_s20 + $0x178] sm:$0xf0] }
0x2508   :  { %13011 = vmatmul.msk.bf16.vlgmr.msrb.gmra.mxu1 %vm331_vm3, %v8539_v1  ;;  %v13368_v42 = vor.u32 %v14487_v6, %v13365_v53  ;;  %v14527_v38 = vld [vmem:[%s17391_s9 + $0x478] sm:$0xff]  ;;  %v14546_v6 = vld [vmem:[%s17391_s9 + $0x510] sm:$0xff] }
0x2509   :  { %9196 = vmatpush.bf16.msrb.mxu1 %v13400_v39  ;;  %v14486_v39 = vld [vmem:[%s17388_s20 + $0x134] sm:$0xf]  ;;  %v14555_v46 = vld [vmem:[%s17391_s9 + $0x558] sm:$0xff] }
0x250a   :  { %v13360_v56 = vor.u32 %v14486_v39, %v13357_v61  ;;  %v14571_v58 = vld [vmem:[%s17391_s9 + $0x5d8] sm:$0xff]  ;;  %v14562_v53 = vld [vmem:[%s17391_s9 + $0x590] sm:$0xff] }
0x250b   :  { %v14547_v39 = vld [vmem:[%s17391_s9 + $0x518] sm:$0xff] }
0x250c   :  { %v14563_v61 = vld [vmem:[%s17391_s9 + $0x598] sm:$0xff] }
0x250d   :  { %9197 = vmatpush.bf16.msrb.mxu1 %v13336_v16  ;;  %v14543_v16 = vld [vmem:[%s17391_s9 + $0x4f8] sm:$0xff] }
0x2585   :  { %v8567_v63 = vpop.f32.mrf.mxu1 }
0x2586   :  { %v8568_v12 = vadd.f32 %v14862_v3, %v8567_v63 }
0x2588   :  { %v8571_v11 = vadd.f32 %v8568_v12, %v16971_v51  ;;  %v13371_v51 = vld [vmem:[%s17388_s20 + $0x180] sm:$0xf] }
0x2589   :  { %v13372_v10 = vor.u32 %v14504_v23, %v13371_v51  ;;  %v13403_v51 = vld [vmem:[%s17388_s20 + $0x1a0] sm:$0xf] }
0x258a   :  { %v8576_v8 = vsel %vm331_vm3, %v8571_v11, 0.0  ;;  %v14508_v23 = vld [vmem:[%s17388_s20 + $0x1dc] sm:$0xf0] }
0x258b   :  { %8577 = vadd.xlane.f32.xlu0 %v8576_v8  ;;  %9105 = vmatpush.bf16.msrb.mxu2 %v13372_v10  ;;  %v13405_v10 = vld [vmem:[%s17388_s20 + $0x1e0] sm:$0xf0]  ;;  %v13404_v20 = vor.u32 %v14508_v23, %v13403_v51 }
0x258c   :  { %v13408_v28 = vor.u32 %v14500_v18, %v13405_v10  ;;  %v14540_v51 = vld [vmem:[%s17391_s9 + $0x4e0] sm:$0xff]  ;;  %v14523_v10 = vld [vmem:[%s17391_s9 + $0x458] sm:$0xff] }
0x258d   :  { %v8569_v13 = vpop.f32.mrf.mxu1  ;;  %v14516_v23 = vld [vmem:[%s17391_s9 + $0x420] sm:$0xff] }
0x258e   :  { %v14863_v13 = vld [vmem:[%s17389_s22 + $0x1] ss:$0 sm:$0xff] }
0x258f   :  { %9106 = vmatpush.bf16.msrb.mxu2 %v13308_v44  ;;  %v14484_v44 = vld [vmem:[%s17388_s20 + $0x124] sm:$0xf] }
0x2590   :  { %v13344_v36 = vor.u32 %v14484_v44, %v13341_v26  ;;  %v14532_v18 = vld [vmem:[%s17391_s9 + $0x4a0] sm:$0xff] }
0x2591   :  { %v14520_v44 = vld [vmem:[%s17391_s9 + $0x440] sm:$0xff] }
0x2592   :  { %v14536_v26 = vld [vmem:[%s17391_s9 + $0x4c0] sm:$0xff] }
0x2593   :  { %9157 = vmatpush.bf16.msra.mxu2 %v13388_v47  ;;  %v13427_v47 = vld [vmem:[%s17388_s20 + $0x1b8] sm:$0xf] }
0x2594   :  { %v13428_v50 = vor.u32 %v14511_v34, %v13427_v47  ;;  %v14549_v47 = vld [vmem:[%s17391_s9 + $0x528] sm:$0xff] }
0x2595   :  { %v14565_v34 = vld [vmem:[%s17391_s9 + $0x5a8] sm:$0xff] }
0x2597   :  { %9158 = vmatpush.bf16.msra.mxu2 %v13324_v5  ;;  %v14495_v5 = vld [vmem:[%s17388_s20 + $0x174] sm:$0xf0] }
0x2598   :  { %v13364_v7 = vor.u32 %v14495_v5, %v13363_v62  ;;  %v14553_v62 = vld [vmem:[%s17391_s9 + $0x548] sm:$0xff] }
0x2599   :  { %v14569_v5 = vld [vmem:[%s17391_s9 + $0x5c8] sm:$0xff] }
0x25fe   :  { %v8578_v31 = vpop.xlane.xlu0 %8577 }
0x25ff   :  { %v8579_v41 = vmul.f32 %v8578_v31, %v15656_v17 }
0x2601   :  { %v17016_v57 = vsub.f32 %v8571_v11, %v8579_v41  ;;  %v14864_v41 = vld [vmem:[%s17390_s15 + $0x1] ss:$0 sm:$0xff] }
0x2603   :  { %v8581_v9 = vmul.f32 %v17016_v57, %v17016_v57 }
0x2605   :  { %v8582_v55 = vsel %vm331_vm3, %v8581_v9, 0.0 }
0x2606   :  { %8583 = vadd.xlane.f32.xlu2 %v8582_v55 }
0x2679   :  { %v8584_v40 = vpop.xlane.xlu2 %8583 }
0x267a   :  { %v8585_v43 = vmul.f32 %v8584_v40, %v15656_v17  ;;  %v13352_v40 = vor.u32 %v14485_v35, %v13349_v0  ;;  %v14512_v35 = vld [vmem:[%s17391_s9 + $0x400] sm:$0xff] }
0x267b   :  { %v14528_v0 = vld [vmem:[%s17391_s9 + $0x480] sm:$0xff] }
0x267c   :  { %v8586_v52 = vadd.f32 1e-05, %v8585_v43  ;;  %v13421_v43 = vld [vmem:[%s17388_s20 + $0x1f0] sm:$0xf0] }
0x267d   :  { %v13424_v21 = vor.u32 %v14502_v33, %v13421_v43  ;;  %v14557_v33 = vld [vmem:[%s17391_s9 + $0x568] sm:$0xff] }
0x267e   :  { %15029 = vrsqrt.f32 %v8586_v52  ;;  %vm8593_vm5 = vweird.f32 %v8586_v52  ;;  %v14573_v43 = vld [vmem:[%s17391_s9 + $0x5e8] sm:$0xff] }
0x2684   :  { %v15030_v1 = vpop.eup %15029 }
0x2685   :  { %v8588_v3 = vmul.f32 %v15030_v1, %v8586_v52  ;;  %vm8594_vm4 = vweird.f32 %v15030_v1  ;;  %v13432_v52 = vor.u32 %v14503_v27, %v13429_v48  ;;  %v14556_v27 = vld [vmem:[%s17391_s9 + $0x560] sm:$0xff] }
0x2686   :  { %vm8595_vm6 = vmor %vm8593_vm5, %vm8594_vm4  ;;  %v14572_v48 = vld [vmem:[%s17391_s9 + $0x5e0] sm:$0xff] }
0x2687   :  { %v8589_v63 = vmul.f32 %v15030_v1, %v8588_v3  ;;  %v14535_v3 = vld [vmem:[%s17391_s9 + $0x4b8] sm:$0xff] }
0x2689   :  { %v8590_v12 = vmul.f32 0.5, %v8589_v63  ;;  %v14526_v63 = vld [vmem:[%s17391_s9 + $0x470] sm:$0xff] }
0x268b   :  { %v8591_v11 = vsub.f32 1.5, %v8590_v12  ;;  %v14542_v12 = vld [vmem:[%s17391_s9 + $0x4f0] sm:$0xff] }
0x268d   :  { %v8592_v8 = vmul.f32 %v15030_v1, %v8591_v11  ;;  %v14518_v11 = vld [vmem:[%s17391_s9 + $0x430] sm:$0xff] }
0x268f   :  { %v8596_v31 = vsel %vm8595_vm6, %v15030_v1, %v8592_v8  ;;  %v14519_v1 = vld [vmem:[%s17391_s9 + $0x438] sm:$0xff]  ;;  %v14534_v8 = vld [vmem:[%s17391_s9 + $0x4b0] sm:$0xff] }
0x2690   :  { %v8597_v9 = vmul.f32 %v8596_v31, %v17016_v57  ;;  %v14541_v31 = vld [vmem:[%s17391_s9 + $0x4e8] sm:$0xff] }
0x2692   :  { %v8601_v55 = vmul.f32 %v14863_v13, %v8597_v9  ;;  %v14525_v13 = vld [vmem:[%s17391_s9 + $0x468] sm:$0xff] }
0x2693   :  { %v14533_v9 = vld [vmem:[%s17391_s9 + $0x4a8] sm:$0xff] }
0x2694   :  { %v17062_v4 = vadd.f32 %v14864_v41, %v8601_v55  ;;  %v14517_v41 = vld [vmem:[%s17391_s9 + $0x428] sm:$0xff]  ;;  %v14524_v55 = vld [vmem:[%s17391_s9 + $0x460] sm:$0xff] }
0x2696   :  { %v17069_v57 = vpack.c.bf16 %v17062_v4, %v17062_v4 }
0x2698   :  { %13433 = vmatmul.msk.bf16.vlgmr.msrb.gmra.mxu2 %vm331_vm3, %v17069_v57  ;;  %13434 = vmatmul.msk.bf16.vlgmr.msra.gmra.mxu0 %vm331_vm3, %v17069_v57 }
0x2699   :  { %13435 = vmatmul.msk.bf16.vlgmr.msrb.gmra.mxu3 %vm331_vm3, %v17069_v57  ;;  %13436 = vmatmul.msk.bf16.vlgmr.msra.gmra.mxu1 %vm331_vm3, %v17069_v57 }
0x269a   :  { %9209 = vmatpush.bf16.msrb.mxu2 %v13404_v20  ;;  %9222 = vmatpush.bf16.msra.mxu0 %v13408_v28  ;;  %v14538_v20 = vld [vmem:[%s17391_s9 + $0x4d0] sm:$0xff] }
0x269b   :  { %9235 = vmatpush.bf16.msrb.mxu3 %v13412_v25  ;;  %9248 = vmatpush.bf16.msra.mxu1 %v13416_v49  ;;  %v14514_v28 = vld [vmem:[%s17391_s9 + $0x410] sm:$0xff]  ;;  %v14513_v25 = vld [vmem:[%s17391_s9 + $0x408] sm:$0xff] }
0x269c   :  { %v14529_v49 = vld [vmem:[%s17391_s9 + $0x488] sm:$0xff] }
0x269e   :  { %9210 = vmatpush.bf16.msrb.mxu2 %v13340_v45  ;;  %9223 = vmatpush.bf16.msra.mxu0 %v13344_v36  ;;  %v14551_v45 = vld [vmem:[%s17391_s9 + $0x538] sm:$0xff] }
0x269f   :  { %9236 = vmatpush.bf16.msrb.mxu3 %v13348_v37  ;;  %9249 = vmatpush.bf16.msra.mxu1 %v13352_v40  ;;  %v14567_v36 = vld [vmem:[%s17391_s9 + $0x5b8] sm:$0xff]  ;;  %v14558_v37 = vld [vmem:[%s17391_s9 + $0x570] sm:$0xff] }
0x26a0   :  { %v14574_v40 = vld [vmem:[%s17391_s9 + $0x5f0] sm:$0xff] }
0x26a8   :  { %13437 = vmatmul.msk.bf16.vlgmr.msra.gmra.mxu2 %vm331_vm3, %v17069_v57  ;;  %13438 = vmatmul.msk.bf16.vlgmr.msrb.gmra.mxu0 %vm331_vm3, %v17069_v57 }
0x26a9   :  { %13439 = vmatmul.msk.bf16.vlgmr.msra.gmra.mxu3 %vm331_vm3, %v17069_v57  ;;  %13440 = vmatmul.msk.bf16.vlgmr.msrb.gmra.mxu1 %vm331_vm3, %v17069_v57 }
0x26aa   :  { %9261 = vmatpush.bf16.msra.mxu2 %v13420_v59  ;;  %9274 = vmatpush.bf16.msrb.mxu0 %v13424_v21  ;;  %v14548_v59 = vld [vmem:[%s17391_s9 + $0x520] sm:$0xff] }
0x26ab   :  { %9287 = vmatpush.bf16.msra.mxu3 %v13428_v50  ;;  %9300 = vmatpush.bf16.msrb.mxu1 %v13432_v52  ;;  %v14564_v21 = vld [vmem:[%s17391_s9 + $0x5a0] sm:$0xff]  ;;  %v14554_v50 = vld [vmem:[%s17391_s9 + $0x550] sm:$0xff] }
0x26ac   :  { %v14570_v52 = vld [vmem:[%s17391_s9 + $0x5d0] sm:$0xff] }
0x26ae   :  { %9262 = vmatpush.bf16.msra.mxu2 %v13356_v2  ;;  %9275 = vmatpush.bf16.msrb.mxu0 %v13360_v56  ;;  %v14552_v2 = vld [vmem:[%s17391_s9 + $0x540] sm:$0xff] }
0x26af   :  { %9288 = vmatpush.bf16.msra.mxu3 %v13364_v7  ;;  %9301 = vmatpush.bf16.msrb.mxu1 %v13368_v42  ;;  %v14568_v56 = vld [vmem:[%s17391_s9 + $0x5c0] sm:$0xff]  ;;  %v14545_v7 = vld [vmem:[%s17391_s9 + $0x508] sm:$0xff] }
0x26b0   :  { %v14561_v42 = vld [vmem:[%s17391_s9 + $0x588] sm:$0xff] }
0x26b8   :  { %13441 = vmatmul.msk.bf16.vlgmr.msrb.gmra.mxu2 %vm331_vm3, %v17069_v57  ;;  %13442 = vmatmul.msk.bf16.vlgmr.msra.gmra.mxu0 %vm331_vm3, %v17069_v57 }
0x26b9   :  { %13443 = vmatmul.msk.bf16.vlgmr.msrb.gmra.mxu3 %vm331_vm3, %v17069_v57  ;;  %13444 = vmatmul.msk.bf16.vlgmr.msra.gmra.mxu1 %vm331_vm3, %v17069_v57 }
0x26ba   :  { %10123 = vmatpush.bf16.msra.mxu0 %v14527_v38  ;;  %10149 = vmatpush.bf16.msra.mxu1 %v14543_v16  ;;  %v14544_v38 = vld [vmem:[%s17391_s9 + $0x500] sm:$0xff] }
0x26bb   :  { %10110 = vmatpush.bf16.msrb.mxu2 %v14519_v1  ;;  %10136 = vmatpush.bf16.msrb.mxu3 %v14535_v3  ;;  %v14560_v16 = vld [vmem:[%s17391_s9 + $0x580] sm:$0xff]  ;;  %v17192_v1 = vld [vmem:[%s17392_s16 + $0x10] sm:$0xff] }
0x26bc   :  { %v8905_v3 = vperm.slane %v17192_v1, 1 }
0x26be   :  { %10124 = vmatpush.bf16.msra.mxu0 %v14526_v63  ;;  %10150 = vmatpush.bf16.msra.mxu1 %v14542_v12  ;;  %v8907_v63 = vperm.slane %v17192_v1, 3 }
0x26bf   :  { %10111 = vmatpush.bf16.msrb.mxu2 %v14518_v11  ;;  %10137 = vmatpush.bf16.msrb.mxu3 %v14534_v8 }
0x26c2   :  { %10125 = vmatpush.bf16.msra.mxu0 %v14525_v13  ;;  %10151 = vmatpush.bf16.msra.mxu1 %v14541_v31 }
0x26c3   :  { %10112 = vmatpush.bf16.msrb.mxu2 %v14517_v41  ;;  %10138 = vmatpush.bf16.msrb.mxu3 %v14533_v9  ;;  %v8904_v41 = vperm.slane %v17192_v1, 0 }
0x26c6   :  { %10126 = vmatpush.bf16.msra.mxu0 %v14524_v55  ;;  %10152 = vmatpush.bf16.msra.mxu1 %v14540_v51  ;;  %v8906_v55 = vperm.slane %v17192_v1, 2  ;;  %v14591_v51 = vld [vmem:[%s17391_s9 + $0x678] sm:$0xff] }
0x26c7   :  { %10113 = vmatpush.bf16.msrb.mxu2 %v14516_v23  ;;  %10139 = vmatpush.bf16.msrb.mxu3 %v14532_v18  ;;  %v14607_v18 = vld [vmem:[%s17391_s9 + $0x6f8] sm:$0xff] }
0x26c8   :  { %13445 = vmatmul.msk.bf16.vlgmr.msra.gmra.mxu2 %vm331_vm3, %v17069_v57  ;;  %13446 = vmatmul.msk.bf16.vlgmr.msrb.gmra.mxu0 %vm331_vm3, %v17069_v57 }
0x26c9   :  { %13447 = vmatmul.msk.bf16.vlgmr.msra.gmra.mxu3 %vm331_vm3, %v17069_v57  ;;  %13448 = vmatmul.msk.bf16.vlgmr.msrb.gmra.mxu1 %vm331_vm3, %v17069_v57  ;;  %v14537_v57 = vld [vmem:[%s17391_s9 + $0x4c8] sm:$0xff] }
0x26ca   :  { %10127 = vmatpush.bf16.msra.mxu0 %v14523_v10  ;;  %10153 = vmatpush.bf16.msra.mxu1 %v14539_v54 }
0x26cb   :  { %10114 = vmatpush.bf16.msrb.mxu2 %v14515_v29  ;;  %10140 = vmatpush.bf16.msrb.mxu3 %v14531_v60 }
0x26ce   :  { %10128 = vmatpush.bf16.msra.mxu0 %v14522_v19  ;;  %10154 = vmatpush.bf16.msra.mxu1 %v14538_v20 }
0x26cf   :  { %10115 = vmatpush.bf16.msrb.mxu2 %v14514_v28  ;;  %10141 = vmatpush.bf16.msrb.mxu3 %v14530_v22  ;;  %v14590_v28 = vld [vmem:[%s17391_s9 + $0x670] sm:$0xff] }
0x26d2   :  { %10129 = vmatpush.bf16.msra.mxu0 %v14521_v24  ;;  %10155 = vmatpush.bf16.msra.mxu1 %v14537_v57  ;;  %v14606_v57 = vld [vmem:[%s17391_s9 + $0x6f0] sm:$0xff] }
0x26d3   :  { %10116 = vmatpush.bf16.msrb.mxu2 %v14513_v25  ;;  %10142 = vmatpush.bf16.msrb.mxu3 %v14529_v49  ;;  %v14583_v49 = vld [vmem:[%s17391_s9 + $0x638] sm:$0xff] }
0x26d6   :  { %10130 = vmatpush.bf16.msra.mxu0 %v14520_v44  ;;  %10156 = vmatpush.bf16.msra.mxu1 %v14536_v26  ;;  %v14599_v26 = vld [vmem:[%s17391_s9 + $0x6b8] sm:$0xff] }
0x26d7   :  { %10117 = vmatpush.bf16.msrb.mxu2 %v14512_v35  ;;  %10143 = vmatpush.bf16.msrb.mxu3 %v14528_v0  ;;  %v14605_v35 = vld [vmem:[%s17391_s9 + $0x6e8] sm:$0xff]  ;;  %v8909_v0 = vperm.slane %v17192_v1, 5 }
0x26da   :  { %10175 = vmatpush.bf16.msrb.mxu0 %v14559_v30  ;;  %10201 = vmatpush.bf16.msrb.mxu1 %v14575_v32  ;;  %v14589_v32 = vld [vmem:[%s17391_s9 + $0x668] sm:$0xff] }
0x26db   :  { %10162 = vmatpush.bf16.msra.mxu2 %v14551_v45  ;;  %10188 = vmatpush.bf16.msra.mxu3 %v14567_v36  ;;  %v8911_v36 = vperm.slane %v17192_v1, 7 }
0x26de   :  { %10176 = vmatpush.bf16.msrb.mxu0 %v14558_v37  ;;  %10202 = vmatpush.bf16.msrb.mxu1 %v14574_v40  ;;  %v14582_v37 = vld [vmem:[%s17391_s9 + $0x630] sm:$0xff] }
0x26df   :  { %10163 = vmatpush.bf16.msra.mxu2 %v14550_v14  ;;  %10189 = vmatpush.bf16.msra.mxu3 %v14566_v15  ;;  %v14598_v14 = vld [vmem:[%s17391_s9 + $0x6b0] sm:$0xff] }
0x26e2   :  { %10177 = vmatpush.bf16.msrb.mxu0 %v14557_v33  ;;  %10203 = vmatpush.bf16.msrb.mxu1 %v14573_v43  ;;  %v14588_v33 = vld [vmem:[%s17391_s9 + $0x660] sm:$0xff] }
0x26e3   :  { %10164 = vmatpush.bf16.msra.mxu2 %v14549_v47  ;;  %10190 = vmatpush.bf16.msra.mxu3 %v14565_v34  ;;  %v14604_v34 = vld [vmem:[%s17391_s9 + $0x6e0] sm:$0xff] }
0x26e6   :  { %10178 = vmatpush.bf16.msrb.mxu0 %v14556_v27  ;;  %10204 = vmatpush.bf16.msrb.mxu1 %v14572_v48  ;;  %v14581_v48 = vld [vmem:[%s17391_s9 + $0x628] sm:$0xff] }
0x26e7   :  { %10165 = vmatpush.bf16.msra.mxu2 %v14548_v59  ;;  %10191 = vmatpush.bf16.msra.mxu3 %v14564_v21  ;;  %v14597_v21 = vld [vmem:[%s17391_s9 + $0x6a8] sm:$0xff] }
0x26ea   :  { %10179 = vmatpush.bf16.msrb.mxu0 %v14555_v46  ;;  %10205 = vmatpush.bf16.msrb.mxu1 %v14571_v58  ;;  %v8908_v46 = vperm.slane %v17192_v1, 4 }
0x26eb   :  { %10166 = vmatpush.bf16.msra.mxu2 %v14547_v39  ;;  %10192 = vmatpush.bf16.msra.mxu3 %v14563_v61  ;;  %v14603_v61 = vld [vmem:[%s17391_s9 + $0x6d8] sm:$0xff] }
0x26ee   :  { %10180 = vmatpush.bf16.msrb.mxu0 %v14554_v50  ;;  %10206 = vmatpush.bf16.msrb.mxu1 %v14570_v52  ;;  %v8910_v50 = vperm.slane %v17192_v1, 6  ;;  %v14587_v52 = vld [vmem:[%s17391_s9 + $0x658] sm:$0xff] }
0x26ef   :  { %10167 = vmatpush.bf16.msra.mxu2 %v14546_v6  ;;  %10193 = vmatpush.bf16.msra.mxu3 %v14562_v53  ;;  %v14580_v6 = vld [vmem:[%s17391_s9 + $0x620] sm:$0xff] }
0x26f2   :  { %10181 = vmatpush.bf16.msrb.mxu0 %v14553_v62  ;;  %10207 = vmatpush.bf16.msrb.mxu1 %v14569_v5 }
0x26f3   :  { %10168 = vmatpush.bf16.msra.mxu2 %v14545_v7  ;;  %10194 = vmatpush.bf16.msra.mxu3 %v14561_v42 }
0x26f6   :  { %10182 = vmatpush.bf16.msrb.mxu0 %v14552_v2  ;;  %10208 = vmatpush.bf16.msrb.mxu1 %v14568_v56  ;;  %v14596_v56 = vld [vmem:[%s17391_s9 + $0x6a0] sm:$0xff] }
0x26f7   :  { %10169 = vmatpush.bf16.msra.mxu2 %v14544_v38  ;;  %10195 = vmatpush.bf16.msra.mxu3 %v14560_v16  ;;  %v14586_v38 = vld [vmem:[%s17391_s9 + $0x650] sm:$0xff] }
0x2715   :  { %v9121_v12 = vpop.f32.mrf.mxu0 }
0x2716   :  { %v9122_v11 = vadd.f32 %v9121_v12, %v8905_v3  ;;  %v9147_v8 = vpop.f32.mrf.mxu1  ;;  %v14602_v3 = vld [vmem:[%s17391_s9 + $0x6d0] sm:$0xff]  ;;  %v14579_v12 = vld [vmem:[%s17391_s9 + $0x618] sm:$0xff] }
0x2717   :  { %v9148_v13 = vadd.f32 %v9147_v8, %v8907_v63 }
0x2718   :  { %v9308_v31 = vmax.f32 %v9122_v11, 0.0  ;;  %v17224_v11 = vld [vmem:[%s17392_s16 + $0x18] sm:$0xff] }
0x2719   :  { %v9310_v9 = vmax.f32 %v9148_v13, 0.0  ;;  %v14595_v13 = vld [vmem:[%s17391_s9 + $0x698] sm:$0xff] }
0x271a   :  { %v9324_v23 = vpack.c.bf16 %v9308_v31, %v9308_v31 }
0x271b   :  { %v9326_v10 = vpack.c.bf16 %v9310_v9, %v9310_v9  ;;  %v9108_v54 = vpop.f32.mrf.mxu2  ;;  %v14601_v9 = vld [vmem:[%s17391_s9 + $0x6c8] sm:$0xff] }
0x271c   :  { %v9109_v29 = vadd.f32 %v9108_v54, %v8904_v41  ;;  %v9134_v60 = vpop.f32.mrf.mxu3  ;;  %10131 = vmatmul.bf16.vlgmr.msra.gmra.mxu0 %v9324_v23  ;;  %v14585_v41 = vld [vmem:[%s17391_s9 + $0x648] sm:$0xff]  ;;  %v8915_v23 = vperm.slane %v17224_v11, 3  ;;  %v14594_v54 = vld [vmem:[%s17391_s9 + $0x690] sm:$0xff] }
0x271d   :  { %v9135_v19 = vadd.f32 %v9134_v60, %v8906_v55  ;;  %10157 = vmatmul.bf16.vlgmr.msra.gmra.mxu1 %v9326_v10  ;;  %10227 = vmatpush.bf16.msra.mxu0 %v14591_v51  ;;  %v9123_v20 = vpop.f32.mrf.mxu0  ;;  %v8913_v55 = vperm.slane %v17224_v11, 1  ;;  %v14584_v60 = vld [vmem:[%s17391_s9 + $0x640] sm:$0xff] }
0x271e   :  { %v9307_v22 = vmax.f32 %v9109_v29, 0.0  ;;  %10253 = vmatpush.bf16.msra.mxu1 %v14607_v18  ;;  %v9149_v24 = vpop.f32.mrf.mxu1  ;;  %v14578_v18 = vld [vmem:[%s17391_s9 + $0x610] sm:$0xff] }
0x271f   :  { %v9309_v25 = vmax.f32 %v9135_v19, 0.0 }
0x2720   :  { %v9323_v44 = vpack.c.bf16 %v9307_v22, %v9307_v22  ;;  %v14623_v22 = vld [vmem:[%s17391_s9 + $0x778] sm:$0xff] }
0x2721   :  { %v9325_v30 = vpack.c.bf16 %v9309_v25, %v9309_v25  ;;  %10228 = vmatpush.bf16.msra.mxu0 %v14590_v28  ;;  %v14600_v28 = vld [vmem:[%s17391_s9 + $0x6c0] sm:$0xff]  ;;  %v14577_v25 = vld [vmem:[%s17391_s9 + $0x608] sm:$0xff] }
0x2722   :  { %10254 = vmatpush.bf16.msra.mxu1 %v14606_v57  ;;  %10118 = vmatmul.bf16.vlgmr.msrb.gmra.mxu2 %v9323_v44  ;;  %v14639_v57 = vld [vmem:[%s17391_s9 + $0x7f8] sm:$0xff]  ;;  %v14593_v44 = vld [vmem:[%s17391_s9 + $0x688] sm:$0xff] }
0x2723   :  { %10144 = vmatmul.bf16.vlgmr.msrb.gmra.mxu3 %v9325_v30  ;;  %10214 = vmatpush.bf16.msrb.mxu2 %v14583_v49  ;;  %v9110_v45 = vpop.f32.mrf.mxu2 }
0x2724   :  { %10240 = vmatpush.bf16.msrb.mxu3 %v14599_v26  ;;  %v9136_v40 = vpop.f32.mrf.mxu3  ;;  %v8912_v26 = vperm.slane %v17224_v11, 0 }
0x2725   :  { %10229 = vmatpush.bf16.msra.mxu0 %v14589_v32  ;;  %v9173_v15 = vpop.f32.mrf.mxu0  ;;  %v8914_v32 = vperm.slane %v17224_v11, 2  ;;  %v14576_v40 = vld [vmem:[%s17391_s9 + $0x600] sm:$0xff] }
0x2726   :  { %10255 = vmatpush.bf16.msra.mxu1 %v14605_v35  ;;  %v9174_v43 = vadd.f32 %v9173_v15, %v8909_v0  ;;  %v9199_v47 = vpop.f32.mrf.mxu1  ;;  %v14622_v0 = vld [vmem:[%s17391_s9 + $0x770] sm:$0xff] }
0x2727   :  { %v9200_v27 = vadd.f32 %v9199_v47, %v8911_v36  ;;  %10215 = vmatpush.bf16.msrb.mxu2 %v14582_v37  ;;  %v14638_v37 = vld [vmem:[%s17391_s9 + $0x7f0] sm:$0xff] }
0x2728   :  { %v9312_v59 = vmax.f32 %v9174_v43, 0.0  ;;  %10241 = vmatpush.bf16.msrb.mxu3 %v14598_v14  ;;  %v14615_v43 = vld [vmem:[%s17391_s9 + $0x738] sm:$0xff] }
0x2729   :  { %v9314_v58 = vmax.f32 %v9200_v27, 0.0  ;;  %10230 = vmatpush.bf16.msra.mxu0 %v14588_v33  ;;  %v14592_v33 = vld [vmem:[%s17391_s9 + $0x680] sm:$0xff]  ;;  %v14631_v27 = vld [vmem:[%s17391_s9 + $0x7b8] sm:$0xff] }
0x272a   :  { %v9328_v39 = vpack.c.bf16 %v9312_v59, %v9312_v59  ;;  %10256 = vmatpush.bf16.msra.mxu1 %v14604_v34 }
0x272b   :  { %v9330_v62 = vpack.c.bf16 %v9314_v58, %v9314_v58  ;;  %10216 = vmatpush.bf16.msrb.mxu2 %v14581_v48  ;;  %v9160_v5 = vpop.f32.mrf.mxu2  ;;  %v14637_v58 = vld [vmem:[%s17391_s9 + $0x7e8] sm:$0xff] }
0x272c   :  { %10242 = vmatpush.bf16.msrb.mxu3 %v14597_v21  ;;  %v9161_v53 = vadd.f32 %v9160_v5, %v8908_v46  ;;  %v9186_v2 = vpop.f32.mrf.mxu3  ;;  %10183 = vmatmul.bf16.vlgmr.msrb.gmra.mxu0 %v9328_v39  ;;  %v14621_v21 = vld [vmem:[%s17391_s9 + $0x768] sm:$0xff] }
0x272d   :  { %v9187_v7 = vadd.f32 %v9186_v2, %v8910_v50  ;;  %10209 = vmatmul.bf16.vlgmr.msrb.gmra.mxu1 %v9330_v62  ;;  %10231 = vmatpush.bf16.msra.mxu0 %v14587_v52  ;;  %v9175_v42 = vpop.f32.mrf.mxu0  ;;  %v14614_v52 = vld [vmem:[%s17391_s9 + $0x730] sm:$0xff]  ;;  %v14620_v62 = vld [vmem:[%s17391_s9 + $0x760] sm:$0xff]  ;;  %v14613_v2 = vld [vmem:[%s17391_s9 + $0x728] sm:$0xff] }
0x272e   :  { %v9311_v16 = vmax.f32 %v9161_v53, 0.0  ;;  %10257 = vmatpush.bf16.msra.mxu1 %v14603_v61  ;;  %v9201_v1 = vpop.f32.mrf.mxu1  ;;  %v14630_v61 = vld [vmem:[%s17391_s9 + $0x7b0] sm:$0xff] }
0x272f   :  { %v9313_v63 = vmax.f32 %v9187_v7, 0.0  ;;  %10217 = vmatpush.bf16.msrb.mxu2 %v14580_v6  ;;  %v14636_v6 = vld [vmem:[%s17391_s9 + $0x7e0] sm:$0xff]  ;;  %v14629_v7 = vld [vmem:[%s17391_s9 + $0x7a8] sm:$0xff] }
0x2730   :  { %v9327_v8 = vpack.c.bf16 %v9311_v16, %v9311_v16  ;;  %10243 = vmatpush.bf16.msrb.mxu3 %v14596_v56  ;;  %v14635_v16 = vld [vmem:[%s17391_s9 + $0x7d8] sm:$0xff]  ;;  %v14612_v1 = vld [vmem:[%s17391_s9 + $0x720] sm:$0xff] }
0x2731   :  { %v9329_v31 = vpack.c.bf16 %v9313_v63, %v9313_v63  ;;  %10232 = vmatpush.bf16.msra.mxu0 %v14586_v38  ;;  %v14619_v38 = vld [vmem:[%s17391_s9 + $0x758] sm:$0xff]  ;;  %v14618_v63 = vld [vmem:[%s17391_s9 + $0x750] sm:$0xff] }
0x2732   :  { %10258 = vmatpush.bf16.msra.mxu1 %v14602_v3  ;;  %10170 = vmatmul.bf16.vlgmr.msra.gmra.mxu2 %v9327_v8  ;;  %v14628_v3 = vld [vmem:[%s17391_s9 + $0x7a0] sm:$0xff] }
0x2733   :  { %10196 = vmatmul.bf16.vlgmr.msra.gmra.mxu3 %v9329_v31  ;;  %10218 = vmatpush.bf16.msrb.mxu2 %v14579_v12  ;;  %v9162_v51 = vpop.f32.mrf.mxu2  ;;  %v8917_v12 = vperm.slane %v17224_v11, 5  ;;  %v8919_v31 = vperm.slane %v17224_v11, 7 }
0x2734   :  { %10244 = vmatpush.bf16.msrb.mxu3 %v14595_v13  ;;  %v9188_v10 = vpop.f32.mrf.mxu3  ;;  %v14634_v13 = vld [vmem:[%s17391_s9 + $0x7d0] sm:$0xff]  ;;  %v14627_v51 = vld [vmem:[%s17391_s9 + $0x798] sm:$0xff] }
0x2735   :  { %10233 = vmatpush.bf16.msra.mxu0 %v14585_v41  ;;  %v9225_v29 = vpop.f32.mrf.mxu0 }
0x2736   :  { %10259 = vmatpush.bf16.msra.mxu1 %v14601_v9  ;;  %v9226_v19 = vadd.f32 %v9225_v29, %v8913_v55  ;;  %v9251_v20 = vpop.f32.mrf.mxu1  ;;  %v14611_v9 = vld [vmem:[%s17391_s9 + $0x718] sm:$0xff] }
0x2737   :  { %v9252_v24 = vadd.f32 %v9251_v20, %v8915_v23  ;;  %10219 = vmatpush.bf16.msrb.mxu2 %v14578_v18  ;;  %v14617_v18 = vld [vmem:[%s17391_s9 + $0x748] sm:$0xff]  ;;  %v14626_v20 = vld [vmem:[%s17391_s9 + $0x790] sm:$0xff] }
0x2738   :  { %v9316_v49 = vmax.f32 %v9226_v19, 0.0  ;;  %10245 = vmatpush.bf16.msrb.mxu3 %v14594_v54  ;;  %v14633_v54 = vld [vmem:[%s17391_s9 + $0x7c8] sm:$0xff]  ;;  %v8916_v19 = vperm.slane %v17224_v11, 4 }
0x2739   :  { %v9318_v30 = vmax.f32 %v9252_v24, 0.0  ;;  %10234 = vmatpush.bf16.msra.mxu0 %v14584_v60  ;;  %v14610_v60 = vld [vmem:[%s17391_s9 + $0x710] sm:$0xff] }
0x273a   :  { %v9332_v35 = vpack.c.bf16 %v9316_v49, %v9316_v49  ;;  %10260 = vmatpush.bf16.msra.mxu1 %v14600_v28  ;;  %v8918_v28 = vperm.slane %v17224_v11, 6 }
0x273b   :  { %v9334_v45 = vpack.c.bf16 %v9318_v30, %v9318_v30  ;;  %10220 = vmatpush.bf16.msrb.mxu2 %v14577_v25  ;;  %v9212_v36 = vpop.f32.mrf.mxu2  ;;  %v14632_v25 = vld [vmem:[%s17391_s9 + $0x7c0] sm:$0xff] }
0x273c   :  { %10246 = vmatpush.bf16.msrb.mxu3 %v14593_v44  ;;  %v9213_v14 = vadd.f32 %v9212_v36, %v8912_v26  ;;  %v9238_v15 = vpop.f32.mrf.mxu3  ;;  %10235 = vmatmul.bf16.vlgmr.msra.gmra.mxu0 %v9332_v35  ;;  %v14609_v26 = vld [vmem:[%s17391_s9 + $0x708] sm:$0xff] }
0x273d   :  { %10279 = vmatpush.bf16.msrb.mxu0 %v14623_v22  ;;  %v9239_v47 = vadd.f32 %v9238_v15, %v8914_v32  ;;  %10261 = vmatmul.bf16.vlgmr.msra.gmra.mxu1 %v9334_v45  ;;  %v9227_v34 = vpop.f32.mrf.mxu0  ;;  %v14616_v22 = vld [vmem:[%s17391_s9 + $0x740] sm:$0xff]  ;;  %v14625_v32 = vld [vmem:[%s17391_s9 + $0x788] sm:$0xff] }
0x273e   :  { %10305 = vmatpush.bf16.msrb.mxu1 %v14639_v57  ;;  %v9315_v48 = vmax.f32 %v9213_v14, 0.0  ;;  %v9253_v59 = vpop.f32.mrf.mxu1  ;;  %v14608_v45 = vld [vmem:[%s17391_s9 + $0x700] sm:$0xff] }
0x273f   :  { %v9317_v46 = vmax.f32 %v9239_v47, 0.0  ;;  %10221 = vmatpush.bf16.msrb.mxu2 %v14576_v40 }
0x2740   :  { %v9331_v50 = vpack.c.bf16 %v9315_v48, %v9315_v48  ;;  %10247 = vmatpush.bf16.msrb.mxu3 %v14592_v33 }
0x2741   :  { %10280 = vmatpush.bf16.msrb.mxu0 %v14622_v0  ;;  %v9333_v39 = vpack.c.bf16 %v9317_v46, %v9317_v46 }
0x2742   :  { %10306 = vmatpush.bf16.msrb.mxu1 %v14638_v37  ;;  %10222 = vmatmul.bf16.vlgmr.msrb.gmra.mxu2 %v9331_v50  ;;  %v14624_v37 = vld [vmem:[%s17391_s9 + $0x780] sm:$0xff] }
0x2743   :  { %10266 = vmatpush.bf16.msra.mxu2 %v14615_v43  ;;  %10248 = vmatmul.bf16.vlgmr.msrb.gmra.mxu3 %v9333_v39  ;;  %v9214_v5 = vpop.f32.mrf.mxu2  ;;  %v14865_v39 = vld [vmem:[%s17393_s11 + $0x1] ss:$0 sm:$0xff] }
0x2744   :  { %10292 = vmatpush.bf16.msra.mxu3 %v14631_v27  ;;  %v9240_v53 = vpop.f32.mrf.mxu3 }
0x2745   :  { %10281 = vmatpush.bf16.msrb.mxu0 %v14621_v21  ;;  %v9277_v56 = vpop.f32.mrf.mxu0 }
0x2746   :  { %10307 = vmatpush.bf16.msrb.mxu1 %v14637_v58  ;;  %v9303_v42 = vpop.f32.mrf.mxu1  ;;  %v9278_v10 = vadd.f32 %v9277_v56, %v8917_v12 }
0x2747   :  { %10267 = vmatpush.bf16.msra.mxu2 %v14614_v52  ;;  %v9304_v29 = vadd.f32 %v9303_v42, %v8919_v31 }
0x2748   :  { %10293 = vmatpush.bf16.msra.mxu3 %v14630_v61  ;;  %v9320_v24 = vmax.f32 %v9278_v10, 0.0 }
0x2749   :  { %10282 = vmatpush.bf16.msrb.mxu0 %v14620_v62  ;;  %v9322_v49 = vmax.f32 %v9304_v29, 0.0 }
0x274a   :  { %10308 = vmatpush.bf16.msrb.mxu1 %v14636_v6  ;;  %v9336_v0 = vpack.c.bf16 %v9320_v24, %v9320_v24 }
0x274b   :  { %10268 = vmatpush.bf16.msra.mxu2 %v14613_v2  ;;  %v9264_v8 = vpop.f32.mrf.mxu2  ;;  %v9338_v11 = vpack.c.bf16 %v9322_v49, %v9322_v49 }
0x274c   :  { %10294 = vmatpush.bf16.msra.mxu3 %v14629_v7  ;;  %v9290_v41 = vpop.f32.mrf.mxu3  ;;  %v9265_v30 = vadd.f32 %v9264_v8, %v8916_v19 }
0x274d   :  { %10283 = vmatpush.bf16.msrb.mxu0 %v14619_v38  ;;  %v9279_v55 = vpop.f32.mrf.mxu0  ;;  %v9291_v35 = vadd.f32 %v9290_v41, %v8918_v28 }
0x274e   :  { %10309 = vmatpush.bf16.msrb.mxu1 %v14635_v16  ;;  %v9305_v23 = vpop.f32.mrf.mxu1  ;;  %v9319_v36 = vmax.f32 %v9265_v30, 0.0 }
0x274f   :  { %10269 = vmatpush.bf16.msra.mxu2 %v14612_v1  ;;  %v9321_v40 = vmax.f32 %v9291_v35, 0.0 }
0x2750   :  { %10295 = vmatpush.bf16.msra.mxu3 %v14628_v3  ;;  %v9335_v14 = vpack.c.bf16 %v9319_v36, %v9319_v36 }
0x2751   :  { %10284 = vmatpush.bf16.msrb.mxu0 %v14618_v63  ;;  %v9337_v15 = vpack.c.bf16 %v9321_v40, %v9321_v40 }
0x2752   :  { %10310 = vmatpush.bf16.msrb.mxu1 %v14634_v13 }
0x2753   :  { %10270 = vmatpush.bf16.msra.mxu2 %v14611_v9  ;;  %v9266_v57 = vpop.f32.mrf.mxu2 }
0x2754   :  { %10296 = vmatpush.bf16.msra.mxu3 %v14627_v51  ;;  %v9292_v44 = vpop.f32.mrf.mxu3 }
0x2755   :  { %10285 = vmatpush.bf16.msrb.mxu0 %v14617_v18 }
0x2756   :  { %10311 = vmatpush.bf16.msrb.mxu1 %v14633_v54 }
0x2757   :  { %10271 = vmatpush.bf16.msra.mxu2 %v14610_v60 }
0x2758   :  { %10297 = vmatpush.bf16.msra.mxu3 %v14626_v20 }
0x2759   :  { %10286 = vmatpush.bf16.msrb.mxu0 %v14616_v22 }
0x275a   :  { %10312 = vmatpush.bf16.msrb.mxu1 %v14632_v25 }
0x275b   :  { %10272 = vmatpush.bf16.msra.mxu2 %v14609_v26 }
0x275c   :  { %10298 = vmatpush.bf16.msra.mxu3 %v14625_v32  ;;  %10287 = vmatmul.bf16.vlgmr.msrb.gmra.mxu0 %v9336_v0 }
0x275d   :  { %10313 = vmatmul.bf16.vlgmr.msrb.gmra.mxu1 %v9338_v11 }
0x275f   :  { %10273 = vmatpush.bf16.msra.mxu2 %v14608_v45 }
0x2760   :  { %10299 = vmatpush.bf16.msra.mxu3 %v14624_v37 }
0x2762   :  { %10274 = vmatmul.bf16.vlgmr.msra.gmra.mxu2 %v9335_v14 }
0x2763   :  { %10300 = vmatmul.bf16.vlgmr.msra.gmra.mxu3 %v9337_v15 }
0x2799   :  { %v10132_v33 = vpop.f32.mrf.mxu0 }
0x279a   :  { %v10158_v43 = vpop.f32.mrf.mxu1 }
0x27a1   :  { %v10134_v47 = vpop.f32.mrf.mxu0 }
0x27a2   :  { %v10160_v34 = vpop.f32.mrf.mxu1  ;;  %v14866_v47 = vld [vmem:[%s17394_s18 + $0x1] ss:$0 sm:$0xff] }
0x27a5   :  { %v10119_v27 = vpop.f32.mrf.mxu2 }
0x27a6   :  { %v10145_v48 = vpop.f32.mrf.mxu3  ;;  %v10120_v5 = vadd.f32 %v14865_v39, %v10119_v27 }
0x27a8   :  { %v10133_v2 = vadd.f32 %v10132_v33, %v10120_v5  ;;  %v14640_v5 = vld [vmem:[%s15478_s6] sm:$0xff] }
0x27a9   :  { %v10184_v59 = vpop.f32.mrf.mxu0 }
0x27aa   :  { %v10210_v21 = vpop.f32.mrf.mxu1  ;;  %v10146_v42 = vadd.f32 %v10145_v48, %v10133_v2  ;;  %v14867_v48 = vld [vmem:[%s17395_s10 + $0x1] ss:$0 sm:$0xff] }
0x27ac   :  { %v10159_v1 = vadd.f32 %v10158_v43, %v10146_v42 }
0x27ad   :  { %v10121_v46 = vpop.f32.mrf.mxu2 }
0x27ae   :  { %v10147_v58 = vpop.f32.mrf.mxu3 }
0x27b1   :  { %v10186_v50 = vpop.f32.mrf.mxu0 }
0x27b2   :  { %v10212_v52 = vpop.f32.mrf.mxu1 }
0x27b5   :  { %v10171_v61 = vpop.f32.mrf.mxu2 }
0x27b6   :  { %v10197_v62 = vpop.f32.mrf.mxu3  ;;  %v10172_v12 = vadd.f32 %v10171_v61, %v10159_v1 }
0x27b8   :  { %v10185_v8 = vadd.f32 %v10184_v59, %v10172_v12  ;;  %v14869_v12 = vld [vmem:[#allocation7] ss:$0 sm:$0xff] }
0x27b9   :  { %v10236_v6 = vpop.f32.mrf.mxu0 }
0x27ba   :  { %v10262_v53 = vpop.f32.mrf.mxu1  ;;  %v10198_v41 = vadd.f32 %v10197_v62, %v10185_v8  ;;  %v14641_v62 = vld [vmem:[%s15478_s6 + $0x8] sm:$0xff] }
0x27bb   :  { %10415 = vmatpush.bf16.msrb.mxu2 %v14641_v62 }
0x27bc   :  { %v10211_v9 = vadd.f32 %v10210_v21, %v10198_v41 }
0x27bd   :  { %v10173_v56 = vpop.f32.mrf.mxu2 }
0x27be   :  { %v10199_v7 = vpop.f32.mrf.mxu3 }
0x27bf   :  { %10416 = vmatpush.bf16.msrb.mxu2 %v14640_v5 }
0x27c1   :  { %v10238_v38 = vpop.f32.mrf.mxu0 }
0x27c2   :  { %v10264_v16 = vpop.f32.mrf.mxu1 }
0x27c5   :  { %v10223_v3 = vpop.f32.mrf.mxu2 }
0x27c6   :  { %v10249_v63 = vpop.f32.mrf.mxu3  ;;  %v10224_v55 = vadd.f32 %v10223_v3, %v10211_v9  ;;  %v14868_v3 = vld [vmem:[#allocation6] ss:$0 sm:$0xff] }
0x27c8   :  { %v10237_v18 = vadd.f32 %v10236_v6, %v10224_v55 }
0x27ca   :  { %v10250_v10 = vadd.f32 %v10249_v63, %v10237_v18 }
0x27cc   :  { %v10263_v60 = vadd.f32 %v10262_v53, %v10250_v10 }
0x27cd   :  { %v10225_v13 = vpop.f32.mrf.mxu2 }
0x27ce   :  { %v10251_v31 = vpop.f32.mrf.mxu3 }
0x27d9   :  { %v10288_v51 = vpop.f32.mrf.mxu0 }
0x27da   :  { %v10314_v23 = vpop.f32.mrf.mxu1 }
0x27e1   :  { %v10290_v54 = vpop.f32.mrf.mxu0 }
0x27e2   :  { %v10316_v29 = vpop.f32.mrf.mxu1 }
0x27e5   :  { %v10275_v19 = vpop.f32.mrf.mxu2 }
0x27e6   :  { %v10276_v20 = vadd.f32 %v10275_v19, %v10263_v60  ;;  %v10301_v28 = vpop.f32.mrf.mxu3 }
0x27e8   :  { %v10289_v22 = vadd.f32 %v10288_v51, %v10276_v20 }
0x27ea   :  { %v10302_v24 = vadd.f32 %v10301_v28, %v10289_v22 }
0x27ec   :  { %v10315_v57 = vadd.f32 %v10314_v23, %v10302_v24 }
0x27ed   :  { %v10277_v25 = vpop.f32.mrf.mxu2 }
0x27ee   :  { %v10303_v49 = vpop.f32.mrf.mxu3  ;;  %v10318_v44 = vadd.f32 %v10315_v57, %v17062_v4 }
0x27f0   :  { %v10323_v26 = vsel %vm331_vm3, %v10318_v44, 0.0 }
0x27f1   :  { %10324 = vadd.xlane.f32.xlu1 %v10323_v26 }
0x2864   :  { %v10325_v30 = vpop.xlane.xlu1 %10324 }
0x2865   :  { %v10326_v32 = vmul.f32 %v10325_v30, %v15656_v17 }
0x2867   :  { %v10327_v35 = vsub.f32 %v10318_v44, %v10326_v32 }
0x2869   :  { %v10328_v0 = vmul.f32 %v10327_v35, %v10327_v35 }
0x286b   :  { %v10329_v11 = vsel %vm331_vm3, %v10328_v0, 0.0 }
0x286c   :  { %10330 = vadd.xlane.f32.xlu2 %v10329_v11 }
0x28df   :  { %v10331_v45 = vpop.xlane.xlu2 %10330 }
0x28e0   :  { %v10332_v36 = vmul.f32 %v10331_v45, %v15656_v17 }
0x28e2   :  { %v10333_v37 = vadd.f32 1e-05, %v10332_v36 }
0x28e4   :  { %15031 = vrsqrt.f32 %v10333_v37  ;;  %vm10340_vm15 = vweird.f32 %v10333_v37 }
0x28ea   :  { %v15032_v40 = vpop.eup %15031 }
0x28eb   :  { %v10335_v4 = vmul.f32 %v15032_v40, %v10333_v37  ;;  %vm10341_vm2 = vweird.f32 %v15032_v40 }
0x28ec   :  { %vm10342_vm0 = vmor %vm10340_vm15, %vm10341_vm2 }
0x28ed   :  { %v10336_v14 = vmul.f32 %v15032_v40, %v10335_v4 }
0x28ef   :  { %v10337_v15 = vmul.f32 0.5, %v10336_v14 }
0x28f1   :  { %v10338_v33 = vsub.f32 1.5, %v10337_v15 }
0x28f3   :  { %v10339_v43 = vmul.f32 %v15032_v40, %v10338_v33 }
0x28f5   :  { %v10343_v34 = vsel %vm10342_vm0, %v15032_v40, %v10339_v43 }
0x28f6   :  { %v10344_v27 = vmul.f32 %v10343_v34, %v10327_v35 }
0x28f8   :  { %v10348_v59 = vmul.f32 %v14866_v47, %v10344_v27 }
0x28fa   :  { %v10352_v21 = vadd.f32 %v14867_v48, %v10348_v59 }
0x28fc   :  { %v10355_v46 = vsel %vm331_vm3, %v10352_v21, 0.0 }
0x28fd   :  { %10356 = vadd.xlane.f32.xlu0 %v10355_v46 }
0x2970   :  { %v10357_v58 = vpop.xlane.xlu0 %10356 }
0x2971   :  { %v10358_v50 = vmul.f32 %v10357_v58, %v15656_v17 }
0x2973   :  { %v10359_v52 = vsub.f32 %v10352_v21, %v10358_v50 }
0x2975   :  { %v10360_v39 = vmul.f32 %v10359_v52, %v10359_v52 }
0x2977   :  { %v10361_v61 = vsel %vm331_vm3, %v10360_v39, 0.0 }
0x2978   :  { %10362 = vadd.xlane.f32.xlu1 %v10361_v61 }
0x29eb   :  { %v10363_v6 = vpop.xlane.xlu1 %10362 }
0x29ec   :  { %v10364_v53 = vmul.f32 %v10363_v6, %v15656_v17  ;;  %v14870_v17 = vld [vmem:[#allocation9] ss:$0 sm:$0xff] }
0x29ee   :  { %v10365_v2 = vadd.f32 1e-05, %v10364_v53 }
0x29f0   :  { %15033 = vrsqrt.f32 %v10365_v2  ;;  %vm10372_vm7 = vweird.f32 %v10365_v2 }
0x29f6   :  { %v15034_v56 = vpop.eup %15033 }
0x29f7   :  { %v10367_v7 = vmul.f32 %v15034_v56, %v10365_v2  ;;  %vm10373_vm1 = vweird.f32 %v15034_v56 }
0x29f8   :  { %vm10374_vm8 = vmor %vm10372_vm7, %vm10373_vm1 }
0x29f9   :  { %v10368_v42 = vmul.f32 %v15034_v56, %v10367_v7 }
0x29fb   :  { %v10369_v38 = vmul.f32 0.5, %v10368_v42 }
0x29fd   :  { %v10370_v16 = vsub.f32 1.5, %v10369_v38 }
0x29ff   :  { %v10371_v1 = vmul.f32 %v15034_v56, %v10370_v16 }
0x2a01   :  { %v10375_v63 = vsel %vm10374_vm8, %v15034_v56, %v10371_v1 }
0x2a02   :  { %v10376_v8 = vmul.f32 %v10375_v63, %v10359_v52 }
0x2a04   :  { %v10380_v13 = vmul.f32 %v14868_v3, %v10376_v8 }
0x2a06   :  { %v10384_v31 = vadd.f32 %v14869_v12, %v10380_v13 }
0x2a08   :  { %v10389_v41 = vpack.c.bf16 %v10384_v31, %v10384_v31 }
0x2a0a   :  { %13971 = vmatmul.msk.bf16.vlgmr.msrb.gmra.mxu2 %vm331_vm3, %v10389_v41 }
0x2a8d   :  { %v10418_v9 = vpop.f32.mrf.mxu2 }
0x2a8e   :  { %v10419_v55 = vadd.f32 %v14870_v17, %v10418_v9 }
0x2a90   :  { %10423 = vst.msk [vmem:[%s15488_s24] sm:$0xff] %vm10422_vm9, %v10419_v55 }
0x2a95   :  { %v10420_v51 = vpop.f32.mrf.mxu2 }
0x2a96   :  { %10428 = vsyncpa [#allocation3], 1 }
0x2a97   :  { %10429 = vsyncpa [#allocation5], 1 }
0x2a98   :  { %10430 = vsyncpa [#allocation8], 1 }

</bundles_post_ra>
